<compile_context>
chip_gen: v5e
topology: v5e:2x2
jax: 0.10.0
libtpu: 0.0.40
codegen_flags: <defaults>
</compile_context>

<pallas_src>
import numpy as np
import jax
import jax.numpy as jnp
from jax import lax
from jax.experimental import pallas as pl
from jax.experimental.pallas import tpu as pltpu


# ----------------------------------------------------------------------------
# Fused kernel: conv1+BN+ReLU -> conv2+BN+ReLU -> bilinear x2, Nb images/step.
# ----------------------------------------------------------------------------
def up_fused_kernel(x_ref, sh_ref, m1_ref, of1_ref, m2_ref, of2_ref,
                    ah_ref, bw_ref, o_ref):
    # x_ref  : (Nb, H, W*Cin)   f32  input rows, channel-interleaved lanes
    # sh_ref : (2, Nb*H, Nb*H)  bf16 block-diag row shift-down / shift-up matrices
    # m1_ref : (3, W*Cin, W*C)  bf16 conv1 banded (block-Toeplitz) matrices, one
    #                                per kh; BN scale + horizontal padding folded in
    # of1_ref: (1, W*C)         f32  folded BN offset (tiled over W)
    # m2_ref : (3, W*C, W*C)    bf16 conv2 banded matrices
    # of2_ref: (1, W*C)         f32
    # ah_ref : (Nb*2H, Nb*H)    bf16 block-diag row-interp matrix kron(I_Nb, ah)
    # bw_ref : (W*C, 2W*C)      bf16 column-interp matrix kron(aw.T, I_C)
    # o_ref  : (Nb, 2H, 2W*C)   f32  lane-dense output (unmasked full-width vst)
    nb, h, w_cin = x_ref.shape
    h2, wc2 = o_ref.shape[1], o_ref.shape[2]

    sh_dn = sh_ref[0]          # row i <- row i-1 (zero at each image's top row)
    sh_up = sh_ref[1]          # row i <- row i+1 (zero at each image's bottom row)

    def conv_bn_relu(x2d, m_ref, of_ref):
        # y[i] = x[i-1] @ m[kh=0] + x[i] @ m[kh=1] + x[i+1] @ m[kh=2]
        # Vertical 'same' padding via exact {0,1} shift matmuls (MXU, not VPU/XLU).
        x_dn = jnp.dot(sh_dn, x2d,
                       preferred_element_type=jnp.float32).astype(jnp.bfloat16)
        x_up = jnp.dot(sh_up, x2d,
                       preferred_element_type=jnp.float32).astype(jnp.bfloat16)
        acc = (jnp.dot(x_dn, m_ref[0], preferred_element_type=jnp.float32)
               + jnp.dot(x2d, m_ref[1], preferred_element_type=jnp.float32)
               + jnp.dot(x_up, m_ref[2], preferred_element_type=jnp.float32))
        # BN scale already folded into the weights; only offset + ReLU remain.
        return jnp.maximum(acc + of_ref[...], 0.0).astype(jnp.bfloat16)

    # (Nb, H, W*Cin) -> (Nb*H, W*Cin): leading-dim merge only (free, lanes unchanged).
    x2d = x_ref[...].reshape(nb * h, w_cin).astype(jnp.bfloat16)
    a1 = conv_bn_relu(x2d, m1_ref, of1_ref)          # (Nb*H, W*C)  bf16
    a2 = conv_bn_relu(a1, m2_ref, of2_ref)           # (Nb*H, W*C)  bf16

    # Bilinear 2x upsample, COLUMN interpolation first (only H rows), then ROW
    # interpolation (block-diagonal over the Nb images) — swapped order halves
    # the dominant matmul MACs; weights {0.25, 0.75, 1.0} are exact in bf16.
    t = jnp.dot(a2, bw_ref[...], preferred_element_type=jnp.float32)   # (Nb*H, 2W*C)
    out = jnp.dot(ah_ref[...], t.astype(jnp.bfloat16),
                  preferred_element_type=jnp.float32)                  # (Nb*2H, 2W*C)
    o_ref[...] = out.reshape(nb, h2, wc2)


def up_block(x, sh, m1, of1, m2, of2, ah_blk, bw, nb):
    n, h, w_cin = x.shape
    wc = m1.shape[2]
    wc2 = bw.shape[1]
    h2 = ah_blk.shape[0] // nb
    assert n % nb == 0, (n, nb)
    return pl.pallas_call(
        up_fused_kernel,
        out_shape=jax.ShapeDtypeStruct((n, h2, wc2), jnp.float32),
        grid_spec=pltpu.PrefetchScalarGridSpec(
            num_scalar_prefetch=0,
            grid=(n // nb,),
            in_specs=[
                pl.BlockSpec((nb, h, w_cin), lambda i: (i, 0, 0)),
                pl.BlockSpec((2, nb * h, nb * h), lambda i: (0, 0, 0)),
                pl.BlockSpec((3, w_cin, wc), lambda i: (0, 0, 0)),
                pl.BlockSpec((1, wc), lambda i: (0, 0)),
                pl.BlockSpec((3, wc, wc), lambda i: (0, 0, 0)),
                pl.BlockSpec((1, wc), lambda i: (0, 0)),
                pl.BlockSpec((nb * h2, nb * h), lambda i: (0, 0)),
                pl.BlockSpec((wc, wc2), lambda i: (0, 0)),
            ],
            out_specs=pl.BlockSpec((nb, h2, wc2), lambda i: (i, 0, 0)),
        ),
        compiler_params=pltpu.CompilerParams(
            dimension_semantics=("parallel",),
            vmem_limit_bytes=32 * 1024 * 1024),
    )(x, sh, m1, of1, m2, of2, ah_blk, bw)


# ----------------------------------------------------------------------------
# Constant construction (wrapper side, done once): banded conv matrices,
# shift matrices, interpolation matrices, folded-BN parameters.
# ----------------------------------------------------------------------------
def bilinear_matrix(in_size, out_size):
    """Interpolation matrix matching F.interpolate(mode='bilinear',
    align_corners=False) semantics (half-pixel centers, edge-clamped)."""
    scale = in_size / out_size
    a = np.zeros((out_size, in_size), np.float32)
    for i in range(out_size):
        src = max((i + 0.5) * scale - 0.5, 0.0)
        x0 = int(np.floor(src))
        frac = src - x0
        x1 = min(x0 + 1, in_size - 1)
        a[i, x0] += 1.0 - frac
        a[i, x1] += frac
    return a


def conv_band_matrices(w, width):
    """3x3 conv as 3 banded block-Toeplitz matrices (one per kh).
    w: (3, 3, Cin, C) with BN scale folded in.  m[kh] has shape (W*Cin, W*C) and
    bakes in the kw taps AND the horizontal zero 'same' padding."""
    cin, c = w.shape[2], w.shape[3]
    m = np.zeros((3, width * cin, width * c), np.float32)
    for kh in range(3):
        for kw in range(3):
            for j in range(width):
                p = j + kw - 1
                if 0 <= p < width:
                    m[kh, p * cin:(p + 1) * cin, j * c:(j + 1) * c] = w[kh, kw]
    return m


def row_shift_matrices(h, nb):
    """Block-diagonal row-shift matrices (exact {0,1} entries, bf16-safe):
    sh[0] @ X -> row i gets row i-1 (zero at each image top),
    sh[1] @ X -> row i gets row i+1 (zero at each image bottom)."""
    dn = np.kron(np.eye(nb, dtype=np.float32), np.eye(h, k=-1, dtype=np.float32))
    up = np.kron(np.eye(nb, dtype=np.float32), np.eye(h, k=1, dtype=np.float32))
    return np.stack([dn, up])


def make_params(input_channels, key):
    k1, k2, k3, k4 = jax.random.split(key, 4)
    co = 32
    w1 = 0.1 * jax.random.normal(k1, (3, 3, input_channels, co), jnp.float32)  # HWIO
    b1 = 0.1 * jax.random.normal(k2, (co,), jnp.float32)
    w2 = 0.1 * jax.random.normal(k3, (3, 3, co, co), jnp.float32)
    b2 = 0.1 * jax.random.normal(k4, (co,), jnp.float32)
    # Deterministic (non-trivial) BN eval-mode statistics.
    idx = jnp.arange(co, dtype=jnp.float32)
    return dict(w1=w1, b1=b1, gamma1=1.0 + 0.01 * idx, beta1=0.01 * idx,
                mean1=0.02 * idx, var1=1.0 + 0.05 * idx,
                w2=w2, b2=b2, gamma2=1.0 - 0.005 * idx, beta2=-0.01 * idx,
                mean2=-0.01 * idx, var2=1.0 + 0.03 * idx)


def prep_kernel_constants(raw, h, w, nb, eps=1e-5):
    def fold(wt, b, gamma, beta, mean, var):
        scale = np.asarray(gamma) / np.sqrt(np.asarray(var) + eps)
        w_folded = np.asarray(wt) * scale                      # scale into weights
        offset = np.asarray(beta) + (np.asarray(b) - np.asarray(mean)) * scale
        return w_folded.astype(np.float32), offset.astype(np.float32)

    w1f, of1 = fold(raw['w1'], raw['b1'], raw['gamma1'], raw['beta1'],
                    raw['mean1'], raw['var1'])
    w2f, of2 = fold(raw['w2'], raw['b2'], raw['gamma2'], raw['beta2'],
                    raw['mean2'], raw['var2'])
    c = w1f.shape[3]

    m1 = conv_band_matrices(w1f, w)                            # (3, W*Cin, W*C)
    m2 = conv_band_matrices(w2f, w)                            # (3, W*C,  W*C)
    sh = row_shift_matrices(h, nb)                             # (2, Nb*H, Nb*H)
    ah = bilinear_matrix(h, 2 * h)                             # (2H, H)
    aw = bilinear_matrix(w, 2 * w)                             # (2W, W)
    ah_blk = np.kron(np.eye(nb, dtype=np.float32), ah)         # (Nb*2H, Nb*H)
    bw = np.kron(aw.T, np.eye(c, dtype=np.float32))            # (W*C, 2W*C)

    return dict(
        sh=jnp.asarray(sh, jnp.bfloat16),
        m1=jnp.asarray(m1, jnp.bfloat16),
        of1=jnp.asarray(np.tile(of1, w).reshape(1, w * c), jnp.float32),
        m2=jnp.asarray(m2, jnp.bfloat16),
        of2=jnp.asarray(np.tile(of2, w).reshape(1, w * c), jnp.float32),
        ah=jnp.asarray(ah_blk, jnp.bfloat16),
        bw=jnp.asarray(bw, jnp.bfloat16),
    )


# ----------------------------------------------------------------------------
# End-to-end forward (NCHW in / NCHW out to match the PyTorch module; the
# kernel itself runs on lane-dense (rows, W*C) slabs).
# ----------------------------------------------------------------------------
@jax.jit
def up_forward(x_nchw, sh, m1, of1, m2, of2, ah_blk, bw):
    n, cin, h, w = x_nchw.shape
    c = of1.shape[1] // w
    nb = ah_blk.shape[1] // h
    x = jnp.transpose(x_nchw, (0, 2, 3, 1)).reshape(n, h, w * cin)
    y = up_block(x.astype(jnp.float32), sh, m1, of1, m2, of2, ah_blk, bw, nb)
    y = y.reshape(n, 2 * h, 2 * w, c)
    return jnp.transpose(y, (0, 3, 1, 2))                      # NCHW


# ----------------------------------------------------------------------------
# Pure-JAX f32 reference (same math as the PyTorch module, eval-mode BN).
# ----------------------------------------------------------------------------
def reference_up(x_nchw, raw, eps=1e-5):
    x = jnp.transpose(x_nchw, (0, 2, 3, 1)).astype(jnp.float32)

    def conv_bn_relu(hx, wt, b, gamma, beta, mean, var):
        y = lax.conv_general_dilated(hx, wt, window_strides=(1, 1), padding='SAME',
                                     dimension_numbers=('NHWC', 'HWIO', 'NHWC'))
        y = (y + b - mean) / jnp.sqrt(var + eps) * gamma + beta
        return jnp.maximum(y, 0.0)

    y = conv_bn_relu(x, raw['w1'], raw['b1'], raw['gamma1'], raw['beta1'],
                     raw['mean1'], raw['var1'])
    y = conv_bn_relu(y, raw['w2'], raw['b2'], raw['gamma2'], raw['beta2'],
                     raw['mean2'], raw['var2'])
    h, w = y.shape[1], y.shape[2]
    ah = jnp.asarray(bilinear_matrix(h, 2 * h))
    aw = jnp.asarray(bilinear_matrix(w, 2 * w))
    out = jnp.einsum('oi,nijc,pj->nopc', ah, y, aw)
    return jnp.transpose(out, (0, 3, 1, 2))


if __name__ == "__main__":
    N, Cin, H, W = 2, 4, 16, 16
    NB = 2                       # images per grid step (batch blocking)
    key = jax.random.PRNGKey(0)
    kx, kp = jax.random.split(key)
    x = jax.random.normal(kx, (N, Cin, H, W), jnp.float32)
    raw = make_params(Cin, kp)
    consts = prep_kernel_constants(raw, H, W, NB)

    out = up_forward(x, consts['sh'], consts['m1'], consts['of1'],
                     consts['m2'], consts['of2'], consts['ah'], consts['bw'])
    out = jax.block_until_ready(out)
    assert out.shape == (N, 32, 2 * H, 2 * W), out.shape

    ref = reference_up(x, raw)
    max_err = float(jnp.max(jnp.abs(out - ref)))
    assert max_err < 0.1, f"max abs err {max_err}"   # bf16 MXU tolerance
    print("KERNEL_OK")
</pallas_src>

<mosaic_0001>
module attributes {stable_mosaic.version = 11 : i64} {
  func.func @up_fused_kernel(%arg0: i32, %arg1: memref<2x16x64xf32, #tpu.memory_space<vmem>>, %arg2: memref<2x32x32xbf16, #tpu.memory_space<vmem>>, %arg3: memref<3x64x512xbf16, #tpu.memory_space<vmem>>, %arg4: memref<1x512xf32, #tpu.memory_space<vmem>>, %arg5: memref<3x512x512xbf16, #tpu.memory_space<vmem>>, %arg6: memref<1x512xf32, #tpu.memory_space<vmem>>, %arg7: memref<64x32xbf16, #tpu.memory_space<vmem>>, %arg8: memref<512x1024xbf16, #tpu.memory_space<vmem>>, %arg9: memref<2x32x1024xf32, #tpu.memory_space<vmem>>) attributes {dimension_semantics = [#tpu.dimension_semantics<parallel>], iteration_bounds = array<i64: 1>, scalar_prefetch = 0 : i64, scratch_operands = 0 : i64, tpu.core_type = #tpu.core_type<tc>, window_params = [{transform_indices = @transform_0, window_bounds = array<i64: 2, 16, 64>}, {pipeline_mode = #tpu.pipeline_mode<synchronous>, transform_indices = @transform_1, window_bounds = array<i64: 2, 32, 32>}, {pipeline_mode = #tpu.pipeline_mode<synchronous>, transform_indices = @transform_2, window_bounds = array<i64: 3, 64, 512>}, {pipeline_mode = #tpu.pipeline_mode<synchronous>, transform_indices = @transform_3, window_bounds = array<i64: 1, 512>}, {pipeline_mode = #tpu.pipeline_mode<synchronous>, transform_indices = @transform_4, window_bounds = array<i64: 3, 512, 512>}, {pipeline_mode = #tpu.pipeline_mode<synchronous>, transform_indices = @transform_5, window_bounds = array<i64: 1, 512>}, {pipeline_mode = #tpu.pipeline_mode<synchronous>, transform_indices = @transform_6, window_bounds = array<i64: 64, 32>}, {pipeline_mode = #tpu.pipeline_mode<synchronous>, transform_indices = @transform_7, window_bounds = array<i64: 512, 1024>}, {transform_indices = @transform_8, window_bounds = array<i64: 2, 32, 1024>}]} {
    %c0 = arith.constant 0 : index
    %c0_0 = arith.constant 0 : index
    %c0_1 = arith.constant 0 : index
    %0 = vector.load %arg2[%c0, %c0_0, %c0_1] : memref<2x32x32xbf16, #tpu.memory_space<vmem>>, vector<1x32x32xbf16>
    %1 = vector.shape_cast %0 : vector<1x32x32xbf16> to vector<32x32xbf16>
    %c1 = arith.constant 1 : index
    %c0_2 = arith.constant 0 : index
    %c0_3 = arith.constant 0 : index
    %2 = vector.load %arg2[%c1, %c0_2, %c0_3] : memref<2x32x32xbf16, #tpu.memory_space<vmem>>, vector<1x32x32xbf16>
    %3 = vector.shape_cast %2 : vector<1x32x32xbf16> to vector<32x32xbf16>
    %c0_4 = arith.constant 0 : index
    %c0_5 = arith.constant 0 : index
    %c0_6 = arith.constant 0 : index
    %4 = vector.load %arg1[%c0_4, %c0_5, %c0_6] : memref<2x16x64xf32, #tpu.memory_space<vmem>>, vector<2x16x64xf32>
    %5 = vector.shape_cast %4 : vector<2x16x64xf32> to vector<32x64xf32>
    %6 = arith.truncf %5 : vector<32x64xf32> to vector<32x64xbf16>
    %cst = arith.constant dense<0.000000e+00> : vector<32x64xf32>
    %7 = tpu.matmul %1, %6, %cst {dimension_numbers = #tpu.dot_dimension_numbers<[1], [0], [0], [1], [0, 0, 1, 1], [], []>} : vector<32x32xbf16>, vector<32x64xbf16>, vector<32x64xf32> -> vector<32x64xf32>
    %8 = arith.truncf %7 : vector<32x64xf32> to vector<32x64xbf16>
    %cst_7 = arith.constant dense<0.000000e+00> : vector<32x64xf32>
    %9 = tpu.matmul %3, %6, %cst_7 {dimension_numbers = #tpu.dot_dimension_numbers<[1], [0], [0], [1], [0, 0, 1, 1], [], []>} : vector<32x32xbf16>, vector<32x64xbf16>, vector<32x64xf32> -> vector<32x64xf32>
    %10 = arith.truncf %9 : vector<32x64xf32> to vector<32x64xbf16>
    %c0_8 = arith.constant 0 : index
    %c0_9 = arith.constant 0 : index
    %c0_10 = arith.constant 0 : index
    %11 = vector.load %arg3[%c0_8, %c0_9, %c0_10] : memref<3x64x512xbf16, #tpu.memory_space<vmem>>, vector<1x64x512xbf16>
    %12 = vector.shape_cast %11 : vector<1x64x512xbf16> to vector<64x512xbf16>
    %cst_11 = arith.constant dense<0.000000e+00> : vector<32x512xf32>
    %13 = tpu.matmul %8, %12, %cst_11 {dimension_numbers = #tpu.dot_dimension_numbers<[1], [0], [0], [1], [0, 0, 1, 1], [], []>} : vector<32x64xbf16>, vector<64x512xbf16>, vector<32x512xf32> -> vector<32x512xf32>
    %c1_12 = arith.constant 1 : index
    %c0_13 = arith.constant 0 : index
    %c0_14 = arith.constant 0 : index
    %14 = vector.load %arg3[%c1_12, %c0_13, %c0_14] : memref<3x64x512xbf16, #tpu.memory_space<vmem>>, vector<1x64x512xbf16>
    %15 = vector.shape_cast %14 : vector<1x64x512xbf16> to vector<64x512xbf16>
    %cst_15 = arith.constant dense<0.000000e+00> : vector<32x512xf32>
    %16 = tpu.matmul %6, %15, %cst_15 {dimension_numbers = #tpu.dot_dimension_numbers<[1], [0], [0], [1], [0, 0, 1, 1], [], []>} : vector<32x64xbf16>, vector<64x512xbf16>, vector<32x512xf32> -> vector<32x512xf32>
    %17 = arith.addf %13, %16 : vector<32x512xf32>
    %c2 = arith.constant 2 : index
    %c0_16 = arith.constant 0 : index
    %c0_17 = arith.constant 0 : index
    %18 = vector.load %arg3[%c2, %c0_16, %c0_17] : memref<3x64x512xbf16, #tpu.memory_space<vmem>>, vector<1x64x512xbf16>
    %19 = vector.shape_cast %18 : vector<1x64x512xbf16> to vector<64x512xbf16>
    %cst_18 = arith.constant dense<0.000000e+00> : vector<32x512xf32>
    %20 = tpu.matmul %10, %19, %cst_18 {dimension_numbers = #tpu.dot_dimension_numbers<[1], [0], [0], [1], [0, 0, 1, 1], [], []>} : vector<32x64xbf16>, vector<64x512xbf16>, vector<32x512xf32> -> vector<32x512xf32>
    %21 = arith.addf %17, %20 : vector<32x512xf32>
    %c0_19 = arith.constant 0 : index
    %c0_20 = arith.constant 0 : index
    %22 = vector.load %arg4[%c0_19, %c0_20] : memref<1x512xf32, #tpu.memory_space<vmem>>, vector<1x512xf32>
    %23 = vector.broadcast %22 : vector<1x512xf32> to vector<32x512xf32>
    %24 = arith.addf %21, %23 : vector<32x512xf32>
    %cst_21 = arith.constant 0.000000e+00 : f32
    %25 = vector.broadcast %cst_21 : f32 to vector<32x512xf32>
    %26 = arith.maximumf %24, %25 : vector<32x512xf32>
    %27 = arith.truncf %26 : vector<32x512xf32> to vector<32x512xbf16>
    %cst_22 = arith.constant dense<0.000000e+00> : vector<32x512xf32>
    %28 = tpu.matmul %1, %27, %cst_22 {dimension_numbers = #tpu.dot_dimension_numbers<[1], [0], [0], [1], [0, 0, 1, 1], [], []>} : vector<32x32xbf16>, vector<32x512xbf16>, vector<32x512xf32> -> vector<32x512xf32>
    %29 = arith.truncf %28 : vector<32x512xf32> to vector<32x512xbf16>
    %cst_23 = arith.constant dense<0.000000e+00> : vector<32x512xf32>
    %30 = tpu.matmul %3, %27, %cst_23 {dimension_numbers = #tpu.dot_dimension_numbers<[1], [0], [0], [1], [0, 0, 1, 1], [], []>} : vector<32x32xbf16>, vector<32x512xbf16>, vector<32x512xf32> -> vector<32x512xf32>
    %31 = arith.truncf %30 : vector<32x512xf32> to vector<32x512xbf16>
    %c0_24 = arith.constant 0 : index
    %c0_25 = arith.constant 0 : index
    %c0_26 = arith.constant 0 : index
    %32 = vector.load %arg5[%c0_24, %c0_25, %c0_26] : memref<3x512x512xbf16, #tpu.memory_space<vmem>>, vector<1x512x512xbf16>
    %33 = vector.shape_cast %32 : vector<1x512x512xbf16> to vector<512x512xbf16>
    %cst_27 = arith.constant dense<0.000000e+00> : vector<32x512xf32>
    %34 = tpu.matmul %29, %33, %cst_27 {dimension_numbers = #tpu.dot_dimension_numbers<[1], [0], [0], [1], [0, 0, 1, 1], [], []>} : vector<32x512xbf16>, vector<512x512xbf16>, vector<32x512xf32> -> vector<32x512xf32>
    %c1_28 = arith.constant 1 : index
    %c0_29 = arith.constant 0 : index
    %c0_30 = arith.constant 0 : index
    %35 = vector.load %arg5[%c1_28, %c0_29, %c0_30] : memref<3x512x512xbf16, #tpu.memory_space<vmem>>, vector<1x512x512xbf16>
    %36 = vector.shape_cast %35 : vector<1x512x512xbf16> to vector<512x512xbf16>
    %cst_31 = arith.constant dense<0.000000e+00> : vector<32x512xf32>
    %37 = tpu.matmul %27, %36, %cst_31 {dimension_numbers = #tpu.dot_dimension_numbers<[1], [0], [0], [1], [0, 0, 1, 1], [], []>} : vector<32x512xbf16>, vector<512x512xbf16>, vector<32x512xf32> -> vector<32x512xf32>
    %38 = arith.addf %34, %37 : vector<32x512xf32>
    %c2_32 = arith.constant 2 : index
    %c0_33 = arith.constant 0 : index
    %c0_34 = arith.constant 0 : index
    %39 = vector.load %arg5[%c2_32, %c0_33, %c0_34] : memref<3x512x512xbf16, #tpu.memory_space<vmem>>, vector<1x512x512xbf16>
    %40 = vector.shape_cast %39 : vector<1x512x512xbf16> to vector<512x512xbf16>
    %cst_35 = arith.constant dense<0.000000e+00> : vector<32x512xf32>
    %41 = tpu.matmul %31, %40, %cst_35 {dimension_numbers = #tpu.dot_dimension_numbers<[1], [0], [0], [1], [0, 0, 1, 1], [], []>} : vector<32x512xbf16>, vector<512x512xbf16>, vector<32x512xf32> -> vector<32x512xf32>
    %42 = arith.addf %38, %41 : vector<32x512xf32>
    %c0_36 = arith.constant 0 : index
    %c0_37 = arith.constant 0 : index
    %43 = vector.load %arg6[%c0_36, %c0_37] : memref<1x512xf32, #tpu.memory_space<vmem>>, vector<1x512xf32>
    %44 = vector.broadcast %43 : vector<1x512xf32> to vector<32x512xf32>
    %45 = arith.addf %42, %44 : vector<32x512xf32>
    %cst_38 = arith.constant 0.000000e+00 : f32
    %46 = vector.broadcast %cst_38 : f32 to vector<32x512xf32>
    %47 = arith.maximumf %45, %46 : vector<32x512xf32>
    %48 = arith.truncf %47 : vector<32x512xf32> to vector<32x512xbf16>
    %c0_39 = arith.constant 0 : index
    %c0_40 = arith.constant 0 : index
    %49 = vector.load %arg8[%c0_39, %c0_40] : memref<512x1024xbf16, #tpu.memory_space<vmem>>, vector<512x1024xbf16>
    %cst_41 = arith.constant dense<0.000000e+00> : vector<32x1024xf32>
    %50 = tpu.matmul %48, %49, %cst_41 {dimension_numbers = #tpu.dot_dimension_numbers<[1], [0], [0], [1], [0, 0, 1, 1], [], []>} : vector<32x512xbf16>, vector<512x1024xbf16>, vector<32x1024xf32> -> vector<32x1024xf32>
    %c0_42 = arith.constant 0 : index
    %c0_43 = arith.constant 0 : index
    %51 = vector.load %arg7[%c0_42, %c0_43] : memref<64x32xbf16, #tpu.memory_space<vmem>>, vector<64x32xbf16>
    %52 = arith.truncf %50 : vector<32x1024xf32> to vector<32x1024xbf16>
    %cst_44 = arith.constant dense<0.000000e+00> : vector<64x1024xf32>
    %53 = tpu.matmul %51, %52, %cst_44 {dimension_numbers = #tpu.dot_dimension_numbers<[1], [0], [0], [1], [0, 0, 1, 1], [], []>} : vector<64x32xbf16>, vector<32x1024xbf16>, vector<64x1024xf32> -> vector<64x1024xf32>
    %54 = vector.shape_cast %53 : vector<64x1024xf32> to vector<2x32x1024xf32>
    %c0_45 = arith.constant 0 : index
    %c0_46 = arith.constant 0 : index
    %c0_47 = arith.constant 0 : index
    %55 = vector.load %arg9[%c0_45, %c0_46, %c0_47] : memref<2x32x1024xf32, #tpu.memory_space<vmem>>, vector<2x32x1024xf32>
    tpu.vector_store %arg9[%c0_45, %c0_46, %c0_47], %54 {strides = array<i32>} : memref<2x32x1024xf32, #tpu.memory_space<vmem>>, vector<2x32x1024xf32>,
    return
  }
  func.func @transform_0(%arg0: i32) -> (i32, i32, i32) {
    %c0_i32 = arith.constant 0 : i32
    %c0_i32_0 = arith.constant 0 : i32
    %c0_i32_1 = arith.constant 0 : i32
    return %arg0, %c0_i32, %c0_i32_0 : i32, i32, i32
  }
  func.func @transform_1(%arg0: i32) -> (i32, i32, i32) {
    %c0_i32 = arith.constant 0 : i32
    %c0_i32_0 = arith.constant 0 : i32
    %c0_i32_1 = arith.constant 0 : i32
    %c0_i32_2 = arith.constant 0 : i32
    return %c0_i32, %c0_i32_0, %c0_i32_1 : i32, i32, i32
  }
  func.func @transform_2(%arg0: i32) -> (i32, i32, i32) {
    %c0_i32 = arith.constant 0 : i32
    %c0_i32_0 = arith.constant 0 : i32
    %c0_i32_1 = arith.constant 0 : i32
    %c0_i32_2 = arith.constant 0 : i32
    return %c0_i32, %c0_i32_0, %c0_i32_1 : i32, i32, i32
  }
  func.func @transform_3(%arg0: i32) -> (i32, i32) {
    %c0_i32 = arith.constant 0 : i32
    %c0_i32_0 = arith.constant 0 : i32
    %c0_i32_1 = arith.constant 0 : i32
    return %c0_i32, %c0_i32_0 : i32, i32
  }
  func.func @transform_4(%arg0: i32) -> (i32, i32, i32) {
    %c0_i32 = arith.constant 0 : i32
    %c0_i32_0 = arith.constant 0 : i32
    %c0_i32_1 = arith.constant 0 : i32
    %c0_i32_2 = arith.constant 0 : i32
    return %c0_i32, %c0_i32_0, %c0_i32_1 : i32, i32, i32
  }
  func.func @transform_5(%arg0: i32) -> (i32, i32) {
    %c0_i32 = arith.constant 0 : i32
    %c0_i32_0 = arith.constant 0 : i32
    %c0_i32_1 = arith.constant 0 : i32
    return %c0_i32, %c0_i32_0 : i32, i32
  }
  func.func @transform_6(%arg0: i32) -> (i32, i32) {
    %c0_i32 = arith.constant 0 : i32
    %c0_i32_0 = arith.constant 0 : i32
    %c0_i32_1 = arith.constant 0 : i32
    return %c0_i32, %c0_i32_0 : i32, i32
  }
  func.func @transform_7(%arg0: i32) -> (i32, i32) {
    %c0_i32 = arith.constant 0 : i32
    %c0_i32_0 = arith.constant 0 : i32
    %c0_i32_1 = arith.constant 0 : i32
    return %c0_i32, %c0_i32_0 : i32, i32
  }
  func.func @transform_8(%arg0: i32) -> (i32, i32, i32) {
    %c0_i32 = arith.constant 0 : i32
    %c0_i32_0 = arith.constant 0 : i32
    %c0_i32_1 = arith.constant 0 : i32
    return %arg0, %c0_i32, %c0_i32_0 : i32, i32, i32
  }
}

</mosaic_0001>

<bundles_post_ra>
// kernel: up_forward.1
= control target key start
LH: loop header
LB: loop body
LE: loop exit
PB: predicated region body
PF: predicated region fallthrough
CT: control target
= control target key end

     0   :  { %13 = vsyncpa [#allocation3], 0  ;;  %s11706_s0 = inlined_call_operand.vmem [shape: f32[2,16,64], index: 0, kind: input, shape index: {}]   ;;  %s11707_s1 = inlined_call_operand.hbm [shape: bf16[2,32,32], index: 1, kind: input, shape index: {}]   ;;  %s11708_s2 = inlined_call_operand.hbm [shape: bf16[3,64,512], index: 2, kind: input, shape index: {}]   ;;  %s11709_s3 = inlined_call_operand.hbm [shape: f32[1,512], index: 3, kind: input, shape index: {}]   ;;  %s11710_s4 = inlined_call_operand.hbm [shape: bf16[3,512,512], index: 4, kind: input, shape index: {}]   ;;  %s11711_s5 = inlined_call_operand.hbm [shape: f32[1,512], index: 5, kind: input, shape index: {}]   ;;  %s11712_s6 = inlined_call_operand.vmem [shape: bf16[64,32], index: 6, kind: input, shape index: {}]   ;;  %s11713_s7 = inlined_call_operand.hbm [shape: bf16[512,1024], index: 7, kind: input, shape index: {}]   ;;  %s11714_s8 = inlined_call_operand.vmem [shape: f32[2,32,1024], index: 8, kind: output, shape index: {}]  }
   0x1   :  { %14 = vsyncpa [#allocation5], 0 }
   0x2   :  { %15 = vsyncpa [#allocation8], 0  ;;  %s36_s29 = sshll.u32 %s11708_s2, 4  ;;  %s37_s29 = int_to_ptr.hbm [resolvable:$true] %s36_s29 }
   0x3   :  { %16 = vsyncpa [#allocation11], 0  ;;  %s10495_s30 = smov [#allocation4]   ;;  %s60_s12 = sshll.u32 %s11710_s4, 4  ;;  %s61_s12 = int_to_ptr.hbm [resolvable:$true] %s60_s12 }
   0x4   :  { %s38_s9 = sshll.u32 %s10495_s30, 4  ;;  %s10496_s13 = smov 256   ;;  %s39_s9 = int_to_ptr.vmem [resolvable:$true] %s38_s9 }
   0x5   :  { %s10497_s14 = smov 16   ;;  %s10498_s15 = smov [#allocation7]  }
   0x6   :  { %44 = dma.hbm_to_vmem [thread:$0]  %s37_s29, 6144, %s39_s9, [#allocation5], %s10496_s13, %s10496_s13, %s10497_s14  }
   0x7   :  { %s62_s16 = sshll.u32 %s10498_s15, 4  ;;  %s23_s19 = sshll.u32 %s11707_s1, 4  ;;  %s63_s16 = int_to_ptr.vmem [resolvable:$true] %s62_s16  ;;  %s24_s19 = int_to_ptr.hbm [resolvable:$true] %s23_s19 }
   0x8   :  { %68 = dma.hbm_to_vmem [thread:$0]  %s61_s12, 49152, %s63_s16, [#allocation8], %s10496_s13, %s10496_s13, %s10497_s14  }
   0x9   :  { %s10499_s2 = smov [#allocation2]   ;;  %s50_s4 = sshll.u32 %s11709_s3, 4  ;;  %s51_s4 = int_to_ptr.hbm [resolvable:$true] %s50_s4 }
   0xa   :  { %s25_s20 = sshll.u32 %s10499_s2, 4  ;;  %s10500_s23 = smov 64   ;;  %s26_s20 = int_to_ptr.vmem [resolvable:$true] %s25_s20 }
   0xb   :  { %s10501_s24 = smov 4   ;;  %s10502_s25 = smov [#allocation6]  }
   0xc   :  { %31 = dma.hbm_to_vmem [thread:$0]  %s24_s19, 512, %s26_s20, [#allocation3], %s10500_s23, %s10500_s23, %s10501_s24  }
   0xd   :  { %s52_s26 = sshll.u32 %s10502_s25, 4  ;;  %s74_s1 = sshll.u32 %s11711_s5, 4  ;;  %s53_s26 = int_to_ptr.vmem [resolvable:$true] %s52_s26  ;;  %s75_s1 = int_to_ptr.hbm [resolvable:$true] %s74_s1 }
   0xe   :  { %55 = dma.hbm_to_vmem [thread:$0]  %s51_s4, 64, %s53_s26, [#allocation5]  }
   0xf   :  { %s86_s9 = sshll.u32 %s11713_s7, 4  ;;  %s10503_s10 = smov [#allocation9]   ;;  %s87_s9 = int_to_ptr.hbm [resolvable:$true] %s86_s9 }
  0x10   :  { %s76_s11 = sshll.u32 %s10503_s10, 4  ;;  %s10504_s3 = smov [#allocation10]   ;;  %s77_s11 = int_to_ptr.vmem [resolvable:$true] %s76_s11 }
  0x11   :  { %79 = dma.hbm_to_vmem [thread:$0]  %s75_s1, 64, %s77_s11, [#allocation8]  }
  0x12   :  { %s88_s12 = sshll.u32 %s10504_s3, 4  ;;  %s10505_s13 = smov 512   ;;  %s89_s12 = int_to_ptr.vmem [resolvable:$true] %s88_s12 }
  0x13   :  { %s10506_s14 = smov 32  }
  0x14   :  { %94 = dma.hbm_to_vmem [thread:$0]  %s87_s9, 32768, %s89_s12, [#allocation11], %s10505_s13, %s10505_s13, %s10506_s14  }
  0x15   :  { %10487 = dma.done.wait [#allocation3], 512  }
  0x16   :  { %10488 = vsyncadd [#allocation3], 4294966784 }
  0x17   :  { %10489 = dma.done.wait [#allocation5], 6208  }
  0x18   :  { %10490 = vsyncadd [#allocation5], 4294961088 }
  0x19   :  { %10491 = dma.done.wait [#allocation8], 49216  }
  0x1a   :  { %10492 = vsyncadd [#allocation8], 4294918080 }
  0x1b   :  { %10493 = dma.done.wait [#allocation11], 32768  }
  0x1c   :  { %10494 = vsyncadd [#allocation11], 4294934528  ;;  %v131_v0 = vld [vmem:[%s11706_s0 + $0x10] sm:$0xff]  ;;  %v132_v1 = vld [vmem:[%s11706_s0 + $0x18] sm:$0xff]  ;;  %vm145_vm0 = vcmask 261120   ;;  %vm323_vm1 = vcmask 523264  }
  0x1d   :  { %v129_v2 = vld [vmem:[%s11706_s0] sm:$0xff]  ;;  %v10579_v3 = vpack.c.bf16 %v132_v1, %v131_v0  ;;  %v130_v4 = vld [vmem:[%s11706_s0 + $0x8] sm:$0xff]  ;;  %v9663_v7 = vld [vmem:[#allocation4 + $0xec] sm:$0xf0] }
  0x1e   :  { %v6839_v5 = vld [vmem:[#allocation4 + $0xe0] sm:$0xf]  ;;  %v10586_v6 = vpack.c.bf16 %v130_v4, %v129_v2  ;;  %v9661_v8 = vld [vmem:[#allocation4 + $0xe4] sm:$0xf]  ;;  %v6841_v9 = vld [vmem:[#allocation4 + $0xf0] sm:$0xf0] }
  0x1f   :  { %158 = vmatpush.bf16.msra.mxu0 %v10579_v3  ;;  %10325 = vmatpush.bf16.msra.mxu2 %v10579_v3  ;;  %v10588_v10 = vld [vmem:[#allocation2] sm:$0xff]  ;;  %v10590_v11 = vld [vmem:[#allocation2 + $0x8] sm:$0xff]  ;;  %v10594_v12 = vld [vmem:[#allocation2 + $0x10] sm:$0xff]  ;;  %v6840_v14 = vor.u32 %v9663_v7, %v6839_v5  ;;  %v6844_v15 = vor.u32 %v9661_v8, %v6841_v9 }
  0x20   :  { %195 = vmatpush.bf16.msra.mxu1 %v10579_v3  ;;  %10327 = vmatpush.bf16.msra.mxu3 %v10579_v3  ;;  %v9632_v13 = vld [vmem:[#allocation2 + $0x18] sm:$0xff]  ;;  %v6823_v16 = vld [vmem:[#allocation4 + $0xc0] sm:$0xf]  ;;  %v9659_v17 = vld [vmem:[#allocation4 + $0xcc] sm:$0xf0] }
  0x21   :  { %v9657_v18 = vld [vmem:[#allocation4 + $0xc4] sm:$0xf]  ;;  %v6825_v19 = vld [vmem:[#allocation4 + $0xd0] sm:$0xf0]  ;;  %v6847_v20 = vld [vmem:[#allocation4 + $0xe8] sm:$0xf]  ;;  %v6824_v28 = vor.u32 %v9659_v17, %v6823_v16 }
  0x22   :  { %v9664_v21 = vld [vmem:[#allocation4 + $0xf4] sm:$0xf0]  ;;  %v9662_v22 = vld [vmem:[#allocation4 + $0xec] sm:$0xf]  ;;  %v6849_v23 = vld [vmem:[#allocation4 + $0xf8] sm:$0xf0]  ;;  %v6828_v29 = vor.u32 %v9657_v18, %v6825_v19 }
  0x23   :  { %159 = vmatpush.bf16.msra.mxu0 %v10586_v6  ;;  %10326 = vmatpush.bf16.msra.mxu2 %v10586_v6  ;;  %v6807_v24 = vld [vmem:[#allocation4 + $0xa0] sm:$0xf]  ;;  %v9655_v25 = vld [vmem:[#allocation4 + $0xac] sm:$0xf0]  ;;  %v6848_v26 = vor.u32 %v9664_v21, %v6847_v20  ;;  %v6852_v27 = vor.u32 %v9662_v22, %v6849_v23  ;;  %v9653_v30 = vld [vmem:[#allocation4 + $0xa4] sm:$0xf] }
  0x24   :  { %196 = vmatpush.bf16.msra.mxu1 %v10586_v6  ;;  %10328 = vmatpush.bf16.msra.mxu3 %v10586_v6  ;;  %v6831_v31 = vld [vmem:[#allocation4 + $0xc8] sm:$0xf]  ;;  %v9660_v32 = vld [vmem:[#allocation4 + $0xd4] sm:$0xf0]  ;;  %v6809_v33 = vld [vmem:[#allocation4 + $0xb0] sm:$0xf0]  ;;  %v6808_v41 = vor.u32 %v9655_v25, %v6807_v24 }
  0x25   :  { %v9658_v34 = vld [vmem:[#allocation4 + $0xcc] sm:$0xf]  ;;  %v6833_v35 = vld [vmem:[#allocation4 + $0xd8] sm:$0xf0]  ;;  %v6791_v36 = vld [vmem:[#allocation4 + $0x80] sm:$0xf]  ;;  %v6832_v38 = vor.u32 %v9660_v32, %v6831_v31  ;;  %v6812_v42 = vor.u32 %v9653_v30, %v6809_v33 }
  0x26   :  { %6777 = vmatmul.msk.bf16.vlgmr.msra.gmra.mxu0 %vm145_vm0, %v10588_v10  ;;  %6778 = vmatmul.msk.bf16.vlgmr.msra.gmra.mxu2 %vm145_vm0, %v10590_v11  ;;  %v9651_v37 = vld [vmem:[#allocation4 + $0x8c] sm:$0xf0]  ;;  %v6836_v39 = vor.u32 %v9658_v34, %v6833_v35  ;;  %v6815_v40 = vld [vmem:[#allocation4 + $0xa8] sm:$0xf]  ;;  %v9656_v43 = vld [vmem:[#allocation4 + $0xb4] sm:$0xf0] }
  0x27   :  { %334 = vmatpush.bf16.msrb.mxu2 %v6840_v14  ;;  %6787 = vmatmul.msk.bf16.vlgmr.msra.gmra.mxu1 %vm145_vm0, %v10594_v12  ;;  %v9654_v44 = vld [vmem:[#allocation4 + $0xac] sm:$0xf]  ;;  %v6817_v45 = vld [vmem:[#allocation4 + $0xb8] sm:$0xf0]  ;;  %v9649_v46 = vld [vmem:[#allocation4 + $0x84] sm:$0xf]  ;;  %v6816_v52 = vor.u32 %v9656_v43, %v6815_v40  ;;  %v6792_v56 = vor.u32 %v9651_v37, %v6791_v36 }
  0x28   :  { %353 = vmatpush.bf16.msrb.mxu3 %v6844_v15  ;;  %372 = vmatpush.bf16.msrb.mxu0 %v6848_v26  ;;  %v6793_v47 = vld [vmem:[#allocation4 + $0x90] sm:$0xf0]  ;;  %v6911_v48 = vld [vmem:[#allocation4 + $0x60] sm:$0xf]  ;;  %v9647_v49 = vld [vmem:[#allocation4 + $0x6c] sm:$0xf0]  ;;  %v6820_v53 = vor.u32 %v9654_v44, %v6817_v45 }
  0x29   :  { %6788 = vmatmul.msk.bf16.vlgmr.msra.gmra.mxu3 %vm145_vm0, %v9632_v13  ;;  %391 = vmatpush.bf16.msrb.mxu1 %v6852_v27  ;;  %v9645_v50 = vld [vmem:[#allocation4 + $0x64] sm:$0xf]  ;;  %v6913_v51 = vld [vmem:[#allocation4 + $0x70] sm:$0xf0]  ;;  %v6799_v54 = vld [vmem:[#allocation4 + $0x88] sm:$0xf]  ;;  %v6796_v57 = vor.u32 %v9649_v46, %v6793_v47  ;;  %v6912_v61 = vor.u32 %v9647_v49, %v6911_v48 }
  0x2a   :  { %v9652_v55 = vld [vmem:[#allocation4 + $0x94] sm:$0xf0]  ;;  %v9650_v58 = vld [vmem:[#allocation4 + $0x8c] sm:$0xf]  ;;  %v6801_v59 = vld [vmem:[#allocation4 + $0x98] sm:$0xf0]  ;;  %v6916_v62 = vor.u32 %v9645_v50, %v6913_v51 }
  0x2b   :  { %335 = vmatpush.bf16.msrb.mxu2 %v6824_v28  ;;  %v6919_v60 = vld [vmem:[#allocation4 + $0x68] sm:$0xf]  ;;  %v9648_v63 = vld [vmem:[#allocation4 + $0x74] sm:$0xf0]  ;;  %v9646_v0 = vld [vmem:[#allocation4 + $0x6c] sm:$0xf]  ;;  %v6800_v2 = vor.u32 %v9652_v55, %v6799_v54  ;;  %v6804_v4 = vor.u32 %v9650_v58, %v6801_v59 }
  0x2c   :  { %354 = vmatpush.bf16.msrb.mxu3 %v6828_v29  ;;  %373 = vmatpush.bf16.msrb.mxu0 %v6832_v38  ;;  %v6921_v1 = vld [vmem:[#allocation4 + $0x78] sm:$0xf0]  ;;  %v6920_v5 = vor.u32 %v9648_v63, %v6919_v60  ;;  %v6895_v8 = vld [vmem:[#allocation4 + $0x40] sm:$0xf]  ;;  %v9643_v9 = vld [vmem:[#allocation4 + $0x4c] sm:$0xf0] }
  0x2d   :  { %392 = vmatpush.bf16.msrb.mxu1 %v6836_v39  ;;  %v6924_v7 = vor.u32 %v9646_v0, %v6921_v1  ;;  %v9641_v13 = vld [vmem:[#allocation4 + $0x44] sm:$0xf]  ;;  %v6896_v14 = vor.u32 %v9643_v9, %v6895_v8  ;;  %v6897_v15 = vld [vmem:[#allocation4 + $0x50] sm:$0xf0]  ;;  %v6903_v16 = vld [vmem:[#allocation4 + $0x48] sm:$0xf] }
  0x2e   :  { %v9644_v17 = vld [vmem:[#allocation4 + $0x54] sm:$0xf0]  ;;  %v9642_v19 = vld [vmem:[#allocation4 + $0x4c] sm:$0xf]  ;;  %v6905_v20 = vld [vmem:[#allocation4 + $0x58] sm:$0xf0] }
  0x2f   :  { %336 = vmatpush.bf16.msrb.mxu2 %v6808_v41  ;;  %v6904_v18 = vor.u32 %v9644_v17, %v6903_v16  ;;  %v6908_v21 = vor.u32 %v9642_v19, %v6905_v20  ;;  %v6879_v22 = vld [vmem:[#allocation4 + $0x20] sm:$0xf]  ;;  %v9639_v23 = vld [vmem:[#allocation4 + $0x2c] sm:$0xf0]  ;;  %v9637_v24 = vld [vmem:[#allocation4 + $0x24] sm:$0xf] }
  0x30   :  { %355 = vmatpush.bf16.msrb.mxu3 %v6812_v42  ;;  %374 = vmatpush.bf16.msrb.mxu0 %v6816_v52  ;;  %v6880_v25 = vor.u32 %v9639_v23, %v6879_v22  ;;  %v6887_v26 = vld [vmem:[#allocation4 + $0x28] sm:$0xf]  ;;  %v9640_v27 = vld [vmem:[#allocation4 + $0x34] sm:$0xf0]  ;;  %v9638_v30 = vld [vmem:[#allocation4 + $0x2c] sm:$0xf] }
  0x31   :  { %393 = vmatpush.bf16.msrb.mxu1 %v6820_v53  ;;  %v6888_v29 = vor.u32 %v9640_v27, %v6887_v26  ;;  %v6889_v31 = vld [vmem:[#allocation4 + $0x38] sm:$0xf0]  ;;  %v6863_v33 = vld [vmem:[#allocation4] sm:$0xf]  ;;  %v9635_v34 = vld [vmem:[#allocation4 + $0xc] sm:$0xf0] }
  0x32   :  { %v6892_v32 = vor.u32 %v9638_v30, %v6889_v31  ;;  %v9633_v35 = vld [vmem:[#allocation4 + $0x4] sm:$0xf]  ;;  %v6864_v36 = vor.u32 %v9635_v34, %v6863_v33  ;;  %v6865_v37 = vld [vmem:[#allocation4 + $0x10] sm:$0xf0]  ;;  %v6871_v38 = vld [vmem:[#allocation4 + $0x8] sm:$0xf] }
  0x33   :  { %337 = vmatpush.bf16.msrb.mxu2 %v6792_v56  ;;  %v9636_v39 = vld [vmem:[#allocation4 + $0x14] sm:$0xf0]  ;;  %v6868_v40 = vor.u32 %v9633_v35, %v6865_v37  ;;  %v9634_v42 = vld [vmem:[#allocation4 + $0xc] sm:$0xf]  ;;  %v6873_v43 = vld [vmem:[#allocation4 + $0x18] sm:$0xf0] }
  0x34   :  { %356 = vmatpush.bf16.msrb.mxu3 %v6796_v57  ;;  %375 = vmatpush.bf16.msrb.mxu0 %v6800_v2  ;;  %v6872_v41 = vor.u32 %v9636_v39, %v6871_v38  ;;  %v6876_v44 = vor.u32 %v9634_v42, %v6873_v43  ;;  %v6983_v45 = vld [vmem:[#allocation4 + $0x160] sm:$0xf]  ;;  %v9679_v46 = vld [vmem:[#allocation4 + $0x16c] sm:$0xf0]  ;;  %v9677_v47 = vld [vmem:[#allocation4 + $0x164] sm:$0xf] }
  0x35   :  { %394 = vmatpush.bf16.msrb.mxu1 %v6804_v4  ;;  %v6984_v48 = vor.u32 %v9679_v46, %v6983_v45  ;;  %v6985_v49 = vld [vmem:[#allocation4 + $0x170] sm:$0xf0]  ;;  %v6991_v50 = vld [vmem:[#allocation4 + $0x168] sm:$0xf]  ;;  %v9680_v51 = vld [vmem:[#allocation4 + $0x174] sm:$0xf0] }
  0x36   :  { %6853 = vmatmul.msk.bf16.vlgmr.msrb.gmra.mxu2 %vm323_vm1, %v10586_v6  ;;  %v6988_v52 = vor.u32 %v9677_v47, %v6985_v49  ;;  %v6992_v53 = vor.u32 %v9680_v51, %v6991_v50  ;;  %v9678_v54 = vld [vmem:[#allocation4 + $0x16c] sm:$0xf]  ;;  %v6993_v55 = vld [vmem:[#allocation4 + $0x178] sm:$0xf0]  ;;  %v6967_v56 = vld [vmem:[#allocation4 + $0x140] sm:$0xf] }
  0x37   :  { %496 = vmatpush.bf16.msra.mxu2 %v6912_v61  ;;  %6857 = vmatmul.msk.bf16.vlgmr.msrb.gmra.mxu0 %vm323_vm1, %v10586_v6  ;;  %v6996_v57 = vor.u32 %v9678_v54, %v6993_v55  ;;  %v9675_v58 = vld [vmem:[#allocation4 + $0x14c] sm:$0xf0]  ;;  %v9673_v59 = vld [vmem:[#allocation4 + $0x144] sm:$0xf]  ;;  %v6969_v60 = vld [vmem:[#allocation4 + $0x150] sm:$0xf0] }
  0x38   :  { %515 = vmatpush.bf16.msra.mxu3 %v6916_v62  ;;  %534 = vmatpush.bf16.msra.mxu0 %v6920_v5  ;;  %v6968_v61 = vor.u32 %v9675_v58, %v6967_v56  ;;  %v6972_v62 = vor.u32 %v9673_v59, %v6969_v60  ;;  %v6975_v63 = vld [vmem:[#allocation4 + $0x148] sm:$0xf]  ;;  %v9676_v0 = vld [vmem:[#allocation4 + $0x154] sm:$0xf0]  ;;  %v9674_v1 = vld [vmem:[#allocation4 + $0x14c] sm:$0xf] }
  0x39   :  { %553 = vmatpush.bf16.msra.mxu1 %v6924_v7  ;;  %6855 = vmatmul.msk.bf16.vlgmr.msrb.gmra.mxu3 %vm323_vm1, %v10586_v6  ;;  %v6976_v2 = vor.u32 %v9676_v0, %v6975_v63  ;;  %v6977_v4 = vld [vmem:[#allocation4 + $0x158] sm:$0xf0]  ;;  %v6951_v5 = vld [vmem:[#allocation4 + $0x120] sm:$0xf]  ;;  %v9671_v7 = vld [vmem:[#allocation4 + $0x12c] sm:$0xf0] }
  0x3a   :  { %6859 = vmatmul.msk.bf16.vlgmr.msrb.gmra.mxu1 %vm323_vm1, %v10586_v6  ;;  %v6900_v6 = vor.u32 %v9641_v13, %v6897_v15  ;;  %v6980_v9 = vor.u32 %v9674_v1, %v6977_v4  ;;  %v9669_v13 = vld [vmem:[#allocation4 + $0x124] sm:$0xf]  ;;  %v6959_v15 = vld [vmem:[#allocation4 + $0x128] sm:$0xf]  ;;  %v6952_v16 = vor.u32 %v9671_v7, %v6951_v5  ;;  %v9672_v17 = vld [vmem:[#allocation4 + $0x134] sm:$0xf0] }
  0x3b   :  { %497 = vmatpush.bf16.msra.mxu2 %v6896_v14  ;;  %v6953_v14 = vld [vmem:[#allocation4 + $0x130] sm:$0xf0]  ;;  %v6960_v20 = vor.u32 %v9672_v17, %v6959_v15  ;;  %v9667_v22 = vld [vmem:[#allocation4 + $0x10c] sm:$0xf0]  ;;  %v9665_v23 = vld [vmem:[#allocation4 + $0x104] sm:$0xf] }
  0x3c   :  { %516 = vmatpush.bf16.msra.mxu3 %v6900_v6  ;;  %535 = vmatpush.bf16.msra.mxu0 %v6904_v18  ;;  %v9670_v6 = vld [vmem:[#allocation4 + $0x12c] sm:$0xf]  ;;  %v6961_v18 = vld [vmem:[#allocation4 + $0x138] sm:$0xf0]  ;;  %v6956_v19 = vor.u32 %v9669_v13, %v6953_v14  ;;  %v9668_v26 = vld [vmem:[#allocation4 + $0x114] sm:$0xf0] }
  0x3d   :  { %554 = vmatpush.bf16.msra.mxu1 %v6908_v21  ;;  %v6935_v21 = vld [vmem:[#allocation4 + $0x100] sm:$0xf]  ;;  %v9666_v30 = vld [vmem:[#allocation4 + $0x10c] sm:$0xf]  ;;  %v6945_v31 = vld [vmem:[#allocation4 + $0x118] sm:$0xf0] }
  0x3e   :  { %v6936_v27 = vor.u32 %v9667_v22, %v6935_v21  ;;  %v6948_v34 = vor.u32 %v9666_v30, %v6945_v31 }
  0x3f   :  { %498 = vmatpush.bf16.msra.mxu2 %v6880_v25  ;;  %v6937_v25 = vld [vmem:[#allocation4 + $0x110] sm:$0xf0] }
  0x40   :  { %536 = vmatpush.bf16.msra.mxu0 %v6888_v29 }
  0x41   :  { %555 = vmatpush.bf16.msra.mxu1 %v6892_v32 }
  0x43   :  { %499 = vmatpush.bf16.msra.mxu2 %v6864_v36 }
  0x44   :  { %537 = vmatpush.bf16.msra.mxu0 %v6872_v41 }
  0x45   :  { %556 = vmatpush.bf16.msra.mxu1 %v6876_v44 }
  0x46   :  { %6854 = vmatmul.msk.bf16.gmra.mxu2 %vm323_vm1, %v10579_v3 }
  0x47   :  { %6858 = vmatmul.msk.bf16.gmra.mxu0 %vm323_vm1, %v10579_v3  ;;  %675 = vmatpush.bf16.msrb.mxu2 %v6984_v48 }
  0x48   :  { %713 = vmatpush.bf16.msrb.mxu0 %v6992_v53 }
  0x49   :  { %6856 = vmatmul.msk.bf16.gmra.mxu3 %vm323_vm1, %v10579_v3  ;;  %732 = vmatpush.bf16.msrb.mxu1 %v6996_v57 }
  0x4a   :  { %6860 = vmatmul.msk.bf16.gmra.mxu1 %vm323_vm1, %v10579_v3  ;;  %v6881_v3 = vld [vmem:[#allocation4 + $0x30] sm:$0xf0] }
  0x4b   :  { %v6884_v28 = vor.u32 %v9637_v24, %v6881_v3  ;;  %676 = vmatpush.bf16.msrb.mxu2 %v6968_v61  ;;  %v6964_v24 = vor.u32 %v9670_v6, %v6961_v18  ;;  %v6943_v3 = vld [vmem:[#allocation4 + $0x108] sm:$0xf] }
  0x4c   :  { %714 = vmatpush.bf16.msrb.mxu0 %v6976_v2  ;;  %v6944_v29 = vor.u32 %v9668_v26, %v6943_v3 }
  0x4d   :  { %517 = vmatpush.bf16.msra.mxu3 %v6884_v28  ;;  %733 = vmatpush.bf16.msrb.mxu1 %v6980_v9  ;;  %v6940_v28 = vor.u32 %v9665_v23, %v6937_v25 }
  0x4f   :  { %677 = vmatpush.bf16.msrb.mxu2 %v6952_v16 }
  0x50   :  { %715 = vmatpush.bf16.msrb.mxu0 %v6960_v20 }
  0x51   :  { %518 = vmatpush.bf16.msra.mxu3 %v6868_v40  ;;  %734 = vmatpush.bf16.msrb.mxu1 %v6964_v24  ;;  %v763_v24 = vld [vmem:[#allocation6] sm:$0xf] }
  0x52   :  { %v767_v30 = vperm.slane %v763_v24, 2  ;;  %v768_v31 = vperm.slane %v763_v24, 3 }
  0x53   :  { %678 = vmatpush.bf16.msrb.mxu2 %v6936_v27 }
  0x54   :  { %716 = vmatpush.bf16.msrb.mxu0 %v6944_v29 }
  0x55   :  { %694 = vmatpush.bf16.msrb.mxu3 %v6988_v52  ;;  %735 = vmatpush.bf16.msrb.mxu1 %v6948_v34  ;;  %v10639_v34 = vperm.slane %v763_v24, 0 }
  0x59   :  { %695 = vmatpush.bf16.msrb.mxu3 %v6972_v62 }
  0x5d   :  { %696 = vmatpush.bf16.msrb.mxu3 %v6956_v19 }
  0x61   :  { %697 = vmatpush.bf16.msrb.mxu3 %v6940_v28 }
  0xa3   :  { %v161_v8 = vpop.f32.mrf.mxu0 }
  0xa4   :  { %v198_v38 = vpop.f32.mrf.mxu1 }
  0xa9   :  { %v166_v35 = vpop.f32.mrf.mxu2 }
  0xab   :  { %v163_v32 = vpop.f32.mrf.mxu0 }
  0xac   :  { %v171_v33 = vpack.c.bf16 %v163_v32, %v161_v8  ;;  %v200_v39 = vpop.f32.mrf.mxu1  ;;  %v203_v41 = vpop.f32.mrf.mxu3 }
  0xad   :  { %v208_v40 = vpack.c.bf16 %v200_v39, %v198_v38 }
  0xae   :  { %6925 = vmatmul.msk.bf16.vlgmr.msra.gmra.mxu2 %vm323_vm1, %v171_v33  ;;  %6927 = vmatmul.msk.bf16.vlgmr.msra.gmra.mxu3 %vm323_vm1, %v171_v33 }
  0xaf   :  { %6929 = vmatmul.msk.bf16.vlgmr.msra.gmra.mxu0 %vm323_vm1, %v171_v33  ;;  %6931 = vmatmul.msk.bf16.vlgmr.msra.gmra.mxu1 %vm323_vm1, %v171_v33 }
  0xb1   :  { %v168_v36 = vpop.f32.mrf.mxu2 }
  0xb2   :  { %v172_v37 = vpack.c.bf16 %v168_v36, %v166_v35  ;;  %v10641_v35 = vperm.slane %v763_v24, 1 }
  0xb4   :  { %v205_v42 = vpop.f32.mrf.mxu3  ;;  %v377_v44 = vpop.f32.mrf.mxu0 }
  0xb5   :  { %v209_v43 = vpack.c.bf16 %v205_v42, %v203_v41 }
  0xb7   :  { %v396_v45 = vpop.f32.mrf.mxu1 }
  0xb9   :  { %v339_v46 = vpop.f32.mrf.mxu2 }
  0xbc   :  { %v358_v47 = vpop.f32.mrf.mxu3  ;;  %v379_v48 = vpop.f32.mrf.mxu0 }
  0xbe   :  { %6926 = vmatmul.msk.bf16.gmra.mxu2 %vm323_vm1, %v172_v37  ;;  %6928 = vmatmul.msk.bf16.gmra.mxu3 %vm323_vm1, %v172_v37 }
  0xbf   :  { %6930 = vmatmul.msk.bf16.gmra.mxu0 %vm323_vm1, %v172_v37  ;;  %6932 = vmatmul.msk.bf16.gmra.mxu1 %vm323_vm1, %v172_v37  ;;  %v398_v49 = vpop.f32.mrf.mxu1 }
  0xc1   :  { %v341_v50 = vpop.f32.mrf.mxu2 }
  0xc4   :  { %v360_v51 = vpop.f32.mrf.mxu3  ;;  %v382_v52 = vpop.f32.mrf.mxu0 }
  0xc7   :  { %v401_v53 = vpop.f32.mrf.mxu1 }
  0xc9   :  { %v344_v54 = vpop.f32.mrf.mxu2 }
  0xcc   :  { %v363_v55 = vpop.f32.mrf.mxu3  ;;  %v384_v56 = vpop.f32.mrf.mxu0 }
  0xce   :  { %6997 = vmatmul.msk.bf16.vlgmr.msrb.gmra.mxu2 %vm323_vm1, %v208_v40  ;;  %6999 = vmatmul.msk.bf16.vlgmr.msrb.gmra.mxu3 %vm323_vm1, %v208_v40 }
  0xcf   :  { %7001 = vmatmul.msk.bf16.vlgmr.msrb.gmra.mxu0 %vm323_vm1, %v208_v40  ;;  %7003 = vmatmul.msk.bf16.vlgmr.msrb.gmra.mxu1 %vm323_vm1, %v208_v40  ;;  %v403_v57 = vpop.f32.mrf.mxu1 }
  0xd1   :  { %v346_v58 = vpop.f32.mrf.mxu2 }
  0xd4   :  { %v365_v59 = vpop.f32.mrf.mxu3 }
  0xde   :  { %6998 = vmatmul.msk.bf16.gmra.mxu2 %vm323_vm1, %v209_v43  ;;  %7000 = vmatmul.msk.bf16.gmra.mxu3 %vm323_vm1, %v209_v43 }
  0xdf   :  { %7002 = vmatmul.msk.bf16.gmra.mxu0 %vm323_vm1, %v209_v43  ;;  %7004 = vmatmul.msk.bf16.gmra.mxu1 %vm323_vm1, %v209_v43 }
 0x12c   :  { %v539_v60 = vpop.f32.mrf.mxu0  ;;  %v558_v61 = vpop.f32.mrf.mxu1 }
 0x12d   :  { %v540_v26 = vadd.f32 %v539_v60, %v377_v44  ;;  %v559_v27 = vadd.f32 %v558_v61, %v396_v45 }
 0x131   :  { %v501_v62 = vpop.f32.mrf.mxu2  ;;  %v520_v63 = vpop.f32.mrf.mxu3 }
 0x132   :  { %v502_v32 = vadd.f32 %v501_v62, %v339_v46  ;;  %v521_v33 = vadd.f32 %v520_v63, %v358_v47 }
 0x134   :  { %v541_v0 = vpop.f32.mrf.mxu0  ;;  %v560_v1 = vpop.f32.mrf.mxu1 }
 0x135   :  { %v542_v36 = vadd.f32 %v541_v0, %v379_v48  ;;  %v561_v37 = vadd.f32 %v560_v1, %v398_v49 }
 0x139   :  { %v503_v2 = vpop.f32.mrf.mxu2  ;;  %v522_v4 = vpop.f32.mrf.mxu3 }
 0x13a   :  { %v504_v42 = vadd.f32 %v503_v2, %v341_v50  ;;  %v523_v43 = vadd.f32 %v522_v4, %v360_v51 }
 0x13c   :  { %v544_v5 = vpop.f32.mrf.mxu0  ;;  %v563_v7 = vpop.f32.mrf.mxu1 }
 0x13d   :  { %v545_v28 = vadd.f32 %v544_v5, %v382_v52  ;;  %v564_v29 = vadd.f32 %v563_v7, %v401_v53 }
 0x141   :  { %v506_v8 = vpop.f32.mrf.mxu2  ;;  %v525_v9 = vpop.f32.mrf.mxu3 }
 0x142   :  { %v507_v46 = vadd.f32 %v506_v8, %v344_v54  ;;  %v526_v47 = vadd.f32 %v525_v9, %v363_v55 }
 0x144   :  { %v546_v13 = vpop.f32.mrf.mxu0  ;;  %v565_v14 = vpop.f32.mrf.mxu1 }
 0x145   :  { %v547_v52 = vadd.f32 %v546_v13, %v384_v56  ;;  %v566_v53 = vadd.f32 %v565_v14, %v403_v57 }
 0x149   :  { %v508_v15 = vpop.f32.mrf.mxu2  ;;  %v527_v16 = vpop.f32.mrf.mxu3 }
 0x14a   :  { %v509_v62 = vadd.f32 %v508_v15, %v346_v58  ;;  %v528_v63 = vadd.f32 %v527_v16, %v365_v59 }
 0x14c   :  { %v718_v17 = vpop.f32.mrf.mxu0  ;;  %v737_v6 = vpop.f32.mrf.mxu1 }
 0x14d   :  { %v749_v44 = vadd.f32 %v718_v17, %v540_v26  ;;  %v750_v45 = vadd.f32 %v737_v6, %v559_v27 }
 0x14f   :  { %v775_v24 = vadd.f32 %v767_v30, %v749_v44 }
 0x151   :  { %v680_v18 = vpop.f32.mrf.mxu2  ;;  %v699_v19 = vpop.f32.mrf.mxu3 }
 0x152   :  { %v747_v13 = vadd.f32 %v680_v18, %v502_v32  ;;  %v748_v14 = vadd.f32 %v699_v19, %v521_v33 }
 0x154   :  { %v720_v20 = vpop.f32.mrf.mxu0  ;;  %v739_v21 = vpop.f32.mrf.mxu1 }
 0x155   :  { %v753_v60 = vadd.f32 %v720_v20, %v542_v36  ;;  %v754_v61 = vadd.f32 %v739_v21, %v561_v37  ;;  %v773_v37 = vadd.f32 %v10639_v34, %v747_v13  ;;  %v9927_v13 = vld [vmem:[#allocation7 + $0x7ac] sm:$0xf0] }
 0x157   :  { %v779_v2 = vadd.f32 %v767_v30, %v753_v60  ;;  %v780_v4 = vadd.f32 %v768_v31, %v754_v61  ;;  %v9935_v60 = vld [vmem:[#allocation7 + $0x7ec] sm:$0xf0] }
 0x159   :  { %v682_v22 = vpop.f32.mrf.mxu2  ;;  %v701_v23 = vpop.f32.mrf.mxu3  ;;  %v796_v26 = vmax.f32 %v780_v4, 0.0  ;;  %v7359_v4 = vld [vmem:[#allocation7 + $0x6a0] sm:$0xf] }
 0x15a   :  { %v751_v54 = vadd.f32 %v682_v22, %v504_v42  ;;  %v752_v55 = vadd.f32 %v701_v23, %v523_v43  ;;  %v791_v23 = vmax.f32 %v775_v24, 0.0 }
 0x15c   :  { %v723_v25 = vpop.f32.mrf.mxu0  ;;  %v742_v3 = vpop.f32.mrf.mxu1 }
 0x15d   :  { %v757_v38 = vadd.f32 %v723_v25, %v545_v28  ;;  %v758_v39 = vadd.f32 %v742_v3, %v564_v29  ;;  %v776_v25 = vadd.f32 %v768_v31, %v750_v45  ;;  %v795_v3 = vmax.f32 %v779_v2, 0.0  ;;  %v7519_v45 = vld [vmem:[#allocation7 + $0x7e0] sm:$0xf] }
 0x15e   :  { %v777_v29 = vadd.f32 %v10639_v34, %v751_v54  ;;  %v9835_v54 = vld [vmem:[#allocation7 + $0x4cc] sm:$0xf0] }
 0x15f   :  { %v783_v48 = vadd.f32 %v767_v30, %v757_v38  ;;  %v784_v49 = vadd.f32 %v768_v31, %v758_v39  ;;  %v792_v28 = vmax.f32 %v776_v25, 0.0  ;;  %v774_v38 = vadd.f32 %v10641_v35, %v748_v14  ;;  %v7119_v14 = vld [vmem:[#allocation7 + $0x4c0] sm:$0xf] }
 0x160   :  { %v10657_v39 = vpack.c.bf16 %v795_v3, %v791_v23  ;;  %v793_v43 = vmax.f32 %v777_v29, 0.0  ;;  %v7231_v3 = vld [vmem:[#allocation7 + $0x5a0] sm:$0xf] }
 0x161   :  { %v685_v40 = vpop.f32.mrf.mxu2  ;;  %v704_v41 = vpop.f32.mrf.mxu3  ;;  %v799_v58 = vmax.f32 %v783_v48, 0.0  ;;  %v800_v59 = vmax.f32 %v784_v49, 0.0  ;;  %v9931_v48 = vld [vmem:[#allocation7 + $0x7cc] sm:$0xf0]  ;;  %v7135_v49 = vld [vmem:[#allocation7 + $0x4e0] sm:$0xf] }
 0x162   :  { %v755_v50 = vadd.f32 %v685_v40, %v507_v46  ;;  %v756_v51 = vadd.f32 %v704_v41, %v526_v47  ;;  %v10659_v40 = vpack.c.bf16 %v796_v26, %v792_v28  ;;  %v9863_v26 = vld [vmem:[#allocation7 + $0x5ac] sm:$0xf0]  ;;  %v7327_v29 = vld [vmem:[#allocation7 + $0x660] sm:$0xf] }
 0x163   :  { %v7232_v28 = vor.u32 %v9863_v26, %v7231_v3 }
 0x164   :  { %v725_v5 = vpop.f32.mrf.mxu0  ;;  %v744_v7 = vpop.f32.mrf.mxu1  ;;  %v781_v17 = vadd.f32 %v10639_v34, %v755_v50  ;;  %v782_v6 = vadd.f32 %v10641_v35, %v756_v51  ;;  %v9871_v50 = vld [vmem:[#allocation7 + $0x5ec] sm:$0xf0] }
 0x165   :  { %v761_v0 = vadd.f32 %v725_v5, %v547_v52  ;;  %v762_v1 = vadd.f32 %v744_v7, %v566_v53  ;;  %v789_v52 = vmax.f32 %v773_v37, 0.0  ;;  %v790_v53 = vmax.f32 %v774_v38, 0.0  ;;  %v9899_v5 = vld [vmem:[#allocation7 + $0x6cc] sm:$0xf0]  ;;  %v7503_v7 = vld [vmem:[#allocation7 + $0x7c0] sm:$0xf] }
 0x166   :  { %v798_v32 = vmax.f32 %v782_v6, 0.0  ;;  %v7504_v25 = vor.u32 %v9931_v48, %v7503_v7  ;;  %v9923_v6 = vld [vmem:[#allocation7 + $0x78c] sm:$0xf0]  ;;  %v7215_v37 = vld [vmem:[#allocation7 + $0x580] sm:$0xf] }
 0x167   :  { %v787_v56 = vadd.f32 %v767_v30, %v761_v0  ;;  %v788_v57 = vadd.f32 %v768_v31, %v762_v1  ;;  %v778_v30 = vadd.f32 %v10641_v35, %v752_v55  ;;  %v797_v31 = vmax.f32 %v781_v17, 0.0  ;;  %v9839_v0 = vld [vmem:[#allocation7 + $0x4ec] sm:$0xf0]  ;;  %v7263_v1 = vld [vmem:[#allocation7 + $0x5e0] sm:$0xf] }
 0x168   :  { %v10675_v61 = vpack.c.bf16 %v793_v43, %v789_v52  ;;  %v7136_v51 = vor.u32 %v9839_v0, %v7135_v49  ;;  %v7264_v2 = vor.u32 %v9871_v50, %v7263_v1  ;;  %v7247_v55 = vld [vmem:[#allocation7 + $0x5c0] sm:$0xf]  ;;  %v9915_v52 = vld [vmem:[#allocation7 + $0x74c] sm:$0xf0] }
 0x169   :  { %v803_v8 = vmax.f32 %v787_v56, 0.0  ;;  %v804_v9 = vmax.f32 %v788_v57, 0.0  ;;  %v687_v15 = vpop.f32.mrf.mxu2  ;;  %v706_v16 = vpop.f32.mrf.mxu3  ;;  %v794_v44 = vmax.f32 %v778_v30, 0.0  ;;  %v9895_v56 = vld [vmem:[#allocation7 + $0x6ac] sm:$0xf0] }
 0x16a   :  { %v759_v20 = vadd.f32 %v687_v15, %v509_v62  ;;  %v760_v21 = vadd.f32 %v706_v16, %v528_v63  ;;  %v7520_v62 = vor.u32 %v9935_v60, %v7519_v45  ;;  %v7375_v63 = vld [vmem:[#allocation7 + $0x6c0] sm:$0xf]  ;;  %v7120_v15 = vor.u32 %v9835_v54, %v7119_v14  ;;  %v9887_v30 = vld [vmem:[#allocation7 + $0x66c] sm:$0xf0] }
 0x16b   :  { %v10645_v27 = vpack.c.bf16 %v803_v8, %v799_v58  ;;  %v10647_v18 = vpack.c.bf16 %v804_v9, %v800_v59  ;;  %v10677_v46 = vpack.c.bf16 %v794_v44, %v790_v53  ;;  %v7376_v24 = vor.u32 %v9899_v5, %v7375_v63  ;;  %v7487_v57 = vld [vmem:[#allocation7 + $0x7a0] sm:$0xf]  ;;  %v9867_v58 = vld [vmem:[#allocation7 + $0x5cc] sm:$0xf0] }
 0x16c   :  { %v785_v19 = vadd.f32 %v10639_v34, %v759_v20  ;;  %v786_v22 = vadd.f32 %v10641_v35, %v760_v21  ;;  %v7391_v34 = vld [vmem:[#allocation7 + $0x6e0] sm:$0xf]  ;;  %v9903_v35 = vld [vmem:[#allocation7 + $0x6ec] sm:$0xf0]  ;;  %v7360_v59 = vor.u32 %v9895_v56, %v7359_v4  ;;  %v7488_v8 = vor.u32 %v9927_v13, %v7487_v57 }
 0x16d   :  { %857 = vmatpush.bf16.msra.mxu0 %v10645_v27  ;;  %876 = vmatpush.bf16.msra.mxu1 %v10647_v18  ;;  %v7392_v47 = vor.u32 %v9903_v35, %v7391_v34  ;;  %v7343_v9 = vld [vmem:[#allocation7 + $0x680] sm:$0xf]  ;;  %v7248_v16 = vor.u32 %v9867_v58, %v7247_v55  ;;  %v9831_v21 = vld [vmem:[#allocation7 + $0x4ac] sm:$0xf0]  ;;  %v7328_v38 = vor.u32 %v9887_v30, %v7327_v29 }
 0x16e   :  { %v801_v33 = vmax.f32 %v785_v19, 0.0  ;;  %v802_v36 = vmax.f32 %v786_v22, 0.0  ;;  %v7471_v17 = vld [vmem:[#allocation7 + $0x780] sm:$0xf]  ;;  %v9859_v44 = vld [vmem:[#allocation7 + $0x58c] sm:$0xf0] }
 0x16f   :  { %v7103_v20 = vld [vmem:[#allocation7 + $0x4a0] sm:$0xf]  ;;  %v7472_v22 = vor.u32 %v9923_v6, %v7471_v17  ;;  %v9883_v35 = vld [vmem:[#allocation7 + $0x64c] sm:$0xf0]  ;;  %v7216_v60 = vor.u32 %v9859_v44, %v7215_v37  ;;  %v9901_v6 = vld [vmem:[#allocation7 + $0x6e4] sm:$0xf] }
 0x170   :  { %v10661_v41 = vpack.c.bf16 %v801_v33, %v797_v31  ;;  %v10663_v42 = vpack.c.bf16 %v802_v36, %v798_v32  ;;  %v7104_v23 = vor.u32 %v9831_v21, %v7103_v20  ;;  %v7455_v31 = vld [vmem:[#allocation7 + $0x760] sm:$0xf]  ;;  %v9919_v32 = vld [vmem:[#allocation7 + $0x76c] sm:$0xf0]  ;;  %v7393_v20 = vld [vmem:[#allocation7 + $0x6f0] sm:$0xf0] }
 0x171   :  { %858 = vmatpush.bf16.msra.mxu0 %v10657_v39  ;;  %877 = vmatpush.bf16.msra.mxu1 %v10659_v40  ;;  %v7087_v33 = vld [vmem:[#allocation7 + $0x480] sm:$0xf]  ;;  %v9827_v36 = vld [vmem:[#allocation7 + $0x48c] sm:$0xf0]  ;;  %v7456_v43 = vor.u32 %v9919_v32, %v7455_v31  ;;  %v9933_v21 = vld [vmem:[#allocation7 + $0x7e4] sm:$0xf] }
 0x172   :  { %819 = vmatpush.bf16.msra.mxu2 %v10661_v41  ;;  %838 = vmatpush.bf16.msra.mxu3 %v10663_v42  ;;  %v7311_v34 = vld [vmem:[#allocation7 + $0x640] sm:$0xf]  ;;  %v7088_v53 = vor.u32 %v9827_v36, %v7087_v33  ;;  %v9855_v48 = vld [vmem:[#allocation7 + $0x56c] sm:$0xf0]  ;;  %v9897_v32 = vld [vmem:[#allocation7 + $0x6c4] sm:$0xf] }
 0x173   :  { %v7439_v45 = vld [vmem:[#allocation7 + $0x740] sm:$0xf]  ;;  %v7312_v5 = vor.u32 %v9883_v35, %v7311_v34  ;;  %v9879_v0 = vld [vmem:[#allocation7 + $0x62c] sm:$0xf0]  ;;  %v7377_v33 = vld [vmem:[#allocation7 + $0x6d0] sm:$0xf0] }
 0x174   :  { %7009 = vmatmul.msk.bf16.vlgmr.msra.gmra.mxu0 %vm145_vm0, %v10588_v10  ;;  %7011 = vmatmul.msk.bf16.vlgmr.msra.gmra.mxu1 %vm145_vm0, %v10588_v10  ;;  %v7199_v63 = vld [vmem:[#allocation7 + $0x560] sm:$0xf]  ;;  %v7440_v7 = vor.u32 %v9915_v52, %v7439_v45  ;;  %v9911_v50 = vld [vmem:[#allocation7 + $0x72c] sm:$0xf0]  ;;  %v9929_v36 = vld [vmem:[#allocation7 + $0x7c4] sm:$0xf]  ;;  %v7380_v44 = vor.u32 %v9897_v32, %v7377_v33 }
 0x175   :  { %941 = vmatpush.bf16.msrb.mxu0 %v10645_v27  ;;  %960 = vmatpush.bf16.msrb.mxu1 %v10647_v18  ;;  %v7295_v49 = vld [vmem:[#allocation7 + $0x620] sm:$0xf]  ;;  %v9851_v56 = vld [vmem:[#allocation7 + $0x54c] sm:$0xf0]  ;;  %v7505_v37 = vld [vmem:[#allocation7 + $0x7d0] sm:$0xf0] }
 0x176   :  { %820 = vmatpush.bf16.msra.mxu2 %v10675_v61  ;;  %839 = vmatpush.bf16.msra.mxu3 %v10677_v46  ;;  %v7423_v1 = vld [vmem:[#allocation7 + $0x720] sm:$0xf]  ;;  %v7296_v57 = vor.u32 %v9879_v0, %v7295_v49  ;;  %v9875_v54 = vld [vmem:[#allocation7 + $0x60c] sm:$0xf0]  ;;  %v7508_v34 = vor.u32 %v9929_v36, %v7505_v37  ;;  %v7137_v35 = vld [vmem:[#allocation7 + $0x4f0] sm:$0xf0] }
 0x177   :  { %v7183_v4 = vld [vmem:[#allocation7 + $0x540] sm:$0xf]  ;;  %v7424_v13 = vor.u32 %v9911_v50, %v7423_v1  ;;  %v9811_v29 = vld [vmem:[#allocation7 + $0x40c] sm:$0xf0]  ;;  %v9869_v45 = vld [vmem:[#allocation7 + $0x5e4] sm:$0xf] }
 0x178   :  { %v7279_v14 = vld [vmem:[#allocation7 + $0x600] sm:$0xf]  ;;  %v9843_v31 = vld [vmem:[#allocation7 + $0x50c] sm:$0xf0]  ;;  %v7121_v49 = vld [vmem:[#allocation7 + $0x4d0] sm:$0xf0] }
 0x179   :  { %942 = vmatpush.bf16.msrb.mxu0 %v10657_v39  ;;  %961 = vmatpush.bf16.msrb.mxu1 %v10659_v40  ;;  %v7407_v55 = vld [vmem:[#allocation7 + $0x700] sm:$0xf]  ;;  %v9821_v32 = vld [vmem:[#allocation7 + $0x464] sm:$0xf]  ;;  %v7073_v33 = vld [vmem:[#allocation7 + $0x470] sm:$0xf0] }
 0x17a   :  { %903 = vmatpush.bf16.msrb.mxu2 %v10661_v41  ;;  %922 = vmatpush.bf16.msrb.mxu3 %v10663_v42  ;;  %v7151_v30 = vld [vmem:[#allocation7 + $0x500] sm:$0xf]  ;;  %v9853_v36 = vld [vmem:[#allocation7 + $0x564] sm:$0xf] }
 0x17b   :  { %7005 = vmatmul.msk.bf16.vlgmr.msra.gmra.mxu2 %vm145_vm0, %v10588_v10  ;;  %7007 = vmatmul.msk.bf16.vlgmr.msra.gmra.mxu3 %vm145_vm0, %v10588_v10  ;;  %v9891_v10 = vld [vmem:[#allocation7 + $0x68c] sm:$0xf0] }
 0x17c   :  { %v7344_v19 = vor.u32 %v9891_v10, %v7343_v9  ;;  %v9815_v9 = vld [vmem:[#allocation7 + $0x42c] sm:$0xf0]  ;;  %v7167_v10 = vld [vmem:[#allocation7 + $0x520] sm:$0xf] }
 0x17d   :  { %1916 = vmatpush.bf16.msra.mxu0 %v7392_v47  ;;  %1935 = vmatpush.bf16.msra.mxu1 %v7520_v62  ;;  %v7071_v47 = vld [vmem:[#allocation7 + $0x460] sm:$0xf]  ;;  %v9823_v62 = vld [vmem:[#allocation7 + $0x46c] sm:$0xf0] }
 0x17e   :  { %904 = vmatpush.bf16.msrb.mxu2 %v10675_v61  ;;  %923 = vmatpush.bf16.msrb.mxu3 %v10677_v46 }
 0x181   :  { %1917 = vmatpush.bf16.msra.mxu0 %v7376_v24  ;;  %1936 = vmatpush.bf16.msra.mxu1 %v7504_v25  ;;  %v7072_v24 = vor.u32 %v9823_v62, %v7071_v47  ;;  %v7200_v25 = vor.u32 %v9855_v48, %v7199_v63  ;;  %v9893_v62 = vld [vmem:[#allocation7 + $0x6a4] sm:$0xf]  ;;  %v7361_v63 = vld [vmem:[#allocation7 + $0x6b0] sm:$0xf0] }
 0x182   :  { %1878 = vmatpush.bf16.msra.mxu2 %v7136_v51  ;;  %1897 = vmatpush.bf16.msra.mxu3 %v7264_v2  ;;  %v7055_v51 = vld [vmem:[#allocation7 + $0x440] sm:$0xf]  ;;  %v9819_v2 = vld [vmem:[#allocation7 + $0x44c] sm:$0xf0]  ;;  %v9833_v48 = vld [vmem:[#allocation7 + $0x4c4] sm:$0xf]  ;;  %v7364_v0 = vor.u32 %v9893_v62, %v7361_v63 }
 0x183   :  { %v7056_v58 = vor.u32 %v9819_v2, %v7055_v51  ;;  %v7124_v50 = vor.u32 %v9833_v48, %v7121_v49  ;;  %v9889_v2 = vld [vmem:[#allocation7 + $0x684] sm:$0xf]  ;;  %v7185_v62 = vld [vmem:[#allocation7 + $0x550] sm:$0xf0] }
 0x184   :  { %7010 = vmatmul.msk.bf16.gmra.mxu0 %vm145_vm0, %v10590_v11  ;;  %7012 = vmatmul.msk.bf16.gmra.mxu1 %vm145_vm0, %v10590_v11  ;;  %v7281_v48 = vld [vmem:[#allocation7 + $0x610] sm:$0xf0]  ;;  %v9905_v49 = vld [vmem:[#allocation7 + $0x704] sm:$0xf] }
 0x185   :  { %1918 = vmatpush.bf16.msra.mxu0 %v7360_v59  ;;  %1937 = vmatpush.bf16.msra.mxu1 %v7488_v8  ;;  %v7184_v59 = vor.u32 %v9851_v56, %v7183_v4  ;;  %v7039_v8 = vld [vmem:[#allocation7 + $0x420] sm:$0xf]  ;;  %v7345_v4 = vld [vmem:[#allocation7 + $0x690] sm:$0xf0]  ;;  %v9921_v56 = vld [vmem:[#allocation7 + $0x784] sm:$0xf] }
 0x186   :  { %1879 = vmatpush.bf16.msra.mxu2 %v7120_v15  ;;  %1898 = vmatpush.bf16.msra.mxu3 %v7248_v16  ;;  %v9847_v15 = vld [vmem:[#allocation7 + $0x52c] sm:$0xf0]  ;;  %v7280_v16 = vor.u32 %v9875_v54, %v7279_v14  ;;  %v7040_v3 = vor.u32 %v9815_v9, %v7039_v8  ;;  %v7105_v14 = vld [vmem:[#allocation7 + $0x4b0] sm:$0xf0]  ;;  %v9861_v54 = vld [vmem:[#allocation7 + $0x5a4] sm:$0xf] }
 0x187   :  { %v7168_v26 = vor.u32 %v9847_v15, %v7167_v10  ;;  %v9885_v9 = vld [vmem:[#allocation7 + $0x664] sm:$0xf]  ;;  %v7329_v10 = vld [vmem:[#allocation7 + $0x670] sm:$0xf0] }
 0x188   :  { %v9917_v15 = vld [vmem:[#allocation7 + $0x764] sm:$0xf] }
 0x189   :  { %1919 = vmatpush.bf16.msra.mxu0 %v7344_v19  ;;  %1938 = vmatpush.bf16.msra.mxu1 %v7472_v22  ;;  %v7396_v19 = vor.u32 %v9901_v6, %v7393_v20  ;;  %v7521_v22 = vld [vmem:[#allocation7 + $0x7f0] sm:$0xf0]  ;;  %v9825_v6 = vld [vmem:[#allocation7 + $0x484] sm:$0xf] }
 0x18a   :  { %1880 = vmatpush.bf16.msra.mxu2 %v7104_v23  ;;  %1899 = vmatpush.bf16.msra.mxu3 %v7232_v28  ;;  %v7524_v23 = vor.u32 %v9933_v21, %v7521_v22  ;;  %v7023_v28 = vld [vmem:[#allocation7 + $0x400] sm:$0xf]  ;;  %v7089_v20 = vld [vmem:[#allocation7 + $0x490] sm:$0xf0]  ;;  %v9857_v21 = vld [vmem:[#allocation7 + $0x584] sm:$0xf] }
 0x18b   :  { %7006 = vmatmul.msk.bf16.gmra.mxu2 %vm145_vm0, %v10590_v11  ;;  %7008 = vmatmul.msk.bf16.gmra.mxu3 %vm145_vm0, %v10590_v11  ;;  %v9907_v11 = vld [vmem:[#allocation7 + $0x70c] sm:$0xf0]  ;;  %v9881_v22 = vld [vmem:[#allocation7 + $0x644] sm:$0xf] }
 0x18c   :  { %v7408_v17 = vor.u32 %v9907_v11, %v7407_v55  ;;  %v7233_v55 = vld [vmem:[#allocation7 + $0x5b0] sm:$0xf0]  ;;  %v7348_v11 = vor.u32 %v9889_v2, %v7345_v4 }
 0x18d   :  { %1920 = vmatpush.bf16.msra.mxu0 %v7328_v38  ;;  %1939 = vmatpush.bf16.msra.mxu1 %v7456_v43  ;;  %v7024_v38 = vor.u32 %v9811_v29, %v7023_v28  ;;  %v7152_v43 = vor.u32 %v9843_v31, %v7151_v30  ;;  %v7236_v8 = vor.u32 %v9861_v54, %v7233_v55  ;;  %v9913_v28 = vld [vmem:[#allocation7 + $0x744] sm:$0xf]  ;;  %v7441_v29 = vld [vmem:[#allocation7 + $0x750] sm:$0xf0] }
 0x18e   :  { %1881 = vmatpush.bf16.msra.mxu2 %v7088_v53  ;;  %1900 = vmatpush.bf16.msra.mxu3 %v7216_v60  ;;  %v7265_v53 = vld [vmem:[#allocation7 + $0x5f0] sm:$0xf0]  ;;  %v10341_v60 = vld [vmem:[#allocation2 + $0x10] sm:$0xff]  ;;  %v7092_v30 = vor.u32 %v9825_v6, %v7089_v20  ;;  %v7511_v6 = vld [vmem:[#allocation7 + $0x7c8] sm:$0xf] }
 0x18f   :  { %v7268_v47 = vor.u32 %v9869_v45, %v7265_v53  ;;  %v9817_v53 = vld [vmem:[#allocation7 + $0x444] sm:$0xf]  ;;  %v7169_v2 = vld [vmem:[#allocation7 + $0x530] sm:$0xf0]  ;;  %v9932_v20 = vld [vmem:[#allocation7 + $0x7d4] sm:$0xf0] }
 0x191   :  { %1921 = vmatpush.bf16.msra.mxu0 %v7312_v5  ;;  %1940 = vmatpush.bf16.msra.mxu1 %v7440_v7  ;;  %v9925_v5 = vld [vmem:[#allocation7 + $0x7a4] sm:$0xf]  ;;  %v7489_v7 = vld [vmem:[#allocation7 + $0x7b0] sm:$0xf0] }
 0x192   :  { %1882 = vmatpush.bf16.msra.mxu2 %v7072_v24  ;;  %1901 = vmatpush.bf16.msra.mxu3 %v7200_v25  ;;  %v7492_v1 = vor.u32 %v9925_v5, %v7489_v7  ;;  %v9865_v24 = vld [vmem:[#allocation7 + $0x5c4] sm:$0xf]  ;;  %v7249_v25 = vld [vmem:[#allocation7 + $0x5d0] sm:$0xf0] }
 0x193   :  { %v7252_v51 = vor.u32 %v9865_v24, %v7249_v25  ;;  %v9873_v7 = vld [vmem:[#allocation7 + $0x604] sm:$0xf] }
 0x194   :  { %7017 = vmatmul.msk.bf16.vlgmr.msrb.gmra.mxu0 %vm145_vm0, %v10594_v12  ;;  %7019 = vmatmul.msk.bf16.vlgmr.msrb.gmra.mxu1 %vm145_vm0, %v10594_v12  ;;  %v9837_v12 = vld [vmem:[#allocation7 + $0x4e4] sm:$0xf]  ;;  %v7284_v4 = vor.u32 %v9873_v7, %v7281_v48  ;;  %v7239_v7 = vld [vmem:[#allocation7 + $0x5a8] sm:$0xf]  ;;  %v9864_v48 = vld [vmem:[#allocation7 + $0x5b4] sm:$0xf0] }
 0x195   :  { %1922 = vmatpush.bf16.msra.mxu0 %v7296_v57  ;;  %1941 = vmatpush.bf16.msra.mxu1 %v7424_v13  ;;  %v7140_v52 = vor.u32 %v9837_v12, %v7137_v35  ;;  %v7473_v57 = vld [vmem:[#allocation7 + $0x790] sm:$0xf0]  ;;  %v9829_v13 = vld [vmem:[#allocation7 + $0x4a4] sm:$0xf]  ;;  %v7076_v35 = vor.u32 %v9821_v32, %v7073_v33  ;;  %v7367_v32 = vld [vmem:[#allocation7 + $0x6a8] sm:$0xf] }
 0x196   :  { %1883 = vmatpush.bf16.msra.mxu2 %v7056_v58  ;;  %1902 = vmatpush.bf16.msra.mxu3 %v7184_v59  ;;  %v7476_v58 = vor.u32 %v9921_v56, %v7473_v57  ;;  %v7108_v59 = vor.u32 %v9829_v13, %v7105_v14  ;;  %v9909_v12 = vld [vmem:[#allocation7 + $0x724] sm:$0xf]  ;;  %v7399_v57 = vld [vmem:[#allocation7 + $0x6e8] sm:$0xf]  ;;  %v9904_v13 = vld [vmem:[#allocation7 + $0x6f4] sm:$0xf0] }
 0x197   :  { %v9813_v25 = vld [vmem:[#allocation7 + $0x424] sm:$0xf]  ;;  %v7527_v14 = vld [vmem:[#allocation7 + $0x7e8] sm:$0xf]  ;;  %v9896_v33 = vld [vmem:[#allocation7 + $0x6b4] sm:$0xf0] }
 0x199   :  { %1923 = vmatpush.bf16.msra.mxu0 %v7280_v16  ;;  %1942 = vmatpush.bf16.msra.mxu1 %v7408_v17  ;;  %v7457_v16 = vld [vmem:[#allocation7 + $0x770] sm:$0xf0] }
 0x19a   :  { %1884 = vmatpush.bf16.msra.mxu2 %v7040_v3  ;;  %1903 = vmatpush.bf16.msra.mxu3 %v7168_v26  ;;  %v10342_v17 = vld [vmem:[#allocation2 + $0x18] sm:$0xff]  ;;  %v7332_v3 = vor.u32 %v9885_v9, %v7329_v10  ;;  %v7460_v26 = vor.u32 %v9917_v15, %v7457_v16  ;;  %v9841_v10 = vld [vmem:[#allocation7 + $0x504] sm:$0xf]  ;;  %v7383_v16 = vld [vmem:[#allocation7 + $0x6c8] sm:$0xf] }
 0x19b   :  { %7013 = vmatmul.msk.bf16.vlgmr.msrb.gmra.mxu2 %vm145_vm0, %v10341_v60  ;;  %7015 = vmatmul.msk.bf16.vlgmr.msrb.gmra.mxu3 %vm145_vm0, %v10341_v60  ;;  %v7057_v60 = vld [vmem:[#allocation7 + $0x450] sm:$0xf0] }
 0x19c   :  { %v7025_v9 = vld [vmem:[#allocation7 + $0x410] sm:$0xf0] }
 0x19d   :  { %1992 = vmatpush.bf16.msrb.mxu0 %v7396_v19  ;;  %2011 = vmatpush.bf16.msrb.mxu1 %v7524_v23  ;;  %v7217_v19 = vld [vmem:[#allocation7 + $0x590] sm:$0xf0] }
 0x19e   :  { %1885 = vmatpush.bf16.msra.mxu2 %v7024_v38  ;;  %1904 = vmatpush.bf16.msra.mxu3 %v7152_v43  ;;  %v7313_v23 = vld [vmem:[#allocation7 + $0x650] sm:$0xf0]  ;;  %v7220_v31 = vor.u32 %v9857_v21, %v7217_v19  ;;  %v7444_v38 = vor.u32 %v9913_v28, %v7441_v29  ;;  %v7512_v19 = vor.u32 %v9932_v20, %v7511_v6  ;;  %v7271_v28 = vld [vmem:[#allocation7 + $0x5e8] sm:$0xf]  ;;  %v9856_v20 = vld [vmem:[#allocation7 + $0x574] sm:$0xf0] }
 0x19f   :  { %v7316_v37 = vor.u32 %v9881_v22, %v7313_v23  ;;  %v7201_v43 = vld [vmem:[#allocation7 + $0x570] sm:$0xf0]  ;;  %v7143_v22 = vld [vmem:[#allocation7 + $0x4e8] sm:$0xf]  ;;  %v9840_v23 = vld [vmem:[#allocation7 + $0x4f4] sm:$0xf0] }
 0x1a0   :  { %v7204_v45 = vor.u32 %v9853_v36, %v7201_v43  ;;  %v7153_v15 = vld [vmem:[#allocation7 + $0x510] sm:$0xf0]  ;;  %v7144_v29 = vor.u32 %v9840_v23, %v7143_v22  ;;  %v7495_v36 = vld [vmem:[#allocation7 + $0x7a8] sm:$0xf]  ;;  %v9836_v43 = vld [vmem:[#allocation7 + $0x4d4] sm:$0xf0] }
 0x1a1   :  { %1993 = vmatpush.bf16.msrb.mxu0 %v7380_v44  ;;  %2012 = vmatpush.bf16.msrb.mxu1 %v7508_v34  ;;  %v9877_v44 = vld [vmem:[#allocation7 + $0x624] sm:$0xf]  ;;  %v7297_v34 = vld [vmem:[#allocation7 + $0x630] sm:$0xf0]  ;;  %v9912_v23 = vld [vmem:[#allocation7 + $0x734] sm:$0xf0] }
 0x1a2   :  { %1954 = vmatpush.bf16.msrb.mxu2 %v7140_v52  ;;  %1973 = vmatpush.bf16.msrb.mxu3 %v7268_v47  ;;  %v7425_v52 = vld [vmem:[#allocation7 + $0x730] sm:$0xf0]  ;;  %v9849_v47 = vld [vmem:[#allocation7 + $0x544] sm:$0xf]  ;;  %v7300_v63 = vor.u32 %v9877_v44, %v7297_v34  ;;  %v7368_v44 = vor.u32 %v9896_v33, %v7367_v32 }
 0x1a3   :  { %v7428_v5 = vor.u32 %v9909_v12, %v7425_v52  ;;  %v7188_v24 = vor.u32 %v9849_v47, %v7185_v62  ;;  %v7255_v12 = vld [vmem:[#allocation7 + $0x5c8] sm:$0xf]  ;;  %v9924_v62 = vld [vmem:[#allocation7 + $0x794] sm:$0xf0] }
 0x1a4   :  { %7018 = vmatmul.msk.bf16.gmra.mxu0 %vm145_vm0, %v10342_v17  ;;  %7020 = vmatmul.msk.bf16.gmra.mxu1 %vm145_vm0, %v10342_v17  ;;  %v7479_v47 = vld [vmem:[#allocation7 + $0x788] sm:$0xf] }
 0x1a5   :  { %1994 = vmatpush.bf16.msrb.mxu0 %v7364_v0  ;;  %2013 = vmatpush.bf16.msrb.mxu1 %v7492_v1  ;;  %v7409_v0 = vld [vmem:[#allocation7 + $0x710] sm:$0xf0]  ;;  %v7060_v1 = vor.u32 %v9817_v53, %v7057_v60  ;;  %v7351_v53 = vld [vmem:[#allocation7 + $0x688] sm:$0xf]  ;;  %v9892_v60 = vld [vmem:[#allocation7 + $0x694] sm:$0xf0] }
 0x1a6   :  { %1955 = vmatpush.bf16.msrb.mxu2 %v7124_v50  ;;  %1974 = vmatpush.bf16.msrb.mxu3 %v7252_v51  ;;  %v7041_v50 = vld [vmem:[#allocation7 + $0x430] sm:$0xf0]  ;;  %v9845_v51 = vld [vmem:[#allocation7 + $0x524] sm:$0xf]  ;;  %v7412_v56 = vor.u32 %v9905_v49, %v7409_v0  ;;  %v7352_v49 = vor.u32 %v9892_v60, %v7351_v53  ;;  %v7480_v0 = vor.u32 %v9924_v62, %v7479_v47  ;;  %v9848_v60 = vld [vmem:[#allocation7 + $0x534] sm:$0xf0] }
 0x1a7   :  { %v7044_v54 = vor.u32 %v9813_v25, %v7041_v50  ;;  %v7172_v55 = vor.u32 %v9845_v51, %v7169_v2  ;;  %v7335_v25 = vld [vmem:[#allocation7 + $0x668] sm:$0xf]  ;;  %v9888_v50 = vld [vmem:[#allocation7 + $0x674] sm:$0xf0]  ;;  %v9902_v47 = vld [vmem:[#allocation7 + $0x6ec] sm:$0xf] }
 0x1a8   :  { %v7463_v51 = vld [vmem:[#allocation7 + $0x768] sm:$0xf]  ;;  %v9920_v2 = vld [vmem:[#allocation7 + $0x774] sm:$0xf0]  ;;  %v7401_v62 = vld [vmem:[#allocation7 + $0x6f8] sm:$0xf0] }
 0x1a9   :  { %1995 = vmatpush.bf16.msrb.mxu0 %v7348_v11  ;;  %2014 = vmatpush.bf16.msrb.mxu1 %v7476_v58  ;;  %v7400_v11 = vor.u32 %v9904_v13, %v7399_v57  ;;  %v9936_v58 = vld [vmem:[#allocation7 + $0x7f4] sm:$0xf0]  ;;  %v7223_v57 = vld [vmem:[#allocation7 + $0x588] sm:$0xf]  ;;  %v7336_v13 = vor.u32 %v9888_v50, %v7335_v25 }
 0x1aa   :  { %1956 = vmatpush.bf16.msrb.mxu2 %v7108_v59  ;;  %1975 = vmatpush.bf16.msrb.mxu3 %v7236_v8  ;;  %v7528_v59 = vor.u32 %v9936_v58, %v7527_v14  ;;  %v9809_v8 = vld [vmem:[#allocation7 + $0x404] sm:$0xf]  ;;  %v7464_v14 = vor.u32 %v9920_v2, %v7463_v51  ;;  %v7447_v58 = vld [vmem:[#allocation7 + $0x748] sm:$0xf]  ;;  %v9844_v50 = vld [vmem:[#allocation7 + $0x514] sm:$0xf0] }
 0x1ab   :  { %7014 = vmatmul.msk.bf16.gmra.mxu2 %vm145_vm0, %v10342_v17  ;;  %7016 = vmatmul.msk.bf16.gmra.mxu3 %vm145_vm0, %v10342_v17  ;;  %v9900_v17 = vld [vmem:[#allocation7 + $0x6d4] sm:$0xf0]  ;;  %v7028_v21 = vor.u32 %v9809_v8, %v7025_v9  ;;  %v7159_v25 = vld [vmem:[#allocation7 + $0x508] sm:$0xf]  ;;  %v9898_v51 = vld [vmem:[#allocation7 + $0x6cc] sm:$0xf] }
 0x1ac   :  { %v7385_v2 = vld [vmem:[#allocation7 + $0x6d8] sm:$0xf0] }
 0x1ad   :  { %1996 = vmatpush.bf16.msrb.mxu0 %v7332_v3  ;;  %2015 = vmatpush.bf16.msrb.mxu1 %v7460_v26  ;;  %v7156_v3 = vor.u32 %v9841_v10, %v7153_v15  ;;  %v7384_v26 = vor.u32 %v9900_v17, %v7383_v16  ;;  %v7079_v10 = vld [vmem:[#allocation7 + $0x468] sm:$0xf]  ;;  %v9824_v15 = vld [vmem:[#allocation7 + $0x474] sm:$0xf0] }
 0x1ae   :  { %1957 = vmatpush.bf16.msrb.mxu2 %v7092_v30  ;;  %1976 = vmatpush.bf16.msrb.mxu3 %v7220_v31  ;;  %v9872_v30 = vld [vmem:[#allocation7 + $0x5f4] sm:$0xf0]  ;;  %v7207_v16 = vld [vmem:[#allocation7 + $0x568] sm:$0xf] }
 0x1af   :  { %v7272_v31 = vor.u32 %v9872_v30, %v7271_v28  ;;  %v7208_v22 = vor.u32 %v9856_v20, %v7207_v16  ;;  %v7063_v28 = vld [vmem:[#allocation7 + $0x448] sm:$0xf]  ;;  %v9926_v16 = vld [vmem:[#allocation7 + $0x7ac] sm:$0xf] }
 0x1b0   :  { %v7191_v30 = vld [vmem:[#allocation7 + $0x548] sm:$0xf] }
 0x1b1   :  { %1997 = vmatpush.bf16.msrb.mxu0 %v7316_v37  ;;  %2016 = vmatpush.bf16.msrb.mxu1 %v7444_v38  ;;  %v9928_v37 = vld [vmem:[#allocation7 + $0x7b4] sm:$0xf0]  ;;  %v7127_v38 = vld [vmem:[#allocation7 + $0x4c8] sm:$0xf] }
 0x1b2   :  { %1958 = vmatpush.bf16.msrb.mxu2 %v7076_v35  ;;  %1977 = vmatpush.bf16.msrb.mxu3 %v7204_v45  ;;  %v7496_v34 = vor.u32 %v9928_v37, %v7495_v36  ;;  %v9868_v35 = vld [vmem:[#allocation7 + $0x5d4] sm:$0xf0]  ;;  %v7128_v45 = vor.u32 %v9836_v43, %v7127_v38  ;;  %v7287_v36 = vld [vmem:[#allocation7 + $0x608] sm:$0xf] }
 0x1b3   :  { %v7256_v52 = vor.u32 %v9868_v35, %v7255_v12  ;;  %v9876_v37 = vld [vmem:[#allocation7 + $0x614] sm:$0xf0]  ;;  %v7415_v38 = vld [vmem:[#allocation7 + $0x708] sm:$0xf] }
 0x1b4   :  { %1924 = vmatmul.bf16.vlgmr.msra.gmra.mxu0 %v10657_v39  ;;  %1943 = vmatmul.bf16.vlgmr.msra.gmra.mxu1 %v10659_v40  ;;  %v7047_v12 = vld [vmem:[#allocation7 + $0x428] sm:$0xf]  ;;  %v9816_v35 = vld [vmem:[#allocation7 + $0x434] sm:$0xf0] }
 0x1b5   :  { %1998 = vmatpush.bf16.msrb.mxu0 %v7300_v63  ;;  %2017 = vmatpush.bf16.msrb.mxu1 %v7428_v5  ;;  %v7111_v63 = vld [vmem:[#allocation7 + $0x4a8] sm:$0xf]  ;;  %v9832_v5 = vld [vmem:[#allocation7 + $0x4b4] sm:$0xf0] }
 0x1b6   :  { %1959 = vmatpush.bf16.msrb.mxu2 %v7060_v1  ;;  %1978 = vmatpush.bf16.msrb.mxu3 %v7188_v24  ;;  %v7112_v1 = vor.u32 %v9832_v5, %v7111_v63  ;;  %v7240_v24 = vor.u32 %v9864_v48, %v7239_v7  ;;  %v9934_v63 = vld [vmem:[#allocation7 + $0x7ec] sm:$0xf]  ;;  %v7048_v5 = vor.u32 %v9816_v35, %v7047_v12  ;;  %v7337_v35 = vld [vmem:[#allocation7 + $0x678] sm:$0xf0] }
 0x1b7   :  { %v7404_v48 = vor.u32 %v9902_v47, %v7401_v62  ;;  %v9886_v12 = vld [vmem:[#allocation7 + $0x66c] sm:$0xf] }
 0x1b8   :  { %v9858_v47 = vld [vmem:[#allocation7 + $0x58c] sm:$0xf]  ;;  %v7340_v62 = vor.u32 %v9886_v12, %v7337_v35  ;;  %v7033_v35 = vld [vmem:[#allocation7 + $0x418] sm:$0xf0] }
 0x1b9   :  { %1999 = vmatpush.bf16.msrb.mxu0 %v7284_v4  ;;  %2018 = vmatpush.bf16.msrb.mxu1 %v7412_v56  ;;  %v7095_v4 = vld [vmem:[#allocation7 + $0x488] sm:$0xf]  ;;  %v9828_v56 = vld [vmem:[#allocation7 + $0x494] sm:$0xf0]  ;;  %v9810_v12 = vld [vmem:[#allocation7 + $0x40c] sm:$0xf] }
 0x1ba   :  { %1960 = vmatpush.bf16.msrb.mxu2 %v7044_v54  ;;  %1979 = vmatpush.bf16.msrb.mxu3 %v7172_v55  ;;  %v9860_v54 = vld [vmem:[#allocation7 + $0x594] sm:$0xf0]  ;;  %v7319_v55 = vld [vmem:[#allocation7 + $0x648] sm:$0xf]  ;;  %v7096_v8 = vor.u32 %v9828_v56, %v7095_v4  ;;  %v9930_v4 = vld [vmem:[#allocation7 + $0x7cc] sm:$0xf] }
 0x1bb   :  { %1886 = vmatmul.bf16.vlgmr.msra.gmra.mxu2 %v10675_v61  ;;  %1905 = vmatmul.bf16.vlgmr.msra.gmra.mxu3 %v10677_v46  ;;  %v7224_v9 = vor.u32 %v9860_v54, %v7223_v57  ;;  %v7160_v57 = vor.u32 %v9844_v50, %v7159_v25  ;;  %v9822_v25 = vld [vmem:[#allocation7 + $0x46c] sm:$0xf]  ;;  %v7081_v50 = vld [vmem:[#allocation7 + $0x478] sm:$0xf0] }
 0x1bd   :  { %2068 = vmatpush.bf16.msra.mxu0 %v7400_v11  ;;  %2087 = vmatpush.bf16.msra.mxu1 %v7528_v59  ;;  %v9884_v11 = vld [vmem:[#allocation7 + $0x654] sm:$0xf0] }
 0x1be   :  { %1961 = vmatpush.bf16.msrb.mxu2 %v7028_v21  ;;  %1980 = vmatpush.bf16.msrb.mxu3 %v7156_v3  ;;  %v9916_v59 = vld [vmem:[#allocation7 + $0x754] sm:$0xf0]  ;;  %v7320_v17 = vor.u32 %v9884_v11, %v7319_v55  ;;  %v7303_v21 = vld [vmem:[#allocation7 + $0x628] sm:$0xf]  ;;  %v9838_v55 = vld [vmem:[#allocation7 + $0x4ec] sm:$0xf] }
 0x1bf   :  { %v7448_v6 = vor.u32 %v9916_v59, %v7447_v58  ;;  %v9880_v3 = vld [vmem:[#allocation7 + $0x634] sm:$0xf0]  ;;  %v7145_v11 = vld [vmem:[#allocation7 + $0x4f8] sm:$0xf0]  ;;  %v9870_v58 = vld [vmem:[#allocation7 + $0x5ec] sm:$0xf] }
 0x1c0   :  { %v7304_v32 = vor.u32 %v9880_v3, %v7303_v21  ;;  %v7148_v59 = vor.u32 %v9838_v55, %v7145_v11  ;;  %v9834_v21 = vld [vmem:[#allocation7 + $0x4cc] sm:$0xf]  ;;  %v7129_v3 = vld [vmem:[#allocation7 + $0x4d8] sm:$0xf0] }
 0x1c1   :  { %2069 = vmatpush.bf16.msra.mxu0 %v7384_v26  ;;  %2088 = vmatpush.bf16.msra.mxu1 %v7512_v19  ;;  %v7431_v26 = vld [vmem:[#allocation7 + $0x728] sm:$0xf]  ;;  %v7080_v19 = vor.u32 %v9824_v15, %v7079_v10  ;;  %v9894_v10 = vld [vmem:[#allocation7 + $0x6ac] sm:$0xf]  ;;  %v7369_v15 = vld [vmem:[#allocation7 + $0x6b8] sm:$0xf0] }
 0x1c2   :  { %2030 = vmatpush.bf16.msra.mxu2 %v7144_v29  ;;  %2049 = vmatpush.bf16.msra.mxu3 %v7272_v31  ;;  %v9820_v29 = vld [vmem:[#allocation7 + $0x454] sm:$0xf0]  ;;  %v7432_v33 = vor.u32 %v9912_v23, %v7431_v26  ;;  %v9866_v26 = vld [vmem:[#allocation7 + $0x5cc] sm:$0xf]  ;;  %v7433_v11 = vld [vmem:[#allocation7 + $0x738] sm:$0xf0] }
 0x1c3   :  { %v9852_v31 = vld [vmem:[#allocation7 + $0x554] sm:$0xf0]  ;;  %v7064_v43 = vor.u32 %v9820_v29, %v7063_v28  ;;  %v9890_v28 = vld [vmem:[#allocation7 + $0x68c] sm:$0xf]  ;;  %v7353_v29 = vld [vmem:[#allocation7 + $0x698] sm:$0xf0] }
 0x1c4   :  { %1929 = vmatmul.bf16.gmra.mxu0 %v10645_v27  ;;  %1948 = vmatmul.bf16.gmra.mxu1 %v10647_v18 }
 0x1c5   :  { %2070 = vmatpush.bf16.msra.mxu0 %v7368_v44  ;;  %2089 = vmatpush.bf16.msra.mxu1 %v7496_v34  ;;  %v7192_v44 = vor.u32 %v9852_v31, %v7191_v30  ;;  %v9908_v34 = vld [vmem:[#allocation7 + $0x714] sm:$0xf0]  ;;  %v9922_v30 = vld [vmem:[#allocation7 + $0x78c] sm:$0xf]  ;;  %v7481_v31 = vld [vmem:[#allocation7 + $0x798] sm:$0xf0] }
 0x1c6   :  { %2031 = vmatpush.bf16.msra.mxu2 %v7128_v45  ;;  %2050 = vmatpush.bf16.msra.mxu3 %v7256_v52  ;;  %v7175_v45 = vld [vmem:[#allocation7 + $0x528] sm:$0xf]  ;;  %v7288_v52 = vor.u32 %v9876_v37, %v7287_v36  ;;  %v7416_v53 = vor.u32 %v9908_v34, %v7415_v38  ;;  %v9862_v36 = vld [vmem:[#allocation7 + $0x5ac] sm:$0xf]  ;;  %v7356_v37 = vor.u32 %v9890_v28, %v7353_v29 }
 0x1c7   :  { %v7176_v7 = vor.u32 %v9848_v60, %v7175_v45  ;;  %v7484_v38 = vor.u32 %v9922_v30, %v7481_v31  ;;  %v9918_v45 = vld [vmem:[#allocation7 + $0x76c] sm:$0xf]  ;;  %v7097_v60 = vld [vmem:[#allocation7 + $0x498] sm:$0xf0] }
 0x1c8   :  { %v7177_v31 = vld [vmem:[#allocation7 + $0x538] sm:$0xf0] }
 0x1c9   :  { %2071 = vmatpush.bf16.msra.mxu0 %v7352_v49  ;;  %2090 = vmatpush.bf16.msra.mxu1 %v7480_v0  ;;  %v7529_v49 = vld [vmem:[#allocation7 + $0x7f8] sm:$0xf0] }
 0x1ca   :  { %2032 = vmatpush.bf16.msra.mxu2 %v7112_v1  ;;  %2051 = vmatpush.bf16.msra.mxu3 %v7240_v24  ;;  %v7532_v0 = vor.u32 %v9934_v63, %v7529_v49  ;;  %v7031_v1 = vld [vmem:[#allocation7 + $0x408] sm:$0xf]  ;;  %v9812_v24 = vld [vmem:[#allocation7 + $0x414] sm:$0xf0]  ;;  %v9914_v49 = vld [vmem:[#allocation7 + $0x74c] sm:$0xf] }
 0x1cb   :  { %1891 = vmatmul.bf16.gmra.mxu2 %v10661_v41  ;;  %1910 = vmatmul.bf16.gmra.mxu3 %v10663_v42  ;;  %v7032_v56 = vor.u32 %v9812_v24, %v7031_v1  ;;  %v7449_v24 = vld [vmem:[#allocation7 + $0x758] sm:$0xf0] }
 0x1cd   :  { %2072 = vmatpush.bf16.msra.mxu0 %v7336_v13  ;;  %2091 = vmatpush.bf16.msra.mxu1 %v7464_v14  ;;  %v7513_v13 = vld [vmem:[#allocation7 + $0x7d8] sm:$0xf0]  ;;  %v7388_v14 = vor.u32 %v9898_v51, %v7385_v2  ;;  %v9854_v51 = vld [vmem:[#allocation7 + $0x56c] sm:$0xf] }
 0x1ce   :  { %2033 = vmatpush.bf16.msra.mxu2 %v7096_v8  ;;  %2052 = vmatpush.bf16.msra.mxu3 %v7224_v9  ;;  %v7516_v54 = vor.u32 %v9930_v4, %v7513_v13  ;;  %v7273_v8 = vld [vmem:[#allocation7 + $0x5f8] sm:$0xf0]  ;;  %v7452_v4 = vor.u32 %v9914_v49, %v7449_v24  ;;  %v7647_v49 = vld [vmem:[#allocation7 + $0xe0] sm:$0xf] }
 0x1cf   :  { %v7276_v9 = vor.u32 %v9870_v58, %v7273_v8  ;;  %v7305_v13 = vld [vmem:[#allocation7 + $0x638] sm:$0xf0]  ;;  %v9818_v58 = vld [vmem:[#allocation7 + $0x44c] sm:$0xf] }
 0x1d0   :  { %v9850_v8 = vld [vmem:[#allocation7 + $0x54c] sm:$0xf] }
 0x1d1   :  { %2073 = vmatpush.bf16.msra.mxu0 %v7320_v17  ;;  %2092 = vmatpush.bf16.msra.mxu1 %v7448_v6  ;;  %v7497_v17 = vld [vmem:[#allocation7 + $0x7b8] sm:$0xf0]  ;;  %v7372_v6 = vor.u32 %v9894_v10, %v7369_v15 }
 0x1d2   :  { %2034 = vmatpush.bf16.msra.mxu2 %v7080_v19  ;;  %2053 = vmatpush.bf16.msra.mxu3 %v7208_v22  ;;  %v7500_v20 = vor.u32 %v9926_v16, %v7497_v17  ;;  %v7132_v19 = vor.u32 %v9834_v21, %v7129_v3  ;;  %v7257_v22 = vld [vmem:[#allocation7 + $0x5d8] sm:$0xf0]  ;;  %v9874_v16 = vld [vmem:[#allocation7 + $0x60c] sm:$0xf] }
 0x1d3   :  { %v7260_v23 = vor.u32 %v9866_v26, %v7257_v22  ;;  %v7193_v15 = vld [vmem:[#allocation7 + $0x558] sm:$0xf0]  ;;  %v9814_v26 = vld [vmem:[#allocation7 + $0x42c] sm:$0xf] }
 0x1d4   :  { %2000 = vmatmul.bf16.vlgmr.msrb.gmra.mxu0 %v10657_v39  ;;  %2019 = vmatmul.bf16.vlgmr.msrb.gmra.mxu1 %v10659_v40  ;;  %v7289_v17 = vld [vmem:[#allocation7 + $0x618] sm:$0xf0]  ;;  %v7196_v21 = vor.u32 %v9850_v8, %v7193_v15  ;;  %v9846_v22 = vld [vmem:[#allocation7 + $0x52c] sm:$0xf] }
 0x1d5   :  { %2074 = vmatpush.bf16.msra.mxu0 %v7304_v32  ;;  %2093 = vmatpush.bf16.msra.mxu1 %v7432_v33  ;;  %v9830_v32 = vld [vmem:[#allocation7 + $0x4ac] sm:$0xf]  ;;  %v7113_v33 = vld [vmem:[#allocation7 + $0x4b8] sm:$0xf0]  ;;  %v7292_v29 = vor.u32 %v9874_v16, %v7289_v17  ;;  %v7855_v16 = vld [vmem:[#allocation7 + $0x280] sm:$0xf] }
 0x1d6   :  { %2035 = vmatpush.bf16.msra.mxu2 %v7064_v43  ;;  %2054 = vmatpush.bf16.msra.mxu3 %v7192_v44  ;;  %v7241_v43 = vld [vmem:[#allocation7 + $0x5b8] sm:$0xf0]  ;;  %v7116_v44 = vor.u32 %v9830_v32, %v7113_v33  ;;  %v7903_v32 = vld [vmem:[#allocation7 + $0x2e0] sm:$0xf]  ;;  %v9775_v33 = vld [vmem:[#allocation7 + $0x2ec] sm:$0xf0] }
 0x1d7   :  { %v7244_v34 = vor.u32 %v9862_v36, %v7241_v43  ;;  %v7417_v3 = vld [vmem:[#allocation7 + $0x718] sm:$0xf0]  ;;  %v8031_v36 = vld [vmem:[#allocation7 + $0x3e0] sm:$0xf]  ;;  %v7904_v43 = vor.u32 %v9775_v33, %v7903_v32  ;;  %v9763_v17 = vld [vmem:[#allocation7 + $0x28c] sm:$0xf0] }
 0x1d9   :  { %2075 = vmatpush.bf16.msra.mxu0 %v7288_v52  ;;  %2094 = vmatpush.bf16.msra.mxu1 %v7416_v53  ;;  %v7465_v52 = vld [vmem:[#allocation7 + $0x778] sm:$0xf0]  ;;  %v9826_v53 = vld [vmem:[#allocation7 + $0x48c] sm:$0xf] }
 0x1da   :  { %2036 = vmatpush.bf16.msra.mxu2 %v7048_v5  ;;  %2055 = vmatpush.bf16.msra.mxu3 %v7176_v7  ;;  %v7468_v63 = vor.u32 %v9918_v45, %v7465_v52  ;;  %v7225_v5 = vld [vmem:[#allocation7 + $0x598] sm:$0xf0]  ;;  %v9882_v7 = vld [vmem:[#allocation7 + $0x64c] sm:$0xf] }
 0x1db   :  { %1962 = vmatmul.bf16.vlgmr.msrb.gmra.mxu2 %v10675_v61  ;;  %1981 = vmatmul.bf16.vlgmr.msrb.gmra.mxu3 %v10677_v46  ;;  %v7228_v1 = vor.u32 %v9858_v47, %v7225_v5  ;;  %v9842_v45 = vld [vmem:[#allocation7 + $0x50c] sm:$0xf]  ;;  %v7161_v52 = vld [vmem:[#allocation7 + $0x518] sm:$0xf0]  ;;  %v8015_v47 = vld [vmem:[#allocation7 + $0x3c0] sm:$0xf] }
 0x1dc   :  { %v9803_v5 = vld [vmem:[#allocation7 + $0x3cc] sm:$0xf0] }
 0x1dd   :  { %2144 = vmatpush.bf16.msrb.mxu0 %v7404_v48  ;;  %2163 = vmatpush.bf16.msrb.mxu1 %v7532_v0  ;;  %v7321_v48 = vld [vmem:[#allocation7 + $0x658] sm:$0xf0]  ;;  %v7100_v0 = vor.u32 %v9826_v53, %v7097_v60  ;;  %v7887_v53 = vld [vmem:[#allocation7 + $0x2c0] sm:$0xf]  ;;  %v9771_v60 = vld [vmem:[#allocation7 + $0x2cc] sm:$0xf0] }
 0x1de   :  { %2037 = vmatpush.bf16.msra.mxu2 %v7032_v56  ;;  %2056 = vmatpush.bf16.msra.mxu3 %v7160_v57  ;;  %v7324_v2 = vor.u32 %v9882_v7, %v7321_v48  ;;  %v7209_v56 = vld [vmem:[#allocation7 + $0x578] sm:$0xf0]  ;;  %v9878_v57 = vld [vmem:[#allocation7 + $0x62c] sm:$0xf]  ;;  %v7888_v7 = vor.u32 %v9771_v60, %v7887_v53  ;;  %v8016_v48 = vor.u32 %v9803_v5, %v8015_v47  ;;  %v9731_v60 = vld [vmem:[#allocation7 + $0x18c] sm:$0xf0] }
 0x1df   :  { %v7212_v55 = vor.u32 %v9854_v51, %v7209_v56  ;;  %v9743_v51 = vld [vmem:[#allocation7 + $0x1ec] sm:$0xf0]  ;;  %v7823_v47 = vld [vmem:[#allocation7 + $0x240] sm:$0xf] }
 0x1e0   :  { %v9767_v56 = vld [vmem:[#allocation7 + $0x2ac] sm:$0xf0] }
 0x1e1   :  { %2145 = vmatpush.bf16.msrb.mxu0 %v7388_v14  ;;  %2164 = vmatpush.bf16.msrb.mxu1 %v7516_v54  ;;  %v9910_v14 = vld [vmem:[#allocation7 + $0x72c] sm:$0xf]  ;;  %v7084_v54 = vor.u32 %v9822_v25, %v7081_v50 }
 0x1e2   :  { %2106 = vmatpush.bf16.msrb.mxu2 %v7148_v59  ;;  %2125 = vmatpush.bf16.msrb.mxu3 %v7276_v9  ;;  %v7065_v59 = vld [vmem:[#allocation7 + $0x458] sm:$0xf0]  ;;  %v7308_v9 = vor.u32 %v9878_v57, %v7305_v13  ;;  %v7436_v10 = vor.u32 %v9910_v14, %v7433_v11  ;;  %v7999_v57 = vld [vmem:[#allocation7 + $0x3a0] sm:$0xf]  ;;  %v9799_v13 = vld [vmem:[#allocation7 + $0x3ac] sm:$0xf0] }
 0x1e3   :  { %v9707_v11 = vld [vmem:[#allocation7 + $0xcc] sm:$0xf0] }
 0x1e4   :  { %2005 = vmatmul.bf16.gmra.mxu0 %v10645_v27  ;;  %2024 = vmatmul.bf16.gmra.mxu1 %v10647_v18 }
 0x1e5   :  { %2146 = vmatpush.bf16.msrb.mxu0 %v7372_v6  ;;  %2165 = vmatpush.bf16.msrb.mxu1 %v7500_v20  ;;  %v9906_v6 = vld [vmem:[#allocation7 + $0x70c] sm:$0xf]  ;;  %v7068_v20 = vor.u32 %v9818_v58, %v7065_v59  ;;  %v7759_v58 = vld [vmem:[#allocation7 + $0x1c0] sm:$0xf] }
 0x1e6   :  { %2107 = vmatpush.bf16.msrb.mxu2 %v7132_v19  ;;  %2126 = vmatpush.bf16.msrb.mxu3 %v7260_v23  ;;  %v7049_v19 = vld [vmem:[#allocation7 + $0x438] sm:$0xf0]  ;;  %v7420_v30 = vor.u32 %v9906_v6, %v7417_v3  ;;  %v7983_v6 = vld [vmem:[#allocation7 + $0x380] sm:$0xf]  ;;  %v9703_v3 = vld [vmem:[#allocation7 + $0xac] sm:$0xf0] }
 0x1e9   :  { %2147 = vmatpush.bf16.msrb.mxu0 %v7356_v37  ;;  %2166 = vmatpush.bf16.msrb.mxu1 %v7484_v38  ;;  %v7052_v37 = vor.u32 %v9814_v26, %v7049_v19  ;;  %v7180_v38 = vor.u32 %v9846_v22, %v7177_v31  ;;  %v7743_v26 = vld [vmem:[#allocation7 + $0x1a0] sm:$0xf]  ;;  %v9735_v31 = vld [vmem:[#allocation7 + $0x1ac] sm:$0xf0] }
 0x1ea   :  { %2108 = vmatpush.bf16.msrb.mxu2 %v7116_v44  ;;  %2127 = vmatpush.bf16.msrb.mxu3 %v7244_v34  ;;  %v9807_v44 = vld [vmem:[#allocation7 + $0x3ec] sm:$0xf0]  ;;  %v7744_v33 = vor.u32 %v9735_v31, %v7743_v26  ;;  %v7919_v26 = vld [vmem:[#allocation7 + $0x300] sm:$0xf] }
 0x1eb   :  { %1967 = vmatmul.bf16.gmra.mxu2 %v10661_v41  ;;  %1986 = vmatmul.bf16.gmra.mxu3 %v10663_v42  ;;  %v8032_v34 = vor.u32 %v9807_v44, %v8031_v36  ;;  %v7839_v36 = vld [vmem:[#allocation7 + $0x260] sm:$0xf]  ;;  %v9779_v31 = vld [vmem:[#allocation7 + $0x30c] sm:$0xf0] }
 0x1ec   :  { %v7599_v44 = vld [vmem:[#allocation7 + $0x80] sm:$0xf] }
 0x1ed   :  { %2148 = vmatpush.bf16.msrb.mxu0 %v7340_v62  ;;  %2167 = vmatpush.bf16.msrb.mxu1 %v7468_v63  ;;  %v7036_v62 = vor.u32 %v9810_v12, %v7033_v35  ;;  %v7164_v63 = vor.u32 %v9842_v45, %v7161_v52  ;;  %v7727_v12 = vld [vmem:[#allocation7 + $0x180] sm:$0xf] }
 0x1ee   :  { %2109 = vmatpush.bf16.msrb.mxu2 %v7100_v0  ;;  %2128 = vmatpush.bf16.msrb.mxu3 %v7228_v1  ;;  %v9711_v0 = vld [vmem:[#allocation7 + $0xec] sm:$0xf0]  ;;  %v7775_v1 = vld [vmem:[#allocation7 + $0x1e0] sm:$0xf] }
 0x1ef   :  { %v7648_v50 = vor.u32 %v9711_v0, %v7647_v49  ;;  %v7583_v49 = vld [vmem:[#allocation7 + $0x60] sm:$0xf]  ;;  %v9695_v0 = vld [vmem:[#allocation7 + $0x6c] sm:$0xf0] }
 0x1f1   :  { %2149 = vmatpush.bf16.msrb.mxu0 %v7324_v2  ;;  %2168 = vmatpush.bf16.msrb.mxu1 %v7452_v4  ;;  %v10725_v23 = vpop.f32.mrf.mxu0  ;;  %v10727_v28 = vpop.f32.mrf.mxu1  ;;  %v7776_v2 = vor.u32 %v9743_v51, %v7775_v1  ;;  %v7871_v4 = vld [vmem:[#allocation7 + $0x2a0] sm:$0xf] }
 0x1f2   :  { %2110 = vmatpush.bf16.msrb.mxu2 %v7084_v54  ;;  %2129 = vmatpush.bf16.msrb.mxu3 %v7212_v55  ;;  %v7872_v14 = vor.u32 %v9767_v56, %v7871_v4  ;;  %v8000_v54 = vor.u32 %v9799_v13, %v7999_v57  ;;  %v7631_v55 = vld [vmem:[#allocation7 + $0xc0] sm:$0xf]  ;;  %v9727_v56 = vld [vmem:[#allocation7 + $0x16c] sm:$0xf0] }
 0x1f3   :  { %v7711_v1 = vld [vmem:[#allocation7 + $0x160] sm:$0xf]  ;;  %v9751_v13 = vld [vmem:[#allocation7 + $0x22c] sm:$0xf0] }
 0x1f4   :  { %2076 = vmatmul.bf16.vlgmr.msra.gmra.mxu0 %v10657_v39  ;;  %2095 = vmatmul.bf16.vlgmr.msra.gmra.mxu1 %v10659_v40  ;;  %v7807_v57 = vld [vmem:[#allocation7 + $0x220] sm:$0xf] }
 0x1f5   :  { %2150 = vmatpush.bf16.msrb.mxu0 %v7308_v9  ;;  %2169 = vmatpush.bf16.msrb.mxu1 %v7436_v10  ;;  %v7632_v9 = vor.u32 %v9707_v11, %v7631_v55  ;;  %v9739_v10 = vld [vmem:[#allocation7 + $0x1cc] sm:$0xf0]  ;;  %v7712_v55 = vor.u32 %v9727_v56, %v7711_v1  ;;  %v7889_v56 = vld [vmem:[#allocation7 + $0x2d0] sm:$0xf0] }
 0x1f6   :  { %2111 = vmatpush.bf16.msrb.mxu2 %v7068_v20  ;;  %2130 = vmatpush.bf16.msrb.mxu3 %v7196_v21  ;;  %v7760_v15 = vor.u32 %v9739_v10, %v7759_v58  ;;  %v9795_v20 = vld [vmem:[#allocation7 + $0x38c] sm:$0xf0]  ;;  %v7615_v21 = vld [vmem:[#allocation7 + $0xa0] sm:$0xf] }
 0x1f7   :  { %v7616_v32 = vor.u32 %v9703_v3, %v7615_v21  ;;  %v9783_v11 = vld [vmem:[#allocation7 + $0x32c] sm:$0xf0]  ;;  %v7567_v58 = vld [vmem:[#allocation7 + $0x40] sm:$0xf] }
 0x1f8   :  { %v7695_v10 = vld [vmem:[#allocation7 + $0x140] sm:$0xf]  ;;  %v9747_v3 = vld [vmem:[#allocation7 + $0x20c] sm:$0xf0] }
 0x1f9   :  { %2151 = vmatpush.bf16.msrb.mxu0 %v7292_v29  ;;  %2170 = vmatpush.bf16.msrb.mxu1 %v7420_v30  ;;  %v10731_v24 = vpop.f32.mrf.mxu0  ;;  %v10733_v25 = vpop.f32.mrf.mxu1  ;;  %v7856_v29 = vor.u32 %v9763_v17, %v7855_v16  ;;  %v7984_v30 = vor.u32 %v9795_v20, %v7983_v6  ;;  %v7808_v17 = vor.u32 %v9751_v13, %v7807_v57  ;;  %v9723_v20 = vld [vmem:[#allocation7 + $0x14c] sm:$0xf0]  ;;  %v7791_v21 = vld [vmem:[#allocation7 + $0x200] sm:$0xf]  ;;  %v9801_v57 = vld [vmem:[#allocation7 + $0x3c4] sm:$0xf] }
 0x1fa   :  { %2112 = vmatpush.bf16.msrb.mxu2 %v7052_v37  ;;  %2131 = vmatpush.bf16.msrb.mxu3 %v7180_v38  ;;  %v9759_v37 = vld [vmem:[#allocation7 + $0x26c] sm:$0xf0]  ;;  %v7967_v38 = vld [vmem:[#allocation7 + $0x360] sm:$0xf]  ;;  %v8017_v13 = vld [vmem:[#allocation7 + $0x3d0] sm:$0xf0] }
 0x1fb   :  { %2038 = vmatmul.bf16.vlgmr.msra.gmra.mxu2 %v10675_v61  ;;  %2057 = vmatmul.bf16.vlgmr.msra.gmra.mxu3 %v10677_v46  ;;  %v7840_v52 = vor.u32 %v9759_v37, %v7839_v36  ;;  %v7679_v36 = vld [vmem:[#allocation7 + $0x120] sm:$0xf] }
 0x1fd   :  { %2860 = vmatpush.bf16.msra.mxu0 %v7904_v43  ;;  %2879 = vmatpush.bf16.msra.mxu1 %v8032_v34  ;;  %v9791_v43 = vld [vmem:[#allocation7 + $0x36c] sm:$0xf0] }
 0x1fe   :  { %2113 = vmatpush.bf16.msrb.mxu2 %v7036_v62  ;;  %2132 = vmatpush.bf16.msrb.mxu3 %v7164_v63  ;;  %v10737_v59 = vpop.f32.mrf.mxu2  ;;  %v10739_v8 = vpop.f32.mrf.mxu3  ;;  %v9699_v34 = vld [vmem:[#allocation7 + $0x8c] sm:$0xf0]  ;;  %v7968_v53 = vor.u32 %v9791_v43, %v7967_v38  ;;  %v7951_v63 = vld [vmem:[#allocation7 + $0x340] sm:$0xf]  ;;  %v7792_v43 = vor.u32 %v9747_v3, %v7791_v21 }
 0x1ff   :  { %v9755_v62 = vld [vmem:[#allocation7 + $0x24c] sm:$0xf0]  ;;  %v7600_v5 = vor.u32 %v9699_v34, %v7599_v44  ;;  %v7920_v44 = vor.u32 %v9779_v31, %v7919_v26  ;;  %v9765_v26 = vld [vmem:[#allocation7 + $0x2a4] sm:$0xf]  ;;  %v8001_v31 = vld [vmem:[#allocation7 + $0x3b0] sm:$0xf0] }
 0x200   :  { %v9719_v34 = vld [vmem:[#allocation7 + $0x12c] sm:$0xf0] }
 0x201   :  { %2861 = vmatpush.bf16.msra.mxu0 %v7888_v7  ;;  %2880 = vmatpush.bf16.msra.mxu1 %v8016_v48  ;;  %v10741_v19 = vpop.f32.mrf.mxu0  ;;  %v10743_v22 = vpop.f32.mrf.mxu1  ;;  %v7728_v7 = vor.u32 %v9731_v60, %v7727_v12  ;;  %v9787_v48 = vld [vmem:[#allocation7 + $0x34c] sm:$0xf0]  ;;  %v9773_v12 = vld [vmem:[#allocation7 + $0x2e4] sm:$0xf] }
 0x202   :  { %2822 = vmatpush.bf16.msra.mxu2 %v7648_v50  ;;  %2841 = vmatpush.bf16.msra.mxu3 %v7776_v2  ;;  %v7824_v2 = vor.u32 %v9755_v62, %v7823_v47  ;;  %v7952_v4 = vor.u32 %v9787_v48, %v7951_v63  ;;  %v7680_v47 = vor.u32 %v9719_v34, %v7679_v36  ;;  %v8033_v63 = vld [vmem:[#allocation7 + $0x3f0] sm:$0xf0]  ;;  %v9683_v48 = vld [vmem:[#allocation7 + $0xc] sm:$0xf0]  ;;  %v9705_v36 = vld [vmem:[#allocation7 + $0xc4] sm:$0xf] }
 0x204   :  { %2081 = vmatmul.bf16.gmra.mxu0 %v10645_v27  ;;  %2100 = vmatmul.bf16.gmra.mxu1 %v10647_v18 }
 0x205   :  { %2862 = vmatpush.bf16.msra.mxu0 %v7872_v14  ;;  %2881 = vmatpush.bf16.msra.mxu1 %v8000_v54  ;;  %v7935_v14 = vld [vmem:[#allocation7 + $0x320] sm:$0xf]  ;;  %v7584_v54 = vor.u32 %v9695_v0, %v7583_v49 }
 0x206   :  { %2823 = vmatpush.bf16.msra.mxu2 %v7632_v9  ;;  %2842 = vmatpush.bf16.msra.mxu3 %v7760_v15  ;;  %v10747_v35 = vpop.f32.mrf.mxu2  ;;  %v10749_v45 = vpop.f32.mrf.mxu3  ;;  %v9691_v9 = vld [vmem:[#allocation7 + $0x4c] sm:$0xf0]  ;;  %v7936_v6 = vor.u32 %v9783_v11, %v7935_v14  ;;  %v7663_v49 = vld [vmem:[#allocation7 + $0x100] sm:$0xf]  ;;  %v7649_v11 = vld [vmem:[#allocation7 + $0xf0] sm:$0xf0] }
 0x209   :  { %2863 = vmatpush.bf16.msra.mxu0 %v7856_v29  ;;  %2882 = vmatpush.bf16.msra.mxu1 %v7984_v30  ;;  %v10751_v50 = vpop.f32.mrf.mxu0  ;;  %v10753_v51 = vpop.f32.mrf.mxu1  ;;  %v7568_v29 = vor.u32 %v9691_v9, %v7567_v58  ;;  %v7696_v30 = vor.u32 %v9723_v20, %v7695_v10  ;;  %v9741_v58 = vld [vmem:[#allocation7 + $0x1e4] sm:$0xf] }
 0x20a   :  { %2824 = vmatpush.bf16.msra.mxu2 %v7616_v32  ;;  %2843 = vmatpush.bf16.msra.mxu3 %v7744_v33  ;;  %v7551_v32 = vld [vmem:[#allocation7 + $0x20] sm:$0xf]  ;;  %v9687_v33 = vld [vmem:[#allocation7 + $0x2c] sm:$0xf0] }
 0x20b   :  { %2043 = vmatmul.bf16.gmra.mxu2 %v10661_v41  ;;  %2062 = vmatmul.bf16.gmra.mxu3 %v10663_v42  ;;  %v7552_v60 = vor.u32 %v9687_v33, %v7551_v32 }
 0x20d   :  { %2864 = vmatpush.bf16.msra.mxu0 %v7840_v52  ;;  %2883 = vmatpush.bf16.msra.mxu1 %v7968_v53  ;;  %v7905_v52 = vld [vmem:[#allocation7 + $0x2f0] sm:$0xf0]  ;;  %v9805_v53 = vld [vmem:[#allocation7 + $0x3e4] sm:$0xf] }
 0x20e   :  { %2825 = vmatpush.bf16.msra.mxu2 %v7600_v5  ;;  %2844 = vmatpush.bf16.msra.mxu3 %v7728_v7  ;;  %v10757_v15 = vpop.f32.mrf.mxu2  ;;  %v10759_v16 = vpop.f32.mrf.mxu3  ;;  %v7908_v62 = vor.u32 %v9773_v12, %v7905_v52  ;;  %v8036_v5 = vor.u32 %v9805_v53, %v8033_v63  ;;  %v7535_v7 = vld [vmem:[#allocation7] sm:$0xf]  ;;  %v9761_v12 = vld [vmem:[#allocation7 + $0x284] sm:$0xf]  ;;  %v7857_v52 = vld [vmem:[#allocation7 + $0x290] sm:$0xf0] }
 0x20f   :  { %v9793_v53 = vld [vmem:[#allocation7 + $0x384] sm:$0xf] }
 0x210   :  { %v9733_v63 = vld [vmem:[#allocation7 + $0x1a4] sm:$0xf] }
 0x211   :  { %2865 = vmatpush.bf16.msra.mxu0 %v7824_v2  ;;  %2884 = vmatpush.bf16.msra.mxu1 %v7952_v4  ;;  %v944_v37 = vpop.f32.mrf.mxu0  ;;  %v963_v38 = vpop.f32.mrf.mxu1  ;;  %v9715_v2 = vld [vmem:[#allocation7 + $0x10c] sm:$0xf0]  ;;  %v9769_v4 = vld [vmem:[#allocation7 + $0x2c4] sm:$0xf] }
 0x212   :  { %2826 = vmatpush.bf16.msra.mxu2 %v7584_v54  ;;  %2845 = vmatpush.bf16.msra.mxu3 %v7712_v55  ;;  %v7892_v14 = vor.u32 %v9769_v4, %v7889_v56  ;;  %v8020_v54 = vor.u32 %v9801_v57, %v8017_v13  ;;  %v9709_v55 = vld [vmem:[#allocation7 + $0xe4] sm:$0xf]  ;;  %v7969_v13 = vld [vmem:[#allocation7 + $0x370] sm:$0xf0] }
 0x213   :  { %v9757_v57 = vld [vmem:[#allocation7 + $0x264] sm:$0xf] }
 0x214   :  { %2152 = vmatmul.bf16.vlgmr.msrb.gmra.mxu0 %v10657_v39  ;;  %2171 = vmatmul.bf16.vlgmr.msrb.gmra.mxu1 %v10659_v40  ;;  %v7536_v39 = vor.u32 %v9683_v48, %v7535_v7  ;;  %v7664_v40 = vor.u32 %v9715_v2, %v7663_v49  ;;  %v7860_v48 = vor.u32 %v9761_v12, %v7857_v52  ;;  %v7745_v2 = vld [vmem:[#allocation7 + $0x1b0] sm:$0xf0]  ;;  %v9749_v12 = vld [vmem:[#allocation7 + $0x224] sm:$0xf] }
 0x215   :  { %2866 = vmatpush.bf16.msra.mxu0 %v7808_v17  ;;  %2885 = vmatpush.bf16.msra.mxu1 %v7936_v6  ;;  %v7652_v17 = vor.u32 %v9709_v55, %v7649_v11  ;;  %v7777_v6 = vld [vmem:[#allocation7 + $0x1f0] sm:$0xf0]  ;;  %v7748_v56 = vor.u32 %v9733_v63, %v7745_v2  ;;  %v9729_v55 = vld [vmem:[#allocation7 + $0x184] sm:$0xf] }
 0x216   :  { %2827 = vmatpush.bf16.msra.mxu2 %v7568_v29  ;;  %2846 = vmatpush.bf16.msra.mxu3 %v7696_v30  ;;  %v10763_v0 = vpop.f32.mrf.mxu2  ;;  %v10765_v1 = vpop.f32.mrf.mxu3  ;;  %v7780_v3 = vor.u32 %v9741_v58, %v7777_v6  ;;  %v7873_v29 = vld [vmem:[#allocation7 + $0x2b0] sm:$0xf0]  ;;  %v9797_v30 = vld [vmem:[#allocation7 + $0x3a4] sm:$0xf] }
 0x217   :  { %v7876_v32 = vor.u32 %v9765_v26, %v7873_v29  ;;  %v8004_v33 = vor.u32 %v9797_v30, %v8001_v31  ;;  %v9753_v26 = vld [vmem:[#allocation7 + $0x244] sm:$0xf]  ;;  %v7953_v31 = vld [vmem:[#allocation7 + $0x350] sm:$0xf0] }
 0x218   :  { %v9785_v29 = vld [vmem:[#allocation7 + $0x344] sm:$0xf]  ;;  %v7809_v52 = vld [vmem:[#allocation7 + $0x230] sm:$0xf0] }
 0x219   :  { %2867 = vmatpush.bf16.msra.mxu0 %v7792_v43  ;;  %2886 = vmatpush.bf16.msra.mxu1 %v7920_v44  ;;  %v946_v9 = vpop.f32.mrf.mxu0  ;;  %v965_v10 = vpop.f32.mrf.mxu1  ;;  %v9737_v43 = vld [vmem:[#allocation7 + $0x1c4] sm:$0xf] }
 0x21a   :  { %2828 = vmatpush.bf16.msra.mxu2 %v7552_v60  ;;  %2847 = vmatpush.bf16.msra.mxu3 %v7680_v47  ;;  %v10767_v20 = vpack.c.bf16 %v946_v9, %v944_v37  ;;  %v10769_v21 = vpack.c.bf16 %v965_v10, %v963_v38  ;;  %v7633_v37 = vld [vmem:[#allocation7 + $0xd0] sm:$0xf0]  ;;  %v9701_v47 = vld [vmem:[#allocation7 + $0xa4] sm:$0xf] }
 0x21b   :  { %2114 = vmatmul.bf16.vlgmr.msrb.gmra.mxu2 %v10675_v61  ;;  %2133 = vmatmul.bf16.vlgmr.msrb.gmra.mxu3 %v10677_v46  ;;  %v7636_v61 = vor.u32 %v9705_v36, %v7633_v37  ;;  %v7761_v46 = vld [vmem:[#allocation7 + $0x1d0] sm:$0xf0]  ;;  %v9725_v36 = vld [vmem:[#allocation7 + $0x164] sm:$0xf] }
 0x21c   :  { %v7764_v34 = vor.u32 %v9737_v43, %v7761_v46  ;;  %v7985_v60 = vld [vmem:[#allocation7 + $0x390] sm:$0xf0]  ;;  %v9689_v63 = vld [vmem:[#allocation7 + $0x44] sm:$0xf] }
 0x21d   :  { %2936 = vmatpush.bf16.msrb.mxu0 %v7908_v62  ;;  %2955 = vmatpush.bf16.msrb.mxu1 %v8036_v5  ;;  %v7617_v62 = vld [vmem:[#allocation7 + $0xb0] sm:$0xf0]  ;;  %v7988_v49 = vor.u32 %v9793_v53, %v7985_v60  ;;  %v9781_v53 = vld [vmem:[#allocation7 + $0x324] sm:$0xf] }
 0x21e   :  { %2829 = vmatpush.bf16.msra.mxu2 %v7536_v39  ;;  %2848 = vmatpush.bf16.msra.mxu3 %v7664_v40  ;;  %v906_v38 = vpop.f32.mrf.mxu2  ;;  %v925_v44 = vpop.f32.mrf.mxu3  ;;  %v7620_v4 = vor.u32 %v9701_v47, %v7617_v62  ;;  %v7841_v39 = vld [vmem:[#allocation7 + $0x270] sm:$0xf0]  ;;  %v9789_v40 = vld [vmem:[#allocation7 + $0x364] sm:$0xf] }
 0x21f   :  { %v7844_v9 = vor.u32 %v9757_v57, %v7841_v39  ;;  %v7972_v10 = vor.u32 %v9789_v40, %v7969_v13  ;;  %v7713_v46 = vld [vmem:[#allocation7 + $0x170] sm:$0xf0]  ;;  %v9777_v57 = vld [vmem:[#allocation7 + $0x304] sm:$0xf] }
 0x220   :  { %v7716_v47 = vor.u32 %v9725_v36, %v7713_v46  ;;  %v7937_v62 = vld [vmem:[#allocation7 + $0x330] sm:$0xf0]  ;;  %v9808_v36 = vld [vmem:[#allocation7 + $0x3f4] sm:$0xf0] }
 0x221   :  { %2937 = vmatpush.bf16.msrb.mxu0 %v7892_v14  ;;  %2956 = vmatpush.bf16.msrb.mxu1 %v8020_v54  ;;  %v949_v5 = vpop.f32.mrf.mxu0  ;;  %v968_v7 = vpop.f32.mrf.mxu1  ;;  %v9697_v14 = vld [vmem:[#allocation7 + $0x84] sm:$0xf]  ;;  %v7601_v54 = vld [vmem:[#allocation7 + $0x90] sm:$0xf0] }
 0x222   :  { %2898 = vmatpush.bf16.msrb.mxu2 %v7652_v17  ;;  %2917 = vmatpush.bf16.msrb.mxu3 %v7780_v3  ;;  %v7729_v17 = vld [vmem:[#allocation7 + $0x190] sm:$0xf0] }
 0x223   :  { %v7732_v30 = vor.u32 %v9729_v55, %v7729_v17  ;;  %v7921_v13 = vld [vmem:[#allocation7 + $0x310] sm:$0xf0]  ;;  %v9717_v55 = vld [vmem:[#allocation7 + $0x124] sm:$0xf] }
 0x224   :  { %2157 = vmatmul.bf16.gmra.mxu0 %v10645_v27  ;;  %2176 = vmatmul.bf16.gmra.mxu1 %v10647_v18  ;;  %v7825_v27 = vld [vmem:[#allocation7 + $0x250] sm:$0xf0]  ;;  %v7604_v18 = vor.u32 %v9697_v14, %v7601_v54  ;;  %v9685_v14 = vld [vmem:[#allocation7 + $0x24] sm:$0xf] }
 0x225   :  { %2938 = vmatpush.bf16.msrb.mxu0 %v7876_v32  ;;  %2957 = vmatpush.bf16.msrb.mxu1 %v8004_v33  ;;  %v9693_v32 = vld [vmem:[#allocation7 + $0x64] sm:$0xf]  ;;  %v7585_v33 = vld [vmem:[#allocation7 + $0x70] sm:$0xf0] }
 0x226   :  { %2899 = vmatpush.bf16.msrb.mxu2 %v7636_v61  ;;  %2918 = vmatpush.bf16.msrb.mxu3 %v7764_v34  ;;  %v908_v11 = vpop.f32.mrf.mxu2  ;;  %v927_v58 = vpop.f32.mrf.mxu3  ;;  %v7828_v61 = vor.u32 %v9753_v26, %v7825_v27  ;;  %v7588_v60 = vor.u32 %v9693_v32, %v7585_v33  ;;  %v7553_v54 = vld [vmem:[#allocation7 + $0x30] sm:$0xf0]  ;;  %v10791_v26 = vpack.c.bf16 %v10731_v24, %v10725_v23  ;;  %v9681_v23 = vld [vmem:[#allocation7 + $0x4] sm:$0xf] }
 0x227   :  { %v10775_v6 = vpack.c.bf16 %v908_v11, %v906_v38  ;;  %v10777_v3 = vpack.c.bf16 %v927_v58, %v925_v44  ;;  %v7956_v38 = vor.u32 %v9785_v29, %v7953_v31  ;;  %v7681_v17 = vld [vmem:[#allocation7 + $0x130] sm:$0xf0]  ;;  %v10795_v27 = vpack.c.bf16 %v10733_v25, %v10727_v28  ;;  %v7911_v29 = vld [vmem:[#allocation7 + $0x2e8] sm:$0xf] }
 0x228   :  { %v7556_v31 = vor.u32 %v9685_v14, %v7553_v54  ;;  %v7684_v32 = vor.u32 %v9717_v55, %v7681_v17  ;;  %v7537_v24 = vld [vmem:[#allocation7 + $0x10] sm:$0xf0]  ;;  %v7639_v14 = vld [vmem:[#allocation7 + $0xc8] sm:$0xf]  ;;  %v9708_v54 = vld [vmem:[#allocation7 + $0xd4] sm:$0xf0] }
 0x229   :  { %2939 = vmatpush.bf16.msrb.mxu0 %v7860_v48  ;;  %2958 = vmatpush.bf16.msrb.mxu1 %v7988_v49  ;;  %v951_v37 = vpop.f32.mrf.mxu0  ;;  %v970_v43 = vpop.f32.mrf.mxu1  ;;  %v7569_v48 = vld [vmem:[#allocation7 + $0x50] sm:$0xf0]  ;;  %v9721_v49 = vld [vmem:[#allocation7 + $0x144] sm:$0xf]  ;;  %v7767_v55 = vld [vmem:[#allocation7 + $0x1c8] sm:$0xf]  ;;  %v7640_v17 = vor.u32 %v9708_v54, %v7639_v14  ;;  %v10837_v14 = vpack.c.bf16 %v10763_v0, %v10757_v15  ;;  %v10841_v54 = vpack.c.bf16 %v10765_v1, %v10759_v16 }
 0x22a   :  { %2900 = vmatpush.bf16.msrb.mxu2 %v7620_v4  ;;  %2919 = vmatpush.bf16.msrb.mxu3 %v7748_v56  ;;  %v10779_v44 = vpack.c.bf16 %v951_v37, %v949_v5  ;;  %v10781_v34 = vpack.c.bf16 %v970_v43, %v968_v7  ;;  %v7812_v7 = vor.u32 %v9749_v12, %v7809_v52  ;;  %v9745_v56 = vld [vmem:[#allocation7 + $0x204] sm:$0xf]  ;;  %v7665_v25 = vld [vmem:[#allocation7 + $0x110] sm:$0xf0]  ;;  %v7895_v12 = vld [vmem:[#allocation7 + $0x2c8] sm:$0xf] }
 0x22b   :  { %2119 = vmatmul.bf16.gmra.mxu2 %v10661_v41  ;;  %2138 = vmatmul.bf16.gmra.mxu3 %v10663_v42  ;;  %v7940_v4 = vor.u32 %v9781_v53, %v7937_v62  ;;  %v7697_v41 = vld [vmem:[#allocation7 + $0x150] sm:$0xf0]  ;;  %v7572_v39 = vor.u32 %v9689_v63, %v7569_v48  ;;  %v9713_v43 = vld [vmem:[#allocation7 + $0x104] sm:$0xf]  ;;  %v9772_v52 = vld [vmem:[#allocation7 + $0x2d4] sm:$0xf0]  ;;  %v10805_v63 = vpack.c.bf16 %v10747_v35, %v10737_v59 }
 0x22c   :  { %v7793_v42 = vld [vmem:[#allocation7 + $0x210] sm:$0xf0]  ;;  %v7700_v40 = vor.u32 %v9721_v49, %v7697_v41  ;;  %v8023_v53 = vld [vmem:[#allocation7 + $0x3c8] sm:$0xf]  ;;  %v9804_v62 = vld [vmem:[#allocation7 + $0x3d4] sm:$0xf0]  ;;  %v10809_v48 = vpack.c.bf16 %v10749_v45, %v10739_v8  ;;  %v7896_v49 = vor.u32 %v9772_v52, %v7895_v12 }
 0x22d   :  { %2940 = vmatpush.bf16.msrb.mxu0 %v7844_v9  ;;  %2959 = vmatpush.bf16.msrb.mxu1 %v7972_v10  ;;  %v7796_v9 = vor.u32 %v9745_v56, %v7793_v42  ;;  %v7924_v10 = vor.u32 %v9777_v57, %v7921_v13  ;;  %v9744_v57 = vld [vmem:[#allocation7 + $0x1f4] sm:$0xf0]  ;;  %v7879_v35 = vld [vmem:[#allocation7 + $0x2a8] sm:$0xf] }
 0x22e   :  { %2901 = vmatpush.bf16.msrb.mxu2 %v7604_v18  ;;  %2920 = vmatpush.bf16.msrb.mxu3 %v7732_v30  ;;  %v911_v2 = vpop.f32.mrf.mxu2  ;;  %v930_v5 = vpop.f32.mrf.mxu3  ;;  %v9776_v18 = vld [vmem:[#allocation7 + $0x2f4] sm:$0xf0]  ;;  %v8039_v30 = vld [vmem:[#allocation7 + $0x3e8] sm:$0xf] }
 0x22f   :  { %v7912_v33 = vor.u32 %v9776_v18, %v7911_v29  ;;  %v8040_v37 = vor.u32 %v9808_v36, %v8039_v30  ;;  %v8007_v8 = vld [vmem:[#allocation7 + $0x3a8] sm:$0xf]  ;;  %v9800_v45 = vld [vmem:[#allocation7 + $0x3b4] sm:$0xf0] }
 0x230   :  { %v8008_v13 = vor.u32 %v9800_v45, %v8007_v8  ;;  %v9740_v29 = vld [vmem:[#allocation7 + $0x1d4] sm:$0xf0]  ;;  %v7959_v8 = vld [vmem:[#allocation7 + $0x348] sm:$0xf] }
 0x231   :  { %2941 = vmatpush.bf16.msrb.mxu0 %v7828_v61  ;;  %2960 = vmatpush.bf16.msrb.mxu1 %v7956_v38  ;;  %v10785_v11 = vpop.f32.mrf.mxu0  ;;  %v10787_v58 = vpop.f32.mrf.mxu1  ;;  %v7768_v30 = vor.u32 %v9740_v29, %v7767_v55  ;;  %v9796_v36 = vld [vmem:[#allocation7 + $0x394] sm:$0xf0]  ;;  %v7815_v15 = vld [vmem:[#allocation7 + $0x228] sm:$0xf] }
 0x232   :  { %2902 = vmatpush.bf16.msrb.mxu2 %v7588_v60  ;;  %2921 = vmatpush.bf16.msrb.mxu3 %v7716_v47  ;;  %v7540_v60 = vor.u32 %v9681_v23, %v7537_v24  ;;  %v7668_v47 = vor.u32 %v9713_v43, %v7665_v25  ;;  %v7623_v23 = vld [vmem:[#allocation7 + $0xa8] sm:$0xf]  ;;  %v9704_v24 = vld [vmem:[#allocation7 + $0xb4] sm:$0xf0] }
 0x233   :  { %v7751_v43 = vld [vmem:[#allocation7 + $0x1a8] sm:$0xf]  ;;  %v9752_v16 = vld [vmem:[#allocation7 + $0x234] sm:$0xf0] }
 0x234   :  { %2868 = vmatmul.bf16.vlgmr.msra.gmra.mxu0 %v10791_v26  ;;  %2887 = vmatmul.bf16.vlgmr.msra.gmra.mxu1 %v10795_v27  ;;  %v7943_v0 = vld [vmem:[#allocation7 + $0x328] sm:$0xf] }
 0x235   :  { %2942 = vmatpush.bf16.msrb.mxu0 %v7812_v7  ;;  %2961 = vmatpush.bf16.msrb.mxu1 %v7940_v4  ;;  %v9712_v7 = vld [vmem:[#allocation7 + $0xf4] sm:$0xf0]  ;;  %v7783_v4 = vld [vmem:[#allocation7 + $0x1e8] sm:$0xf] }
 0x236   :  { %2903 = vmatpush.bf16.msrb.mxu2 %v7572_v39  ;;  %2922 = vmatpush.bf16.msrb.mxu3 %v7700_v40  ;;  %v913_v61 = vpop.f32.mrf.mxu2  ;;  %v932_v28 = vpop.f32.mrf.mxu3  ;;  %v7784_v59 = vor.u32 %v9744_v57, %v7783_v4  ;;  %v9768_v39 = vld [vmem:[#allocation7 + $0x2b4] sm:$0xf0]  ;;  %v7735_v4 = vld [vmem:[#allocation7 + $0x188] sm:$0xf] }
 0x237   :  { %v10799_v38 = vpack.c.bf16 %v913_v61, %v911_v2  ;;  %v10801_v46 = vpack.c.bf16 %v932_v28, %v930_v5  ;;  %v8024_v2 = vor.u32 %v9804_v62, %v8023_v53  ;;  %v7655_v5 = vld [vmem:[#allocation7 + $0xe8] sm:$0xf]  ;;  %v7880_v40 = vor.u32 %v9768_v39, %v7879_v35  ;;  %v9736_v53 = vld [vmem:[#allocation7 + $0x1b4] sm:$0xf0] }
 0x238   :  { %v7656_v42 = vor.u32 %v9712_v7, %v7655_v5  ;;  %v10820_v61 = vpack.c.bf16 %v10751_v50, %v10741_v19  ;;  %v7847_v62 = vld [vmem:[#allocation7 + $0x268] sm:$0xf]  ;;  %v9792_v50 = vld [vmem:[#allocation7 + $0x374] sm:$0xf0] }
 0x239   :  { %2943 = vmatpush.bf16.msrb.mxu0 %v7796_v9  ;;  %2962 = vmatpush.bf16.msrb.mxu1 %v7924_v10  ;;  %v10811_v41 = vpop.f32.mrf.mxu0  ;;  %v10813_v56 = vpop.f32.mrf.mxu1  ;;  %v7607_v5 = vld [vmem:[#allocation7 + $0x88] sm:$0xf]  ;;  %v9700_v7 = vld [vmem:[#allocation7 + $0x94] sm:$0xf0] }
 0x23a   :  { %2904 = vmatpush.bf16.msrb.mxu2 %v7556_v31  ;;  %2923 = vmatpush.bf16.msrb.mxu3 %v7684_v32  ;;  %v7863_v31 = vld [vmem:[#allocation7 + $0x288] sm:$0xf]  ;;  %v9764_v32 = vld [vmem:[#allocation7 + $0x294] sm:$0xf0]  ;;  %v7608_v45 = vor.u32 %v9700_v7, %v7607_v5 }
 0x23b   :  { %2830 = vmatmul.bf16.vlgmr.msra.gmra.mxu2 %v10805_v63  ;;  %2849 = vmatmul.bf16.vlgmr.msra.gmra.mxu3 %v10809_v48  ;;  %v7864_v12 = vor.u32 %v9764_v32, %v7863_v31  ;;  %v9756_v39 = vld [vmem:[#allocation7 + $0x254] sm:$0xf0] }
 0x23c   :  { %v9728_v32 = vld [vmem:[#allocation7 + $0x174] sm:$0xf0] }
 0x23d   :  { %3012 = vmatpush.bf16.msra.mxu0 %v7912_v33  ;;  %3031 = vmatpush.bf16.msra.mxu1 %v8040_v37  ;;  %v7991_v33 = vld [vmem:[#allocation7 + $0x388] sm:$0xf]  ;;  %v9780_v5 = vld [vmem:[#allocation7 + $0x314] sm:$0xf0] }
 0x23e   :  { %2905 = vmatpush.bf16.msrb.mxu2 %v7540_v60  ;;  %2924 = vmatpush.bf16.msrb.mxu3 %v7668_v47  ;;  %v1887_v9 = vpop.f32.mrf.mxu2  ;;  %v1906_v10 = vpop.f32.mrf.mxu3  ;;  %v7992_v52 = vor.u32 %v9796_v36, %v7991_v33  ;;  %v7624_v60 = vor.u32 %v9704_v24, %v7623_v23  ;;  %v7752_v47 = vor.u32 %v9736_v53, %v7751_v43  ;;  %v9784_v36 = vld [vmem:[#allocation7 + $0x334] sm:$0xf0]  ;;  %v7703_v24 = vld [vmem:[#allocation7 + $0x148] sm:$0xf] }
 0x23f   :  { %v1907_v18 = vadd.f32 %v1906_v10, %v1887_v9  ;;  %v7591_v9 = vld [vmem:[#allocation7 + $0x68] sm:$0xf]  ;;  %v9696_v10 = vld [vmem:[#allocation7 + $0x74] sm:$0xf0]  ;;  %v7944_v53 = vor.u32 %v9784_v36, %v7943_v0  ;;  %v9770_v0 = vld [vmem:[#allocation7 + $0x2cc] sm:$0xf] }
 0x240   :  { %v9692_v23 = vld [vmem:[#allocation7 + $0x54] sm:$0xf0] }
 0x241   :  { %3013 = vmatpush.bf16.msra.mxu0 %v7896_v49  ;;  %3032 = vmatpush.bf16.msra.mxu1 %v8024_v2  ;;  %v1926_v37 = vadd.f32 %v10785_v11, %v1907_v18  ;;  %v10822_v28 = vpop.f32.mrf.mxu0  ;;  %v10824_v25 = vpop.f32.mrf.mxu1  ;;  %v10828_v11 = vpack.c.bf16 %v10753_v51, %v10743_v22  ;;  %v9760_v49 = vld [vmem:[#allocation7 + $0x274] sm:$0xf0]  ;;  %v7975_v2 = vld [vmem:[#allocation7 + $0x368] sm:$0xf] }
 0x242   :  { %2974 = vmatpush.bf16.msra.mxu2 %v7656_v42  ;;  %2993 = vmatpush.bf16.msra.mxu3 %v7784_v59  ;;  %v7848_v22 = vor.u32 %v9760_v49, %v7847_v62  ;;  %v7976_v51 = vor.u32 %v9792_v50, %v7975_v2  ;;  %v9732_v59 = vld [vmem:[#allocation7 + $0x194] sm:$0xf0]  ;;  %v7799_v62 = vld [vmem:[#allocation7 + $0x208] sm:$0xf] }
 0x243   :  { %v10831_v19 = vadd.f32 %v10787_v58, %v1926_v37  ;;  %v7831_v58 = vld [vmem:[#allocation7 + $0x248] sm:$0xf]  ;;  %v9748_v49 = vld [vmem:[#allocation7 + $0x214] sm:$0xf0] }
 0x244   :  { %2873 = vmatmul.bf16.gmra.mxu0 %v10820_v61  ;;  %2892 = vmatmul.bf16.gmra.mxu1 %v10828_v11  ;;  %v7575_v37 = vld [vmem:[#allocation7 + $0x48] sm:$0xf] }
 0x245   :  { %3014 = vmatpush.bf16.msra.mxu0 %v7880_v40  ;;  %3033 = vmatpush.bf16.msra.mxu1 %v8008_v13  ;;  %v7736_v40 = vor.u32 %v9732_v59, %v7735_v4  ;;  %v9788_v13 = vld [vmem:[#allocation7 + $0x354] sm:$0xf0]  ;;  %v7576_v2 = vor.u32 %v9692_v23, %v7575_v37  ;;  %v7559_v4 = vld [vmem:[#allocation7 + $0x28] sm:$0xf]  ;;  %v7800_v59 = vor.u32 %v9748_v49, %v7799_v62  ;;  %v8025_v23 = vld [vmem:[#allocation7 + $0x3d8] sm:$0xf0] }
 0x246   :  { %2975 = vmatpush.bf16.msra.mxu2 %v7640_v17  ;;  %2994 = vmatpush.bf16.msra.mxu3 %v7768_v30  ;;  %v1889_v42 = vpop.f32.mrf.mxu2  ;;  %v1908_v57 = vpop.f32.mrf.mxu3  ;;  %v7719_v17 = vld [vmem:[#allocation7 + $0x168] sm:$0xf]  ;;  %v7832_v30 = vor.u32 %v9756_v39, %v7831_v58  ;;  %v7960_v31 = vor.u32 %v9788_v13, %v7959_v8  ;;  %v9720_v58 = vld [vmem:[#allocation7 + $0x134] sm:$0xf0]  ;;  %v9774_v39 = vld [vmem:[#allocation7 + $0x2ec] sm:$0xf] }
 0x247   :  { %v1909_v35 = vadd.f32 %v1908_v57, %v1889_v42  ;;  %v7720_v33 = vor.u32 %v9728_v32, %v7719_v17  ;;  %v9688_v42 = vld [vmem:[#allocation7 + $0x34] sm:$0xf0]  ;;  %v7687_v57 = vld [vmem:[#allocation7 + $0x128] sm:$0xf]  ;;  %v7913_v8 = vld [vmem:[#allocation7 + $0x2f8] sm:$0xf0] }
 0x248   :  { %v7688_v13 = vor.u32 %v9720_v58, %v7687_v57  ;;  %v7543_v17 = vld [vmem:[#allocation7 + $0x8] sm:$0xf]  ;;  %v9738_v58 = vld [vmem:[#allocation7 + $0x1cc] sm:$0xf] }
 0x249   :  { %3015 = vmatpush.bf16.msra.mxu0 %v7864_v12  ;;  %3034 = vmatpush.bf16.msra.mxu1 %v7992_v52  ;;  %v1928_v55 = vadd.f32 %v10811_v41, %v1909_v35  ;;  %v10844_v29 = vpop.f32.mrf.mxu0  ;;  %v10846_v18 = vpop.f32.mrf.mxu1  ;;  %v7592_v41 = vor.u32 %v9696_v10, %v7591_v9  ;;  %v7816_v52 = vor.u32 %v9752_v16, %v7815_v15  ;;  %v8041_v9 = vld [vmem:[#allocation7 + $0x3f8] sm:$0xf0] }
 0x24a   :  { %2976 = vmatpush.bf16.msra.mxu2 %v7624_v60  ;;  %2995 = vmatpush.bf16.msra.mxu3 %v7752_v47  ;;  %v9724_v60 = vld [vmem:[#allocation7 + $0x154] sm:$0xf0] }
 0x24b   :  { %2835 = vmatmul.bf16.gmra.mxu2 %v10837_v14  ;;  %2854 = vmatmul.bf16.gmra.mxu3 %v10841_v54  ;;  %v10851_v1 = vadd.f32 %v10813_v56, %v1928_v55  ;;  %v7927_v56 = vld [vmem:[#allocation7 + $0x308] sm:$0xf]  ;;  %v7704_v50 = vor.u32 %v9724_v60, %v7703_v24  ;;  %v7916_v55 = vor.u32 %v9774_v39, %v7913_v8  ;;  %v9742_v60 = vld [vmem:[#allocation7 + $0x1ec] sm:$0xf] }
 0x24c   :  { %v7928_v35 = vor.u32 %v9780_v5, %v7927_v56  ;;  %v7785_v56 = vld [vmem:[#allocation7 + $0x1f8] sm:$0xf0] }
 0x24d   :  { %3016 = vmatpush.bf16.msra.mxu0 %v7848_v22  ;;  %3035 = vmatpush.bf16.msra.mxu1 %v7976_v51  ;;  %v7881_v5 = vld [vmem:[#allocation7 + $0x2b8] sm:$0xf0] }
 0x24e   :  { %2977 = vmatpush.bf16.msra.mxu2 %v7608_v45  ;;  %2996 = vmatpush.bf16.msra.mxu3 %v7736_v40  ;;  %v1892_v43 = vpop.f32.mrf.mxu2  ;;  %v1911_v12 = vpop.f32.mrf.mxu3  ;;  %v9806_v45 = vld [vmem:[#allocation7 + $0x3ec] sm:$0xf] }
 0x24f   :  { %v1912_v47 = vadd.f32 %v1911_v12, %v1892_v43  ;;  %v8044_v10 = vor.u32 %v9806_v45, %v8041_v9  ;;  %v7865_v9 = vld [vmem:[#allocation7 + $0x298] sm:$0xf0] }
 0x251   :  { %3017 = vmatpush.bf16.msra.mxu0 %v7832_v30  ;;  %3036 = vmatpush.bf16.msra.mxu1 %v7960_v31  ;;  %v1931_v7 = vadd.f32 %v10822_v28, %v1912_v47  ;;  %v10854_v22 = vpop.f32.mrf.mxu0  ;;  %v10856_v51 = vpop.f32.mrf.mxu1  ;;  %v7560_v28 = vor.u32 %v9688_v42, %v7559_v4  ;;  %v9684_v30 = vld [vmem:[#allocation7 + $0x14] sm:$0xf0]  ;;  %v7671_v31 = vld [vmem:[#allocation7 + $0x108] sm:$0xf]  ;;  %v8009_v4 = vld [vmem:[#allocation7 + $0x3b8] sm:$0xf0] }
 0x252   :  { %2978 = vmatpush.bf16.msra.mxu2 %v7592_v41  ;;  %2997 = vmatpush.bf16.msra.mxu3 %v7720_v33  ;;  %v7897_v41 = vld [vmem:[#allocation7 + $0x2d8] sm:$0xf0]  ;;  %v9802_v33 = vld [vmem:[#allocation7 + $0x3cc] sm:$0xf]  ;;  %v7544_v36 = vor.u32 %v9684_v30, %v7543_v17 }
 0x253   :  { %v10859_v40 = vadd.f32 %v10824_v25, %v1931_v7  ;;  %v9716_v25 = vld [vmem:[#allocation7 + $0x114] sm:$0xf0]  ;;  %v7900_v43 = vor.u32 %v9770_v0, %v7897_v41  ;;  %v8028_v12 = vor.u32 %v9802_v33, %v8025_v23  ;;  %v9798_v7 = vld [vmem:[#allocation7 + $0x3ac] sm:$0xf]  ;;  %v7993_v17 = vld [vmem:[#allocation7 + $0x398] sm:$0xf0] }
 0x254   :  { %2944 = vmatmul.bf16.vlgmr.msrb.gmra.mxu0 %v10791_v26  ;;  %2963 = vmatmul.bf16.vlgmr.msrb.gmra.mxu1 %v10795_v27  ;;  %v7672_v37 = vor.u32 %v9716_v25, %v7671_v31  ;;  %v8012_v57 = vor.u32 %v9798_v7, %v8009_v4  ;;  %v9702_v31 = vld [vmem:[#allocation7 + $0xac] sm:$0xf]  ;;  %v7753_v33 = vld [vmem:[#allocation7 + $0x1b8] sm:$0xf0] }
 0x255   :  { %3018 = vmatpush.bf16.msra.mxu0 %v7816_v52  ;;  %3037 = vmatpush.bf16.msra.mxu1 %v7944_v53  ;;  %v9710_v52 = vld [vmem:[#allocation7 + $0xec] sm:$0xf]  ;;  %v7657_v53 = vld [vmem:[#allocation7 + $0xf8] sm:$0xf0] }
 0x256   :  { %2979 = vmatpush.bf16.msra.mxu2 %v7576_v2  ;;  %2998 = vmatpush.bf16.msra.mxu3 %v7704_v50  ;;  %v1894_v32 = vpop.f32.mrf.mxu2  ;;  %v1913_v15 = vpop.f32.mrf.mxu3  ;;  %v7660_v49 = vor.u32 %v9710_v52, %v7657_v53  ;;  %v7788_v2 = vor.u32 %v9742_v60, %v7785_v56  ;;  %v9766_v50 = vld [vmem:[#allocation7 + $0x2ac] sm:$0xf]  ;;  %v7609_v53 = vld [vmem:[#allocation7 + $0x98] sm:$0xf0] }
 0x257   :  { %v1914_v16 = vadd.f32 %v1913_v15, %v1894_v32  ;;  %v7884_v42 = vor.u32 %v9766_v50, %v7881_v5  ;;  %v7625_v32 = vld [vmem:[#allocation7 + $0xb8] sm:$0xf0]  ;;  %v9734_v15 = vld [vmem:[#allocation7 + $0x1ac] sm:$0xf] }
 0x258   :  { %v9758_v23 = vld [vmem:[#allocation7 + $0x26c] sm:$0xf]  ;;  %v7737_v5 = vld [vmem:[#allocation7 + $0x198] sm:$0xf0] }
 0x259   :  { %3019 = vmatpush.bf16.msra.mxu0 %v7800_v59  ;;  %3038 = vmatpush.bf16.msra.mxu1 %v7928_v35  ;;  %v1933_v24 = vadd.f32 %v10844_v29, %v1914_v16  ;;  %v10864_v47 = vpop.f32.mrf.mxu0  ;;  %v10866_v62 = vpop.f32.mrf.mxu1  ;;  %v9706_v59 = vld [vmem:[#allocation7 + $0xcc] sm:$0xf]  ;;  %v7641_v35 = vld [vmem:[#allocation7 + $0xd8] sm:$0xf0] }
 0x25a   :  { %2980 = vmatpush.bf16.msra.mxu2 %v7560_v28  ;;  %2999 = vmatpush.bf16.msra.mxu3 %v7688_v13  ;;  %v7644_v45 = vor.u32 %v9706_v59, %v7641_v35  ;;  %v7769_v28 = vld [vmem:[#allocation7 + $0x1d8] sm:$0xf0]  ;;  %v9698_v52 = vld [vmem:[#allocation7 + $0x8c] sm:$0xf] }
 0x25b   :  { %2906 = vmatmul.bf16.vlgmr.msrb.gmra.mxu2 %v10805_v63  ;;  %2925 = vmatmul.bf16.vlgmr.msrb.gmra.mxu3 %v10809_v48  ;;  %v10871_v29 = vadd.f32 %v10846_v18, %v1933_v24  ;;  %v9762_v18 = vld [vmem:[#allocation7 + $0x28c] sm:$0xf]  ;;  %v7849_v24 = vld [vmem:[#allocation7 + $0x278] sm:$0xf0] }
 0x25c   :  { %v7868_v0 = vor.u32 %v9762_v18, %v7865_v9  ;;  %v9730_v60 = vld [vmem:[#allocation7 + $0x18c] sm:$0xf]  ;;  %v7833_v4 = vld [vmem:[#allocation7 + $0x258] sm:$0xf0] }
 0x25d   :  { %3088 = vmatpush.bf16.msrb.mxu0 %v7916_v55  ;;  %3107 = vmatpush.bf16.msrb.mxu1 %v8044_v10  ;;  %v7772_v55 = vor.u32 %v9738_v58, %v7769_v28  ;;  %v9794_v10 = vld [vmem:[#allocation7 + $0x38c] sm:$0xf]  ;;  %v7740_v59 = vor.u32 %v9730_v60, %v7737_v5  ;;  %v7961_v35 = vld [vmem:[#allocation7 + $0x358] sm:$0xf0] }
 0x25e   :  { %2981 = vmatpush.bf16.msra.mxu2 %v7544_v36  ;;  %3000 = vmatpush.bf16.msra.mxu3 %v7672_v37  ;;  %v1963_v39 = vpop.f32.mrf.mxu2  ;;  %v1982_v8 = vpop.f32.mrf.mxu3  ;;  %v7996_v41 = vor.u32 %v9794_v10, %v7993_v17  ;;  %v7628_v36 = vor.u32 %v9702_v31, %v7625_v32  ;;  %v7756_v37 = vor.u32 %v9734_v15, %v7753_v33  ;;  %v7721_v9 = vld [vmem:[#allocation7 + $0x178] sm:$0xf0]  ;;  %v9750_v10 = vld [vmem:[#allocation7 + $0x22c] sm:$0xf] }
 0x25f   :  { %v1983_v13 = vadd.f32 %v1982_v8, %v1963_v39  ;;  %v9694_v39 = vld [vmem:[#allocation7 + $0x6c] sm:$0xf]  ;;  %v7593_v8 = vld [vmem:[#allocation7 + $0x78] sm:$0xf0] }
 0x260   :  { %v7817_v17 = vld [vmem:[#allocation7 + $0x238] sm:$0xf0]  ;;  %v7596_v31 = vor.u32 %v9694_v39, %v7593_v8  ;;  %v9722_v33 = vld [vmem:[#allocation7 + $0x14c] sm:$0xf]  ;;  %v8543_v39 = vld [vmem:[#allocation7 + $0xbe0] sm:$0xf] }
 0x261   :  { %3089 = vmatpush.bf16.msrb.mxu0 %v7900_v43  ;;  %3108 = vmatpush.bf16.msrb.mxu1 %v8028_v12  ;;  %v2002_v30 = vadd.f32 %v10854_v22, %v1983_v13  ;;  %v10874_v25 = vpop.f32.mrf.mxu0  ;;  %v10876_v16 = vpop.f32.mrf.mxu1  ;;  %v9790_v43 = vld [vmem:[#allocation7 + $0x36c] sm:$0xf]  ;;  %v7977_v12 = vld [vmem:[#allocation7 + $0x378] sm:$0xf0] }
 0x262   :  { %3050 = vmatpush.bf16.msrb.mxu2 %v7660_v49  ;;  %3069 = vmatpush.bf16.msrb.mxu3 %v7788_v2  ;;  %v7852_v2 = vor.u32 %v9758_v23, %v7849_v24  ;;  %v7980_v50 = vor.u32 %v9790_v43, %v7977_v12  ;;  %v7945_v15 = vld [vmem:[#allocation7 + $0x338] sm:$0xf0]  ;;  %v7820_v23 = vor.u32 %v9750_v10, %v7817_v17  ;;  %v9682_v10 = vld [vmem:[#allocation7 + $0xc] sm:$0xf] }
 0x263   :  { %v10879_v22 = vadd.f32 %v10856_v51, %v2002_v30  ;;  %v9754_v51 = vld [vmem:[#allocation7 + $0x24c] sm:$0xf]  ;;  %v7705_v43 = vld [vmem:[#allocation7 + $0x158] sm:$0xf0] }
 0x264   :  { %2949 = vmatmul.bf16.gmra.mxu0 %v10820_v61  ;;  %2968 = vmatmul.bf16.gmra.mxu1 %v10828_v11  ;;  %v9782_v30 = vld [vmem:[#allocation7 + $0x32c] sm:$0xf]  ;;  %v7561_v5 = vld [vmem:[#allocation7 + $0x38] sm:$0xf0] }
 0x265   :  { %3090 = vmatpush.bf16.msrb.mxu0 %v7884_v42  ;;  %3109 = vmatpush.bf16.msrb.mxu1 %v8012_v57  ;;  %v9786_v42 = vld [vmem:[#allocation7 + $0x34c] sm:$0xf]  ;;  %v7612_v57 = vor.u32 %v9698_v52, %v7609_v53  ;;  %v7948_v24 = vor.u32 %v9782_v30, %v7945_v15  ;;  %v7801_v53 = vld [vmem:[#allocation7 + $0x218] sm:$0xf0] }
 0x266   :  { %3051 = vmatpush.bf16.msrb.mxu2 %v7644_v45  ;;  %3070 = vmatpush.bf16.msrb.mxu3 %v7772_v55  ;;  %v1965_v49 = vpop.f32.mrf.mxu2  ;;  %v1984_v56 = vpop.f32.mrf.mxu3  ;;  %v9726_v45 = vld [vmem:[#allocation7 + $0x16c] sm:$0xf]  ;;  %v7836_v55 = vor.u32 %v9754_v51, %v7833_v4  ;;  %v7964_v18 = vor.u32 %v9786_v42, %v7961_v35  ;;  %v8415_v35 = vld [vmem:[#allocation7 + $0xae0] sm:$0xf]  ;;  %v7545_v17 = vld [vmem:[#allocation7 + $0x18] sm:$0xf0] }
 0x267   :  { %v1985_v7 = vadd.f32 %v1984_v56, %v1965_v49  ;;  %v7724_v32 = vor.u32 %v9726_v45, %v7721_v9  ;;  %v9746_v52 = vld [vmem:[#allocation7 + $0x20c] sm:$0xf]  ;;  %v7708_v49 = vor.u32 %v9722_v33, %v7705_v43  ;;  %v7929_v56 = vld [vmem:[#allocation7 + $0x318] sm:$0xf0]  ;;  %v8527_v33 = vld [vmem:[#allocation7 + $0xbc0] sm:$0xf] }
 0x268   :  { %v7804_v42 = vor.u32 %v9746_v52, %v7801_v53  ;;  %v9714_v30 = vld [vmem:[#allocation7 + $0x10c] sm:$0xf]  ;;  %v8159_v52 = vld [vmem:[#allocation7 + $0x8e0] sm:$0xf]  ;;  %v9967_v53 = vld [vmem:[#allocation7 + $0x8ec] sm:$0xf0] }
 0x269   :  { %3091 = vmatpush.bf16.msrb.mxu0 %v7868_v0  ;;  %3110 = vmatpush.bf16.msrb.mxu1 %v7996_v41  ;;  %v2004_v58 = vadd.f32 %v10864_v47, %v1985_v7  ;;  %v10884_v28 = vpop.f32.mrf.mxu0  ;;  %v10886_v13 = vpop.f32.mrf.mxu1  ;;  %v9690_v0 = vld [vmem:[#allocation7 + $0x4c] sm:$0xf]  ;;  %v7577_v41 = vld [vmem:[#allocation7 + $0x58] sm:$0xf0] }
 0x26a   :  { %3052 = vmatpush.bf16.msrb.mxu2 %v7628_v36  ;;  %3071 = vmatpush.bf16.msrb.mxu3 %v7756_v37  ;;  %v7580_v60 = vor.u32 %v9690_v0, %v7577_v41  ;;  %v9718_v7 = vld [vmem:[#allocation7 + $0x12c] sm:$0xf]  ;;  %v8399_v0 = vld [vmem:[#allocation7 + $0xac0] sm:$0xf]  ;;  %v10027_v41 = vld [vmem:[#allocation7 + $0xacc] sm:$0xf0] }
 0x26b   :  { %2911 = vmatmul.bf16.gmra.mxu2 %v10837_v14  ;;  %2930 = vmatmul.bf16.gmra.mxu3 %v10841_v54  ;;  %v10891_v47 = vadd.f32 %v10866_v62, %v2004_v58  ;;  %v9778_v62 = vld [vmem:[#allocation7 + $0x30c] sm:$0xf]  ;;  %v10031_v58 = vld [vmem:[#allocation7 + $0xaec] sm:$0xf0]  ;;  %v8400_v43 = vor.u32 %v10027_v41, %v8399_v0  ;;  %v8255_v41 = vld [vmem:[#allocation7 + $0x9a0] sm:$0xf] }
 0x26c   :  { %v9959_v0 = vld [vmem:[#allocation7 + $0x8ac] sm:$0xf0] }
 0x26d   :  { %3092 = vmatpush.bf16.msrb.mxu0 %v7852_v2  ;;  %3111 = vmatpush.bf16.msrb.mxu1 %v7980_v50  ;;  %v9686_v50 = vld [vmem:[#allocation7 + $0x2c] sm:$0xf] }
 0x26e   :  { %3053 = vmatpush.bf16.msrb.mxu2 %v7612_v57  ;;  %3072 = vmatpush.bf16.msrb.mxu3 %v7740_v59  ;;  %v1968_v36 = vpop.f32.mrf.mxu2  ;;  %v1987_v37 = vpop.f32.mrf.mxu3  ;;  %v7932_v57 = vor.u32 %v9778_v62, %v7929_v56  ;;  %v7689_v59 = vld [vmem:[#allocation7 + $0x138] sm:$0xf0]  ;;  %v8287_v62 = vld [vmem:[#allocation7 + $0x9e0] sm:$0xf]  ;;  %v8160_v56 = vor.u32 %v9967_v53, %v8159_v52  ;;  %v10015_v53 = vld [vmem:[#allocation7 + $0xa6c] sm:$0xf0] }
 0x26f   :  { %v1988_v12 = vadd.f32 %v1987_v37, %v1968_v36  ;;  %v7692_v45 = vor.u32 %v9718_v7, %v7689_v59  ;;  %v7548_v36 = vor.u32 %v9682_v10, %v7545_v17  ;;  %v10023_v7 = vld [vmem:[#allocation7 + $0xaac] sm:$0xf0]  ;;  %v8351_v52 = vld [vmem:[#allocation7 + $0xa60] sm:$0xf] }
 0x271   :  { %3093 = vmatpush.bf16.msrb.mxu0 %v7836_v55  ;;  %3112 = vmatpush.bf16.msrb.mxu1 %v7964_v18  ;;  %v2007_v2 = vadd.f32 %v10874_v25, %v1988_v12  ;;  %v10894_v51 = vpop.f32.mrf.mxu0  ;;  %v10896_v4 = vpop.f32.mrf.mxu1  ;;  %v7564_v25 = vor.u32 %v9686_v50, %v7561_v5  ;;  %v8416_v55 = vor.u32 %v10031_v58, %v8415_v35  ;;  %v10063_v18 = vld [vmem:[#allocation7 + $0xbec] sm:$0xf0]  ;;  %v8383_v5 = vld [vmem:[#allocation7 + $0xaa0] sm:$0xf] }
 0x272   :  { %3054 = vmatpush.bf16.msrb.mxu2 %v7596_v31  ;;  %3073 = vmatpush.bf16.msrb.mxu3 %v7724_v32  ;;  %v8544_v9 = vor.u32 %v10063_v18, %v8543_v39  ;;  %v8384_v59 = vor.u32 %v10023_v7, %v8383_v5  ;;  %v8143_v58 = vld [vmem:[#allocation7 + $0x8c0] sm:$0xf]  ;;  %v9963_v39 = vld [vmem:[#allocation7 + $0x8cc] sm:$0xf0] }
 0x273   :  { %v10899_v8 = vadd.f32 %v10876_v16, %v2007_v2  ;;  %v7673_v16 = vld [vmem:[#allocation7 + $0x118] sm:$0xf0]  ;;  %v9999_v2 = vld [vmem:[#allocation7 + $0x9ec] sm:$0xf0]  ;;  %v8144_v18 = vor.u32 %v9963_v39, %v8143_v58  ;;  %v8239_v5 = vld [vmem:[#allocation7 + $0x980] sm:$0xf] }
 0x274   :  { %3020 = vmatmul.bf16.vlgmr.msra.gmra.mxu0 %v10791_v26  ;;  %3039 = vmatmul.bf16.vlgmr.msra.gmra.mxu1 %v10795_v27  ;;  %v7676_v37 = vor.u32 %v9714_v30, %v7673_v16  ;;  %v8288_v50 = vor.u32 %v9999_v2, %v8287_v62  ;;  %v10019_v30 = vld [vmem:[#allocation7 + $0xa8c] sm:$0xf0]  ;;  %v8479_v62 = vld [vmem:[#allocation7 + $0xb60] sm:$0xf] }
 0x275   :  { %3094 = vmatpush.bf16.msrb.mxu0 %v7820_v23  ;;  %3113 = vmatpush.bf16.msrb.mxu1 %v7948_v24  ;;  %v10059_v23 = vld [vmem:[#allocation7 + $0xbcc] sm:$0xf0]  ;;  %v8111_v2 = vld [vmem:[#allocation7 + $0x880] sm:$0xf] }
 0x276   :  { %3055 = vmatpush.bf16.msrb.mxu2 %v7580_v60  ;;  %3074 = vmatpush.bf16.msrb.mxu3 %v7708_v49  ;;  %v1970_v31 = vpop.f32.mrf.mxu2  ;;  %v1989_v32 = vpop.f32.mrf.mxu3  ;;  %v8528_v12 = vor.u32 %v10059_v23, %v8527_v33  ;;  %v10011_v39 = vld [vmem:[#allocation7 + $0xa4c] sm:$0xf0] }
 0x277   :  { %v1990_v15 = vadd.f32 %v1989_v32, %v1970_v31  ;;  %v8495_v31 = vld [vmem:[#allocation7 + $0xb80] sm:$0xf]  ;;  %v10051_v32 = vld [vmem:[#allocation7 + $0xb8c] sm:$0xf0] }
 0x278   :  { %v8496_v23 = vor.u32 %v10051_v32, %v8495_v31 }
 0x279   :  { %3095 = vmatpush.bf16.msrb.mxu0 %v7804_v42  ;;  %3114 = vmatpush.bf16.msrb.mxu1 %v7932_v57  ;;  %v2009_v24 = vadd.f32 %v10884_v28, %v1990_v15  ;;  %v10904_v60 = vpop.f32.mrf.mxu0  ;;  %v10906_v49 = vpop.f32.mrf.mxu1  ;;  %v8511_v42 = vld [vmem:[#allocation7 + $0xba0] sm:$0xf]  ;;  %v10055_v57 = vld [vmem:[#allocation7 + $0xbac] sm:$0xf0] }
 0x27a   :  { %3056 = vmatpush.bf16.msrb.mxu2 %v7564_v25  ;;  %3075 = vmatpush.bf16.msrb.mxu3 %v7692_v45  ;;  %v8512_v35 = vor.u32 %v10055_v57, %v8511_v42  ;;  %v8271_v25 = vld [vmem:[#allocation7 + $0x9c0] sm:$0xf]  ;;  %v8352_v57 = vor.u32 %v10015_v53, %v8351_v52  ;;  %v9947_v52 = vld [vmem:[#allocation7 + $0x84c] sm:$0xf0] }
 0x27b   :  { %2982 = vmatmul.bf16.vlgmr.msra.gmra.mxu2 %v10805_v63  ;;  %3001 = vmatmul.bf16.vlgmr.msra.gmra.mxu3 %v10809_v48  ;;  %v10911_v28 = vadd.f32 %v10886_v13, %v2009_v24  ;;  %v8367_v13 = vld [vmem:[#allocation7 + $0xa80] sm:$0xf]  ;;  %v9991_v24 = vld [vmem:[#allocation7 + $0x9ac] sm:$0xf0] }
 0x27c   :  { %v8127_v15 = vld [vmem:[#allocation7 + $0x8a0] sm:$0xf] }
 0x27d   :  { %3933 = vmatpush.bf16.msra.mxu0 %v8416_v55  ;;  %3952 = vmatpush.bf16.msra.mxu1 %v8544_v9  ;;  %v9995_v9 = vld [vmem:[#allocation7 + $0x9cc] sm:$0xf0]  ;;  %v8207_v53 = vld [vmem:[#allocation7 + $0x940] sm:$0xf] }
 0x27e   :  { %3057 = vmatpush.bf16.msrb.mxu2 %v7548_v36  ;;  %3076 = vmatpush.bf16.msrb.mxu3 %v7676_v37  ;;  %v2039_v45 = vpop.f32.mrf.mxu2  ;;  %v2058_v55 = vpop.f32.mrf.mxu3  ;;  %v8272_v17 = vor.u32 %v9995_v9, %v8271_v25  ;;  %v8368_v37 = vor.u32 %v10019_v30, %v8367_v13  ;;  %v8463_v25 = vld [vmem:[#allocation7 + $0xb40] sm:$0xf] }
 0x27f   :  { %v2059_v10 = vadd.f32 %v2058_v55, %v2039_v45  ;;  %v8223_v13 = vld [vmem:[#allocation7 + $0x960] sm:$0xf] }
 0x281   :  { %3934 = vmatpush.bf16.msra.mxu0 %v8400_v43  ;;  %3953 = vmatpush.bf16.msra.mxu1 %v8528_v12  ;;  %v2078_v16 = vadd.f32 %v10894_v51, %v2059_v10  ;;  %v10914_v33 = vpop.f32.mrf.mxu0  ;;  %v10916_v36 = vpop.f32.mrf.mxu1  ;;  %v8128_v43 = vor.u32 %v9959_v0, %v8127_v15  ;;  %v8256_v12 = vor.u32 %v9991_v24, %v8255_v41  ;;  %v8095_v10 = vld [vmem:[#allocation7 + $0x860] sm:$0xf]  ;;  %v9983_v15 = vld [vmem:[#allocation7 + $0x96c] sm:$0xf0] }
 0x282   :  { %3895 = vmatpush.bf16.msra.mxu2 %v8160_v56  ;;  %3914 = vmatpush.bf16.msra.mxu3 %v8288_v50  ;;  %v10047_v56 = vld [vmem:[#allocation7 + $0xb6c] sm:$0xf0]  ;;  %v8319_v0 = vld [vmem:[#allocation7 + $0xa20] sm:$0xf]  ;;  %v8224_v24 = vor.u32 %v9983_v15, %v8223_v13  ;;  %v10029_v13 = vld [vmem:[#allocation7 + $0xae4] sm:$0xf] }
 0x283   :  { %v10919_v51 = vadd.f32 %v10896_v4, %v2078_v16  ;;  %v9955_v50 = vld [vmem:[#allocation7 + $0x88c] sm:$0xf0]  ;;  %v8335_v4 = vld [vmem:[#allocation7 + $0xa40] sm:$0xf] }
 0x284   :  { %3025 = vmatmul.bf16.gmra.mxu0 %v10820_v61  ;;  %3044 = vmatmul.bf16.gmra.mxu1 %v10828_v11  ;;  %v8112_v45 = vor.u32 %v9955_v50, %v8111_v2  ;;  %v8336_v32 = vor.u32 %v10011_v39, %v8335_v4  ;;  %v10007_v41 = vld [vmem:[#allocation7 + $0xa2c] sm:$0xf0]  ;;  %v8063_v39 = vld [vmem:[#allocation7 + $0x820] sm:$0xf] }
 0x285   :  { %3935 = vmatpush.bf16.msra.mxu0 %v8384_v59  ;;  %3954 = vmatpush.bf16.msra.mxu1 %v8512_v35  ;;  %v8480_v59 = vor.u32 %v10047_v56, %v8479_v62  ;;  %v9987_v35 = vld [vmem:[#allocation7 + $0x98c] sm:$0xf0]  ;;  %v8320_v2 = vor.u32 %v10007_v41, %v8319_v0 }
 0x286   :  { %3896 = vmatpush.bf16.msra.mxu2 %v8144_v18  ;;  %3915 = vmatpush.bf16.msra.mxu3 %v8272_v17  ;;  %v2041_v7 = vpop.f32.mrf.mxu2  ;;  %v2060_v42 = vpop.f32.mrf.mxu3  ;;  %v8240_v55 = vor.u32 %v9987_v35, %v8239_v5  ;;  %v10043_v18 = vld [vmem:[#allocation7 + $0xb4c] sm:$0xf0] }
 0x287   :  { %v2061_v58 = vadd.f32 %v2060_v42, %v2041_v7  ;;  %v9951_v17 = vld [vmem:[#allocation7 + $0x86c] sm:$0xf0]  ;;  %v8464_v16 = vor.u32 %v10043_v18, %v8463_v25  ;;  %v8303_v42 = vld [vmem:[#allocation7 + $0xa00] sm:$0xf] }
 0x288   :  { %v9979_v5 = vld [vmem:[#allocation7 + $0x94c] sm:$0xf0] }
 0x289   :  { %3936 = vmatpush.bf16.msra.mxu0 %v8368_v37  ;;  %3955 = vmatpush.bf16.msra.mxu1 %v8496_v23  ;;  %v2080_v9 = vadd.f32 %v10904_v60, %v2061_v58  ;;  %v10924_v30 = vpop.f32.mrf.mxu0  ;;  %v10926_v31 = vpop.f32.mrf.mxu1  ;;  %v8447_v37 = vld [vmem:[#allocation7 + $0xb20] sm:$0xf]  ;;  %v8096_v23 = vor.u32 %v9951_v17, %v8095_v10  ;;  %v8208_v35 = vor.u32 %v9979_v5, %v8207_v53  ;;  %v10035_v58 = vld [vmem:[#allocation7 + $0xb0c] sm:$0xf0] }
 0x28a   :  { %3897 = vmatpush.bf16.msra.mxu2 %v8128_v43  ;;  %3916 = vmatpush.bf16.msra.mxu3 %v8256_v12  ;;  %v10039_v43 = vld [vmem:[#allocation7 + $0xb2c] sm:$0xf0]  ;;  %v8079_v12 = vld [vmem:[#allocation7 + $0x840] sm:$0xf] }
 0x28b   :  { %2987 = vmatmul.bf16.gmra.mxu2 %v10837_v14  ;;  %3006 = vmatmul.bf16.gmra.mxu3 %v10841_v54  ;;  %v10931_v60 = vadd.f32 %v10906_v49, %v2080_v9  ;;  %v8448_v50 = vor.u32 %v10039_v43, %v8447_v37  ;;  %v8431_v49 = vld [vmem:[#allocation7 + $0xb00] sm:$0xf]  ;;  %v9943_v25 = vld [vmem:[#allocation7 + $0x82c] sm:$0xf0]  ;;  %v8545_v37 = vld [vmem:[#allocation7 + $0xbf0] sm:$0xf0] }
 0x28c   :  { %v8432_v10 = vor.u32 %v10035_v58, %v8431_v49  ;;  %v9975_v17 = vld [vmem:[#allocation7 + $0x92c] sm:$0xf0]  ;;  %v9965_v49 = vld [vmem:[#allocation7 + $0x8e4] sm:$0xf] }
 0x28d   :  { %3937 = vmatpush.bf16.msra.mxu0 %v8352_v57  ;;  %3956 = vmatpush.bf16.msra.mxu1 %v8480_v59  ;;  %v10003_v57 = vld [vmem:[#allocation7 + $0xa0c] sm:$0xf0]  ;;  %v8080_v59 = vor.u32 %v9947_v52, %v8079_v12  ;;  %v8175_v12 = vld [vmem:[#allocation7 + $0x900] sm:$0xf] }
 0x28e   :  { %3898 = vmatpush.bf16.msra.mxu2 %v8112_v45  ;;  %3917 = vmatpush.bf16.msra.mxu3 %v8240_v55  ;;  %v2044_v62 = vpop.f32.mrf.mxu2  ;;  %v2063_v56 = vpop.f32.mrf.mxu3  ;;  %v8191_v45 = vld [vmem:[#allocation7 + $0x920] sm:$0xf]  ;;  %v8304_v9 = vor.u32 %v10003_v57, %v8303_v42  ;;  %v9939_v43 = vld [vmem:[#allocation7 + $0x80c] sm:$0xf0] }
 0x28f   :  { %v2064_v7 = vadd.f32 %v2063_v56, %v2044_v62  ;;  %v8192_v0 = vor.u32 %v9975_v17, %v8191_v45  ;;  %v10025_v56 = vld [vmem:[#allocation7 + $0xac4] sm:$0xf] }
 0x290   :  { %v10053_v17 = vld [vmem:[#allocation7 + $0xba4] sm:$0xf] }
 0x291   :  { %3938 = vmatpush.bf16.msra.mxu0 %v8336_v32  ;;  %3957 = vmatpush.bf16.msra.mxu1 %v8464_v16  ;;  %v2083_v4 = vadd.f32 %v10914_v33, %v2064_v7  ;;  %v10934_v55 = vpop.f32.mrf.mxu0  ;;  %v10936_v18 = vpop.f32.mrf.mxu1  ;;  %v8417_v32 = vld [vmem:[#allocation7 + $0xaf0] sm:$0xf0]  ;;  %v10061_v16 = vld [vmem:[#allocation7 + $0xbe4] sm:$0xf]  ;;  %v8064_v33 = vor.u32 %v9943_v25, %v8063_v39 }
 0x292   :  { %3899 = vmatpush.bf16.msra.mxu2 %v8096_v23  ;;  %3918 = vmatpush.bf16.msra.mxu3 %v8224_v24  ;;  %v8420_v41 = vor.u32 %v10029_v13, %v8417_v32  ;;  %v8548_v23 = vor.u32 %v10061_v16, %v8545_v37  ;;  %v8047_v24 = vld [vmem:[#allocation7 + $0x800] sm:$0xf]  ;;  %v8289_v25 = vld [vmem:[#allocation7 + $0x9f0] sm:$0xf0] }
 0x293   :  { %v10939_v15 = vadd.f32 %v10916_v36, %v2083_v4  ;;  %v9971_v36 = vld [vmem:[#allocation7 + $0x90c] sm:$0xf0]  ;;  %v8513_v13 = vld [vmem:[#allocation7 + $0xbb0] sm:$0xf0] }
 0x294   :  { %3096 = vmatmul.bf16.vlgmr.msrb.gmra.mxu0 %v10791_v26  ;;  %3115 = vmatmul.bf16.vlgmr.msrb.gmra.mxu1 %v10795_v27  ;;  %v8048_v26 = vor.u32 %v9939_v43, %v8047_v24  ;;  %v8176_v5 = vor.u32 %v9971_v36, %v8175_v12  ;;  %v8529_v27 = vld [vmem:[#allocation7 + $0xbd0] sm:$0xf0]  ;;  %v8516_v16 = vor.u32 %v10053_v17, %v8513_v13 }
 0x295   :  { %3939 = vmatpush.bf16.msra.mxu0 %v8320_v2  ;;  %3958 = vmatpush.bf16.msra.mxu1 %v8448_v50  ;;  %v8401_v2 = vld [vmem:[#allocation7 + $0xad0] sm:$0xf0]  ;;  %v10057_v50 = vld [vmem:[#allocation7 + $0xbc4] sm:$0xf] }
 0x296   :  { %3900 = vmatpush.bf16.msra.mxu2 %v8080_v59  ;;  %3919 = vmatpush.bf16.msra.mxu3 %v8208_v35  ;;  %v2046_v52 = vpop.f32.mrf.mxu2  ;;  %v2065_v53 = vpop.f32.mrf.mxu3  ;;  %v8404_v42 = vor.u32 %v10025_v56, %v8401_v2  ;;  %v8532_v57 = vor.u32 %v10057_v50, %v8529_v27  ;;  %v8161_v59 = vld [vmem:[#allocation7 + $0x8f0] sm:$0xf0]  ;;  %v9997_v35 = vld [vmem:[#allocation7 + $0x9e4] sm:$0xf] }
 0x297   :  { %v2066_v62 = vadd.f32 %v2065_v53, %v2046_v52  ;;  %v8164_v39 = vor.u32 %v9965_v49, %v8161_v59  ;;  %v8292_v45 = vor.u32 %v9997_v35, %v8289_v25  ;;  %v8369_v12 = vld [vmem:[#allocation7 + $0xa90] sm:$0xf0]  ;;  %v10049_v52 = vld [vmem:[#allocation7 + $0xb84] sm:$0xf] }
 0x298   :  { %v8497_v53 = vld [vmem:[#allocation7 + $0xb90] sm:$0xf0]  ;;  %v9989_v2 = vld [vmem:[#allocation7 + $0x9a4] sm:$0xf] }
 0x299   :  { %3940 = vmatpush.bf16.msra.mxu0 %v8304_v9  ;;  %3959 = vmatpush.bf16.msra.mxu1 %v8432_v10  ;;  %v2085_v7 = vadd.f32 %v10924_v30, %v2066_v62  ;;  %v10944_v58 = vpop.f32.mrf.mxu0  ;;  %v10946_v4 = vpop.f32.mrf.mxu1  ;;  %v10021_v9 = vld [vmem:[#allocation7 + $0xaa4] sm:$0xf]  ;;  %v8385_v10 = vld [vmem:[#allocation7 + $0xab0] sm:$0xf0]  ;;  %v8500_v27 = vor.u32 %v10049_v52, %v8497_v53 }
 0x29a   :  { %3901 = vmatpush.bf16.msra.mxu2 %v8064_v33  ;;  %3920 = vmatpush.bf16.msra.mxu3 %v8192_v0  ;;  %v8388_v32 = vor.u32 %v10021_v9, %v8385_v10  ;;  %v9961_v33 = vld [vmem:[#allocation7 + $0x8c4] sm:$0xf]  ;;  %v8145_v0 = vld [vmem:[#allocation7 + $0x8d0] sm:$0xf0] }
 0x29b   :  { %3058 = vmatmul.bf16.vlgmr.msrb.gmra.mxu2 %v10805_v63  ;;  %3077 = vmatmul.bf16.vlgmr.msrb.gmra.mxu3 %v10809_v48  ;;  %v10951_v30 = vadd.f32 %v10926_v31, %v2085_v7  ;;  %v8148_v48 = vor.u32 %v9961_v33, %v8145_v0  ;;  %v10017_v31 = vld [vmem:[#allocation7 + $0xa84] sm:$0xf]  ;;  %v8129_v56 = vld [vmem:[#allocation7 + $0x8b0] sm:$0xf0] }
 0x29c   :  { %v9957_v62 = vld [vmem:[#allocation7 + $0x8a4] sm:$0xf]  ;;  %v8257_v7 = vld [vmem:[#allocation7 + $0x9b0] sm:$0xf0] }
 0x29d   :  { %4009 = vmatpush.bf16.msrb.mxu0 %v8420_v41  ;;  %4028 = vmatpush.bf16.msrb.mxu1 %v8548_v23  ;;  %v9993_v41 = vld [vmem:[#allocation7 + $0x9c4] sm:$0xf]  ;;  %v8273_v23 = vld [vmem:[#allocation7 + $0x9d0] sm:$0xf0] }
 0x29e   :  { %3902 = vmatpush.bf16.msra.mxu2 %v8048_v26  ;;  %3921 = vmatpush.bf16.msra.mxu3 %v8176_v5  ;;  %v2115_v63 = vpop.f32.mrf.mxu2  ;;  %v2134_v37 = vpop.f32.mrf.mxu3  ;;  %v8276_v43 = vor.u32 %v9993_v41, %v8273_v23  ;;  %v8372_v5 = vor.u32 %v10017_v31, %v8369_v12  ;;  %v10013_v49 = vld [vmem:[#allocation7 + $0xa64] sm:$0xf]  ;;  %v8353_v59 = vld [vmem:[#allocation7 + $0xa70] sm:$0xf0] }
 0x29f   :  { %v2135_v24 = vadd.f32 %v2134_v37, %v2115_v63  ;;  %v10045_v35 = vld [vmem:[#allocation7 + $0xb64] sm:$0xf]  ;;  %v8356_v13 = vor.u32 %v10013_v49, %v8353_v59  ;;  %v8337_v0 = vld [vmem:[#allocation7 + $0xa50] sm:$0xf0] }
 0x2a0   :  { %v9953_v25 = vld [vmem:[#allocation7 + $0x884] sm:$0xf]  ;;  %v8465_v37 = vld [vmem:[#allocation7 + $0xb50] sm:$0xf0] }
 0x2a1   :  { %4010 = vmatpush.bf16.msrb.mxu0 %v8404_v42  ;;  %4029 = vmatpush.bf16.msrb.mxu1 %v8532_v57  ;;  %v2154_v36 = vadd.f32 %v10934_v55, %v2135_v24  ;;  %v10954_v50 = vpop.f32.mrf.mxu0  ;;  %v10956_v26 = vpop.f32.mrf.mxu1  ;;  %v8132_v42 = vor.u32 %v9957_v62, %v8129_v56  ;;  %v8260_v57 = vor.u32 %v9989_v2, %v8257_v7  ;;  %v9985_v9 = vld [vmem:[#allocation7 + $0x984] sm:$0xf]  ;;  %v8097_v23 = vld [vmem:[#allocation7 + $0x870] sm:$0xf0] }
 0x2a2   :  { %3971 = vmatpush.bf16.msrb.mxu2 %v8164_v39  ;;  %3990 = vmatpush.bf16.msrb.mxu3 %v8292_v45  ;;  %v8481_v39 = vld [vmem:[#allocation7 + $0xb70] sm:$0xf0]  ;;  %v10041_v41 = vld [vmem:[#allocation7 + $0xb44] sm:$0xf] }
 0x2a3   :  { %v10959_v55 = vadd.f32 %v10936_v18, %v2154_v36  ;;  %v8113_v45 = vld [vmem:[#allocation7 + $0x890] sm:$0xf0]  ;;  %v10009_v18 = vld [vmem:[#allocation7 + $0xa44] sm:$0xf]  ;;  %v8468_v52 = vor.u32 %v10041_v41, %v8465_v37  ;;  %v8423_v37 = vld [vmem:[#allocation7 + $0xae8] sm:$0xf] }
 0x2a4   :  { %3101 = vmatmul.bf16.gmra.mxu0 %v10820_v61  ;;  %3120 = vmatmul.bf16.gmra.mxu1 %v10828_v11  ;;  %v8116_v63 = vor.u32 %v9953_v25, %v8113_v45  ;;  %v9981_v24 = vld [vmem:[#allocation7 + $0x964] sm:$0xf]  ;;  %v8340_v12 = vor.u32 %v10009_v18, %v8337_v0  ;;  %v8225_v53 = vld [vmem:[#allocation7 + $0x970] sm:$0xf0] }
 0x2a5   :  { %4011 = vmatpush.bf16.msrb.mxu0 %v8388_v32  ;;  %4030 = vmatpush.bf16.msrb.mxu1 %v8516_v16  ;;  %v8484_v32 = vor.u32 %v10045_v35, %v8481_v39  ;;  %v8241_v16 = vld [vmem:[#allocation7 + $0x990] sm:$0xf0]  ;;  %v10005_v36 = vld [vmem:[#allocation7 + $0xa24] sm:$0xf] }
 0x2a6   :  { %3972 = vmatpush.bf16.msrb.mxu2 %v8148_v48  ;;  %3991 = vmatpush.bf16.msrb.mxu3 %v8276_v43  ;;  %v2117_v10 = vpop.f32.mrf.mxu2  ;;  %v2136_v17 = vpop.f32.mrf.mxu3  ;;  %v8244_v61 = vor.u32 %v9985_v9, %v8241_v16  ;;  %v9949_v48 = vld [vmem:[#allocation7 + $0x864] sm:$0xf]  ;;  %v8321_v62 = vld [vmem:[#allocation7 + $0xa30] sm:$0xf0] }
 0x2a7   :  { %v2137_v33 = vadd.f32 %v2136_v17, %v2117_v10  ;;  %v10037_v56 = vld [vmem:[#allocation7 + $0xb24] sm:$0xf]  ;;  %v8100_v2 = vor.u32 %v9949_v48, %v8097_v23  ;;  %v8209_v35 = vld [vmem:[#allocation7 + $0x950] sm:$0xf0]  ;;  %v8551_v48 = vld [vmem:[#allocation7 + $0xbe8] sm:$0xf] }
 0x2a8   :  { %v9945_v7 = vld [vmem:[#allocation7 + $0x844] sm:$0xf]  ;;  %v8305_v45 = vld [vmem:[#allocation7 + $0xa10] sm:$0xf0] }
 0x2a9   :  { %4012 = vmatpush.bf16.msrb.mxu0 %v8372_v5  ;;  %4031 = vmatpush.bf16.msrb.mxu1 %v8500_v27  ;;  %v2156_v11 = vadd.f32 %v10944_v58, %v2137_v33  ;;  %v10964_v43 = vpop.f32.mrf.mxu0  ;;  %v10966_v31 = vpop.f32.mrf.mxu1  ;;  %v8228_v5 = vor.u32 %v9981_v24, %v8225_v53  ;;  %v8449_v27 = vld [vmem:[#allocation7 + $0xb30] sm:$0xf0]  ;;  %v10001_v25 = vld [vmem:[#allocation7 + $0xa04] sm:$0xf] }
 0x2aa   :  { %3973 = vmatpush.bf16.msrb.mxu2 %v8132_v42  ;;  %3992 = vmatpush.bf16.msrb.mxu3 %v8260_v57  ;;  %v8081_v42 = vld [vmem:[#allocation7 + $0x850] sm:$0xf0]  ;;  %v9977_v57 = vld [vmem:[#allocation7 + $0x944] sm:$0xf]  ;;  %v8308_v41 = vor.u32 %v10001_v25, %v8305_v45  ;;  %v8167_v25 = vld [vmem:[#allocation7 + $0x8e8] sm:$0xf] }
 0x2ab   :  { %3063 = vmatmul.bf16.gmra.mxu2 %v10837_v14  ;;  %3082 = vmatmul.bf16.gmra.mxu3 %v10841_v54  ;;  %v10971_v58 = vadd.f32 %v10946_v4, %v2156_v11  ;;  %v8324_v14 = vor.u32 %v10005_v36, %v8321_v62  ;;  %v8452_v54 = vor.u32 %v10037_v56, %v8449_v27  ;;  %v10033_v4 = vld [vmem:[#allocation7 + $0xb04] sm:$0xf]  ;;  %v8433_v17 = vld [vmem:[#allocation7 + $0xb10] sm:$0xf0]  ;;  %v10032_v11 = vld [vmem:[#allocation7 + $0xaf4] sm:$0xf0] }
 0x2ac   :  { %v8084_v9 = vor.u32 %v9945_v7, %v8081_v42  ;;  %v8212_v10 = vor.u32 %v9977_v57, %v8209_v35  ;;  %v8065_v16 = vld [vmem:[#allocation7 + $0x830] sm:$0xf0]  ;;  %v9973_v33 = vld [vmem:[#allocation7 + $0x924] sm:$0xf]  ;;  %v8407_v7 = vld [vmem:[#allocation7 + $0xac8] sm:$0xf] }
 0x2ad   :  { %4013 = vmatpush.bf16.msrb.mxu0 %v8356_v13  ;;  %4032 = vmatpush.bf16.msrb.mxu1 %v8484_v32  ;;  %v9941_v32 = vld [vmem:[#allocation7 + $0x824] sm:$0xf]  ;;  %v8049_v62 = vld [vmem:[#allocation7 + $0x810] sm:$0xf0]  ;;  %v10028_v42 = vld [vmem:[#allocation7 + $0xad4] sm:$0xf0] }
 0x2ae   :  { %3974 = vmatpush.bf16.msrb.mxu2 %v8116_v63  ;;  %3993 = vmatpush.bf16.msrb.mxu3 %v8244_v61  ;;  %v2120_v49 = vpop.f32.mrf.mxu2  ;;  %v2139_v59 = vpop.f32.mrf.mxu3  ;;  %v8436_v63 = vor.u32 %v10033_v4, %v8433_v17  ;;  %v8193_v61 = vld [vmem:[#allocation7 + $0x930] sm:$0xf0]  ;;  %v9937_v36 = vld [vmem:[#allocation7 + $0x804] sm:$0xf]  ;;  %v8535_v57 = vld [vmem:[#allocation7 + $0xbc8] sm:$0xf]  ;;  %v8408_v35 = vor.u32 %v10028_v42, %v8407_v7 }
 0x2af   :  { %v2140_v39 = vadd.f32 %v2139_v59, %v2120_v49  ;;  %v8196_v24 = vor.u32 %v9973_v33, %v8193_v61  ;;  %v9969_v56 = vld [vmem:[#allocation7 + $0x904] sm:$0xf]  ;;  %v8052_v49 = vor.u32 %v9937_v36, %v8049_v62  ;;  %v9968_v45 = vld [vmem:[#allocation7 + $0x8f4] sm:$0xf0]  ;;  %v8295_v4 = vld [vmem:[#allocation7 + $0x9e8] sm:$0xf] }
 0x2b0   :  { %v8168_v17 = vor.u32 %v9968_v45, %v8167_v25  ;;  %v10024_v33 = vld [vmem:[#allocation7 + $0xab4] sm:$0xf0]  ;;  %v8375_v62 = vld [vmem:[#allocation7 + $0xa88] sm:$0xf] }
 0x2b1   :  { %4014 = vmatpush.bf16.msrb.mxu0 %v8340_v12  ;;  %4033 = vmatpush.bf16.msrb.mxu1 %v8468_v52  ;;  %v2159_v13 = vadd.f32 %v10954_v50, %v2140_v39  ;;  %v10974_v18 = vpop.f32.mrf.mxu0  ;;  %v10976_v0 = vpop.f32.mrf.mxu1  ;;  %v8068_v50 = vor.u32 %v9941_v32, %v8065_v16  ;;  %v8424_v12 = vor.u32 %v10032_v11, %v8423_v37  ;;  %v10064_v52 = vld [vmem:[#allocation7 + $0xbf4] sm:$0xf0]  ;;  %v8391_v16 = vld [vmem:[#allocation7 + $0xaa8] sm:$0xf] }
 0x2b2   :  { %3975 = vmatpush.bf16.msrb.mxu2 %v8100_v2  ;;  %3994 = vmatpush.bf16.msrb.mxu3 %v8228_v5  ;;  %v8552_v53 = vor.u32 %v10064_v52, %v8551_v48  ;;  %v8392_v61 = vor.u32 %v10024_v33, %v8391_v16  ;;  %v8151_v11 = vld [vmem:[#allocation7 + $0x8c8] sm:$0xf]  ;;  %v9964_v48 = vld [vmem:[#allocation7 + $0x8d4] sm:$0xf0] }
 0x2b3   :  { %v10979_v23 = vadd.f32 %v10956_v26, %v2159_v13  ;;  %v8177_v26 = vld [vmem:[#allocation7 + $0x910] sm:$0xf0]  ;;  %v10000_v13 = vld [vmem:[#allocation7 + $0x9f4] sm:$0xf0]  ;;  %v8152_v52 = vor.u32 %v9964_v48, %v8151_v11  ;;  %v8263_v42 = vld [vmem:[#allocation7 + $0x9a8] sm:$0xf] }
 0x2b4   :  { %3941 = vmatmul.bf16.vlgmr.msra.gmra.mxu0 %v10767_v20  ;;  %3960 = vmatmul.bf16.vlgmr.msra.gmra.mxu1 %v10769_v21  ;;  %v8180_v59 = vor.u32 %v9969_v56, %v8177_v26  ;;  %v8296_v32 = vor.u32 %v10000_v13, %v8295_v4  ;;  %v10020_v56 = vld [vmem:[#allocation7 + $0xa94] sm:$0xf0]  ;;  %v8359_v25 = vld [vmem:[#allocation7 + $0xa68] sm:$0xf] }
 0x2b5   :  { %4015 = vmatpush.bf16.msrb.mxu0 %v8324_v14  ;;  %4034 = vmatpush.bf16.msrb.mxu1 %v8452_v54  ;;  %v10060_v14 = vld [vmem:[#allocation7 + $0xbd4] sm:$0xf0]  ;;  %v8487_v4 = vld [vmem:[#allocation7 + $0xb68] sm:$0xf] }
 0x2b6   :  { %3976 = vmatpush.bf16.msrb.mxu2 %v8084_v9  ;;  %3995 = vmatpush.bf16.msrb.mxu3 %v8212_v10  ;;  %v2122_v2 = vpop.f32.mrf.mxu2  ;;  %v2141_v5 = vpop.f32.mrf.mxu3  ;;  %v8536_v39 = vor.u32 %v10060_v14, %v8535_v57  ;;  %v9960_v7 = vld [vmem:[#allocation7 + $0x8b4] sm:$0xf0]  ;;  %v8247_v33 = vld [vmem:[#allocation7 + $0x988] sm:$0xf] }
 0x2b7   :  { %v2142_v27 = vadd.f32 %v2141_v5, %v2122_v2  ;;  %v8503_v2 = vld [vmem:[#allocation7 + $0xb88] sm:$0xf]  ;;  %v10052_v5 = vld [vmem:[#allocation7 + $0xb94] sm:$0xf0] }
 0x2b8   :  { %v8504_v14 = vor.u32 %v10052_v5, %v8503_v2  ;;  %v10016_v45 = vld [vmem:[#allocation7 + $0xa74] sm:$0xf0] }
 0x2b9   :  { %4016 = vmatpush.bf16.msrb.mxu0 %v8308_v41  ;;  %4035 = vmatpush.bf16.msrb.mxu1 %v8436_v63  ;;  %v2161_v54 = vadd.f32 %v10964_v43, %v2142_v27  ;;  %v10984_v9 = vpop.f32.mrf.mxu0  ;;  %v10986_v10 = vpop.f32.mrf.mxu1  ;;  %v8519_v41 = vld [vmem:[#allocation7 + $0xba8] sm:$0xf]  ;;  %v10056_v63 = vld [vmem:[#allocation7 + $0xbb4] sm:$0xf0] }
 0x2ba   :  { %3977 = vmatpush.bf16.msrb.mxu2 %v8068_v50  ;;  %3996 = vmatpush.bf16.msrb.mxu3 %v8196_v24  ;;  %v8520_v37 = vor.u32 %v10056_v63, %v8519_v41  ;;  %v8279_v50 = vld [vmem:[#allocation7 + $0x9c8] sm:$0xf]  ;;  %v9956_v16 = vld [vmem:[#allocation7 + $0x894] sm:$0xf0] }
 0x2bb   :  { %3903 = vmatmul.bf16.vlgmr.msra.gmra.mxu2 %v10775_v6  ;;  %3922 = vmatmul.bf16.vlgmr.msra.gmra.mxu3 %v10777_v3  ;;  %v10991_v43 = vadd.f32 %v10966_v31, %v2161_v54  ;;  %v8135_v27 = vld [vmem:[#allocation7 + $0x8a8] sm:$0xf]  ;;  %v10012_v48 = vld [vmem:[#allocation7 + $0xa54] sm:$0xf0] }
 0x2bd   :  { %4085 = vmatpush.bf16.msra.mxu0 %v8424_v12  ;;  %4104 = vmatpush.bf16.msra.mxu1 %v8552_v53  ;;  %v9996_v53 = vld [vmem:[#allocation7 + $0x9d4] sm:$0xf0] }
 0x2be   :  { %3978 = vmatpush.bf16.msrb.mxu2 %v8052_v49  ;;  %3997 = vmatpush.bf16.msrb.mxu3 %v8180_v59  ;;  %v2831_v24 = vpop.f32.mrf.mxu2  ;;  %v2850_v12 = vpop.f32.mrf.mxu3  ;;  %v8280_v31 = vor.u32 %v9996_v53, %v8279_v50  ;;  %v8376_v59 = vor.u32 %v10020_v56, %v8375_v62  ;;  %v8471_v50 = vld [vmem:[#allocation7 + $0xb48] sm:$0xf] }
 0x2bf   :  { %v2832_v36 = vadd.f32 %v2831_v24, %v10831_v19  ;;  %v9992_v19 = vld [vmem:[#allocation7 + $0x9b4] sm:$0xf0]  ;;  %v8231_v62 = vld [vmem:[#allocation7 + $0x968] sm:$0xf] }
 0x2c1   :  { %4086 = vmatpush.bf16.msra.mxu0 %v8408_v35  ;;  %4105 = vmatpush.bf16.msra.mxu1 %v8536_v39  ;;  %v2851_v26 = vadd.f32 %v2850_v12, %v2832_v36  ;;  %v10994_v57 = vpop.f32.mrf.mxu0  ;;  %v10996_v49 = vpop.f32.mrf.mxu1  ;;  %v8136_v35 = vor.u32 %v9960_v7, %v8135_v27  ;;  %v8264_v39 = vor.u32 %v9992_v19, %v8263_v42  ;;  %v8103_v36 = vld [vmem:[#allocation7 + $0x868] sm:$0xf]  ;;  %v10008_v42 = vld [vmem:[#allocation7 + $0xa34] sm:$0xf0] }
 0x2c2   :  { %4047 = vmatpush.bf16.msra.mxu2 %v8168_v17  ;;  %4066 = vmatpush.bf16.msra.mxu3 %v8296_v32  ;;  %v10048_v17 = vld [vmem:[#allocation7 + $0xb74] sm:$0xf0]  ;;  %v8119_v32 = vld [vmem:[#allocation7 + $0x888] sm:$0xf] }
 0x2c3   :  { %v2870_v54 = vadd.f32 %v10974_v18, %v2851_v26  ;;  %v8360_v18 = vor.u32 %v10016_v45, %v8359_v25  ;;  %v8120_v24 = vor.u32 %v9956_v16, %v8119_v32  ;;  %v9984_v26 = vld [vmem:[#allocation7 + $0x974] sm:$0xf0]  ;;  %v8327_v7 = vld [vmem:[#allocation7 + $0xa28] sm:$0xf] }
 0x2c4   :  { %3946 = vmatmul.bf16.gmra.mxu0 %v10779_v44  ;;  %3965 = vmatmul.bf16.gmra.mxu1 %v10781_v34  ;;  %v8232_v19 = vor.u32 %v9984_v26, %v8231_v62  ;;  %v9948_v25 = vld [vmem:[#allocation7 + $0x854] sm:$0xf0]  ;;  %v8215_v45 = vld [vmem:[#allocation7 + $0x948] sm:$0xf]  ;;  %v8425_v62 = vld [vmem:[#allocation7 + $0xaf8] sm:$0xf0] }
 0x2c5   :  { %4087 = vmatpush.bf16.msra.mxu0 %v8392_v61  ;;  %4106 = vmatpush.bf16.msra.mxu1 %v8520_v37  ;;  %v11000_v13 = vadd.f32 %v10976_v0, %v2870_v54  ;;  %v8488_v61 = vor.u32 %v10048_v17, %v8487_v4  ;;  %v9988_v37 = vld [vmem:[#allocation7 + $0x994] sm:$0xf0]  ;;  %v8343_v0 = vld [vmem:[#allocation7 + $0xa48] sm:$0xf]  ;;  %v8328_v17 = vor.u32 %v10008_v42, %v8327_v7  ;;  %v8553_v7 = vld [vmem:[#allocation7 + $0xbf8] sm:$0xf0] }
 0x2c6   :  { %4048 = vmatpush.bf16.msra.mxu2 %v8152_v52  ;;  %4067 = vmatpush.bf16.msra.mxu3 %v8280_v31  ;;  %v2833_v41 = vpop.f32.mrf.mxu2  ;;  %v2852_v63 = vpop.f32.mrf.mxu3  ;;  %v8248_v12 = vor.u32 %v9988_v37, %v8247_v33  ;;  %v10044_v52 = vld [vmem:[#allocation7 + $0xb54] sm:$0xf0]  ;;  %v8344_v5 = vor.u32 %v10012_v48, %v8343_v0  ;;  %v8071_v0 = vld [vmem:[#allocation7 + $0x828] sm:$0xf] }
 0x2c7   :  { %v2834_v11 = vadd.f32 %v2833_v41, %v10851_v1  ;;  %v9952_v31 = vld [vmem:[#allocation7 + $0x874] sm:$0xf0]  ;;  %v8472_v1 = vor.u32 %v10044_v52, %v8471_v50  ;;  %v8311_v41 = vld [vmem:[#allocation7 + $0xa08] sm:$0xf] }
 0x2c8   :  { %v10040_v54 = vld [vmem:[#allocation7 + $0xb34] sm:$0xf0]  ;;  %v8199_v50 = vld [vmem:[#allocation7 + $0x928] sm:$0xf] }
 0x2c9   :  { %4088 = vmatpush.bf16.msra.mxu0 %v8376_v59  ;;  %4107 = vmatpush.bf16.msra.mxu1 %v8504_v14  ;;  %v2853_v53 = vadd.f32 %v2852_v63, %v2834_v11  ;;  %v11005_v56 = vpop.f32.mrf.mxu0  ;;  %v11007_v2 = vpop.f32.mrf.mxu1  ;;  %v8455_v59 = vld [vmem:[#allocation7 + $0xb28] sm:$0xf]  ;;  %v8104_v14 = vor.u32 %v9952_v31, %v8103_v36  ;;  %v9980_v16 = vld [vmem:[#allocation7 + $0x954] sm:$0xf0]  ;;  %v10030_v31 = vld [vmem:[#allocation7 + $0xaec] sm:$0xf] }
 0x2ca   :  { %4049 = vmatpush.bf16.msra.mxu2 %v8136_v35  ;;  %4068 = vmatpush.bf16.msra.mxu3 %v8264_v39  ;;  %v8087_v39 = vld [vmem:[#allocation7 + $0x848] sm:$0xf]  ;;  %v8456_v32 = vor.u32 %v10040_v54, %v8455_v59  ;;  %v10004_v63 = vld [vmem:[#allocation7 + $0xa14] sm:$0xf0] }
 0x2cb   :  { %v2872_v27 = vadd.f32 %v10984_v9, %v2853_v53  ;;  %3908 = vmatmul.bf16.gmra.mxu2 %v10799_v38  ;;  %3927 = vmatmul.bf16.gmra.mxu3 %v10801_v46  ;;  %v10036_v37 = vld [vmem:[#allocation7 + $0xb14] sm:$0xf0]  ;;  %v8312_v52 = vor.u32 %v10004_v63, %v8311_v41 }
 0x2cc   :  { %v9944_v48 = vld [vmem:[#allocation7 + $0x834] sm:$0xf0] }
 0x2cd   :  { %4089 = vmatpush.bf16.msra.mxu0 %v8360_v18  ;;  %4108 = vmatpush.bf16.msra.mxu1 %v8488_v61  ;;  %v11013_v35 = vadd.f32 %v10986_v10, %v2872_v27  ;;  %v8439_v18 = vld [vmem:[#allocation7 + $0xb08] sm:$0xf]  ;;  %v8088_v61 = vor.u32 %v9948_v25, %v8087_v39  ;;  %v8216_v10 = vor.u32 %v9980_v16, %v8215_v45  ;;  %v9976_v53 = vld [vmem:[#allocation7 + $0x934] sm:$0xf0]  ;;  %v8537_v16 = vld [vmem:[#allocation7 + $0xbd8] sm:$0xf0] }
 0x2ce   :  { %4050 = vmatpush.bf16.msra.mxu2 %v8120_v24  ;;  %4069 = vmatpush.bf16.msra.mxu3 %v8248_v12  ;;  %v2836_v4 = vpop.f32.mrf.mxu2  ;;  %v2855_v9 = vpop.f32.mrf.mxu3  ;;  %v8200_v26 = vor.u32 %v9976_v53, %v8199_v50  ;;  %v8428_v27 = vor.u32 %v10030_v31, %v8425_v62  ;;  %v9972_v25 = vld [vmem:[#allocation7 + $0x914] sm:$0xf0]  ;;  %v10054_v53 = vld [vmem:[#allocation7 + $0xbac] sm:$0xf] }
 0x2cf   :  { %v2837_v33 = vadd.f32 %v2836_v4, %v10859_v40  ;;  %v8440_v40 = vor.u32 %v10036_v37, %v8439_v18  ;;  %v10026_v4 = vld [vmem:[#allocation7 + $0xacc] sm:$0xf] }
 0x2d0   :  { %v9966_v18 = vld [vmem:[#allocation7 + $0x8ec] sm:$0xf] }
 0x2d1   :  { %4090 = vmatpush.bf16.msra.mxu0 %v8344_v5  ;;  %4109 = vmatpush.bf16.msra.mxu1 %v8472_v1  ;;  %v2856_v11 = vadd.f32 %v2855_v9, %v2837_v33  ;;  %v11016_v24 = vpop.f32.mrf.mxu0  ;;  %v11018_v12 = vpop.f32.mrf.mxu1  ;;  %v10062_v5 = vld [vmem:[#allocation7 + $0xbec] sm:$0xf]  ;;  %v8072_v1 = vor.u32 %v9944_v48, %v8071_v0  ;;  %v8297_v0 = vld [vmem:[#allocation7 + $0x9f8] sm:$0xf0] }
 0x2d2   :  { %4051 = vmatpush.bf16.msra.mxu2 %v8104_v14  ;;  %4070 = vmatpush.bf16.msra.mxu3 %v8232_v19  ;;  %v8556_v59 = vor.u32 %v10062_v5, %v8553_v7  ;;  %v8055_v14 = vld [vmem:[#allocation7 + $0x808] sm:$0xf]  ;;  %v9940_v19 = vld [vmem:[#allocation7 + $0x814] sm:$0xf0]  ;;  %v10058_v9 = vld [vmem:[#allocation7 + $0xbcc] sm:$0xf] }
 0x2d3   :  { %v2875_v36 = vadd.f32 %v10994_v57, %v2856_v11  ;;  %v8183_v57 = vld [vmem:[#allocation7 + $0x908] sm:$0xf]  ;;  %v8540_v63 = vor.u32 %v10058_v9, %v8537_v16  ;;  %v9990_v9 = vld [vmem:[#allocation7 + $0x9ac] sm:$0xf] }
 0x2d4   :  { %4017 = vmatmul.bf16.vlgmr.msrb.gmra.mxu0 %v10767_v20  ;;  %4036 = vmatmul.bf16.vlgmr.msrb.gmra.mxu1 %v10769_v21 }
 0x2d5   :  { %4091 = vmatpush.bf16.msra.mxu0 %v8328_v17  ;;  %4110 = vmatpush.bf16.msra.mxu1 %v8456_v32  ;;  %v11022_v42 = vadd.f32 %v10996_v49, %v2875_v36  ;;  %v8409_v49 = vld [vmem:[#allocation7 + $0xad8] sm:$0xf0]  ;;  %v8056_v17 = vor.u32 %v9940_v19, %v8055_v14  ;;  %v8184_v32 = vor.u32 %v9972_v25, %v8183_v57 }
 0x2d6   :  { %4052 = vmatpush.bf16.msra.mxu2 %v8088_v61  ;;  %4071 = vmatpush.bf16.msra.mxu3 %v8216_v10  ;;  %v2838_v54 = vpop.f32.mrf.mxu2  ;;  %v2857_v39 = vpop.f32.mrf.mxu3  ;;  %v8412_v41 = vor.u32 %v10026_v4, %v8409_v49  ;;  %v8169_v61 = vld [vmem:[#allocation7 + $0x8f8] sm:$0xf0]  ;;  %v9998_v10 = vld [vmem:[#allocation7 + $0x9ec] sm:$0xf] }
 0x2d7   :  { %v2839_v45 = vadd.f32 %v2838_v54, %v10871_v29  ;;  %v8172_v29 = vor.u32 %v9966_v18, %v8169_v61  ;;  %v8300_v50 = vor.u32 %v9998_v10, %v8297_v0  ;;  %v8521_v36 = vld [vmem:[#allocation7 + $0xbb8] sm:$0xf0]  ;;  %v10018_v54 = vld [vmem:[#allocation7 + $0xa8c] sm:$0xf] }
 0x2d8   :  { %v8524_v5 = vor.u32 %v10054_v53, %v8521_v36  ;;  %v8281_v14 = vld [vmem:[#allocation7 + $0x9d8] sm:$0xf0]  ;;  %v9958_v4 = vld [vmem:[#allocation7 + $0x8ac] sm:$0xf] }
 0x2d9   :  { %4092 = vmatpush.bf16.msra.mxu0 %v8312_v52  ;;  %4111 = vmatpush.bf16.msra.mxu1 %v8440_v40  ;;  %v2858_v33 = vadd.f32 %v2857_v39, %v2839_v45  ;;  %v11027_v37 = vpop.f32.mrf.mxu0  ;;  %v11029_v11 = vpop.f32.mrf.mxu1  ;;  %v10022_v52 = vld [vmem:[#allocation7 + $0xaac] sm:$0xf]  ;;  %v8393_v40 = vld [vmem:[#allocation7 + $0xab8] sm:$0xf0] }
 0x2da   :  { %4053 = vmatpush.bf16.msra.mxu2 %v8072_v1  ;;  %4072 = vmatpush.bf16.msra.mxu3 %v8200_v26  ;;  %v8396_v62 = vor.u32 %v10022_v52, %v8393_v40  ;;  %v9962_v1 = vld [vmem:[#allocation7 + $0x8cc] sm:$0xf]  ;;  %v8377_v39 = vld [vmem:[#allocation7 + $0xa98] sm:$0xf0] }
 0x2db   :  { %v2877_v48 = vadd.f32 %v11005_v56, %v2858_v33  ;;  %3979 = vmatmul.bf16.vlgmr.msrb.gmra.mxu2 %v10775_v6  ;;  %3998 = vmatmul.bf16.vlgmr.msrb.gmra.mxu3 %v10777_v3  ;;  %v8153_v56 = vld [vmem:[#allocation7 + $0x8d8] sm:$0xf0]  ;;  %v9994_v26 = vld [vmem:[#allocation7 + $0x9cc] sm:$0xf]  ;;  %v8380_v16 = vor.u32 %v10018_v54, %v8377_v39 }
 0x2dc   :  { %v8284_v57 = vor.u32 %v9994_v26, %v8281_v14  ;;  %v8505_v25 = vld [vmem:[#allocation7 + $0xb98] sm:$0xf0]  ;;  %v10014_v61 = vld [vmem:[#allocation7 + $0xa6c] sm:$0xf] }
 0x2dd   :  { %4161 = vmatpush.bf16.msrb.mxu0 %v8428_v27  ;;  %4180 = vmatpush.bf16.msrb.mxu1 %v8556_v59  ;;  %v11035_v31 = vadd.f32 %v11007_v2, %v2877_v48  ;;  %v8156_v59 = vor.u32 %v9962_v1, %v8153_v56  ;;  %v10050_v2 = vld [vmem:[#allocation7 + $0xb8c] sm:$0xf]  ;;  %v8137_v49 = vld [vmem:[#allocation7 + $0x8b8] sm:$0xf0] }
 0x2de   :  { %4054 = vmatpush.bf16.msra.mxu2 %v8056_v17  ;;  %4073 = vmatpush.bf16.msra.mxu3 %v8184_v32  ;;  %v2907_v27 = vpop.f32.mrf.mxu2  ;;  %v2926_v7 = vpop.f32.mrf.mxu3  ;;  %v8508_v33 = vor.u32 %v10050_v2, %v8505_v25  ;;  %v8361_v10 = vld [vmem:[#allocation7 + $0xa78] sm:$0xf0]  ;;  %v9986_v40 = vld [vmem:[#allocation7 + $0x98c] sm:$0xf] }
 0x2df   :  { %v2908_v19 = vadd.f32 %v2907_v27, %v10879_v22  ;;  %v8265_v22 = vld [vmem:[#allocation7 + $0x9b8] sm:$0xf0]  ;;  %v10042_v26 = vld [vmem:[#allocation7 + $0xb4c] sm:$0xf] }
 0x2e0   :  { %v8268_v18 = vor.u32 %v9990_v9, %v8265_v22  ;;  %v8489_v0 = vld [vmem:[#allocation7 + $0xb78] sm:$0xf0]  ;;  %v9982_v54 = vld [vmem:[#allocation7 + $0x96c] sm:$0xf] }
 0x2e1   :  { %4162 = vmatpush.bf16.msrb.mxu0 %v8412_v41  ;;  %4181 = vmatpush.bf16.msrb.mxu1 %v8540_v63  ;;  %v2927_v45 = vadd.f32 %v2926_v7, %v2908_v19  ;;  %v11038_v17 = vpop.f32.mrf.mxu0  ;;  %v11040_v32 = vpop.f32.mrf.mxu1  ;;  %v8140_v63 = vor.u32 %v9958_v4, %v8137_v49  ;;  %v8121_v52 = vld [vmem:[#allocation7 + $0x898] sm:$0xf0]  ;;  %v9950_v19 = vld [vmem:[#allocation7 + $0x86c] sm:$0xf] }
 0x2e2   :  { %4123 = vmatpush.bf16.msrb.mxu2 %v8172_v29  ;;  %4142 = vmatpush.bf16.msrb.mxu3 %v8300_v50  ;;  %v10046_v29 = vld [vmem:[#allocation7 + $0xb6c] sm:$0xf]  ;;  %v8345_v56 = vld [vmem:[#allocation7 + $0xa58] sm:$0xf0] }
 0x2e3   :  { %v2946_v41 = vadd.f32 %v11016_v24, %v2927_v45  ;;  %v9954_v50 = vld [vmem:[#allocation7 + $0x88c] sm:$0xf]  ;;  %v8364_v24 = vor.u32 %v10014_v61, %v8361_v10  ;;  %v8233_v45 = vld [vmem:[#allocation7 + $0x978] sm:$0xf0] }
 0x2e4   :  { %4022 = vmatmul.bf16.gmra.mxu0 %v10779_v44  ;;  %4041 = vmatmul.bf16.gmra.mxu1 %v10781_v34  ;;  %v8124_v27 = vor.u32 %v9954_v50, %v8121_v52  ;;  %v10006_v49 = vld [vmem:[#allocation7 + $0xa2c] sm:$0xf]  ;;  %v8329_v9 = vld [vmem:[#allocation7 + $0xa38] sm:$0xf0]  ;;  %v8236_v22 = vor.u32 %v9982_v54, %v8233_v45 }
 0x2e5   :  { %4163 = vmatpush.bf16.msrb.mxu0 %v8396_v62  ;;  %4182 = vmatpush.bf16.msrb.mxu1 %v8524_v5  ;;  %v11044_v48 = vadd.f32 %v11018_v12, %v2946_v41  ;;  %v8492_v62 = vor.u32 %v10046_v29, %v8489_v0  ;;  %v8249_v5 = vld [vmem:[#allocation7 + $0x998] sm:$0xf0]  ;;  %v10010_v12 = vld [vmem:[#allocation7 + $0xa4c] sm:$0xf]  ;;  %v8332_v0 = vor.u32 %v10006_v49, %v8329_v9 }
 0x2e6   :  { %4124 = vmatpush.bf16.msrb.mxu2 %v8156_v59  ;;  %4143 = vmatpush.bf16.msrb.mxu3 %v8284_v57  ;;  %v2909_v53 = vpop.f32.mrf.mxu2  ;;  %v2928_v36 = vpop.f32.mrf.mxu3  ;;  %v8252_v7 = vor.u32 %v9986_v40, %v8249_v5  ;;  %v8473_v59 = vld [vmem:[#allocation7 + $0xb58] sm:$0xf0]  ;;  %v8348_v25 = vor.u32 %v10010_v12, %v8345_v56  ;;  %v9978_v10 = vld [vmem:[#allocation7 + $0x94c] sm:$0xf] }
 0x2e7   :  { %v2910_v1 = vadd.f32 %v2909_v53, %v10891_v47  ;;  %v8105_v57 = vld [vmem:[#allocation7 + $0x878] sm:$0xf0]  ;;  %v8476_v47 = vor.u32 %v10042_v26, %v8473_v59  ;;  %v10002_v53 = vld [vmem:[#allocation7 + $0xa0c] sm:$0xf] }
 0x2e8   :  { %v8457_v41 = vld [vmem:[#allocation7 + $0xb38] sm:$0xf0]  ;;  %v9942_v12 = vld [vmem:[#allocation7 + $0x82c] sm:$0xf] }
 0x2e9   :  { %4164 = vmatpush.bf16.msrb.mxu0 %v8380_v16  ;;  %4183 = vmatpush.bf16.msrb.mxu1 %v8508_v33  ;;  %v2929_v14 = vadd.f32 %v2928_v36, %v2910_v1  ;;  %v11049_v39 = vpop.f32.mrf.mxu0  ;;  %v11051_v2 = vpop.f32.mrf.mxu1  ;;  %v10038_v16 = vld [vmem:[#allocation7 + $0xb2c] sm:$0xf]  ;;  %v8108_v33 = vor.u32 %v9950_v19, %v8105_v57  ;;  %v8089_v61 = vld [vmem:[#allocation7 + $0x858] sm:$0xf0] }
 0x2ea   :  { %4125 = vmatpush.bf16.msrb.mxu2 %v8140_v63  ;;  %4144 = vmatpush.bf16.msrb.mxu3 %v8268_v18  ;;  %v9946_v18 = vld [vmem:[#allocation7 + $0x84c] sm:$0xf]  ;;  %v8460_v50 = vor.u32 %v10038_v16, %v8457_v41  ;;  %v8217_v52 = vld [vmem:[#allocation7 + $0x958] sm:$0xf0] }
 0x2eb   :  { %v2948_v4 = vadd.f32 %v11027_v37, %v2929_v14  ;;  %3984 = vmatmul.bf16.gmra.mxu2 %v10799_v38  ;;  %4003 = vmatmul.bf16.gmra.mxu3 %v10801_v46  ;;  %v8313_v36 = vld [vmem:[#allocation7 + $0xa18] sm:$0xf0]  ;;  %v9974_v26 = vld [vmem:[#allocation7 + $0x92c] sm:$0xf] }
 0x2ec   :  { %v8441_v5 = vld [vmem:[#allocation7 + $0xb18] sm:$0xf0]  ;;  %v8316_v59 = vor.u32 %v10002_v53, %v8313_v36 }
 0x2ed   :  { %4165 = vmatpush.bf16.msrb.mxu0 %v8364_v24  ;;  %4184 = vmatpush.bf16.msrb.mxu1 %v8492_v62  ;;  %v11057_v63 = vadd.f32 %v11029_v11, %v2948_v4  ;;  %v10034_v24 = vld [vmem:[#allocation7 + $0xb0c] sm:$0xf]  ;;  %v8092_v62 = vor.u32 %v9946_v18, %v8089_v61  ;;  %v8220_v11 = vor.u32 %v9978_v10, %v8217_v52  ;;  %v8073_v56 = vld [vmem:[#allocation7 + $0x838] sm:$0xf0] }
 0x2ee   :  { %4126 = vmatpush.bf16.msrb.mxu2 %v8124_v27  ;;  %4145 = vmatpush.bf16.msrb.mxu3 %v8252_v7  ;;  %v2912_v29 = vpop.f32.mrf.mxu2  ;;  %v2931_v37 = vpop.f32.mrf.mxu3  ;;  %v8444_v14 = vor.u32 %v10034_v24, %v8441_v5  ;;  %v8201_v19 = vld [vmem:[#allocation7 + $0x938] sm:$0xf0]  ;;  %v8076_v57 = vor.u32 %v9942_v12, %v8073_v56  ;;  %v9970_v4 = vld [vmem:[#allocation7 + $0x90c] sm:$0xf] }
 0x2ef   :  { %v2913_v40 = vadd.f32 %v2912_v29, %v10899_v8  ;;  %v8204_v54 = vor.u32 %v9974_v26, %v8201_v19  ;;  %v8057_v45 = vld [vmem:[#allocation7 + $0x818] sm:$0xf0]  ;;  %v8783_v26 = vld [vmem:[#allocation10 + $0x1c0] sm:$0xf] }
 0x2f0   :  { %v8185_v16 = vld [vmem:[#allocation7 + $0x918] sm:$0xf0] }
 0x2f1   :  { %4166 = vmatpush.bf16.msrb.mxu0 %v8348_v25  ;;  %4185 = vmatpush.bf16.msrb.mxu1 %v8476_v47  ;;  %v2932_v1 = vadd.f32 %v2931_v37, %v2913_v40  ;;  %v3021_v27 = vpop.f32.mrf.mxu0  ;;  %v3040_v7 = vpop.f32.mrf.mxu1  ;;  %v9938_v47 = vld [vmem:[#allocation7 + $0x80c] sm:$0xf] }
 0x2f2   :  { %4127 = vmatpush.bf16.msrb.mxu2 %v8108_v33  ;;  %4146 = vmatpush.bf16.msrb.mxu3 %v8236_v22  ;;  %v8060_v33 = vor.u32 %v9938_v47, %v8057_v45  ;;  %v8188_v22 = vor.u32 %v9970_v4, %v8185_v16  ;;  %v10109_v45 = vld [vmem:[#allocation10 + $0x15c] sm:$0xf0] }
 0x2f3   :  { %v2951_v8 = vadd.f32 %v11038_v17, %v2932_v1  ;;  %v8687_v16 = vld [vmem:[#allocation10 + $0x100] sm:$0xf] }
 0x2f4   :  { %4093 = vmatmul.bf16.vlgmr.msra.gmra.mxu0 %v10767_v20  ;;  %4112 = vmatmul.bf16.vlgmr.msra.gmra.mxu1 %v10769_v21 }
 0x2f5   :  { %4167 = vmatpush.bf16.msrb.mxu0 %v8332_v0  ;;  %4186 = vmatpush.bf16.msrb.mxu1 %v8460_v50  ;;  %v11062_v25 = vadd.f32 %v11040_v32, %v2951_v8  ;;  %v8751_v8 = vld [vmem:[#allocation10 + $0x180] sm:$0xf] }
 0x2f6   :  { %4128 = vmatpush.bf16.msrb.mxu2 %v8092_v62  ;;  %4147 = vmatpush.bf16.msrb.mxu3 %v8220_v11  ;;  %v2914_v49 = vpop.f32.mrf.mxu2  ;;  %v2933_v9 = vpop.f32.mrf.mxu3 }
 0x2f7   :  { %v2915_v17 = vadd.f32 %v2914_v49, %v10911_v28 }
 0x2f9   :  { %4168 = vmatpush.bf16.msrb.mxu0 %v8316_v59  ;;  %4187 = vmatpush.bf16.msrb.mxu1 %v8444_v14  ;;  %v2934_v32 = vadd.f32 %v2933_v9, %v2915_v17  ;;  %v11067_v41 = vpop.f32.mrf.mxu0  ;;  %v11069_v18 = vpop.f32.mrf.mxu1  ;;  %v10101_v17 = vld [vmem:[#allocation10 + $0x11c] sm:$0xf0] }
 0x2fa   :  { %4129 = vmatpush.bf16.msrb.mxu2 %v8076_v57  ;;  %4148 = vmatpush.bf16.msrb.mxu3 %v8204_v54 }
 0x2fb   :  { %v2953_v61 = vadd.f32 %v11049_v39, %v2934_v32  ;;  %4055 = vmatmul.bf16.vlgmr.msra.gmra.mxu2 %v10775_v6  ;;  %4074 = vmatmul.bf16.vlgmr.msra.gmra.mxu3 %v10777_v3 }
 0x2fd   :  { %v11075_v10 = vadd.f32 %v11051_v2, %v2953_v61 }
 0x2fe   :  { %4130 = vmatpush.bf16.msrb.mxu2 %v8060_v33  ;;  %4149 = vmatpush.bf16.msrb.mxu3 %v8188_v22  ;;  %v2983_v28 = vpop.f32.mrf.mxu2  ;;  %v3002_v29 = vpop.f32.mrf.mxu3  ;;  %v8688_v33 = vor.u32 %v10101_v17, %v8687_v16  ;;  %v10181_v17 = vld [vmem:[#allocation10 + $0x39c] sm:$0xf0] }
 0x2ff   :  { %v2984_v37 = vadd.f32 %v2983_v28, %v10919_v51 }
 0x301   :  { %v3003_v0 = vadd.f32 %v3002_v29, %v2984_v37  ;;  %v3026_v50 = vpop.f32.mrf.mxu0  ;;  %v3045_v52 = vpop.f32.mrf.mxu1  ;;  %v8655_v29 = vld [vmem:[#allocation10 + $0xc0] sm:$0xf] }
 0x303   :  { %v3022_v40 = vadd.f32 %v3021_v27, %v3003_v0  ;;  %v10125_v27 = vld [vmem:[#allocation10 + $0x1dc] sm:$0xf0] }
 0x304   :  { %4098 = vmatmul.bf16.gmra.mxu0 %v10779_v44  ;;  %4117 = vmatmul.bf16.gmra.mxu1 %v10781_v34 }
 0x305   :  { %v11078_v53 = vadd.f32 %v3040_v7, %v3022_v40  ;;  %v8784_v7 = vor.u32 %v10125_v27, %v8783_v26  ;;  %v10069_v26 = vld [vmem:[#allocation10 + $0x1c] sm:$0xf0] }
 0x306   :  { %v11082_v39 = vpop.f32.mrf.mxu2  ;;  %v11084_v36 = vpop.f32.mrf.mxu3 }
 0x307   :  { %5801 = vmatpush.bf16.msra.mxu2 %v8784_v7 }
 0x309   :  { %v11086_v2 = vpop.f32.mrf.mxu0  ;;  %v11088_v24 = vpop.f32.mrf.mxu1 }
 0x30b   :  { %4060 = vmatmul.bf16.gmra.mxu2 %v10799_v38  ;;  %4079 = vmatmul.bf16.gmra.mxu3 %v10801_v46 }
 0x30e   :  { %v2988_v51 = vpop.f32.mrf.mxu2  ;;  %v3007_v62 = vpop.f32.mrf.mxu3 }
 0x30f   :  { %v2989_v11 = vadd.f32 %v2988_v51, %v10939_v15  ;;  %v10117_v15 = vld [vmem:[#allocation10 + $0x19c] sm:$0xf0] }
 0x310   :  { %v8752_v57 = vor.u32 %v10117_v15, %v8751_v8 }
 0x311   :  { %v3008_v5 = vadd.f32 %v3007_v62, %v2989_v11  ;;  %v3097_v1 = vpop.f32.mrf.mxu0  ;;  %v3116_v12 = vpop.f32.mrf.mxu1  ;;  %v10077_v11 = vld [vmem:[#allocation10 + $0x5c] sm:$0xf0] }
 0x312   :  { %5802 = vmatpush.bf16.msra.mxu2 %v8752_v57 }
 0x313   :  { %v3027_v56 = vadd.f32 %v3026_v50, %v3008_v5  ;;  %v8623_v50 = vld [vmem:[#allocation10 + $0x80] sm:$0xf] }
 0x314   :  { %4169 = vmatmul.bf16.vlgmr.msrb.gmra.mxu0 %v10767_v20  ;;  %4188 = vmatmul.bf16.vlgmr.msrb.gmra.mxu1 %v10769_v21  ;;  %v8719_v20 = vld [vmem:[#allocation10 + $0x140] sm:$0xf] }
 0x315   :  { %v11093_v59 = vadd.f32 %v3045_v52, %v3027_v56  ;;  %v8720_v21 = vor.u32 %v10109_v45, %v8719_v20  ;;  %v10085_v52 = vld [vmem:[#allocation10 + $0x9c] sm:$0xf0]  ;;  %v10121_v45 = vld [vmem:[#allocation10 + $0x1c4] sm:$0xf] }
 0x316   :  { %v11097_v14 = vpop.f32.mrf.mxu2  ;;  %v11099_v19 = vpop.f32.mrf.mxu3  ;;  %v8624_v40 = vor.u32 %v10085_v52, %v8623_v50  ;;  %v8559_v56 = vld [vmem:[#allocation10] sm:$0xf]  ;;  %v10105_v50 = vld [vmem:[#allocation10 + $0x144] sm:$0xf] }
 0x317   :  { %5803 = vmatpush.bf16.msra.mxu2 %v8720_v21  ;;  %v8560_v27 = vor.u32 %v10069_v26, %v8559_v56  ;;  %v9039_v20 = vld [vmem:[#allocation10 + $0x3c0] sm:$0xf]  ;;  %v8785_v21 = vld [vmem:[#allocation10 + $0x1e0] sm:$0xf0] }
 0x318   :  { %v10097_v56 = vld [vmem:[#allocation10 + $0x104] sm:$0xf] }
 0x319   :  { %v11101_v54 = vpop.f32.mrf.mxu0  ;;  %v11103_v47 = vpop.f32.mrf.mxu1 }
 0x31b   :  { %4131 = vmatmul.bf16.vlgmr.msrb.gmra.mxu2 %v10775_v6  ;;  %4150 = vmatmul.bf16.vlgmr.msrb.gmra.mxu3 %v10777_v3  ;;  %v10093_v6 = vld [vmem:[#allocation10 + $0xdc] sm:$0xf0] }
 0x31c   :  { %5804 = vmatpush.bf16.msra.mxu2 %v8688_v33  ;;  %v8656_v37 = vor.u32 %v10093_v6, %v8655_v29  ;;  %v10113_v33 = vld [vmem:[#allocation10 + $0x184] sm:$0xf] }
 0x31e   :  { %v3059_v4 = vpop.f32.mrf.mxu2  ;;  %v3078_v49 = vpop.f32.mrf.mxu3 }
 0x31f   :  { %v3060_v9 = vadd.f32 %v3059_v4, %v10959_v55 }
 0x320   :  { %5805 = vmatpush.bf16.msra.mxu2 %v8656_v37  ;;  %v8975_v37 = vld [vmem:[#allocation10 + $0x340] sm:$0xf] }
 0x321   :  { %v3079_v22 = vadd.f32 %v3078_v49, %v3060_v9  ;;  %v3102_v32 = vpop.f32.mrf.mxu0  ;;  %v3121_v61 = vpop.f32.mrf.mxu1  ;;  %v8788_v49 = vor.u32 %v10121_v45, %v8785_v21  ;;  %v8911_v45 = vld [vmem:[#allocation10 + $0x2c0] sm:$0xf]  ;;  %v10089_v21 = vld [vmem:[#allocation10 + $0xc4] sm:$0xf] }
 0x323   :  { %v3098_v28 = vadd.f32 %v3097_v1, %v3079_v22 }
 0x324   :  { %4174 = vmatmul.bf16.gmra.mxu0 %v10779_v44  ;;  %4193 = vmatmul.bf16.gmra.mxu1 %v10781_v34  ;;  %v8591_v44 = vld [vmem:[#allocation10 + $0x40] sm:$0xf] }
 0x325   :  { %v11108_v3 = vadd.f32 %v3116_v12, %v3098_v28  ;;  %5806 = vmatpush.bf16.msra.mxu2 %v8624_v40  ;;  %v8592_v34 = vor.u32 %v10077_v11, %v8591_v44  ;;  %v8753_v28 = vld [vmem:[#allocation10 + $0x1a0] sm:$0xf0] }
 0x326   :  { %v11112_v0 = vpop.f32.mrf.mxu2  ;;  %v11114_v55 = vpop.f32.mrf.mxu3  ;;  %v8721_v40 = vld [vmem:[#allocation10 + $0x160] sm:$0xf0] }
 0x327   :  { %v8724_v44 = vor.u32 %v10105_v50, %v8721_v40  ;;  %v10081_v50 = vld [vmem:[#allocation10 + $0x84] sm:$0xf] }
 0x328   :  { %v8625_v40 = vld [vmem:[#allocation10 + $0xa0] sm:$0xf0] }
 0x329   :  { %v11116_v51 = vpop.f32.mrf.mxu0  ;;  %v11118_v62 = vpop.f32.mrf.mxu1  ;;  %5807 = vmatpush.bf16.msra.mxu2 %v8592_v34 }
 0x32b   :  { %4136 = vmatmul.bf16.gmra.mxu2 %v10799_v38  ;;  %4155 = vmatmul.bf16.gmra.mxu3 %v10801_v46  ;;  %v10189_v38 = vld [vmem:[#allocation10 + $0x3dc] sm:$0xf0] }
 0x32c   :  { %v9040_v46 = vor.u32 %v10189_v38, %v9039_v20 }
 0x32d   :  { %5808 = vmatpush.bf16.msra.mxu2 %v8560_v27  ;;  %v8689_v27 = vld [vmem:[#allocation10 + $0x120] sm:$0xf0] }
 0x32e   :  { %v3064_v5 = vpop.f32.mrf.mxu2  ;;  %v3083_v1 = vpop.f32.mrf.mxu3  ;;  %5820 = vmatpush.bf16.msra.mxu3 %v9040_v46  ;;  %v10157_v46 = vld [vmem:[#allocation10 + $0x2dc] sm:$0xf0] }
 0x32f   :  { %v3065_v12 = vadd.f32 %v3064_v5, %v10979_v23  ;;  %v9007_v23 = vld [vmem:[#allocation10 + $0x380] sm:$0xf] }
 0x330   :  { %v9008_v22 = vor.u32 %v10181_v17, %v9007_v23  ;;  %v8657_v23 = vld [vmem:[#allocation10 + $0xe0] sm:$0xf0] }
 0x331   :  { %v3084_v7 = vadd.f32 %v3083_v1, %v3065_v12  ;;  %v3942_v8 = vpop.f32.mrf.mxu0  ;;  %v3961_v15 = vpop.f32.mrf.mxu1  ;;  %5877 = vmatpush.bf16.msrb.mxu2 %v8788_v49  ;;  %v8943_v1 = vld [vmem:[#allocation10 + $0x300] sm:$0xf]  ;;  %v8912_v49 = vor.u32 %v10157_v46, %v8911_v45 }
 0x332   :  { %5821 = vmatpush.bf16.msra.mxu3 %v9008_v22  ;;  %v10165_v12 = vld [vmem:[#allocation10 + $0x31c] sm:$0xf0]  ;;  %v11129_v22 = vld [vmem:[#allocation9] sm:$0xf] }
 0x333   :  { %v3103_v57 = vadd.f32 %v3102_v32, %v3084_v7  ;;  %v8756_v32 = vor.u32 %v10113_v33, %v8753_v28  ;;  %v8944_v26 = vor.u32 %v10165_v12, %v8943_v1  ;;  %v8660_v33 = vor.u32 %v10089_v21, %v8657_v23 }
 0x335   :  { %v11123_v4 = vadd.f32 %v3121_v61, %v3103_v57  ;;  %5878 = vmatpush.bf16.msrb.mxu2 %v8756_v32  ;;  %v10173_v61 = vld [vmem:[#allocation10 + $0x35c] sm:$0xf0]  ;;  %v8692_v57 = vor.u32 %v10097_v56, %v8689_v27  ;;  %v10073_v27 = vld [vmem:[#allocation10 + $0x44] sm:$0xf] }
 0x336   :  { %v11125_v9 = vpop.f32.mrf.mxu2  ;;  %v11127_v16 = vpop.f32.mrf.mxu3  ;;  %v8976_v52 = vor.u32 %v10173_v61, %v8975_v37  ;;  %v10149_v61 = vld [vmem:[#allocation10 + $0x29c] sm:$0xf0] }
 0x337   :  { %v8847_v56 = vld [vmem:[#allocation10 + $0x240] sm:$0xf] }
 0x338   :  { %5822 = vmatpush.bf16.msra.mxu3 %v8976_v52 }
 0x339   :  { %v3944_v29 = vpop.f32.mrf.mxu0  ;;  %v3963_v6 = vpop.f32.mrf.mxu1  ;;  %5879 = vmatpush.bf16.msrb.mxu2 %v8724_v44 }
 0x33c   :  { %5823 = vmatpush.bf16.msra.mxu3 %v8944_v26  ;;  %v10141_v26 = vld [vmem:[#allocation10 + $0x25c] sm:$0xf0] }
 0x33d   :  { %5880 = vmatpush.bf16.msrb.mxu2 %v8692_v57  ;;  %v8593_v57 = vld [vmem:[#allocation10 + $0x60] sm:$0xf0] }
 0x33e   :  { %v3904_v11 = vpop.f32.mrf.mxu2  ;;  %v3923_v34 = vpop.f32.mrf.mxu3  ;;  %v8596_v46 = vor.u32 %v10073_v27, %v8593_v57  ;;  %v8791_v27 = vld [vmem:[#allocation10 + $0x1c8] sm:$0xf] }
 0x33f   :  { %v3924_v5 = vadd.f32 %v3923_v34, %v3904_v11  ;;  %v11133_v11 = vperm.slane %v11129_v22, 0 }
 0x340   :  { %5824 = vmatpush.bf16.msra.mxu3 %v8912_v49 }
 0x341   :  { %v3943_v7 = vadd.f32 %v3942_v8, %v3924_v5  ;;  %v3947_v20 = vpop.f32.mrf.mxu0  ;;  %v3966_v38 = vpop.f32.mrf.mxu1  ;;  %5881 = vmatpush.bf16.msrb.mxu2 %v8660_v33  ;;  %v8879_v8 = vld [vmem:[#allocation10 + $0x280] sm:$0xf]  ;;  %v10065_v33 = vld [vmem:[#allocation10 + $0x4] sm:$0xf] }
 0x342   :  { %v8880_v52 = vor.u32 %v10149_v61, %v8879_v8 }
 0x343   :  { %v3962_v17 = vadd.f32 %v3961_v15, %v3943_v7  ;;  %v8628_v15 = vor.u32 %v10081_v50, %v8625_v40  ;;  %v8848_v7 = vor.u32 %v10141_v26, %v8847_v56  ;;  %v9041_v26 = vld [vmem:[#allocation10 + $0x3e0] sm:$0xf0] }
 0x344   :  { %5825 = vmatpush.bf16.msra.mxu3 %v8880_v52 }
 0x345   :  { %v4199_v44 = vadd.f32 %v3962_v17, %v11000_v13  ;;  %5882 = vmatpush.bf16.msrb.mxu2 %v8628_v15  ;;  %v8815_v17 = vld [vmem:[#allocation10 + $0x200] sm:$0xf] }
 0x346   :  { %v3906_v28 = vpop.f32.mrf.mxu2  ;;  %v3925_v32 = vpop.f32.mrf.mxu3  ;;  %v10253_v15 = vld [vmem:[#allocation10 + $0x5dc] sm:$0xf0] }
 0x347   :  { %v3926_v37 = vadd.f32 %v3925_v32, %v3906_v28  ;;  %v4225_v45 = vadd.f32 %v11133_v11, %v4199_v44  ;;  %v8561_v32 = vld [vmem:[#allocation10 + $0x20] sm:$0xf0] }
 0x348   :  { %5826 = vmatpush.bf16.msra.mxu3 %v8848_v7  ;;  %v8564_v50 = vor.u32 %v10065_v33, %v8561_v32  ;;  %v10126_v7 = vld [vmem:[#allocation10 + $0x1e4] sm:$0xf0] }
 0x349   :  { %v3945_v34 = vadd.f32 %v3944_v29, %v3926_v37  ;;  %v3949_v5 = vpop.f32.mrf.mxu0  ;;  %v11135_v1 = vpop.f32.mrf.mxu1  ;;  %5883 = vmatpush.bf16.msrb.mxu2 %v8596_v46  ;;  %v4241_v37 = vmax.f32 %v4225_v45, 0.0  ;;  %v8792_v57 = vor.u32 %v10126_v7, %v8791_v27  ;;  %v10118_v33 = vld [vmem:[#allocation10 + $0x1a4] sm:$0xf0] }
 0x34b   :  { %v3964_v12 = vadd.f32 %v3963_v6, %v3945_v34  ;;  %v10133_v6 = vld [vmem:[#allocation10 + $0x21c] sm:$0xf0] }
 0x34c   :  { %v8816_v28 = vor.u32 %v10133_v6, %v8815_v17  ;;  %v9295_v34 = vld [vmem:[#allocation10 + $0x5c0] sm:$0xf]  ;;  %v9009_v17 = vld [vmem:[#allocation10 + $0x3a0] sm:$0xf0]  ;;  %v8759_v6 = vld [vmem:[#allocation10 + $0x188] sm:$0xf] }
 0x34d   :  { %v4203_v13 = vadd.f32 %v3964_v12, %v11013_v35  ;;  %5884 = vmatpush.bf16.msrb.mxu2 %v8564_v50  ;;  %v10185_v12 = vld [vmem:[#allocation10 + $0x3c4] sm:$0xf]  ;;  %v9296_v56 = vor.u32 %v10253_v15, %v9295_v34  ;;  %v10237_v34 = vld [vmem:[#allocation10 + $0x55c] sm:$0xf0] }
 0x34e   :  { %v3909_v21 = vpop.f32.mrf.mxu2  ;;  %v3928_v49 = vpop.f32.mrf.mxu3  ;;  %5827 = vmatpush.bf16.msra.mxu3 %v8816_v28  ;;  %v10169_v15 = vld [vmem:[#allocation10 + $0x344] sm:$0xf] }
 0x34f   :  { %v4229_v29 = vadd.f32 %v11133_v11, %v4203_v13  ;;  %v3929_v23 = vadd.f32 %v3928_v49, %v3909_v21  ;;  %5839 = vmatpush.bf16.msra.mxu0 %v9296_v56  ;;  %v10245_v49 = vld [vmem:[#allocation10 + $0x59c] sm:$0xf0]  ;;  %v8977_v56 = vld [vmem:[#allocation10 + $0x360] sm:$0xf0] }
 0x350   :  { %v8980_v7 = vor.u32 %v10169_v15, %v8977_v56  ;;  %v10153_v15 = vld [vmem:[#allocation10 + $0x2c4] sm:$0xf] }
 0x351   :  { %v4245_v8 = vmax.f32 %v4229_v29, 0.0  ;;  %v3948_v61 = vadd.f32 %v3947_v20, %v3929_v23  ;;  %v11140_v52 = vpop.f32.mrf.mxu0  ;;  %v11142_v35 = vpop.f32.mrf.mxu1  ;;  %v9044_v20 = vor.u32 %v10185_v12, %v9041_v26  ;;  %v10177_v29 = vld [vmem:[#allocation10 + $0x384] sm:$0xf]  ;;  %v8727_v26 = vld [vmem:[#allocation10 + $0x148] sm:$0xf] }
 0x352   :  { %v9012_v32 = vor.u32 %v10177_v29, %v9009_v17  ;;  %v8695_v17 = vld [vmem:[#allocation10 + $0x108] sm:$0xf]  ;;  %v8913_v56 = vld [vmem:[#allocation10 + $0x2e0] sm:$0xf0] }
 0x353   :  { %v11144_v40 = vpack.c.bf16 %v4245_v8, %v4241_v37  ;;  %v3967_v44 = vadd.f32 %v3966_v38, %v3948_v61  ;;  %5896 = vmatpush.bf16.msrb.mxu3 %v9044_v20  ;;  %v9263_v38 = vld [vmem:[#allocation10 + $0x580] sm:$0xf]  ;;  %v8760_v37 = vor.u32 %v10118_v33, %v8759_v6  ;;  %v10102_v6 = vld [vmem:[#allocation10 + $0x124] sm:$0xf0] }
 0x354   :  { %v9264_v23 = vor.u32 %v10245_v49, %v9263_v38  ;;  %v10229_v38 = vld [vmem:[#allocation10 + $0x51c] sm:$0xf0]  ;;  %v10161_v49 = vld [vmem:[#allocation10 + $0x304] sm:$0xf] }
 0x355   :  { %5809 = vmatmul.bf16.vlgmr.msra.gmra.mxu2 %v11144_v40  ;;  %v4207_v45 = vadd.f32 %v3967_v44, %v11022_v42  ;;  %v9231_v44 = vld [vmem:[#allocation10 + $0x540] sm:$0xf] }
 0x356   :  { %v3911_v13 = vpop.f32.mrf.mxu2  ;;  %v3930_v46 = vpop.f32.mrf.mxu3  ;;  %5953 = vmatpush.bf16.msra.mxu2 %v8792_v57  ;;  %5840 = vmatpush.bf16.msra.mxu0 %v9264_v23  ;;  %v9232_v12 = vor.u32 %v10237_v34, %v9231_v44  ;;  %v8945_v23 = vld [vmem:[#allocation10 + $0x320] sm:$0xf0]  ;;  %v9167_v44 = vld [vmem:[#allocation10 + $0x4c0] sm:$0xf] }
 0x357   :  { %v3931_v21 = vadd.f32 %v3930_v46, %v3911_v13  ;;  %v4233_v8 = vadd.f32 %v11133_v11, %v4207_v45  ;;  %5897 = vmatpush.bf16.msrb.mxu3 %v9012_v32  ;;  %v8696_v32 = vor.u32 %v10102_v6, %v8695_v17  ;;  %v10221_v34 = vld [vmem:[#allocation10 + $0x4dc] sm:$0xf0] }
 0x359   :  { %v3950_v28 = vadd.f32 %v3949_v5, %v3931_v21  ;;  %v11149_v61 = vpop.f32.mrf.mxu0  ;;  %v11151_v42 = vpop.f32.mrf.mxu1  ;;  %v10110_v5 = vld [vmem:[#allocation10 + $0x164] sm:$0xf0]  ;;  %v4249_v57 = vmax.f32 %v4233_v8, 0.0  ;;  %v9199_v21 = vld [vmem:[#allocation10 + $0x500] sm:$0xf] }
 0x35a   :  { %5954 = vmatpush.bf16.msra.mxu2 %v8760_v37  ;;  %v8728_v20 = vor.u32 %v10110_v5, %v8727_v26  ;;  %5841 = vmatpush.bf16.msra.mxu0 %v9232_v12  ;;  %v9200_v29 = vor.u32 %v10229_v38, %v9199_v21  ;;  %v9168_v12 = vor.u32 %v10221_v34, %v9167_v44  ;;  %v8663_v26 = vld [vmem:[#allocation10 + $0xc8] sm:$0xf]  ;;  %v8881_v38 = vld [vmem:[#allocation10 + $0x2a0] sm:$0xf0] }
 0x35b   :  { %v3969_v50 = vadd.f32 %v11135_v1, %v3950_v28  ;;  %5898 = vmatpush.bf16.msrb.mxu3 %v8980_v7  ;;  %v8948_v28 = vor.u32 %v10161_v49, %v8945_v23  ;;  %v8916_v5 = vor.u32 %v10153_v15, %v8913_v56  ;;  %v8631_v49 = vld [vmem:[#allocation10 + $0x88] sm:$0xf]  ;;  %v10137_v44 = vld [vmem:[#allocation10 + $0x244] sm:$0xf] }
 0x35c   :  { %v8849_v15 = vld [vmem:[#allocation10 + $0x260] sm:$0xf0] }
 0x35d   :  { %v4211_v27 = vadd.f32 %v3969_v50, %v11035_v31 }
 0x35e   :  { %v3980_v45 = vpop.f32.mrf.mxu2  ;;  %v3999_v13 = vpop.f32.mrf.mxu3  ;;  %5955 = vmatpush.bf16.msra.mxu2 %v8728_v20  ;;  %5842 = vmatpush.bf16.msra.mxu0 %v9200_v29  ;;  %v11167_v20 = vperm.slane %v11129_v22, 1  ;;  %v10086_v29 = vld [vmem:[#allocation10 + $0xa4] sm:$0xf0] }
 0x35f   :  { %v4237_v46 = vadd.f32 %v11133_v11, %v4211_v27  ;;  %v4000_v1 = vadd.f32 %v3999_v13, %v3980_v45  ;;  %5899 = vmatpush.bf16.msrb.mxu3 %v8948_v28  ;;  %v9135_v13 = vld [vmem:[#allocation10 + $0x480] sm:$0xf] }
 0x361   :  { %v4253_v33 = vmax.f32 %v4237_v46, 0.0  ;;  %v4019_v31 = vadd.f32 %v11140_v52, %v4000_v1  ;;  %v11157_v37 = vpop.f32.mrf.mxu0  ;;  %v11159_v8 = vpop.f32.mrf.mxu1  ;;  %v10094_v52 = vld [vmem:[#allocation10 + $0xe4] sm:$0xf0]  ;;  %v10213_v46 = vld [vmem:[#allocation10 + $0x49c] sm:$0xf0] }
 0x362   :  { %5956 = vmatpush.bf16.msra.mxu2 %v8696_v32  ;;  %v8664_v27 = vor.u32 %v10094_v52, %v8663_v26  ;;  %5843 = vmatpush.bf16.msra.mxu0 %v9168_v12  ;;  %v10145_v1 = vld [vmem:[#allocation10 + $0x284] sm:$0xf]  ;;  %v9136_v21 = vor.u32 %v10213_v46, %v9135_v13  ;;  %v9103_v32 = vld [vmem:[#allocation10 + $0x440] sm:$0xf]  ;;  %v8599_v12 = vld [vmem:[#allocation10 + $0x48] sm:$0xf]  ;;  %v8852_v26 = vor.u32 %v10137_v44, %v8849_v15 }
 0x363   :  { %v11161_v11 = vpack.c.bf16 %v4253_v33, %v4249_v57  ;;  %v4038_v50 = vadd.f32 %v11142_v35, %v4019_v31  ;;  %5900 = vmatpush.bf16.msrb.mxu3 %v8916_v5  ;;  %v8884_v17 = vor.u32 %v10145_v1, %v8881_v38  ;;  %v10129_v13 = vld [vmem:[#allocation10 + $0x204] sm:$0xf]  ;;  %v10070_v38 = vld [vmem:[#allocation10 + $0x24] sm:$0xf0] }
 0x364   :  { %v8817_v1 = vld [vmem:[#allocation10 + $0x220] sm:$0xf0]  ;;  %v9047_v15 = vld [vmem:[#allocation10 + $0x3c8] sm:$0xf] }
 0x365   :  { %5814 = vmatmul.bf16.gmra.mxu2 %v11161_v11  ;;  %v4200_v7 = vadd.f32 %v4038_v50, %v11044_v48  ;;  %v8632_v48 = vor.u32 %v10086_v29, %v8631_v49  ;;  %v10205_v50 = vld [vmem:[#allocation10 + $0x45c] sm:$0xf0]  ;;  %v8820_v29 = vor.u32 %v10129_v13, %v8817_v1  ;;  %v9265_v1 = vld [vmem:[#allocation10 + $0x5a0] sm:$0xf0] }
 0x366   :  { %v3982_v57 = vpop.f32.mrf.mxu2  ;;  %v4001_v35 = vpop.f32.mrf.mxu3  ;;  %5957 = vmatpush.bf16.msra.mxu2 %v8664_v27  ;;  %5844 = vmatpush.bf16.msra.mxu0 %v9136_v21  ;;  %v9104_v34 = vor.u32 %v10205_v50, %v9103_v32  ;;  %v8567_v21 = vld [vmem:[#allocation10 + $0x8] sm:$0xf]  ;;  %v10317_v32 = vld [vmem:[#allocation10 + $0x7dc] sm:$0xf0]  ;;  %v10249_v50 = vld [vmem:[#allocation10 + $0x5c4] sm:$0xf] }
 0x367   :  { %v4002_v45 = vadd.f32 %v4001_v35, %v3982_v57  ;;  %v4226_v6 = vadd.f32 %v11167_v20, %v4200_v7  ;;  %5901 = vmatpush.bf16.msrb.mxu3 %v8884_v17  ;;  %v9071_v35 = vld [vmem:[#allocation10 + $0x400] sm:$0xf] }
 0x369   :  { %v4021_v23 = vadd.f32 %v11149_v61, %v4002_v45  ;;  %v11171_v33 = vpop.f32.mrf.mxu0  ;;  %v11173_v31 = vpop.f32.mrf.mxu1  ;;  %v10078_v61 = vld [vmem:[#allocation10 + $0x64] sm:$0xf0]  ;;  %v4242_v5 = vmax.f32 %v4226_v6, 0.0  ;;  %v10197_v45 = vld [vmem:[#allocation10 + $0x41c] sm:$0xf0] }
 0x36a   :  { %5958 = vmatpush.bf16.msra.mxu2 %v8632_v48  ;;  %v8600_v52 = vor.u32 %v10078_v61, %v8599_v12  ;;  %5845 = vmatpush.bf16.msra.mxu0 %v9104_v34  ;;  %v9072_v46 = vor.u32 %v10197_v45, %v9071_v35  ;;  %v9297_v34 = vld [vmem:[#allocation10 + $0x5e0] sm:$0xf0]  ;;  %v10190_v12 = vld [vmem:[#allocation10 + $0x3e4] sm:$0xf0] }
 0x36b   :  { %v4040_v28 = vadd.f32 %v11151_v42, %v4021_v23  ;;  %5902 = vmatpush.bf16.msrb.mxu3 %v8852_v26  ;;  %v8568_v23 = vor.u32 %v10070_v38, %v8567_v21  ;;  %v9300_v26 = vor.u32 %v10249_v50, %v9297_v34  ;;  %v10241_v35 = vld [vmem:[#allocation10 + $0x584] sm:$0xf]  ;;  %v9015_v21 = vld [vmem:[#allocation10 + $0x388] sm:$0xf] }
 0x36c   :  { %v9268_v38 = vor.u32 %v10241_v35, %v9265_v1 }
 0x36d   :  { %v4204_v56 = vadd.f32 %v4040_v28, %v11057_v63  ;;  %v9551_v28 = vld [vmem:[#allocation10 + $0x7c0] sm:$0xf] }
 0x36e   :  { %v3985_v27 = vpop.f32.mrf.mxu2  ;;  %v4004_v7 = vpop.f32.mrf.mxu3  ;;  %5959 = vmatpush.bf16.msra.mxu2 %v8600_v52  ;;  %5846 = vmatpush.bf16.msra.mxu0 %v9072_v46  ;;  %v9048_v52 = vor.u32 %v10190_v12, %v9047_v15 }
 0x36f   :  { %v4230_v57 = vadd.f32 %v11167_v20, %v4204_v56  ;;  %v4005_v42 = vadd.f32 %v4004_v7, %v3985_v27  ;;  %5903 = vmatpush.bf16.msrb.mxu3 %v8820_v29  ;;  %v8793_v27 = vld [vmem:[#allocation10 + $0x1e8] sm:$0xf0] }
 0x370   :  { %v8761_v29 = vld [vmem:[#allocation10 + $0x1a8] sm:$0xf0] }
 0x371   :  { %v4246_v49 = vmax.f32 %v4230_v57, 0.0  ;;  %v4024_v63 = vadd.f32 %v11157_v37, %v4005_v42  ;;  %v11179_v17 = vpop.f32.mrf.mxu0  ;;  %v11183_v6 = vpop.f32.mrf.mxu1  ;;  %v9552_v37 = vor.u32 %v10317_v32, %v9551_v28  ;;  %v10309_v42 = vld [vmem:[#allocation10 + $0x79c] sm:$0xf0] }
 0x372   :  { %5960 = vmatpush.bf16.msra.mxu2 %v8568_v23  ;;  %5915 = vmatpush.bf16.msrb.mxu0 %v9300_v26 }
 0x373   :  { %v11181_v48 = vpack.c.bf16 %v4246_v49, %v4242_v5  ;;  %v4043_v44 = vadd.f32 %v11159_v8, %v4024_v63  ;;  %v10122_v5 = vld [vmem:[#allocation10 + $0x1cc] sm:$0xf]  ;;  %5858 = vmatpush.bf16.msra.mxu1 %v9552_v37  ;;  %v9519_v8 = vld [vmem:[#allocation10 + $0x780] sm:$0xf]  ;;  %v10182_v49 = vld [vmem:[#allocation10 + $0x3a4] sm:$0xf0] }
 0x374   :  { %v8796_v57 = vor.u32 %v10122_v5, %v8793_v27  ;;  %v9520_v46 = vor.u32 %v10309_v42, %v9519_v8  ;;  %v10114_v63 = vld [vmem:[#allocation10 + $0x18c] sm:$0xf]  ;;  %v9016_v32 = vor.u32 %v10182_v49, %v9015_v21  ;;  %v9487_v37 = vld [vmem:[#allocation10 + $0x740] sm:$0xf]  ;;  %v2986_v8 = vadd.f32 %v11082_v39, %v10931_v60  ;;  %v10166_v60 = vld [vmem:[#allocation10 + $0x324] sm:$0xf0] }
 0x375   :  { %5828 = vmatmul.bf16.vlgmr.msra.gmra.mxu3 %v11181_v48  ;;  %5885 = vmatmul.bf16.vlgmr.msrb.gmra.mxu2 %v11144_v40  ;;  %v4208_v45 = vadd.f32 %v4043_v44, %v11062_v25  ;;  %v8764_v50 = vor.u32 %v10114_v63, %v8761_v29  ;;  %v10301_v25 = vld [vmem:[#allocation10 + $0x75c] sm:$0xf0]  ;;  %v10233_v44 = vld [vmem:[#allocation10 + $0x544] sm:$0xf]  ;;  %v8951_v29 = vld [vmem:[#allocation10 + $0x308] sm:$0xf] }
 0x376   :  { %v3987_v61 = vpop.f32.mrf.mxu2  ;;  %v4006_v56 = vpop.f32.mrf.mxu3  ;;  %5972 = vmatpush.bf16.msra.mxu3 %v9048_v52  ;;  %6029 = vmatpush.bf16.msrb.mxu2 %v8796_v57  ;;  %v9488_v12 = vor.u32 %v10301_v25, %v9487_v37  ;;  %v8729_v57 = vld [vmem:[#allocation10 + $0x168] sm:$0xf0]  ;;  %v9201_v63 = vld [vmem:[#allocation10 + $0x520] sm:$0xf0]  ;;  %v8952_v37 = vor.u32 %v10166_v60, %v8951_v29  ;;  %v10150_v29 = vld [vmem:[#allocation10 + $0x2a4] sm:$0xf0] }
 0x377   :  { %v4007_v7 = vadd.f32 %v4006_v56, %v3987_v61  ;;  %5859 = vmatpush.bf16.msra.mxu1 %v9520_v46  ;;  %5916 = vmatpush.bf16.msrb.mxu0 %v9268_v38  ;;  %v9233_v61 = vld [vmem:[#allocation10 + $0x560] sm:$0xf0]  ;;  %v10174_v56 = vld [vmem:[#allocation10 + $0x364] sm:$0xf0]  ;;  %v10098_v39 = vld [vmem:[#allocation10 + $0x10c] sm:$0xf] }
 0x378   :  { %v9236_v5 = vor.u32 %v10233_v44, %v9233_v61  ;;  %v10225_v46 = vld [vmem:[#allocation10 + $0x504] sm:$0xf]  ;;  %v9423_v44 = vld [vmem:[#allocation10 + $0x6c0] sm:$0xf]  ;;  %v8633_v60 = vld [vmem:[#allocation10 + $0xa8] sm:$0xf0] }
 0x379   :  { %v4026_v13 = vadd.f32 %v11171_v33, %v4007_v7  ;;  %v11191_v28 = vpop.f32.mrf.mxu0  ;;  %v4234_v33 = vadd.f32 %v11167_v20, %v4208_v45  ;;  %v11195_v15 = vpop.f32.mrf.mxu1  ;;  %v10106_v7 = vld [vmem:[#allocation10 + $0x14c] sm:$0xf]  ;;  %v9455_v45 = vld [vmem:[#allocation10 + $0x700] sm:$0xf] }
 0x37a   :  { %5973 = vmatpush.bf16.msra.mxu3 %v9016_v32  ;;  %6030 = vmatpush.bf16.msrb.mxu2 %v8764_v50  ;;  %v8732_v35 = vor.u32 %v10106_v7, %v8729_v57  ;;  %v3005_v32 = vadd.f32 %v11084_v36, %v2986_v8  ;;  %v8919_v36 = vld [vmem:[#allocation10 + $0x2c8] sm:$0xf]  ;;  %v8665_v7 = vld [vmem:[#allocation10 + $0xe8] sm:$0xf0] }
 0x37b   :  { %v4045_v23 = vadd.f32 %v11173_v31, %v4026_v13  ;;  %v8983_v31 = vld [vmem:[#allocation10 + $0x348] sm:$0xf]  ;;  %5860 = vmatpush.bf16.msra.mxu1 %v9488_v12  ;;  %5917 = vmatpush.bf16.msrb.mxu0 %v9236_v5  ;;  %v10293_v13 = vld [vmem:[#allocation10 + $0x71c] sm:$0xf0]  ;;  %v4250_v1 = vmax.f32 %v4234_v33, 0.0 }
 0x37c   :  { %v8984_v27 = vor.u32 %v10174_v56, %v8983_v31  ;;  %v9456_v49 = vor.u32 %v10293_v13, %v9455_v45  ;;  %v10285_v33 = vld [vmem:[#allocation10 + $0x6dc] sm:$0xf0]  ;;  %v9169_v31 = vld [vmem:[#allocation10 + $0x4e0] sm:$0xf0]  ;;  %v10158_v5 = vld [vmem:[#allocation10 + $0x2e4] sm:$0xf0]  ;;  %v3024_v57 = vadd.f32 %v11067_v41, %v3005_v32 }
 0x37d   :  { %v4212_v34 = vadd.f32 %v4045_v23, %v11075_v10  ;;  %v9204_v23 = vor.u32 %v10225_v46, %v9201_v63  ;;  %v9424_v61 = vor.u32 %v10285_v33, %v9423_v44  ;;  %v10277_v45 = vld [vmem:[#allocation10 + $0x69c] sm:$0xf0]  ;;  %v10209_v13 = vld [vmem:[#allocation10 + $0x484] sm:$0xf]  ;;  %v8887_v41 = vld [vmem:[#allocation10 + $0x288] sm:$0xf] }
 0x37e   :  { %v4056_v26 = vpop.f32.mrf.mxu2  ;;  %v4075_v52 = vpop.f32.mrf.mxu3  ;;  %5974 = vmatpush.bf16.msra.mxu3 %v8984_v27  ;;  %6031 = vmatpush.bf16.msrb.mxu2 %v8732_v35  ;;  %v10090_v27 = vld [vmem:[#allocation10 + $0xcc] sm:$0xf]  ;;  %v9391_v35 = vld [vmem:[#allocation10 + $0x680] sm:$0xf] }
 0x37f   :  { %v4238_v42 = vadd.f32 %v11167_v20, %v4212_v34  ;;  %v4076_v10 = vadd.f32 %v4075_v52, %v4056_v26  ;;  %v8697_v20 = vld [vmem:[#allocation10 + $0x128] sm:$0xf0]  ;;  %5861 = vmatpush.bf16.msra.mxu1 %v9456_v49  ;;  %5918 = vmatpush.bf16.msrb.mxu0 %v9204_v23  ;;  %v9137_v49 = vld [vmem:[#allocation10 + $0x4a0] sm:$0xf0] }
 0x380   :  { %v8700_v25 = vor.u32 %v10098_v39, %v8697_v20  ;;  %v9140_v63 = vor.u32 %v10209_v13, %v9137_v49  ;;  %v10082_v23 = vld [vmem:[#allocation10 + $0x8c] sm:$0xf]  ;;  %v3043_v39 = vadd.f32 %v11069_v18, %v3024_v57  ;;  %v9073_v49 = vld [vmem:[#allocation10 + $0x420] sm:$0xf0] }
 0x381   :  { %v4254_v21 = vmax.f32 %v4238_v42, 0.0  ;;  %v4095_v38 = vadd.f32 %v11179_v17, %v4076_v10  ;;  %v10217_v17 = vld [vmem:[#allocation10 + $0x4c4] sm:$0xf]  ;;  %v11205_v12 = vpop.f32.mrf.mxu0  ;;  %v8920_v42 = vor.u32 %v10158_v5, %v8919_v36  ;;  %v8668_v10 = vor.u32 %v10090_v27, %v8665_v7 }
 0x382   :  { %5975 = vmatpush.bf16.msra.mxu3 %v8952_v37  ;;  %6032 = vmatpush.bf16.msrb.mxu2 %v8700_v25  ;;  %v9172_v52 = vor.u32 %v10217_v17, %v9169_v31  ;;  %v8636_v32 = vor.u32 %v10082_v23, %v8633_v60  ;;  %v9359_v37 = vld [vmem:[#allocation10 + $0x640] sm:$0xf]  ;;  %v10142_v31 = vld [vmem:[#allocation10 + $0x264] sm:$0xf0]  ;;  %v2991_v5 = vadd.f32 %v11097_v14, %v10951_v30 }
 0x383   :  { %v11202_v50 = vpack.c.bf16 %v4254_v21, %v4250_v1  ;;  %v4114_v34 = vadd.f32 %v11183_v6, %v4095_v38  ;;  %v11210_v6 = vpop.f32.mrf.mxu1  ;;  %5862 = vmatpush.bf16.msra.mxu1 %v9424_v61  ;;  %v11214_v1 = vperm.slane %v11129_v22, 2  ;;  %v9392_v38 = vor.u32 %v10277_v45, %v9391_v35  ;;  %v10269_v25 = vld [vmem:[#allocation10 + $0x65c] sm:$0xf0]  ;;  %v8855_v61 = vld [vmem:[#allocation10 + $0x248] sm:$0xf] }
 0x384   :  { %5919 = vmatpush.bf16.msrb.mxu0 %v9172_v52  ;;  %v9360_v17 = vor.u32 %v10269_v25, %v9359_v37  ;;  %v8601_v52 = vld [vmem:[#allocation10 + $0x68] sm:$0xf0]  ;;  %v10193_v35 = vld [vmem:[#allocation10 + $0x404] sm:$0xf]  ;;  %v10134_v14 = vld [vmem:[#allocation10 + $0x224] sm:$0xf0]  ;;  %v3010_v23 = vadd.f32 %v11099_v19, %v2991_v5 }
 0x385   :  { %5833 = vmatmul.bf16.gmra.mxu3 %v11202_v50  ;;  %5890 = vmatmul.bf16.gmra.mxu2 %v11161_v11  ;;  %v4201_v46 = vadd.f32 %v4114_v34, %v11078_v53  ;;  %v8888_v53 = vor.u32 %v10150_v29, %v8887_v41  ;;  %v9105_v34 = vld [vmem:[#allocation10 + $0x460] sm:$0xf0]  ;;  %v8823_v41 = vld [vmem:[#allocation10 + $0x208] sm:$0xf]  ;;  %v9076_v30 = vor.u32 %v10193_v35, %v9073_v49  ;;  %v8569_v29 = vld [vmem:[#allocation10 + $0x28] sm:$0xf0] }
 0x386   :  { %v4058_v56 = vpop.f32.mrf.mxu2  ;;  %v4077_v26 = vpop.f32.mrf.mxu3  ;;  %5976 = vmatpush.bf16.msra.mxu3 %v8920_v42  ;;  %6033 = vmatpush.bf16.msrb.mxu2 %v8668_v10  ;;  %v9327_v42 = vld [vmem:[#allocation10 + $0x600] sm:$0xf] }
 0x387   :  { %v4078_v8 = vadd.f32 %v4077_v26, %v4058_v56  ;;  %5863 = vmatpush.bf16.msra.mxu1 %v9392_v38  ;;  %v4227_v44 = vadd.f32 %v11214_v1, %v4201_v46  ;;  %v10074_v26 = vld [vmem:[#allocation10 + $0x4c] sm:$0xf]  ;;  %v10261_v10 = vld [vmem:[#allocation10 + $0x61c] sm:$0xf0] }
 0x388   :  { %5920 = vmatpush.bf16.msrb.mxu0 %v9140_v63  ;;  %v9328_v38 = vor.u32 %v10261_v10, %v9327_v42  ;;  %v10066_v63 = vld [vmem:[#allocation10 + $0xc] sm:$0xf]  ;;  %v10246_v42 = vld [vmem:[#allocation10 + $0x5a4] sm:$0xf0] }
 0x389   :  { %v4097_v21 = vadd.f32 %v11191_v28, %v4078_v8  ;;  %v10201_v28 = vld [vmem:[#allocation10 + $0x444] sm:$0xf]  ;;  %v4101_v7 = vpop.f32.mrf.mxu0  ;;  %v8604_v8 = vor.u32 %v10074_v26, %v8601_v52  ;;  %v4243_v45 = vmax.f32 %v4227_v44, 0.0  ;;  %v10186_v44 = vld [vmem:[#allocation10 + $0x3cc] sm:$0xf] }
 0x38a   :  { %5977 = vmatpush.bf16.msra.mxu3 %v8888_v53  ;;  %6034 = vmatpush.bf16.msrb.mxu2 %v8636_v32  ;;  %v9108_v18 = vor.u32 %v10201_v28, %v9105_v34  ;;  %v10313_v53 = vld [vmem:[#allocation10 + $0x7c4] sm:$0xf]  ;;  %v10254_v28 = vld [vmem:[#allocation10 + $0x5e4] sm:$0xf0]  ;;  %v10178_v10 = vld [vmem:[#allocation10 + $0x38c] sm:$0xf] }
 0x38b   :  { %v4116_v20 = vadd.f32 %v11195_v15, %v4097_v21  ;;  %v8856_v15 = vor.u32 %v10142_v31, %v8855_v61  ;;  %5864 = vmatpush.bf16.msra.mxu1 %v9360_v17  ;;  %v4120_v46 = vpop.f32.mrf.mxu1  ;;  %v9553_v32 = vld [vmem:[#allocation10 + $0x7e0] sm:$0xf0]  ;;  %v8799_v31 = vld [vmem:[#allocation10 + $0x1d0] sm:$0xf]  ;;  %v9271_v52 = vld [vmem:[#allocation10 + $0x588] sm:$0xf] }
 0x38c   :  { %5921 = vmatpush.bf16.msrb.mxu0 %v9108_v18  ;;  %v9556_v25 = vor.u32 %v10313_v53, %v9553_v32  ;;  %v9521_v26 = vld [vmem:[#allocation10 + $0x7a0] sm:$0xf0]  ;;  %v9272_v35 = vor.u32 %v10246_v42, %v9271_v52  ;;  %v8985_v53 = vld [vmem:[#allocation10 + $0x368] sm:$0xf0]  ;;  %v10103_v52 = vld [vmem:[#allocation10 + $0x12c] sm:$0xf0] }
 0x38d   :  { %v4205_v33 = vadd.f32 %v4116_v20, %v3043_v39  ;;  %v8824_v39 = vor.u32 %v10134_v14, %v8823_v41  ;;  %v8572_v20 = vor.u32 %v10066_v63, %v8569_v29  ;;  %v10297_v14 = vld [vmem:[#allocation10 + $0x744] sm:$0xf]  ;;  %v9239_v63 = vld [vmem:[#allocation10 + $0x548] sm:$0xf] }
 0x38e   :  { %v4061_v36 = vpop.f32.mrf.mxu2  ;;  %v4080_v56 = vpop.f32.mrf.mxu3  ;;  %5978 = vmatpush.bf16.msra.mxu3 %v8856_v15  ;;  %6035 = vmatpush.bf16.msrb.mxu2 %v8604_v8  ;;  %v10305_v15 = vld [vmem:[#allocation10 + $0x784] sm:$0xf] }
 0x38f   :  { %v4231_v27 = vadd.f32 %v11214_v1, %v4205_v33  ;;  %v4081_v57 = vadd.f32 %v4080_v56, %v4061_v36  ;;  %5865 = vmatpush.bf16.msra.mxu1 %v9328_v38  ;;  %v9049_v33 = vld [vmem:[#allocation10 + $0x3e8] sm:$0xf0]  ;;  %v10127_v36 = vld [vmem:[#allocation10 + $0x1ec] sm:$0xf0]  ;;  %v3029_v56 = vadd.f32 %v11086_v2, %v3010_v23  ;;  %v9524_v8 = vor.u32 %v10305_v15, %v9521_v26 }
 0x390   :  { %5922 = vmatpush.bf16.msrb.mxu0 %v9076_v30  ;;  %v9052_v61 = vor.u32 %v10186_v44, %v9049_v33  ;;  %v8800_v18 = vor.u32 %v10127_v36, %v8799_v31  ;;  %v8767_v2 = vld [vmem:[#allocation10 + $0x190] sm:$0xf]  ;;  %v8953_v26 = vld [vmem:[#allocation10 + $0x328] sm:$0xf0] }
 0x391   :  { %v4247_v13 = vmax.f32 %v4231_v27, 0.0  ;;  %v4100_v21 = vadd.f32 %v11205_v12, %v4081_v57  ;;  %v9303_v12 = vld [vmem:[#allocation10 + $0x5c8] sm:$0xf]  ;;  %v4170_v27 = vpop.f32.mrf.mxu0 }
 0x392   :  { %5979 = vmatpush.bf16.msra.mxu3 %v8824_v39  ;;  %v9304_v34 = vor.u32 %v10254_v28, %v9303_v12  ;;  %6036 = vmatpush.bf16.msrb.mxu2 %v8572_v20  ;;  %v10238_v39 = vld [vmem:[#allocation10 + $0x564] sm:$0xf0]  ;;  %v10170_v20 = vld [vmem:[#allocation10 + $0x34c] sm:$0xf]  ;;  %v10111_v28 = vld [vmem:[#allocation10 + $0x16c] sm:$0xf0] }
 0x393   :  { %v11225_v60 = vpack.c.bf16 %v4247_v13, %v4243_v45  ;;  %v4119_v37 = vadd.f32 %v11210_v6, %v4100_v21  ;;  %5934 = vmatpush.bf16.msrb.mxu1 %v9556_v25  ;;  %v9017_v45 = vld [vmem:[#allocation10 + $0x3a8] sm:$0xf0]  ;;  %v10119_v13 = vld [vmem:[#allocation10 + $0x1ac] sm:$0xf0]  ;;  %v3048_v21 = vadd.f32 %v11088_v24, %v3029_v56  ;;  %v4189_v38 = vpop.f32.mrf.mxu1  ;;  %v3062_v24 = vadd.f32 %v11112_v0, %v10971_v58  ;;  %v10230_v0 = vld [vmem:[#allocation10 + $0x524] sm:$0xf0] }
 0x394   :  { %v9020_v41 = vor.u32 %v10178_v10, %v9017_v45  ;;  %v8768_v30 = vor.u32 %v10119_v13, %v8767_v2  ;;  %v9240_v12 = vor.u32 %v10238_v39, %v9239_v63  ;;  %v8735_v25 = vld [vmem:[#allocation10 + $0x150] sm:$0xf]  ;;  %v10281_v10 = vld [vmem:[#allocation10 + $0x6c4] sm:$0xf]  ;;  %v10222_v13 = vld [vmem:[#allocation10 + $0x4e4] sm:$0xf0] }
 0x395   :  { %5847 = vmatmul.bf16.vlgmr.msra.gmra.mxu0 %v11225_v60  ;;  %5904 = vmatmul.bf16.vlgmr.msrb.gmra.mxu3 %v11181_v48  ;;  %v4209_v5 = vadd.f32 %v4119_v37, %v11093_v59  ;;  %v9489_v59 = vld [vmem:[#allocation10 + $0x760] sm:$0xf0]  ;;  %v8988_v37 = vor.u32 %v10170_v20, %v8985_v53  ;;  %v9143_v53 = vld [vmem:[#allocation10 + $0x488] sm:$0xf] }
 0x396   :  { %5961 = vmatmul.bf16.vlgmr.msra.gmra.mxu2 %v11144_v40  ;;  %v4063_v19 = vpop.f32.mrf.mxu2  ;;  %v4082_v17 = vpop.f32.mrf.mxu3  ;;  %5991 = vmatpush.bf16.msra.mxu0 %v9304_v34  ;;  %v9492_v23 = vor.u32 %v10297_v14, %v9489_v59  ;;  %v9457_v34 = vld [vmem:[#allocation10 + $0x720] sm:$0xf0] }
 0x397   :  { %v4083_v6 = vadd.f32 %v4082_v17, %v4063_v19  ;;  %6048 = vmatpush.bf16.msrb.mxu3 %v9052_v61  ;;  %6105 = vmatpush.bf16.msra.mxu2 %v8800_v18  ;;  %v8736_v19 = vor.u32 %v10111_v28, %v8735_v25  ;;  %v10289_v17 = vld [vmem:[#allocation10 + $0x704] sm:$0xf]  ;;  %v9207_v61 = vld [vmem:[#allocation10 + $0x508] sm:$0xf]  ;;  %v3081_v18 = vadd.f32 %v11114_v55, %v3062_v24  ;;  %v11247_v28 = vperm.slane %v11129_v22, 3 }
 0x398   :  { %5935 = vmatpush.bf16.msrb.mxu1 %v9524_v8  ;;  %v9460_v58 = vor.u32 %v10289_v17, %v9457_v34  ;;  %v9208_v15 = vor.u32 %v10230_v0, %v9207_v61  ;;  %v9393_v20 = vld [vmem:[#allocation10 + $0x6a0] sm:$0xf0]  ;;  %v10214_v24 = vld [vmem:[#allocation10 + $0x4a4] sm:$0xf0] }
 0x399   :  { %v4102_v57 = vadd.f32 %v4101_v7, %v4083_v6  ;;  %v4235_v7 = vadd.f32 %v11214_v1, %v4209_v5  ;;  %v10162_v6 = vld [vmem:[#allocation10 + $0x30c] sm:$0xf]  ;;  %v9361_v61 = vld [vmem:[#allocation10 + $0x660] sm:$0xf0] }
 0x39a   :  { %5992 = vmatpush.bf16.msra.mxu0 %v9272_v35  ;;  %v8956_v8 = vor.u32 %v10162_v6, %v8953_v26  ;;  %v9175_v35 = vld [vmem:[#allocation10 + $0x4c8] sm:$0xf]  ;;  %v10138_v6 = vld [vmem:[#allocation10 + $0x24c] sm:$0xf]  ;;  %v10257_v26 = vld [vmem:[#allocation10 + $0x604] sm:$0xf] }
 0x39b   :  { %v4121_v49 = vadd.f32 %v4120_v46, %v4102_v57  ;;  %6049 = vmatpush.bf16.msrb.mxu3 %v9020_v41  ;;  %6106 = vmatpush.bf16.msra.mxu2 %v8768_v30  ;;  %v4251_v31 = vmax.f32 %v4235_v7, 0.0  ;;  %v4172_v57 = vpop.f32.mrf.mxu0  ;;  %v4191_v45 = vpop.f32.mrf.mxu1  ;;  %v3100_v41 = vadd.f32 %v11101_v54, %v3081_v18  ;;  %v9176_v59 = vor.u32 %v10222_v13, %v9175_v35  ;;  %v8671_v7 = vld [vmem:[#allocation10 + $0xd0] sm:$0xf] }
 0x39c   :  { %5936 = vmatpush.bf16.msrb.mxu1 %v9492_v23  ;;  %v9144_v54 = vor.u32 %v10214_v24, %v9143_v53  ;;  %v8607_v18 = vld [vmem:[#allocation10 + $0x50] sm:$0xf]  ;;  %v9559_v53 = vld [vmem:[#allocation10 + $0x7c8] sm:$0xf] }
 0x39d   :  { %v4213_v29 = vadd.f32 %v4121_v49, %v3048_v21  ;;  %v10154_v21 = vld [vmem:[#allocation10 + $0x2cc] sm:$0xf]  ;;  %v3119_v17 = vadd.f32 %v11103_v47, %v3100_v41  ;;  %v10318_v24 = vld [vmem:[#allocation10 + $0x7e4] sm:$0xf0] }
 0x39e   :  { %v4132_v46 = vpop.f32.mrf.mxu2  ;;  %v4151_v32 = vpop.f32.mrf.mxu3  ;;  %5993 = vmatpush.bf16.msra.mxu0 %v9240_v12  ;;  %v8921_v49 = vld [vmem:[#allocation10 + $0x2e8] sm:$0xf0] }
 0x39f   :  { %v4239_v44 = vadd.f32 %v11214_v1, %v4213_v29  ;;  %v4152_v33 = vadd.f32 %v4151_v32, %v4132_v46  ;;  %6050 = vmatpush.bf16.msrb.mxu3 %v8988_v37  ;;  %6107 = vmatpush.bf16.msra.mxu2 %v8736_v19  ;;  %v8703_v1 = vld [vmem:[#allocation10 + $0x110] sm:$0xf]  ;;  %v8924_v63 = vor.u32 %v10154_v21, %v8921_v49  ;;  %v10146_v32 = vld [vmem:[#allocation10 + $0x28c] sm:$0xf]  ;;  %v10265_v19 = vld [vmem:[#allocation10 + $0x644] sm:$0xf] }
 0x3a0   :  { %5937 = vmatpush.bf16.msrb.mxu1 %v9460_v58  ;;  %v8704_v42 = vor.u32 %v10103_v52, %v8703_v1  ;;  %v10095_v29 = vld [vmem:[#allocation10 + $0xec] sm:$0xf0]  ;;  %v8889_v12 = vld [vmem:[#allocation10 + $0x2a8] sm:$0xf0]  ;;  %v9364_v0 = vor.u32 %v10265_v19, %v9361_v61  ;;  %v9329_v1 = vld [vmem:[#allocation10 + $0x620] sm:$0xf0] }
 0x3a1   :  { %v4255_v36 = vmax.f32 %v4239_v44, 0.0  ;;  %v4171_v56 = vadd.f32 %v4170_v27, %v4152_v33  ;;  %v9425_v27 = vld [vmem:[#allocation10 + $0x6e0] sm:$0xf0]  ;;  %v8672_v39 = vor.u32 %v10095_v29, %v8671_v7  ;;  %v8639_v37 = vld [vmem:[#allocation10 + $0x90] sm:$0xf]  ;;  %v8892_v34 = vor.u32 %v10146_v32, %v8889_v12 }
 0x3a2   :  { %5994 = vmatpush.bf16.msra.mxu0 %v9208_v15  ;;  %v9428_v55 = vor.u32 %v10281_v10, %v9425_v27  ;;  %v10087_v33 = vld [vmem:[#allocation10 + $0xac] sm:$0xf0]  ;;  %v3067_v10 = vadd.f32 %v11125_v9, %v10991_v43  ;;  %v9332_v21 = vor.u32 %v10257_v26, %v9329_v1  ;;  %v10130_v49 = vld [vmem:[#allocation10 + $0x20c] sm:$0xf]  ;;  %v10123_v19 = vld [vmem:[#allocation10 + $0x1d4] sm:$0xf] }
 0x3a3   :  { %v11239_v5 = vpack.c.bf16 %v4255_v36, %v4251_v31  ;;  %v4190_v2 = vadd.f32 %v4189_v38, %v4171_v56  ;;  %6051 = vmatpush.bf16.msrb.mxu3 %v8956_v8  ;;  %v10273_v38 = vld [vmem:[#allocation10 + $0x684] sm:$0xf]  ;;  %6108 = vmatpush.bf16.msra.mxu2 %v8704_v42  ;;  %v9111_v31 = vld [vmem:[#allocation10 + $0x448] sm:$0xf]  ;;  %v8640_v58 = vor.u32 %v10087_v33, %v8639_v37  ;;  %v10079_v15 = vld [vmem:[#allocation10 + $0x6c] sm:$0xf0]  ;;  %v4175_v52 = vpop.f32.mrf.mxu0  ;;  %v4194_v41 = vpop.f32.mrf.mxu1 }
 0x3a4   :  { %5938 = vmatpush.bf16.msrb.mxu1 %v9428_v55  ;;  %v9396_v46 = vor.u32 %v10273_v38, %v9393_v20  ;;  %v10206_v36 = vld [vmem:[#allocation10 + $0x464] sm:$0xf0]  ;;  %v3086_v29 = vadd.f32 %v11127_v16, %v3067_v10  ;;  %v9305_v32 = vld [vmem:[#allocation10 + $0x5e8] sm:$0xf0]  ;;  %v9055_v12 = vld [vmem:[#allocation10 + $0x3d0] sm:$0xf] }
 0x3a5   :  { %5852 = vmatmul.bf16.gmra.mxu0 %v11239_v5  ;;  %5909 = vmatmul.bf16.gmra.mxu3 %v11202_v50  ;;  %v4202_v25 = vadd.f32 %v4190_v2, %v11108_v3  ;;  %v8857_v3 = vld [vmem:[#allocation10 + $0x268] sm:$0xf0]  ;;  %v9112_v22 = vor.u32 %v10206_v36, %v9111_v31  ;;  %v9079_v8 = vld [vmem:[#allocation10 + $0x408] sm:$0xf]  ;;  %v8608_v2 = vor.u32 %v10079_v15, %v8607_v18  ;;  %v10191_v16 = vld [vmem:[#allocation10 + $0x3ec] sm:$0xf0] }
 0x3a6   :  { %5966 = vmatmul.bf16.gmra.mxu2 %v11161_v11  ;;  %v4134_v30 = vpop.f32.mrf.mxu2  ;;  %v4153_v14 = vpop.f32.mrf.mxu3  ;;  %5995 = vmatpush.bf16.msra.mxu0 %v9176_v59  ;;  %v10198_v42 = vld [vmem:[#allocation10 + $0x424] sm:$0xf0]  ;;  %v8575_v59 = vld [vmem:[#allocation10 + $0x10] sm:$0xf]  ;;  %v9056_v33 = vor.u32 %v10191_v16, %v9055_v12 }
 0x3a7   :  { %v4154_v23 = vadd.f32 %v4153_v14, %v4134_v30  ;;  %6052 = vmatpush.bf16.msrb.mxu3 %v8924_v63  ;;  %6109 = vmatpush.bf16.msra.mxu2 %v8672_v39  ;;  %v4228_v47 = vadd.f32 %v11247_v28, %v4202_v25  ;;  %v9080_v30 = vor.u32 %v10198_v42, %v9079_v8  ;;  %v8825_v14 = vld [vmem:[#allocation10 + $0x228] sm:$0xf0]  ;;  %v10071_v63 = vld [vmem:[#allocation10 + $0x2c] sm:$0xf0]  ;;  %v9495_v10 = vld [vmem:[#allocation10 + $0x748] sm:$0xf] }
 0x3a8   :  { %5939 = vmatpush.bf16.msrb.mxu1 %v9396_v46  ;;  %v8576_v39 = vor.u32 %v10071_v63, %v8575_v59  ;;  %v10250_v46 = vld [vmem:[#allocation10 + $0x5cc] sm:$0xf]  ;;  %v9023_v15 = vld [vmem:[#allocation10 + $0x390] sm:$0xf] }
 0x3a9   :  { %v4173_v44 = vadd.f32 %v4172_v57, %v4154_v23  ;;  %v4244_v7 = vmax.f32 %v4228_v47, 0.0  ;;  %v8828_v23 = vor.u32 %v10130_v49, %v8825_v14  ;;  %v10183_v1 = vld [vmem:[#allocation10 + $0x3ac] sm:$0xf0]  ;;  %v10115_v47 = vld [vmem:[#allocation10 + $0x194] sm:$0xf] }
 0x3aa   :  { %5996 = vmatpush.bf16.msra.mxu0 %v9144_v54  ;;  %v9560_v54 = vor.u32 %v10318_v24, %v9559_v53  ;;  %v8737_v14 = vld [vmem:[#allocation10 + $0x170] sm:$0xf0]  ;;  %v8959_v53 = vld [vmem:[#allocation10 + $0x310] sm:$0xf] }
 0x3ab   :  { %v4192_v56 = vadd.f32 %v4191_v45, %v4173_v44  ;;  %6053 = vmatpush.bf16.msrb.mxu3 %v8892_v34  ;;  %v8860_v45 = vor.u32 %v10138_v6, %v8857_v3  ;;  %6110 = vmatpush.bf16.msra.mxu2 %v8640_v58  ;;  %v9308_v44 = vor.u32 %v10250_v46, %v9305_v32  ;;  %v4177_v36 = vpop.f32.mrf.mxu0  ;;  %v9527_v58 = vld [vmem:[#allocation10 + $0x788] sm:$0xf]  ;;  %v10242_v6 = vld [vmem:[#allocation10 + $0x58c] sm:$0xf]  ;;  %v4196_v26 = vpop.f32.mrf.mxu1  ;;  %v10167_v46 = vld [vmem:[#allocation10 + $0x32c] sm:$0xf0] }
 0x3ac   :  { %5940 = vmatpush.bf16.msrb.mxu1 %v9364_v0  ;;  %v3105_v34 = vadd.f32 %v11116_v51, %v3086_v29  ;;  %v10310_v0 = vld [vmem:[#allocation10 + $0x7a4] sm:$0xf0]  ;;  %v8705_v32 = vld [vmem:[#allocation10 + $0x130] sm:$0xf0]  ;;  %v8960_v16 = vor.u32 %v10167_v46, %v8959_v53  ;;  %v9561_v53 = vld [vmem:[#allocation10 + $0x7e8] sm:$0xf0] }
 0x3ad   :  { %v4206_v57 = vadd.f32 %v4192_v56, %v3119_v17  ;;  %v8801_v17 = vld [vmem:[#allocation10 + $0x1f0] sm:$0xf0]  ;;  %v9528_v18 = vor.u32 %v10310_v0, %v9527_v58  ;;  %v9399_v0 = vld [vmem:[#allocation10 + $0x688] sm:$0xf] }
 0x3ae   :  { %v4137_v27 = vpop.f32.mrf.mxu2  ;;  %v4156_v35 = vpop.f32.mrf.mxu3  ;;  %5997 = vmatpush.bf16.msra.mxu0 %v9112_v22  ;;  %v8804_v31 = vor.u32 %v10123_v19, %v8801_v17  ;;  %v9273_v22 = vld [vmem:[#allocation10 + $0x5a8] sm:$0xf0]  ;;  %v8927_v17 = vld [vmem:[#allocation10 + $0x2d0] sm:$0xf] }
 0x3af   :  { %v4232_v55 = vadd.f32 %v11247_v28, %v4206_v57  ;;  %v4157_v13 = vadd.f32 %v4156_v35, %v4137_v27  ;;  %6054 = vmatpush.bf16.msrb.mxu3 %v8860_v45  ;;  %6111 = vmatpush.bf16.msra.mxu2 %v8608_v2  ;;  %v9276_v51 = vor.u32 %v10242_v6, %v9273_v22  ;;  %v10302_v27 = vld [vmem:[#allocation10 + $0x764] sm:$0xf0]  ;;  %v10234_v35 = vld [vmem:[#allocation10 + $0x54c] sm:$0xf] }
 0x3b0   :  { %5941 = vmatpush.bf16.msrb.mxu1 %v9332_v21  ;;  %v3124_v57 = vadd.f32 %v11118_v62, %v3105_v34  ;;  %v9496_v2 = vor.u32 %v10302_v27, %v9495_v10  ;;  %v10175_v21 = vld [vmem:[#allocation10 + $0x36c] sm:$0xf0]  ;;  %v10107_v62 = vld [vmem:[#allocation10 + $0x154] sm:$0xf]  ;;  %v9177_v19 = vld [vmem:[#allocation10 + $0x4e8] sm:$0xf0] }
 0x3b1   :  { %v4248_v43 = vmax.f32 %v4232_v55, 0.0  ;;  %v4176_v9 = vadd.f32 %v4175_v52, %v4157_v13  ;;  %v8769_v52 = vld [vmem:[#allocation10 + $0x1b0] sm:$0xf0]  ;;  %v9241_v55 = vld [vmem:[#allocation10 + $0x568] sm:$0xf0]  ;;  %v8740_v59 = vor.u32 %v10107_v62, %v8737_v14 }
 0x3b2   :  { %5998 = vmatpush.bf16.msra.mxu0 %v9080_v30  ;;  %v8772_v42 = vor.u32 %v10115_v47, %v8769_v52  ;;  %v8991_v13 = vld [vmem:[#allocation10 + $0x350] sm:$0xf]  ;;  %v10278_v6 = vld [vmem:[#allocation10 + $0x6a4] sm:$0xf0]  ;;  %v9145_v22 = vld [vmem:[#allocation10 + $0x4a8] sm:$0xf0] }
 0x3b3   :  { %v11255_v38 = vpack.c.bf16 %v4248_v43, %v4244_v7  ;;  %v4195_v20 = vadd.f32 %v4194_v41, %v4176_v9  ;;  %6055 = vmatpush.bf16.msrb.mxu3 %v8828_v23  ;;  %6112 = vmatpush.bf16.msra.mxu2 %v8576_v39  ;;  %v9244_v41 = vor.u32 %v10234_v35, %v9241_v55  ;;  %v9463_v7 = vld [vmem:[#allocation10 + $0x708] sm:$0xf]  ;;  %v10226_v9 = vld [vmem:[#allocation10 + $0x50c] sm:$0xf]  ;;  %v10159_v34 = vld [vmem:[#allocation10 + $0x2ec] sm:$0xf0] }
 0x3b4   :  { %v8992_v30 = vor.u32 %v10175_v21, %v8991_v13  ;;  %v10294_v43 = vld [vmem:[#allocation10 + $0x724] sm:$0xf0]  ;;  %v8641_v47 = vld [vmem:[#allocation10 + $0xb0] sm:$0xf0]  ;;  %v9113_v10 = vld [vmem:[#allocation10 + $0x468] sm:$0xf0] }
 0x3b5   :  { %5866 = vmatmul.bf16.vlgmr.msra.gmra.mxu1 %v11255_v38  ;;  %5923 = vmatmul.bf16.vlgmr.msrb.gmra.mxu0 %v11225_v60  ;;  %v4210_v56 = vadd.f32 %v4195_v20, %v11123_v4  ;;  %v9024_v4 = vor.u32 %v10183_v1, %v9023_v15  ;;  %v9464_v39 = vor.u32 %v10294_v43, %v9463_v7  ;;  %v9209_v20 = vld [vmem:[#allocation10 + $0x528] sm:$0xf0]  ;;  %v8895_v15 = vld [vmem:[#allocation10 + $0x290] sm:$0xf]  ;;  %v10083_v1 = vld [vmem:[#allocation10 + $0x94] sm:$0xf] }
 0x3b6   :  { %5980 = vmatmul.bf16.vlgmr.msra.gmra.mxu3 %v11181_v48  ;;  %6037 = vmatmul.bf16.vlgmr.msrb.gmra.mxu2 %v11144_v40  ;;  %v4139_v37 = vpop.f32.mrf.mxu2  ;;  %v4158_v25 = vpop.f32.mrf.mxu3  ;;  %v9212_v24 = vor.u32 %v10226_v9, %v9209_v20  ;;  %v9367_v52 = vld [vmem:[#allocation10 + $0x648] sm:$0xf]  ;;  %v10075_v55 = vld [vmem:[#allocation10 + $0x54] sm:$0xf]  ;;  %v10194_v62 = vld [vmem:[#allocation10 + $0x40c] sm:$0xf] }
 0x3b7   :  { %v4159_v61 = vadd.f32 %v4158_v25, %v4139_v37  ;;  %6010 = vmatpush.bf16.msra.mxu1 %v9560_v54  ;;  %6067 = vmatpush.bf16.msrb.mxu0 %v9308_v44  ;;  %v4236_v45 = vadd.f32 %v11247_v28, %v4210_v56  ;;  %v10099_v54 = vld [vmem:[#allocation10 + $0x114] sm:$0xf]  ;;  %v9431_v37 = vld [vmem:[#allocation10 + $0x6c8] sm:$0xf]  ;;  %v10218_v44 = vld [vmem:[#allocation10 + $0x4cc] sm:$0xf]  ;;  %v8928_v56 = vor.u32 %v10159_v34, %v8927_v17 }
 0x3b8   :  { %6124 = vmatpush.bf16.msra.mxu3 %v9056_v33  ;;  %6181 = vmatpush.bf16.msrb.mxu2 %v8804_v31  ;;  %v10286_v25 = vld [vmem:[#allocation10 + $0x6e4] sm:$0xf0]  ;;  %v10091_v31 = vld [vmem:[#allocation10 + $0xd4] sm:$0xf]  ;;  %v10135_v7 = vld [vmem:[#allocation10 + $0x22c] sm:$0xf0] }
 0x3b9   :  { %v4178_v3 = vadd.f32 %v4177_v36, %v4159_v61  ;;  %v4252_v29 = vmax.f32 %v4236_v45, 0.0  ;;  %v9432_v33 = vor.u32 %v10286_v25, %v9431_v37  ;;  %v9180_v61 = vor.u32 %v10218_v44, %v9177_v19  ;;  %v8673_v36 = vld [vmem:[#allocation10 + $0xf0] sm:$0xf0]  ;;  %v8863_v45 = vld [vmem:[#allocation10 + $0x250] sm:$0xf] }
 0x3ba   :  { %v8676_v58 = vor.u32 %v10091_v31, %v8673_v36  ;;  %v8609_v13 = vld [vmem:[#allocation10 + $0x70] sm:$0xf0]  ;;  %v10314_v20 = vld [vmem:[#allocation10 + $0x7cc] sm:$0xf]  ;;  %v8807_v25 = vld [vmem:[#allocation10 + $0x1d8] sm:$0xf] }
 0x3bb   :  { %v4197_v8 = vadd.f32 %v4196_v26, %v4178_v3  ;;  %6011 = vmatpush.bf16.msra.mxu1 %v9528_v18  ;;  %6068 = vmatpush.bf16.msrb.mxu0 %v9276_v51  ;;  %v10210_v3 = vld [vmem:[#allocation10 + $0x48c] sm:$0xf]  ;;  %v9400_v18 = vor.u32 %v10278_v6, %v9399_v0  ;;  %v10151_v26 = vld [vmem:[#allocation10 + $0x2ac] sm:$0xf0]  ;;  %v10067_v9 = vld [vmem:[#allocation10 + $0x14] sm:$0xf]  ;;  %v9564_v46 = vor.u32 %v10314_v20, %v9561_v53 }
 0x3bc   :  { %6125 = vmatpush.bf16.msra.mxu3 %v9024_v4  ;;  %6182 = vmatpush.bf16.msrb.mxu2 %v8772_v42  ;;  %v9148_v51 = vor.u32 %v10210_v3, %v9145_v22  ;;  %v10270_v4 = vld [vmem:[#allocation10 + $0x664] sm:$0xf0]  ;;  %v10202_v42 = vld [vmem:[#allocation10 + $0x44c] sm:$0xf]  ;;  %v10128_v44 = vld [vmem:[#allocation10 + $0x1f4] sm:$0xf0] }
 0x3bd   :  { %v4214_v49 = vadd.f32 %v4197_v8, %v3124_v57  ;;  %v8896_v57 = vor.u32 %v10151_v26, %v8895_v15  ;;  %v8644_v8 = vor.u32 %v10083_v1, %v8641_v47  ;;  %v9368_v27 = vor.u32 %v10270_v4, %v9367_v52  ;;  %v10306_v19 = vld [vmem:[#allocation10 + $0x78c] sm:$0xf]  ;;  %v9279_v34 = vld [vmem:[#allocation10 + $0x590] sm:$0xf]  ;;  %v10179_v36 = vld [vmem:[#allocation10 + $0x394] sm:$0xf] }
 0x3be   :  { %v9116_v35 = vor.u32 %v10202_v42, %v9113_v10  ;;  %v9529_v17 = vld [vmem:[#allocation10 + $0x7a8] sm:$0xf0]  ;;  %v10247_v31 = vld [vmem:[#allocation10 + $0x5ac] sm:$0xf0]  ;;  %v8775_v6 = vld [vmem:[#allocation10 + $0x198] sm:$0xf] }
 0x3bf   :  { %v4240_v63 = vadd.f32 %v11247_v28, %v4214_v49  ;;  %6012 = vmatpush.bf16.msra.mxu1 %v9496_v2  ;;  %6069 = vmatpush.bf16.msrb.mxu0 %v9244_v41  ;;  %v8708_v28 = vor.u32 %v10099_v54, %v8705_v32  ;;  %v10143_v2 = vld [vmem:[#allocation10 + $0x26c] sm:$0xf0]  ;;  %v8612_v49 = vor.u32 %v10075_v55, %v8609_v13  ;;  %v9335_v41 = vld [vmem:[#allocation10 + $0x608] sm:$0xf]  ;;  %v10187_v32 = vld [vmem:[#allocation10 + $0x3d4] sm:$0xf] }
 0x3c0   :  { %6126 = vmatpush.bf16.msra.mxu3 %v8992_v30  ;;  %6183 = vmatpush.bf16.msrb.mxu2 %v8740_v59  ;;  %v8864_v21 = vor.u32 %v10143_v2, %v8863_v45  ;;  %v10262_v30 = vld [vmem:[#allocation10 + $0x624] sm:$0xf0]  ;;  %v9081_v59 = vld [vmem:[#allocation10 + $0x428] sm:$0xf0]  ;;  %v10255_v54 = vld [vmem:[#allocation10 + $0x5ec] sm:$0xf0] }
 0x3c1   :  { %v4256_v23 = vmax.f32 %v4240_v63, 0.0  ;;  %v9336_v14 = vor.u32 %v10262_v30, %v9335_v41  ;;  %v8831_v63 = vld [vmem:[#allocation10 + $0x210] sm:$0xf]  ;;  %v9084_v43 = vor.u32 %v10194_v62, %v9081_v59  ;;  %v10120_v3 = vld [vmem:[#allocation10 + $0x1b4] sm:$0xf0] }
 0x3c2   :  { %v8776_v22 = vor.u32 %v10120_v3, %v8775_v6  ;;  %v9497_v15 = vld [vmem:[#allocation10 + $0x768] sm:$0xf0]  ;;  %v9247_v26 = vld [vmem:[#allocation10 + $0x550] sm:$0xf]  ;;  %v10171_v52 = vld [vmem:[#allocation10 + $0x354] sm:$0xf] }
 0x3c3   :  { %v11266_v12 = vpack.c.bf16 %v4256_v23, %v4252_v29  ;;  %6013 = vmatpush.bf16.msra.mxu1 %v9464_v39  ;;  %6070 = vmatpush.bf16.msrb.mxu0 %v9212_v24  ;;  %v8577_v29 = vld [vmem:[#allocation10 + $0x30] sm:$0xf0]  ;;  %v8832_v23 = vor.u32 %v10135_v7, %v8831_v63  ;;  %v9311_v24 = vld [vmem:[#allocation10 + $0x5d0] sm:$0xf]  ;;  %v10112_v42 = vld [vmem:[#allocation10 + $0x174] sm:$0xf0] }
 0x3c4   :  { %6127 = vmatpush.bf16.msra.mxu3 %v8960_v16  ;;  %6184 = vmatpush.bf16.msrb.mxu2 %v8708_v28  ;;  %v8580_v39 = vor.u32 %v10067_v9, %v8577_v29  ;;  %v9057_v16 = vld [vmem:[#allocation10 + $0x3f0] sm:$0xf0]  ;;  %v9312_v28 = vor.u32 %v10255_v54, %v9311_v24  ;;  %v9215_v45 = vld [vmem:[#allocation10 + $0x510] sm:$0xf]  ;;  %v8711_v41 = vld [vmem:[#allocation10 + $0x118] sm:$0xf] }
 0x3c5   :  { %5871 = vmatmul.bf16.gmra.mxu1 %v11266_v12  ;;  %5928 = vmatmul.bf16.gmra.mxu0 %v11239_v5  ;;  %v9060_v37 = vor.u32 %v10187_v32, %v9057_v16  ;;  %v10231_v55 = vld [vmem:[#allocation10 + $0x52c] sm:$0xf0]  ;;  %v10163_v13 = vld [vmem:[#allocation10 + $0x314] sm:$0xf]  ;;  %v10104_v30 = vld [vmem:[#allocation10 + $0x134] sm:$0xf0] }
 0x3c6   :  { %5985 = vmatmul.bf16.gmra.mxu3 %v11202_v50  ;;  %6042 = vmatmul.bf16.gmra.mxu2 %v11161_v11  ;;  %v10282_v59 = vld [vmem:[#allocation10 + $0x6cc] sm:$0xf]  ;;  %v9183_v7 = vld [vmem:[#allocation10 + $0x4d0] sm:$0xf]  ;;  %v10155_v29 = vld [vmem:[#allocation10 + $0x2d4] sm:$0xf] }
 0x3c7   :  { %6014 = vmatpush.bf16.msra.mxu1 %v9432_v33  ;;  %6071 = vmatpush.bf16.msrb.mxu0 %v9180_v61  ;;  %v8808_v33 = vor.u32 %v10128_v44, %v8807_v25  ;;  %v9532_v61 = vor.u32 %v10306_v19, %v9529_v17  ;;  %v9433_v63 = vld [vmem:[#allocation10 + $0x6e8] sm:$0xf0]  ;;  %v10223_v9 = vld [vmem:[#allocation10 + $0x4ec] sm:$0xf0]  ;;  %v8679_v20 = vld [vmem:[#allocation10 + $0xd8] sm:$0xf] }
 0x3c8   :  { %6128 = vmatpush.bf16.msra.mxu3 %v8928_v56  ;;  %6185 = vmatpush.bf16.msrb.mxu2 %v8676_v58  ;;  %v9025_v56 = vld [vmem:[#allocation10 + $0x3b0] sm:$0xf0]  ;;  %v9280_v58 = vor.u32 %v10247_v31, %v9279_v34  ;;  %v10096_v53 = vld [vmem:[#allocation10 + $0xf4] sm:$0xf0]  ;;  %v10274_v54 = vld [vmem:[#allocation10 + $0x68c] sm:$0xf] }
 0x3c9   :  { %v9028_v0 = vor.u32 %v10179_v36, %v9025_v56  ;;  %v9401_v32 = vld [vmem:[#allocation10 + $0x6a8] sm:$0xf0]  ;;  %v9151_v16 = vld [vmem:[#allocation10 + $0x490] sm:$0xf]  ;;  %v10147_v25 = vld [vmem:[#allocation10 + $0x294] sm:$0xf] }
 0x3ca   :  { %v8897_v44 = vld [vmem:[#allocation10 + $0x2b0] sm:$0xf0]  ;;  %v8647_v19 = vld [vmem:[#allocation10 + $0x98] sm:$0xf]  ;;  %v10266_v34 = vld [vmem:[#allocation10 + $0x64c] sm:$0xf] }
 0x3cb   :  { %6015 = vmatpush.bf16.msra.mxu1 %v9400_v18  ;;  %6072 = vmatpush.bf16.msrb.mxu0 %v9148_v51  ;;  %v10298_v18 = vld [vmem:[#allocation10 + $0x74c] sm:$0xf]  ;;  %v10239_v51 = vld [vmem:[#allocation10 + $0x56c] sm:$0xf0]  ;;  %v10088_v17 = vld [vmem:[#allocation10 + $0xb4] sm:$0xf0] }
 0x3cc   :  { %6129 = vmatpush.bf16.msra.mxu3 %v8896_v57  ;;  %6186 = vmatpush.bf16.msrb.mxu2 %v8644_v8  ;;  %v9500_v1 = vor.u32 %v10298_v18, %v9497_v15  ;;  %v9248_v47 = vor.u32 %v10239_v51, %v9247_v26  ;;  %v8993_v57 = vld [vmem:[#allocation10 + $0x370] sm:$0xf0]  ;;  %v8743_v8 = vld [vmem:[#allocation10 + $0x158] sm:$0xf]  ;;  %v8648_v31 = vor.u32 %v10088_v17, %v8647_v19  ;;  %v9369_v36 = vld [vmem:[#allocation10 + $0x668] sm:$0xf0] }
 0x3cd   :  { %v8996_v4 = vor.u32 %v10171_v52, %v8993_v57  ;;  %v8744_v10 = vor.u32 %v10112_v42, %v8743_v8  ;;  %v9119_v56 = vld [vmem:[#allocation10 + $0x450] sm:$0xf]  ;;  %v10139_v3 = vld [vmem:[#allocation10 + $0x254] sm:$0xf]  ;;  %v10080_v15 = vld [vmem:[#allocation10 + $0x74] sm:$0xf0] }
 0x3ce   :  { %v8865_v18 = vld [vmem:[#allocation10 + $0x270] sm:$0xf0]  ;;  %v9337_v52 = vld [vmem:[#allocation10 + $0x628] sm:$0xf0]  ;;  %v9087_v57 = vld [vmem:[#allocation10 + $0x410] sm:$0xf] }
 0x3cf   :  { %6016 = vmatpush.bf16.msra.mxu1 %v9368_v27  ;;  %6073 = vmatpush.bf16.msrb.mxu0 %v9116_v35  ;;  %v10290_v27 = vld [vmem:[#allocation10 + $0x70c] sm:$0xf]  ;;  %v8868_v51 = vor.u32 %v10139_v3, %v8865_v18  ;;  %v10131_v42 = vld [vmem:[#allocation10 + $0x214] sm:$0xf]  ;;  %v10303_v19 = vld [vmem:[#allocation10 + $0x76c] sm:$0xf0] }
 0x3d0   :  { %6130 = vmatpush.bf16.msra.mxu3 %v8864_v21  ;;  %6187 = vmatpush.bf16.msrb.mxu2 %v8612_v49  ;;  %v9465_v35 = vld [vmem:[#allocation10 + $0x728] sm:$0xf0]  ;;  %v8961_v21 = vld [vmem:[#allocation10 + $0x330] sm:$0xf0]  ;;  %v9216_v49 = vor.u32 %v10231_v55, %v9215_v45  ;;  %v10072_v45 = vld [vmem:[#allocation10 + $0x34] sm:$0xf0] }
 0x3d1   :  { %v9468_v2 = vor.u32 %v10290_v27, %v9465_v35  ;;  %v8964_v62 = vor.u32 %v10163_v13, %v8961_v21  ;;  %v8583_v35 = vld [vmem:[#allocation10 + $0x18] sm:$0xf]  ;;  %v9567_v13 = vld [vmem:[#allocation10 + $0x7d0] sm:$0xf]  ;;  %v10235_v17 = vld [vmem:[#allocation10 + $0x554] sm:$0xf] }
 0x3d2   :  { %v8584_v55 = vor.u32 %v10072_v45, %v8583_v35  ;;  %v10319_v21 = vld [vmem:[#allocation10 + $0x7ec] sm:$0xf0] }
 0x3d3   :  { %6017 = vmatpush.bf16.msra.mxu1 %v9336_v14  ;;  %6074 = vmatpush.bf16.msrb.mxu0 %v9084_v43  ;;  %v8712_v14 = vor.u32 %v10104_v30, %v8711_v41  ;;  %v9436_v43 = vor.u32 %v10282_v59, %v9433_v63  ;;  %v9568_v41 = vor.u32 %v10319_v21, %v9567_v13  ;;  %v9313_v30 = vld [vmem:[#allocation10 + $0x5f0] sm:$0xf0]  ;;  %v9439_v45 = vld [vmem:[#allocation10 + $0x6d0] sm:$0xf] }
 0x3d4   :  { %6131 = vmatpush.bf16.msra.mxu3 %v8832_v23  ;;  %6188 = vmatpush.bf16.msrb.mxu2 %v8580_v39  ;;  %v8929_v23 = vld [vmem:[#allocation10 + $0x2f0] sm:$0xf0]  ;;  %v9184_v39 = vor.u32 %v10223_v9, %v9183_v7  ;;  %v10124_v7 = vld [vmem:[#allocation10 + $0x1dc] sm:$0xf] }
 0x3d5   :  { %5942 = vmatmul.bf16.vlgmr.msrb.gmra.mxu1 %v11255_v38  ;;  %5999 = vmatmul.bf16.vlgmr.msra.gmra.mxu0 %v11225_v60  ;;  %v8932_v24 = vor.u32 %v10155_v29, %v8929_v23  ;;  %v9535_v23 = vld [vmem:[#allocation10 + $0x790] sm:$0xf]  ;;  %v9185_v21 = vld [vmem:[#allocation10 + $0x4f0] sm:$0xf0] }
 0x3d6   :  { %6056 = vmatmul.bf16.vlgmr.msrb.gmra.mxu3 %v11181_v48  ;;  %6113 = vmatmul.bf16.vlgmr.msra.gmra.mxu2 %v11144_v40 }
 0x3d7   :  { %6086 = vmatpush.bf16.msrb.mxu1 %v9564_v46  ;;  %6143 = vmatpush.bf16.msra.mxu0 %v9312_v28  ;;  %v8680_v46 = vor.u32 %v10096_v53, %v8679_v20  ;;  %v9404_v28 = vor.u32 %v10274_v54, %v9401_v32  ;;  %v10243_v20 = vld [vmem:[#allocation10 + $0x594] sm:$0xf]  ;;  %v9031_v54 = vld [vmem:[#allocation10 + $0x398] sm:$0xf] }
 0x3d8   :  { %6200 = vmatpush.bf16.msrb.mxu3 %v9060_v37  ;;  %6257 = vmatpush.bf16.msra.mxu2 %v8808_v33  ;;  %v10215_v37 = vld [vmem:[#allocation10 + $0x4ac] sm:$0xf0]  ;;  %v11280_v26 = vpop.f32.mrf.mxu2  ;;  %v10184_v32 = vld [vmem:[#allocation10 + $0x3b4] sm:$0xf0] }
 0x3d9   :  { %v9152_v33 = vor.u32 %v10215_v37, %v9151_v16  ;;  %v10116_v37 = vld [vmem:[#allocation10 + $0x19c] sm:$0xf] }
 0x3db   :  { %6087 = vmatpush.bf16.msrb.mxu1 %v9532_v61  ;;  %6144 = vmatpush.bf16.msra.mxu0 %v9280_v58  ;;  %v8900_v61 = vor.u32 %v10147_v25, %v8897_v44  ;;  %v10207_v58 = vld [vmem:[#allocation10 + $0x46c] sm:$0xf0]  ;;  %v8777_v25 = vld [vmem:[#allocation10 + $0x1b8] sm:$0xf0] }
 0x3dc   :  { %6201 = vmatpush.bf16.msrb.mxu3 %v9028_v0  ;;  %6258 = vmatpush.bf16.msra.mxu2 %v8776_v22  ;;  %v9372_v0 = vor.u32 %v10266_v34, %v9369_v36  ;;  %v9120_v6 = vor.u32 %v10207_v58, %v9119_v56  ;;  %v8615_v22 = vld [vmem:[#allocation10 + $0x58] sm:$0xf]  ;;  %v8780_v44 = vor.u32 %v10116_v37, %v8777_v25  ;;  %v9375_v25 = vld [vmem:[#allocation10 + $0x650] sm:$0xf] }
 0x3dd   :  { %v10176_v36 = vld [vmem:[#allocation10 + $0x374] sm:$0xf0] }
 0x3df   :  { %6088 = vmatpush.bf16.msrb.mxu1 %v9500_v1  ;;  %6145 = vmatpush.bf16.msra.mxu0 %v9248_v47  ;;  %v8616_v1 = vor.u32 %v10080_v15, %v8615_v22  ;;  %v10258_v47 = vld [vmem:[#allocation10 + $0x60c] sm:$0xf]  ;;  %v9471_v22 = vld [vmem:[#allocation10 + $0x710] sm:$0xf] }
 0x3e0   :  { %6202 = vmatpush.bf16.msrb.mxu3 %v8996_v4  ;;  %6259 = vmatpush.bf16.msra.mxu2 %v8744_v10  ;;  %v9340_v8 = vor.u32 %v10258_v47, %v9337_v52  ;;  %v10199_v4 = vld [vmem:[#allocation10 + $0x42c] sm:$0xf0]  ;;  %v8833_v10 = vld [vmem:[#allocation10 + $0x230] sm:$0xf0]  ;;  %v11288_v53 = vpop.f32.mrf.mxu2  ;;  %v8967_v52 = vld [vmem:[#allocation10 + $0x318] sm:$0xf] }
 0x3e1   :  { %v9088_v27 = vor.u32 %v10199_v4, %v9087_v57  ;;  %v10295_v15 = vld [vmem:[#allocation10 + $0x72c] sm:$0xf0]  ;;  %v9217_v47 = vld [vmem:[#allocation10 + $0x530] sm:$0xf0]  ;;  %v10168_v57 = vld [vmem:[#allocation10 + $0x334] sm:$0xf0] }
 0x3e2   :  { %v10100_v4 = vld [vmem:[#allocation10 + $0x11c] sm:$0xf] }
 0x3e3   :  { %6089 = vmatpush.bf16.msrb.mxu1 %v9468_v2  ;;  %6146 = vmatpush.bf16.msra.mxu0 %v9216_v49  ;;  %v8836_v2 = vor.u32 %v10131_v42, %v8833_v10  ;;  %v10251_v49 = vld [vmem:[#allocation10 + $0x5d4] sm:$0xf]  ;;  %v8713_v42 = vld [vmem:[#allocation10 + $0x138] sm:$0xf0] }
 0x3e4   :  { %6203 = vmatpush.bf16.msrb.mxu3 %v8964_v62  ;;  %6260 = vmatpush.bf16.msra.mxu2 %v8712_v14  ;;  %v9063_v62 = vld [vmem:[#allocation10 + $0x3d8] sm:$0xf]  ;;  %v9316_v59 = vor.u32 %v10251_v49, %v9313_v30  ;;  %v8716_v35 = vor.u32 %v10100_v4, %v8713_v42  ;;  %v10068_v42 = vld [vmem:[#allocation10 + $0x1c] sm:$0xf] }
 0x3e5   :  { %5947 = vmatmul.bf16.gmra.mxu1 %v11266_v12  ;;  %6004 = vmatmul.bf16.gmra.mxu0 %v11239_v5  ;;  %v10192_v14 = vld [vmem:[#allocation10 + $0x3f4] sm:$0xf0] }
 0x3e6   :  { %6061 = vmatmul.bf16.gmra.mxu3 %v11202_v50  ;;  %6118 = vmatmul.bf16.gmra.mxu2 %v11161_v11  ;;  %v9064_v63 = vor.u32 %v10192_v14, %v9063_v62  ;;  %v8935_v49 = vld [vmem:[#allocation10 + $0x2d8] sm:$0xf]  ;;  %v10092_v62 = vld [vmem:[#allocation10 + $0xdc] sm:$0xf] }
 0x3e7   :  { %6090 = vmatpush.bf16.msrb.mxu1 %v9436_v43  ;;  %6147 = vmatpush.bf16.msra.mxu0 %v9184_v39  ;;  %v8809_v43 = vld [vmem:[#allocation10 + $0x1f8] sm:$0xf0]  ;;  %v10311_v39 = vld [vmem:[#allocation10 + $0x7ac] sm:$0xf0] }
 0x3e8   :  { %6204 = vmatpush.bf16.msrb.mxu3 %v8932_v24  ;;  %6261 = vmatpush.bf16.msra.mxu2 %v8680_v46  ;;  %v8812_v9 = vor.u32 %v10124_v7, %v8809_v43  ;;  %v9536_v24 = vor.u32 %v10311_v39, %v9535_v23  ;;  %v9281_v46 = vld [vmem:[#allocation10 + $0x5b0] sm:$0xf0]  ;;  %v11292_v10 = vpop.f32.mrf.mxu2  ;;  %v8681_v14 = vld [vmem:[#allocation10 + $0xf8] sm:$0xf0]  ;;  %v9407_v43 = vld [vmem:[#allocation10 + $0x690] sm:$0xf] }
 0x3e9   :  { %v9284_v16 = vor.u32 %v10243_v20, %v9281_v46  ;;  %v10211_v23 = vld [vmem:[#allocation10 + $0x494] sm:$0xf]  ;;  %v10152_v46 = vld [vmem:[#allocation10 + $0x2b4] sm:$0xf0] }
 0x3ea   :  { %v9153_v20 = vld [vmem:[#allocation10 + $0x4b0] sm:$0xf0] }
 0x3eb   :  { %6091 = vmatpush.bf16.msrb.mxu1 %v9404_v28  ;;  %6148 = vmatpush.bf16.msra.mxu0 %v9152_v33  ;;  %v9032_v28 = vor.u32 %v10184_v32, %v9031_v54  ;;  %v9503_v33 = vld [vmem:[#allocation10 + $0x750] sm:$0xf]  ;;  %v9156_v54 = vor.u32 %v10211_v23, %v9153_v20  ;;  %v10084_v32 = vld [vmem:[#allocation10 + $0x9c] sm:$0xf]  ;;  %v9287_v23 = vld [vmem:[#allocation10 + $0x598] sm:$0xf] }
 0x3ec   :  { %6205 = vmatpush.bf16.msrb.mxu3 %v8900_v61  ;;  %6262 = vmatpush.bf16.msra.mxu2 %v8648_v31  ;;  %v9504_v34 = vor.u32 %v10303_v19, %v9503_v33  ;;  %v9249_v61 = vld [vmem:[#allocation10 + $0x570] sm:$0xf0]  ;;  %v8999_v31 = vld [vmem:[#allocation10 + $0x358] sm:$0xf] }
 0x3ed   :  { %v9252_v56 = vor.u32 %v10235_v17, %v9249_v61  ;;  %v9000_v58 = vor.u32 %v10176_v36, %v8999_v31  ;;  %v10203_v33 = vld [vmem:[#allocation10 + $0x454] sm:$0xf]  ;;  %v10144_v61 = vld [vmem:[#allocation10 + $0x274] sm:$0xf0] }
 0x3ee   :  { %v9121_v17 = vld [vmem:[#allocation10 + $0x470] sm:$0xf0]  ;;  %v10248_v20 = vld [vmem:[#allocation10 + $0x5b4] sm:$0xf0] }
 0x3ef   :  { %6092 = vmatpush.bf16.msrb.mxu1 %v9372_v0  ;;  %6149 = vmatpush.bf16.msra.mxu0 %v9120_v6  ;;  %v10108_v0 = vld [vmem:[#allocation10 + $0x15c] sm:$0xf]  ;;  %v9124_v36 = vor.u32 %v10203_v33, %v9121_v17  ;;  %v10240_v33 = vld [vmem:[#allocation10 + $0x574] sm:$0xf0] }
 0x3f0   :  { %6206 = vmatpush.bf16.msrb.mxu3 %v8868_v51  ;;  %6263 = vmatpush.bf16.msra.mxu2 %v8616_v1  ;;  %v8745_v6 = vld [vmem:[#allocation10 + $0x178] sm:$0xf0]  ;;  %v10227_v51 = vld [vmem:[#allocation10 + $0x514] sm:$0xf]  ;;  %v9472_v1 = vor.u32 %v10295_v15, %v9471_v22  ;;  %v11300_v31 = vpop.f32.mrf.mxu2  ;;  %v9343_v22 = vld [vmem:[#allocation10 + $0x610] sm:$0xf] }
 0x3f1   :  { %v8748_v3 = vor.u32 %v10108_v0, %v8745_v6  ;;  %v10263_v15 = vld [vmem:[#allocation10 + $0x62c] sm:$0xf0]  ;;  %v9001_v17 = vld [vmem:[#allocation10 + $0x378] sm:$0xf0] }
 0x3f3   :  { %6093 = vmatpush.bf16.msrb.mxu1 %v9340_v8  ;;  %6150 = vmatpush.bf16.msra.mxu0 %v9088_v27  ;;  %v9220_v8 = vor.u32 %v10227_v51, %v9217_v47  ;;  %v8968_v27 = vor.u32 %v10168_v57, %v8967_v52  ;;  %v10195_v51 = vld [vmem:[#allocation10 + $0x414] sm:$0xf]  ;;  %v8839_v52 = vld [vmem:[#allocation10 + $0x218] sm:$0xf] }
 0x3f4   :  { %6207 = vmatpush.bf16.msrb.mxu3 %v8836_v2  ;;  %6264 = vmatpush.bf16.msra.mxu2 %v8584_v55  ;;  %v10287_v2 = vld [vmem:[#allocation10 + $0x6ec] sm:$0xf0]  ;;  %v10219_v55 = vld [vmem:[#allocation10 + $0x4d4] sm:$0xf]  ;;  %v10136_v57 = vld [vmem:[#allocation10 + $0x234] sm:$0xf0] }
 0x3f5   :  { %6018 = vmatmul.bf16.vlgmr.msra.gmra.mxu1 %v11255_v38  ;;  %6075 = vmatmul.bf16.vlgmr.msrb.gmra.mxu0 %v11225_v60  ;;  %v9440_v13 = vor.u32 %v10287_v2, %v9439_v45  ;;  %v9188_v30 = vor.u32 %v10219_v55, %v9185_v21  ;;  %v9089_v47 = vld [vmem:[#allocation10 + $0x430] sm:$0xf0] }
 0x3f6   :  { %6132 = vmatmul.bf16.vlgmr.msra.gmra.mxu3 %v11181_v48  ;;  %6189 = vmatmul.bf16.vlgmr.msrb.gmra.mxu2 %v11144_v40  ;;  %v9092_v4 = vor.u32 %v10195_v51, %v9089_v47  ;;  %v10315_v2 = vld [vmem:[#allocation10 + $0x7d4] sm:$0xf]  ;;  %v10164_v51 = vld [vmem:[#allocation10 + $0x31c] sm:$0xf] }
 0x3f7   :  { %6162 = vmatpush.bf16.msra.mxu1 %v9568_v41  ;;  %6219 = vmatpush.bf16.msrb.mxu0 %v9316_v59  ;;  %v10160_v41 = vld [vmem:[#allocation10 + $0x2f4] sm:$0xf0]  ;;  %v9569_v55 = vld [vmem:[#allocation10 + $0x7f0] sm:$0xf0] }
 0x3f8   :  { %v11286_v29 = vpop.f32.mrf.mxu3  ;;  %6276 = vmatpush.bf16.msra.mxu3 %v9064_v63  ;;  %6333 = vmatpush.bf16.msrb.mxu2 %v8812_v9  ;;  %v8936_v59 = vor.u32 %v10160_v41, %v8935_v49  ;;  %v8684_v63 = vor.u32 %v10092_v62, %v8681_v14  ;;  %v10279_v9 = vld [vmem:[#allocation10 + $0x6ac] sm:$0xf0]  ;;  %v9572_v21 = vor.u32 %v10315_v2, %v9569_v55  ;;  %v10256_v49 = vld [vmem:[#allocation10 + $0x5f4] sm:$0xf0]  ;;  %v10188_v41 = vld [vmem:[#allocation10 + $0x3dc] sm:$0xf] }
 0x3f9   :  { %v9408_v39 = vor.u32 %v10279_v9, %v9407_v43  ;;  %v10307_v43 = vld [vmem:[#allocation10 + $0x794] sm:$0xf]  ;;  %v10156_v2 = vld [vmem:[#allocation10 + $0x2dc] sm:$0xf] }
 0x3fa   :  { %v9537_v9 = vld [vmem:[#allocation10 + $0x7b0] sm:$0xf0]  ;;  %v8937_v55 = vld [vmem:[#allocation10 + $0x2f8] sm:$0xf0] }
 0x3fb   :  { %6163 = vmatpush.bf16.msra.mxu1 %v9536_v24  ;;  %6220 = vmatpush.bf16.msrb.mxu0 %v9284_v16  ;;  %v8903_v24 = vld [vmem:[#allocation10 + $0x298] sm:$0xf]  ;;  %v8649_v16 = vld [vmem:[#allocation10 + $0xb8] sm:$0xf0] }
 0x3fc   :  { %6277 = vmatpush.bf16.msra.mxu3 %v9032_v28  ;;  %6334 = vmatpush.bf16.msrb.mxu2 %v8780_v44  ;;  %v8904_v28 = vor.u32 %v10152_v46, %v8903_v24  ;;  %v8652_v37 = vor.u32 %v10084_v32, %v8649_v16  ;;  %v10271_v44 = vld [vmem:[#allocation10 + $0x66c] sm:$0xf0]  ;;  %v10180_v24 = vld [vmem:[#allocation10 + $0x39c] sm:$0xf]  ;;  %v9288_v32 = vor.u32 %v10248_v20, %v9287_v23 }
 0x3fd   :  { %v9376_v19 = vor.u32 %v10271_v44, %v9375_v25  ;;  %v9033_v46 = vld [vmem:[#allocation10 + $0x3b8] sm:$0xf0]  ;;  %v9255_v25 = vld [vmem:[#allocation10 + $0x558] sm:$0xf] }
 0x3fe   :  { %v9036_v16 = vor.u32 %v10180_v24, %v9033_v46  ;;  %v8905_v23 = vld [vmem:[#allocation10 + $0x2b8] sm:$0xf0] }
 0x3ff   :  { %6164 = vmatpush.bf16.msra.mxu1 %v9504_v34  ;;  %6221 = vmatpush.bf16.msrb.mxu0 %v9252_v56  ;;  %v8871_v34 = vld [vmem:[#allocation10 + $0x258] sm:$0xf]  ;;  %v10076_v56 = vld [vmem:[#allocation10 + $0x5c] sm:$0xf] }
 0x400   :  { %v11290_v18 = vpop.f32.mrf.mxu3  ;;  %6278 = vmatpush.bf16.msra.mxu3 %v9000_v58  ;;  %6335 = vmatpush.bf16.msrb.mxu2 %v8748_v3  ;;  %v8617_v58 = vld [vmem:[#allocation10 + $0x78] sm:$0xf0]  ;;  %v8872_v0 = vor.u32 %v10144_v61, %v8871_v34  ;;  %v9256_v34 = vor.u32 %v10240_v33, %v9255_v25  ;;  %v10208_v25 = vld [vmem:[#allocation10 + $0x474] sm:$0xf0] }
 0x401   :  { %v8620_v6 = vor.u32 %v10076_v56, %v8617_v58  ;;  %v10291_v56 = vld [vmem:[#allocation10 + $0x714] sm:$0xf]  ;;  %v8873_v33 = vld [vmem:[#allocation10 + $0x278] sm:$0xf0] }
 0x402   :  { %v9473_v58 = vld [vmem:[#allocation10 + $0x730] sm:$0xf0] }
 0x403   :  { %6165 = vmatpush.bf16.msra.mxu1 %v9472_v1  ;;  %6222 = vmatpush.bf16.msrb.mxu0 %v9220_v8  ;;  %v9344_v1 = vor.u32 %v10263_v15, %v9343_v22  ;;  %v9476_v22 = vor.u32 %v10291_v56, %v9473_v58  ;;  %v10232_v15 = vld [vmem:[#allocation10 + $0x534] sm:$0xf0] }
 0x404   :  { %6279 = vmatpush.bf16.msra.mxu3 %v8968_v27  ;;  %6336 = vmatpush.bf16.msrb.mxu2 %v8716_v35  ;;  %v8585_v27 = vld [vmem:[#allocation10 + $0x38] sm:$0xf0]  ;;  %v8840_v35 = vor.u32 %v10136_v57, %v8839_v52  ;;  %v9095_v56 = vld [vmem:[#allocation10 + $0x418] sm:$0xf] }
 0x405   :  { %6023 = vmatmul.bf16.gmra.mxu1 %v11266_v12  ;;  %6080 = vmatmul.bf16.gmra.mxu0 %v11239_v5  ;;  %v8588_v45 = vor.u32 %v10068_v42, %v8585_v27  ;;  %v9441_v42 = vld [vmem:[#allocation10 + $0x6f0] sm:$0xf0]  ;;  %v9191_v27 = vld [vmem:[#allocation10 + $0x4d8] sm:$0xf] }
 0x406   :  { %6137 = vmatmul.bf16.gmra.mxu3 %v11202_v50  ;;  %6194 = vmatmul.bf16.gmra.mxu2 %v11161_v11 }
 0x407   :  { %6166 = vmatpush.bf16.msra.mxu1 %v9440_v13  ;;  %6223 = vmatpush.bf16.msrb.mxu0 %v9188_v30  ;;  %v9319_v13 = vld [vmem:[#allocation10 + $0x5d8] sm:$0xf]  ;;  %v9065_v30 = vld [vmem:[#allocation10 + $0x3f8] sm:$0xf0] }
 0x408   :  { %v11298_v7 = vpop.f32.mrf.mxu3  ;;  %6280 = vmatpush.bf16.msra.mxu3 %v8936_v59  ;;  %6337 = vmatpush.bf16.msrb.mxu2 %v8684_v63  ;;  %v9320_v62 = vor.u32 %v10256_v49, %v9319_v13  ;;  %v9068_v14 = vor.u32 %v10188_v41, %v9065_v30  ;;  %v11310_v59 = vpop.f32.mrf.mxu2  ;;  %v10275_v49 = vld [vmem:[#allocation10 + $0x694] sm:$0xf]  ;;  %v9159_v30 = vld [vmem:[#allocation10 + $0x498] sm:$0xf] }
 0x409   :  { %v9409_v41 = vld [vmem:[#allocation10 + $0x6b0] sm:$0xf0] }
 0x40b   :  { %6167 = vmatpush.bf16.msra.mxu1 %v9408_v39  ;;  %6224 = vmatpush.bf16.msrb.mxu0 %v9156_v54  ;;  %v9540_v39 = vor.u32 %v10307_v43, %v9537_v9  ;;  %v10216_v43 = vld [vmem:[#allocation10 + $0x4b4] sm:$0xf0]  ;;  %v10148_v9 = vld [vmem:[#allocation10 + $0x29c] sm:$0xf] }
 0x40c   :  { %6281 = vmatpush.bf16.msra.mxu3 %v8904_v28  ;;  %6338 = vmatpush.bf16.msrb.mxu2 %v8652_v37  ;;  %v10299_v28 = vld [vmem:[#allocation10 + $0x754] sm:$0xf]  ;;  %v9160_v20 = vor.u32 %v10216_v43, %v9159_v30  ;;  %v8908_v46 = vor.u32 %v10148_v9, %v8905_v23 }
 0x40d   :  { %v9505_v37 = vld [vmem:[#allocation10 + $0x770] sm:$0xf0] }
 0x40e   :  { %v9508_v44 = vor.u32 %v10299_v28, %v9505_v37  ;;  %v9127_v28 = vld [vmem:[#allocation10 + $0x458] sm:$0xf] }
 0x40f   :  { %6168 = vmatpush.bf16.msra.mxu1 %v9376_v19  ;;  %6225 = vmatpush.bf16.msrb.mxu0 %v9124_v36  ;;  %v10172_v19 = vld [vmem:[#allocation10 + $0x35c] sm:$0xf] }
 0x410   :  { %v11302_v3 = vpop.f32.mrf.mxu3  ;;  %6282 = vmatpush.bf16.msra.mxu3 %v8872_v0  ;;  %6339 = vmatpush.bf16.msrb.mxu2 %v8620_v6  ;;  %v9004_v61 = vor.u32 %v10172_v19, %v9001_v17  ;;  %v9223_v0 = vld [vmem:[#allocation10 + $0x518] sm:$0xf]  ;;  %v11318_v6 = vpop.f32.mrf.mxu2  ;;  %v9128_v19 = vor.u32 %v10208_v25, %v9127_v28  ;;  %v9257_v28 = vld [vmem:[#allocation10 + $0x578] sm:$0xf0] }
 0x411   :  { %v9224_v52 = vor.u32 %v10232_v15, %v9223_v0  ;;  %v10200_v0 = vld [vmem:[#allocation10 + $0x434] sm:$0xf0]  ;;  %v8841_v15 = vld [vmem:[#allocation10 + $0x238] sm:$0xf0] }
 0x412   :  { %v11304_v8 = vpop.f32.mrf.mxu0 }
 0x413   :  { %6169 = vmatpush.bf16.msra.mxu1 %v9344_v1  ;;  %6226 = vmatpush.bf16.msrb.mxu0 %v9092_v4  ;;  %v8969_v1 = vld [vmem:[#allocation10 + $0x338] sm:$0xf0]  ;;  %v10283_v4 = vld [vmem:[#allocation10 + $0x6d4] sm:$0xf] }
 0x414   :  { %6283 = vmatpush.bf16.msra.mxu3 %v8840_v35  ;;  %6340 = vmatpush.bf16.msrb.mxu2 %v8588_v45  ;;  %v8972_v57 = vor.u32 %v10164_v51, %v8969_v1  ;;  %v9444_v35 = vor.u32 %v10283_v4, %v9441_v42  ;;  %v10224_v45 = vld [vmem:[#allocation10 + $0x4f4] sm:$0xf0] }
 0x415   :  { %6094 = vmatmul.bf16.vlgmr.msrb.gmra.mxu1 %v11255_v38  ;;  %6151 = vmatmul.bf16.vlgmr.msra.gmra.mxu0 %v11225_v60  ;;  %v9192_v13 = vor.u32 %v10224_v45, %v9191_v27  ;;  %v9575_v42 = vld [vmem:[#allocation10 + $0x7d8] sm:$0xf] }
 0x416   :  { %6208 = vmatmul.bf16.vlgmr.msrb.gmra.mxu3 %v11181_v48  ;;  %6265 = vmatmul.bf16.vlgmr.msra.gmra.mxu2 %v11144_v40  ;;  %v10320_v27 = vld [vmem:[#allocation10 + $0x7f4] sm:$0xf0] }
 0x417   :  { %6238 = vmatpush.bf16.msrb.mxu1 %v9572_v21  ;;  %6295 = vmatpush.bf16.msra.mxu0 %v9320_v62  ;;  %v8940_v21 = vor.u32 %v10156_v2, %v8937_v55  ;;  %v9576_v2 = vor.u32 %v10320_v27, %v9575_v42  ;;  %v9321_v55 = vld [vmem:[#allocation10 + $0x5f8] sm:$0xf0]  ;;  %v5835_v27 = vadd.f32 %v11298_v7, %v11292_v10 }
 0x418   :  { %v11312_v63 = vpop.f32.mrf.mxu3  ;;  %6352 = vmatpush.bf16.msrb.mxu3 %v9068_v14  ;;  %v9412_v14 = vor.u32 %v10275_v49, %v9409_v41  ;;  %v11330_v24 = vpop.f32.mrf.mxu2  ;;  %v10312_v49 = vld [vmem:[#allocation10 + $0x7b4] sm:$0xf0]  ;;  %v10244_v41 = vld [vmem:[#allocation10 + $0x59c] sm:$0xf] }
 0x419   :  { %v9161_v7 = vld [vmem:[#allocation10 + $0x4b8] sm:$0xf0] }
 0x41a   :  { %v11314_v54 = vpop.f32.mrf.mxu0 }
 0x41b   :  { %6239 = vmatpush.bf16.msrb.mxu1 %v9540_v39  ;;  %6296 = vmatpush.bf16.msra.mxu0 %v9288_v32  ;;  %v10267_v32 = vld [vmem:[#allocation10 + $0x654] sm:$0xf] }
 0x41c   :  { %6353 = vmatpush.bf16.msrb.mxu3 %v9036_v16  ;;  %v9377_v16 = vld [vmem:[#allocation10 + $0x670] sm:$0xf0] }
 0x41d   :  { %v9380_v37 = vor.u32 %v10267_v32, %v9377_v16  ;;  %v10236_v32 = vld [vmem:[#allocation10 + $0x55c] sm:$0xf] }
 0x41f   :  { %6240 = vmatpush.bf16.msrb.mxu1 %v9508_v44  ;;  %6297 = vmatpush.bf16.msra.mxu0 %v9256_v34  ;;  %v10140_v44 = vld [vmem:[#allocation10 + $0x25c] sm:$0xf]  ;;  %v10259_v34 = vld [vmem:[#allocation10 + $0x614] sm:$0xf] }
 0x420   :  { %v11316_v36 = vpop.f32.mrf.mxu3  ;;  %6354 = vmatpush.bf16.msrb.mxu3 %v9004_v61  ;;  %v8876_v17 = vor.u32 %v10140_v44, %v8873_v33  ;;  %v9345_v61 = vld [vmem:[#allocation10 + $0x630] sm:$0xf0]  ;;  %v11338_v45 = vpop.f32.mrf.mxu2  ;;  %v9479_v44 = vld [vmem:[#allocation10 + $0x718] sm:$0xf] }
 0x421   :  { %v9348_v58 = vor.u32 %v10259_v34, %v9345_v61  ;;  %v10296_v33 = vld [vmem:[#allocation10 + $0x734] sm:$0xf0]  ;;  %v9225_v34 = vld [vmem:[#allocation10 + $0x538] sm:$0xf0] }
 0x422   :  { %v11320_v47 = vpop.f32.mrf.mxu0 }
 0x423   :  { %6241 = vmatpush.bf16.msrb.mxu1 %v9476_v22  ;;  %6298 = vmatpush.bf16.msra.mxu0 %v9224_v52  ;;  %v10132_v22 = vld [vmem:[#allocation10 + $0x21c] sm:$0xf]  ;;  %v9096_v52 = vor.u32 %v10200_v0, %v9095_v56  ;;  %v9447_v0 = vld [vmem:[#allocation10 + $0x6d8] sm:$0xf] }
 0x424   :  { %6355 = vmatpush.bf16.msrb.mxu3 %v8972_v57  ;;  %v8844_v4 = vor.u32 %v10132_v22, %v8841_v15  ;;  %v10288_v22 = vld [vmem:[#allocation10 + $0x6f4] sm:$0xf0]  ;;  %v10220_v15 = vld [vmem:[#allocation10 + $0x4dc] sm:$0xf] }
 0x425   :  { %6099 = vmatmul.bf16.gmra.mxu1 %v11266_v12  ;;  %6156 = vmatmul.bf16.gmra.mxu0 %v11239_v5 }
 0x426   :  { %6213 = vmatmul.bf16.gmra.mxu3 %v11202_v50  ;;  %6270 = vmatmul.bf16.gmra.mxu2 %v11161_v11 }
 0x427   :  { %6242 = vmatpush.bf16.msrb.mxu1 %v9444_v35  ;;  %6299 = vmatpush.bf16.msra.mxu0 %v9192_v13  ;;  %v10252_v35 = vld [vmem:[#allocation10 + $0x5dc] sm:$0xf] }
 0x428   :  { %v11326_v62 = vpop.f32.mrf.mxu3  ;;  %6356 = vmatpush.bf16.msrb.mxu3 %v8940_v21  ;;  %v9324_v13 = vor.u32 %v10252_v35, %v9321_v55  ;;  %v9543_v21 = vld [vmem:[#allocation10 + $0x798] sm:$0xf]  ;;  %v11348_v25 = vpop.f32.mrf.mxu2  ;;  %v5837_v35 = vadd.f32 %v11302_v3, %v11300_v31 }
 0x429   :  { %v9544_v30 = vor.u32 %v10312_v49, %v9543_v21  ;;  %v9415_v55 = vld [vmem:[#allocation10 + $0x698] sm:$0xf]  ;;  %v10212_v21 = vld [vmem:[#allocation10 + $0x49c] sm:$0xf]  ;;  %v5832_v49 = vadd.f32 %v11290_v18, %v11288_v53 }
 0x42a   :  { %v11328_v39 = vpop.f32.mrf.mxu0  ;;  %v9164_v3 = vor.u32 %v10212_v21, %v9161_v7  ;;  %v9383_v53 = vld [vmem:[#allocation10 + $0x658] sm:$0xf]  ;;  %v10300_v21 = vld [vmem:[#allocation10 + $0x75c] sm:$0xf] }
 0x42b   :  { %6243 = vmatpush.bf16.msrb.mxu1 %v9412_v14  ;;  %6300 = vmatpush.bf16.msra.mxu0 %v9160_v20  ;;  %v9289_v14 = vld [vmem:[#allocation10 + $0x5b8] sm:$0xf0]  ;;  %v9511_v20 = vld [vmem:[#allocation10 + $0x758] sm:$0xf] }
 0x42c   :  { %6357 = vmatpush.bf16.msrb.mxu3 %v8908_v46  ;;  %v9292_v23 = vor.u32 %v10244_v41, %v9289_v14  ;;  %v10304_v46 = vld [vmem:[#allocation10 + $0x774] sm:$0xf0]  ;;  %v9481_v7 = vld [vmem:[#allocation10 + $0x738] sm:$0xf0] }
 0x42d   :  { %v10272_v18 = vld [vmem:[#allocation10 + $0x674] sm:$0xf0] }
 0x42f   :  { %6244 = vmatpush.bf16.msrb.mxu1 %v9380_v37  ;;  %6301 = vmatpush.bf16.msra.mxu0 %v9128_v19  ;;  %v9260_v37 = vor.u32 %v10236_v32, %v9257_v28  ;;  %v10228_v19 = vld [vmem:[#allocation10 + $0x51c] sm:$0xf] }
 0x430   :  { %v11336_v57 = vpop.f32.mrf.mxu3  ;;  %6358 = vmatpush.bf16.msrb.mxu3 %v8876_v17  ;;  %v9480_v17 = vor.u32 %v10296_v33, %v9479_v44  ;;  %v11364_v41 = vpop.f32.mrf.mxu2  ;;  %v9129_v44 = vld [vmem:[#allocation10 + $0x478] sm:$0xf0] }
 0x432   :  { %v11332_v51 = vpop.f32.mrf.mxu1  ;;  %v11334_v1 = vpop.f32.mrf.mxu0 }
 0x433   :  { %6245 = vmatpush.bf16.msrb.mxu1 %v9348_v58  ;;  %6302 = vmatpush.bf16.msra.mxu0 %v9096_v52  ;;  %v9228_v58 = vor.u32 %v10228_v19, %v9225_v34  ;;  %v9448_v52 = vor.u32 %v10288_v22, %v9447_v0 }
 0x434   :  { %6359 = vmatpush.bf16.msrb.mxu3 %v8844_v4  ;;  %v9193_v4 = vld [vmem:[#allocation10 + $0x4f8] sm:$0xf0] }
 0x435   :  { %6170 = vmatmul.bf16.vlgmr.msra.gmra.mxu1 %v11255_v38  ;;  %6227 = vmatmul.bf16.vlgmr.msrb.gmra.mxu0 %v11225_v60  ;;  %v9196_v42 = vor.u32 %v10220_v15, %v9193_v4  ;;  %v9577_v15 = vld [vmem:[#allocation10 + $0x7f8] sm:$0xf0] }
 0x436   :  { %6284 = vmatmul.bf16.vlgmr.msra.gmra.mxu3 %v11181_v48  ;;  %6341 = vmatmul.bf16.vlgmr.msrb.gmra.mxu2 %v11144_v40  ;;  %v9512_v40 = vor.u32 %v10304_v46, %v9511_v20  ;;  %v5851_v20 = vadd.f32 %v11314_v54, %v5832_v49  ;;  %v10196_v54 = vld [vmem:[#allocation10 + $0x41c] sm:$0xf] }
 0x437   :  { %6314 = vmatpush.bf16.msra.mxu1 %v9576_v2  ;;  %6371 = vmatpush.bf16.msrb.mxu0 %v9324_v13  ;;  %v10280_v13 = vld [vmem:[#allocation10 + $0x6b4] sm:$0xf0]  ;;  %v10308_v4 = vld [vmem:[#allocation10 + $0x79c] sm:$0xf] }
 0x438   :  { %v9416_v10 = vor.u32 %v10280_v13, %v9415_v55  ;;  %v11379_v22 = vpop.f32.mrf.mxu2  ;;  %v9513_v49 = vld [vmem:[#allocation10 + $0x778] sm:$0xf0] }
 0x439   :  { %v11346_v16 = vpop.f32.mrf.mxu3 }
 0x43a   :  { %v5869_v43 = vpop.f32.mrf.mxu1  ;;  %v11344_v9 = vpop.f32.mrf.mxu0 }
 0x43b   :  { %6315 = vmatpush.bf16.msra.mxu1 %v9544_v30  ;;  %6372 = vmatpush.bf16.msrb.mxu0 %v9292_v23  ;;  %v5856_v30 = vadd.f32 %v11328_v39, %v5837_v35  ;;  %v5830_v23 = vadd.f32 %v11286_v29, %v11280_v26  ;;  %v9351_v26 = vld [vmem:[#allocation10 + $0x618] sm:$0xf] }
 0x43c   :  { %v10264_v29 = vld [vmem:[#allocation10 + $0x634] sm:$0xf0] }
 0x43d   :  { %v5849_v39 = vadd.f32 %v11304_v8, %v5830_v23  ;;  %v10284_v23 = vld [vmem:[#allocation10 + $0x6dc] sm:$0xf] }
 0x43f   :  { %6316 = vmatpush.bf16.msra.mxu1 %v9512_v40  ;;  %6373 = vmatpush.bf16.msrb.mxu0 %v9260_v37  ;;  %v5870_v40 = vadd.f32 %v5869_v43, %v5851_v20  ;;  %v9384_v37 = vor.u32 %v10272_v18, %v9383_v53  ;;  %v5868_v19 = vadd.f32 %v11332_v51, %v5849_v39  ;;  %v10316_v51 = vld [vmem:[#allocation10 + $0x7dc] sm:$0xf] }
 0x440   :  { %v9449_v20 = vld [vmem:[#allocation10 + $0x6f8] sm:$0xf0]  ;;  %v5911_v53 = vadd.f32 %v11326_v62, %v11330_v24  ;;  %v5913_v18 = vadd.f32 %v11336_v57, %v11338_v45  ;;  %v5906_v62 = vadd.f32 %v11312_v63, %v11310_v59 }
 0x441   :  { %v11360_v2 = vpop.f32.mrf.mxu3  ;;  %v10276_v39 = vld [vmem:[#allocation10 + $0x69c] sm:$0xf] }
 0x442   :  { %v5872_v61 = vpop.f32.mrf.mxu1  ;;  %v11350_v56 = vpop.f32.mrf.mxu0 }
 0x443   :  { %6317 = vmatpush.bf16.msra.mxu1 %v9480_v17  ;;  %6374 = vmatpush.bf16.msrb.mxu0 %v9228_v58  ;;  %v6417_v17 = vpack.c.bf16 %v5870_v40, %v5868_v19  ;;  %v9097_v58 = vld [vmem:[#allocation10 + $0x438] sm:$0xf0] }
 0x444   :  { %v9100_v43 = vor.u32 %v10196_v54, %v9097_v58  ;;  %v9417_v40 = vld [vmem:[#allocation10 + $0x6b8] sm:$0xf0]  ;;  %v5925_v54 = vadd.f32 %v11334_v1, %v5906_v62 }
 0x445   :  { %6175 = vmatmul.bf16.gmra.mxu1 %v11266_v12  ;;  %6232 = vmatmul.bf16.gmra.mxu0 %v11239_v5  ;;  %v9353_v58 = vld [vmem:[#allocation10 + $0x638] sm:$0xf0] }
 0x446   :  { %6289 = vmatmul.bf16.gmra.mxu3 %v11202_v50  ;;  %6346 = vmatmul.bf16.gmra.mxu2 %v11161_v11  ;;  %v5854_v11 = vadd.f32 %v11320_v47, %v5835_v27  ;;  %v10204_v47 = vld [vmem:[#allocation10 + $0x45c] sm:$0xf] }
 0x447   :  { %6318 = vmatpush.bf16.msra.mxu1 %v9448_v52  ;;  %6375 = vmatpush.bf16.msrb.mxu0 %v9196_v42  ;;  %v9132_v33 = vor.u32 %v10204_v47, %v9129_v44  ;;  %v9580_v52 = vor.u32 %v10316_v51, %v9577_v15  ;;  %v9545_v42 = vld [vmem:[#allocation10 + $0x7b8] sm:$0xf0] }
 0x448   :  { %v5873_v46 = vadd.f32 %v5872_v61, %v5854_v11  ;;  %v9352_v61 = vor.u32 %v10264_v29, %v9351_v26  ;;  %v9548_v27 = vor.u32 %v10308_v4, %v9545_v42  ;;  %v11388_v11 = vpop.f32.mrf.mxu2  ;;  %v10268_v26 = vld [vmem:[#allocation10 + $0x65c] sm:$0xf] }
 0x449   :  { %v11375_v34 = vpop.f32.mrf.mxu3  ;;  %v9385_v29 = vld [vmem:[#allocation10 + $0x678] sm:$0xf0] }
 0x44a   :  { %v5874_v14 = vpop.f32.mrf.mxu1  ;;  %v11368_v31 = vpop.f32.mrf.mxu0 }
 0x44b   :  { %v5875_v32 = vadd.f32 %v5874_v14, %v5856_v30  ;;  %6319 = vmatpush.bf16.msra.mxu1 %v9416_v10  ;;  %6376 = vmatpush.bf16.msrb.mxu0 %v9164_v3  ;;  %v9516_v30 = vor.u32 %v10300_v21, %v9513_v49  ;;  %v10292_v10 = vld [vmem:[#allocation10 + $0x71c] sm:$0xf]  ;;  %v5932_v44 = vadd.f32 %v11368_v31, %v5913_v18 }
 0x44c   :  { %v9484_v14 = vor.u32 %v10292_v10, %v9481_v7  ;;  %v5987_v21 = vadd.f32 %v11375_v34, %v11379_v22 }
 0x44d   :  { %v6425_v28 = vpack.c.bf16 %v5875_v32, %v5873_v46  ;;  %v9452_v32 = vor.u32 %v10284_v23, %v9449_v20 }
 0x44f   :  { %6471 = vmatpush.bf16.msra.mxu2 %v6425_v28  ;;  %6320 = vmatpush.bf16.msra.mxu1 %v9384_v37  ;;  %v5908_v28 = vadd.f32 %v11316_v36, %v11318_v6  ;;  %v5930_v37 = vadd.f32 %v11350_v56, %v5911_v53  ;;  %v9388_v56 = vor.u32 %v10268_v26, %v9385_v29 }
 0x450   :  { %6377 = vmatpush.bf16.msrb.mxu0 %v9132_v33  ;;  %v11399_v47 = vpop.f32.mrf.mxu2  ;;  %v9420_v33 = vor.u32 %v10276_v39, %v9417_v40 }
 0x451   :  { %v11386_v13 = vpop.f32.mrf.mxu3  ;;  %v5927_v24 = vadd.f32 %v11344_v9, %v5908_v28 }
 0x452   :  { %v5943_v0 = vpop.f32.mrf.mxu1  ;;  %v11377_v8 = vpop.f32.mrf.mxu0  ;;  %v5989_v49 = vadd.f32 %v11386_v13, %v11388_v11 }
 0x453   :  { %6472 = vmatpush.bf16.msra.mxu2 %v6417_v17  ;;  %6321 = vmatpush.bf16.msra.mxu1 %v9352_v61  ;;  %v5944_v17 = vadd.f32 %v5943_v0, %v5925_v54  ;;  %v10260_v61 = vld [vmem:[#allocation10 + $0x61c] sm:$0xf] }
 0x454   :  { %6378 = vmatpush.bf16.msrb.mxu0 %v9100_v43  ;;  %v9356_v63 = vor.u32 %v10260_v61, %v9353_v58 }
 0x455   :  { %6246 = vmatmul.bf16.vlgmr.msrb.gmra.mxu1 %v11255_v38  ;;  %6303 = vmatmul.bf16.vlgmr.msra.gmra.mxu0 %v11225_v60 }
 0x456   :  { %6360 = vmatmul.bf16.vlgmr.msrb.gmra.mxu3 %v11181_v48 }
 0x457   :  { %6390 = vmatpush.bf16.msrb.mxu1 %v9580_v52 }
 0x458   :  { %v6040_v43 = vpop.f32.mrf.mxu2 }
 0x459   :  { %v11390_v46 = vpop.f32.mrf.mxu3 }
 0x45a   :  { %v5945_v35 = vpop.f32.mrf.mxu1  ;;  %v11384_v55 = vpop.f32.mrf.mxu0 }
 0x45b   :  { %6391 = vmatpush.bf16.msrb.mxu1 %v9548_v27  ;;  %v5946_v36 = vadd.f32 %v5945_v35, %v5927_v24  ;;  %v6058_v24 = vadd.f32 %v11390_v46, %v11399_v47 }
 0x45d   :  { %v6418_v59 = vpack.c.bf16 %v5946_v36, %v5944_v17 }
 0x45f   :  { %6392 = vmatpush.bf16.msrb.mxu1 %v9516_v30 }
 0x460   :  { %v6043_v0 = vpop.f32.mrf.mxu2 }
 0x461   :  { %v6059_v31 = vpop.f32.mrf.mxu3 }
 0x462   :  { %v5948_v48 = vpop.f32.mrf.mxu1  ;;  %v6005_v3 = vpop.f32.mrf.mxu0 }
 0x463   :  { %6393 = vmatpush.bf16.msrb.mxu1 %v9484_v14  ;;  %v5949_v57 = vadd.f32 %v5948_v48, %v5930_v37  ;;  %v6006_v30 = vadd.f32 %v6005_v3, %v5987_v21  ;;  %v5982_v48 = vadd.f32 %v11346_v16, %v11348_v25 }
 0x465   :  { %6251 = vmatmul.bf16.gmra.mxu1 %v11266_v12  ;;  %6308 = vmatmul.bf16.gmra.mxu0 %v11239_v5 }
 0x466   :  { %6365 = vmatmul.bf16.gmra.mxu3 %v11202_v50 }
 0x467   :  { %6394 = vmatpush.bf16.msrb.mxu1 %v9452_v32  ;;  %v6001_v32 = vadd.f32 %v11377_v8, %v5982_v48 }
 0x468   :  { %v6045_v35 = vpop.f32.mrf.mxu2 }
 0x469   :  { %v6062_v1 = vpop.f32.mrf.mxu3 }
 0x46a   :  { %v5950_v50 = vpop.f32.mrf.mxu1  ;;  %v6007_v19 = vpop.f32.mrf.mxu0  ;;  %v6063_v37 = vadd.f32 %v6062_v1, %v6043_v0 }
 0x46b   :  { %v5951_v45 = vadd.f32 %v5950_v50, %v5932_v44  ;;  %6395 = vmatpush.bf16.msrb.mxu1 %v9420_v33  ;;  %v6008_v10 = vadd.f32 %v6007_v19, %v5989_v49  ;;  %v6060_v33 = vadd.f32 %v6059_v31, %v6040_v43 }
 0x46d   :  { %v6426_v6 = vpack.c.bf16 %v5951_v45, %v5949_v57 }
 0x46f   :  { %6500 = vmatpush.bf16.msra.mxu3 %v6426_v6  ;;  %6396 = vmatpush.bf16.msrb.mxu1 %v9388_v56 }
 0x470   :  { %v6114_v13 = vpop.f32.mrf.mxu2 }
 0x471   :  { %v6064_v27 = vpop.f32.mrf.mxu3 }
 0x472   :  { %v6019_v9 = vpop.f32.mrf.mxu1  ;;  %v6076_v51 = vpop.f32.mrf.mxu0  ;;  %v6065_v44 = vadd.f32 %v6064_v27, %v6045_v35 }
 0x473   :  { %6501 = vmatpush.bf16.msra.mxu3 %v6418_v59  ;;  %6397 = vmatpush.bf16.msrb.mxu1 %v9356_v63  ;;  %v6020_v11 = vadd.f32 %v6019_v9, %v6001_v32  ;;  %v6077_v54 = vadd.f32 %v6076_v51, %v6058_v24  ;;  %v11432_v51 = vld [vmem:[%s11712_s6] sm:$0xff] }
 0x474   :  { %9597 = vmatmul.msk.bf16.vlgmr.msra.gmra.mxu2 %vm145_vm0, %v11432_v51 }
 0x475   :  { %6322 = vmatmul.bf16.vlgmr.msra.gmra.mxu1 %v11255_v38  ;;  %6379 = vmatmul.bf16.vlgmr.msrb.gmra.mxu0 %v11225_v60  ;;  %v5984_v60 = vadd.f32 %v11360_v2, %v11364_v41 }
 0x476   :  { %9601 = vmatmul.msk.bf16.vlgmr.msra.gmra.mxu3 %vm145_vm0, %v11432_v51 }
 0x477   :  { %v6003_v23 = vadd.f32 %v11384_v55, %v5984_v60 }
 0x478   :  { %v6116_v16 = vpop.f32.mrf.mxu2 }
 0x479   :  { %v6133_v53 = vpop.f32.mrf.mxu3 }
 0x47a   :  { %v6021_v15 = vpop.f32.mrf.mxu1  ;;  %v6078_v52 = vpop.f32.mrf.mxu0  ;;  %v6134_v35 = vadd.f32 %v6133_v53, %v6114_v13  ;;  %v11445_v53 = vld [vmem:[%s11712_s6 + $0x8] sm:$0xff] }
 0x47b   :  { %v6022_v34 = vadd.f32 %v6021_v15, %v6003_v23 }
 0x47d   :  { %v6419_v2 = vpack.c.bf16 %v6022_v34, %v6020_v11 }
 0x480   :  { %v6119_v28 = vpop.f32.mrf.mxu2 }
 0x481   :  { %v6135_v18 = vpop.f32.mrf.mxu3 }
 0x482   :  { %v6024_v4 = vpop.f32.mrf.mxu1  ;;  %v6081_v42 = vpop.f32.mrf.mxu0 }
 0x483   :  { %v6025_v20 = vadd.f32 %v6024_v4, %v6006_v30  ;;  %v6082_v50 = vadd.f32 %v6081_v42, %v6063_v37 }
 0x484   :  { %9598 = vmatmul.msk.bf16.gmra.mxu2 %vm145_vm0, %v11445_v53 }
 0x485   :  { %6327 = vmatmul.bf16.gmra.mxu1 %v11266_v12  ;;  %6384 = vmatmul.bf16.gmra.mxu0 %v11239_v5 }
 0x486   :  { %9602 = vmatmul.msk.bf16.gmra.mxu3 %vm145_vm0, %v11445_v53 }
 0x488   :  { %v6121_v29 = vpop.f32.mrf.mxu2 }
 0x489   :  { %v6138_v39 = vpop.f32.mrf.mxu3 }
 0x48a   :  { %v6026_v7 = vpop.f32.mrf.mxu1  ;;  %v6083_v14 = vpop.f32.mrf.mxu0  ;;  %v6139_v1 = vadd.f32 %v6138_v39, %v6119_v28 }
 0x48b   :  { %v6027_v5 = vadd.f32 %v6026_v7, %v6008_v10  ;;  %v6084_v19 = vadd.f32 %v6083_v14, %v6065_v44 }
 0x48d   :  { %v6427_v22 = vpack.c.bf16 %v6027_v5, %v6025_v20 }
 0x48f   :  { %6529 = vmatpush.bf16.msra.mxu0 %v6427_v22 }
 0x490   :  { %v6190_v58 = vpop.f32.mrf.mxu2 }
 0x491   :  { %v6140_v26 = vpop.f32.mrf.mxu3 }
 0x492   :  { %v6095_v41 = vpop.f32.mrf.mxu1  ;;  %v6152_v3 = vpop.f32.mrf.mxu0  ;;  %v6141_v15 = vadd.f32 %v6140_v26, %v6121_v29 }
 0x493   :  { %6530 = vmatpush.bf16.msra.mxu0 %v6419_v2  ;;  %v6096_v17 = vadd.f32 %v6095_v41, %v6077_v54  ;;  %v6153_v7 = vadd.f32 %v6152_v3, %v6134_v35 }
 0x495   :  { %6398 = vmatmul.bf16.vlgmr.msrb.gmra.mxu1 %v11255_v38  ;;  %v6079_v38 = vadd.f32 %v6078_v52, %v6060_v33  ;;  %v6136_v52 = vadd.f32 %v6135_v18, %v6116_v16 }
 0x496   :  { %9605 = vmatmul.msk.bf16.vlgmr.msra.gmra.mxu0 %vm145_vm0, %v11432_v51 }
 0x498   :  { %v6192_v47 = vpop.f32.mrf.mxu2 }
 0x499   :  { %v6209_v31 = vpop.f32.mrf.mxu3 }
 0x49a   :  { %v6097_v25 = vpop.f32.mrf.mxu1  ;;  %v6154_v55 = vpop.f32.mrf.mxu0  ;;  %v6210_v33 = vadd.f32 %v6209_v31, %v6190_v58 }
 0x49b   :  { %v6098_v36 = vadd.f32 %v6097_v25, %v6079_v38  ;;  %v6155_v49 = vadd.f32 %v6154_v55, %v6136_v52  ;;  %v11458_v25 = vld [vmem:[%s11712_s6 + $0x10] sm:$0xff] }
 0x49c   :  { %9599 = vmatmul.msk.bf16.gmra.mxu2 %vm145_vm0, %v11458_v25  ;;  %9603 = vmatmul.msk.bf16.gmra.mxu3 %vm145_vm0, %v11458_v25 }
 0x4a0   :  { %v6195_v21 = vpop.f32.mrf.mxu2 }
 0x4a1   :  { %v6211_v46 = vpop.f32.mrf.mxu3 }
 0x4a2   :  { %v6100_v40 = vpop.f32.mrf.mxu1  ;;  %v6157_v8 = vpop.f32.mrf.mxu0  ;;  %v6212_v39 = vadd.f32 %v6211_v46, %v6192_v47 }
 0x4a3   :  { %v6101_v57 = vadd.f32 %v6100_v40, %v6082_v50  ;;  %v6158_v0 = vadd.f32 %v6157_v8, %v6139_v1 }
 0x4a5   :  { %6403 = vmatmul.bf16.gmra.mxu1 %v11266_v12  ;;  %v6420_v12 = vpack.c.bf16 %v6098_v36, %v6096_v17 }
 0x4a6   :  { %9606 = vmatmul.msk.bf16.gmra.mxu0 %vm145_vm0, %v11445_v53 }
 0x4a8   :  { %v6197_v34 = vpop.f32.mrf.mxu2 }
 0x4a9   :  { %v6214_v42 = vpop.f32.mrf.mxu3 }
 0x4aa   :  { %v6102_v62 = vpop.f32.mrf.mxu1  ;;  %v6159_v56 = vpop.f32.mrf.mxu0  ;;  %v6215_v18 = vadd.f32 %v6214_v42, %v6195_v21 }
 0x4ab   :  { %v6103_v45 = vadd.f32 %v6102_v62, %v6084_v19  ;;  %v6160_v4 = vadd.f32 %v6159_v56, %v6141_v15  ;;  %v11472_v56 = vld [vmem:[%s11712_s6 + $0x18] sm:$0xff] }
 0x4ac   :  { %9600 = vmatmul.msk.bf16.gmra.mxu2 %vm145_vm0, %v11472_v56  ;;  %9604 = vmatmul.msk.bf16.gmra.mxu3 %vm145_vm0, %v11472_v56 }
 0x4ad   :  { %v6428_v6 = vpack.c.bf16 %v6103_v45, %v6101_v57 }
 0x4af   :  { %6558 = vmatpush.bf16.msra.mxu1 %v6428_v6 }
 0x4b0   :  { %v6266_v2 = vpop.f32.mrf.mxu2 }
 0x4b1   :  { %v6216_v32 = vpop.f32.mrf.mxu3 }
 0x4b2   :  { %v6171_v61 = vpop.f32.mrf.mxu1  ;;  %v11427_v43 = vpop.f32.mrf.mxu0  ;;  %v6217_v16 = vadd.f32 %v6216_v32, %v6197_v34 }
 0x4b3   :  { %6559 = vmatpush.bf16.msra.mxu1 %v6420_v12  ;;  %v6172_v23 = vadd.f32 %v6171_v61, %v6153_v7  ;;  %v6229_v24 = vadd.f32 %v11427_v43, %v6210_v33 }
 0x4b6   :  { %9609 = vmatmul.msk.bf16.vlgmr.msra.gmra.mxu1 %vm145_vm0, %v11432_v51  ;;  %9607 = vmatmul.msk.bf16.gmra.mxu0 %vm145_vm0, %v11458_v25 }
 0x4b8   :  { %v6268_v40 = vpop.f32.mrf.mxu2 }
 0x4b9   :  { %v6285_v11 = vpop.f32.mrf.mxu3 }
 0x4ba   :  { %v6173_v59 = vpop.f32.mrf.mxu1  ;;  %v6230_v63 = vpop.f32.mrf.mxu0 }
 0x4bb   :  { %v6174_v14 = vadd.f32 %v6173_v59, %v6155_v49  ;;  %v6231_v50 = vadd.f32 %v6230_v63, %v6212_v39 }
 0x4bd   :  { %v6421_v20 = vpack.c.bf16 %v6174_v14, %v6172_v23 }
 0x4c0   :  { %v6271_v36 = vpop.f32.mrf.mxu2 }
 0x4c1   :  { %v6287_v55 = vpop.f32.mrf.mxu3 }
 0x4c2   :  { %v6176_v9 = vpop.f32.mrf.mxu1  ;;  %v6233_v10 = vpop.f32.mrf.mxu0 }
 0x4c3   :  { %v6177_v60 = vadd.f32 %v6176_v9, %v6158_v0  ;;  %v6234_v28 = vadd.f32 %v6233_v10, %v6215_v18  ;;  %v6288_v9 = vadd.f32 %v6287_v55, %v6268_v40  ;;  %v6286_v0 = vadd.f32 %v6285_v11, %v6266_v2 }
 0x4c6   :  { %9610 = vmatmul.msk.bf16.gmra.mxu1 %vm145_vm0, %v11445_v53  ;;  %9608 = vmatmul.msk.bf16.gmra.mxu0 %vm145_vm0, %v11472_v56 }
 0x4c8   :  { %v6273_v61 = vpop.f32.mrf.mxu2 }
 0x4c9   :  { %v6290_v29 = vpop.f32.mrf.mxu3 }
 0x4ca   :  { %v6178_v27 = vpop.f32.mrf.mxu1  ;;  %v6235_v22 = vpop.f32.mrf.mxu0  ;;  %v6291_v46 = vadd.f32 %v6290_v29, %v6271_v36 }
 0x4cb   :  { %v6179_v30 = vadd.f32 %v6178_v27, %v6160_v4  ;;  %v6236_v8 = vadd.f32 %v6235_v22, %v6217_v16 }
 0x4cd   :  { %v6429_v48 = vpack.c.bf16 %v6179_v30, %v6177_v60 }
 0x4cf   :  { %6587 = vmatpush.bf16.msrb.mxu2 %v6429_v48 }
 0x4d0   :  { %v6342_v59 = vpop.f32.mrf.mxu2 }
 0x4d1   :  { %v6292_v12 = vpop.f32.mrf.mxu3 }
 0x4d2   :  { %v6247_v5 = vpop.f32.mrf.mxu1  ;;  %v6304_v41 = vpop.f32.mrf.mxu0  ;;  %v6293_v47 = vadd.f32 %v6292_v12, %v6273_v61 }
 0x4d3   :  { %6588 = vmatpush.bf16.msrb.mxu2 %v6421_v20  ;;  %v6248_v45 = vadd.f32 %v6247_v5, %v6229_v24  ;;  %v6305_v35 = vadd.f32 %v6304_v41, %v6286_v0 }
 0x4d6   :  { %9611 = vmatmul.msk.bf16.gmra.mxu1 %vm145_vm0, %v11458_v25  ;;  %9613 = vmatmul.msk.bf16.vlgmr.msrb.gmra.mxu2 %vm145_vm0, %v11432_v51 }
 0x4d8   :  { %v6344_v10 = vpop.f32.mrf.mxu2 }
 0x4d9   :  { %v6361_v43 = vpop.f32.mrf.mxu3 }
 0x4da   :  { %v6249_v13 = vpop.f32.mrf.mxu1  ;;  %v6306_v37 = vpop.f32.mrf.mxu0  ;;  %v6362_v39 = vadd.f32 %v6361_v43, %v6342_v59 }
 0x4db   :  { %v6250_v38 = vadd.f32 %v6249_v13, %v6231_v50  ;;  %v6307_v4 = vadd.f32 %v6306_v37, %v6288_v9 }
 0x4dd   :  { %v6422_v26 = vpack.c.bf16 %v6250_v38, %v6248_v45 }
 0x4e0   :  { %v6347_v5 = vpop.f32.mrf.mxu2 }
 0x4e1   :  { %v6363_v30 = vpop.f32.mrf.mxu3 }
 0x4e2   :  { %v6252_v3 = vpop.f32.mrf.mxu1  ;;  %v6309_v6 = vpop.f32.mrf.mxu0 }
 0x4e3   :  { %v6253_v19 = vadd.f32 %v6252_v3, %v6234_v28  ;;  %v6310_v1 = vadd.f32 %v6309_v6, %v6291_v46  ;;  %v6364_v3 = vadd.f32 %v6363_v30, %v6344_v10 }
 0x4e6   :  { %9612 = vmatmul.msk.bf16.gmra.mxu1 %vm145_vm0, %v11472_v56  ;;  %9614 = vmatmul.msk.bf16.gmra.mxu2 %vm145_vm0, %v11445_v53 }
 0x4e8   :  { %v6349_v13 = vpop.f32.mrf.mxu2 }
 0x4e9   :  { %v6366_v23 = vpop.f32.mrf.mxu3 }
 0x4ea   :  { %v6254_v44 = vpop.f32.mrf.mxu1  ;;  %v6311_v31 = vpop.f32.mrf.mxu0  ;;  %v6367_v2 = vadd.f32 %v6366_v23, %v6347_v5 }
 0x4eb   :  { %v6255_v62 = vadd.f32 %v6254_v44, %v6236_v8  ;;  %v6312_v15 = vadd.f32 %v6311_v31, %v6293_v47 }
 0x4ed   :  { %v6430_v57 = vpack.c.bf16 %v6255_v62, %v6253_v19 }
 0x4ef   :  { %6616 = vmatpush.bf16.msrb.mxu3 %v6430_v57 }
 0x4f1   :  { %v6368_v22 = vpop.f32.mrf.mxu3 }
 0x4f2   :  { %v6323_v54 = vpop.f32.mrf.mxu1  ;;  %v6380_v63 = vpop.f32.mrf.mxu0  ;;  %v6369_v41 = vadd.f32 %v6368_v22, %v6349_v13 }
 0x4f3   :  { %6617 = vmatpush.bf16.msrb.mxu3 %v6422_v26  ;;  %v6324_v60 = vadd.f32 %v6323_v54, %v6305_v35  ;;  %v6381_v37 = vadd.f32 %v6380_v63, %v6362_v39 }
 0x4f6   :  { %9617 = vmatmul.msk.bf16.vlgmr.msrb.gmra.mxu3 %vm145_vm0, %v11432_v51  ;;  %9615 = vmatmul.msk.bf16.gmra.mxu2 %vm145_vm0, %v11458_v25 }
 0x4f9   :  { %v6503_v38 = vpop.f32.mrf.mxu3 }
 0x4fa   :  { %v6325_v17 = vpop.f32.mrf.mxu1  ;;  %v6382_v14 = vpop.f32.mrf.mxu0  ;;  %6698 = vst [vmem:[%s11714_s8 + $0x8] sm:$0xff] %v6503_v38 }
 0x4fb   :  { %v6326_v21 = vadd.f32 %v6325_v17, %v6307_v4  ;;  %v6383_v40 = vadd.f32 %v6382_v14, %v6364_v3 }
 0x4fd   :  { %v6423_v7 = vpack.c.bf16 %v6326_v21, %v6324_v60 }
 0x501   :  { %v6505_v26 = vpop.f32.mrf.mxu3 }
 0x502   :  { %v6328_v58 = vpop.f32.mrf.mxu1  ;;  %v6385_v32 = vpop.f32.mrf.mxu0  ;;  %6706 = vst [vmem:[%s11714_s8 + $0x48] sm:$0xff] %v6505_v26 }
 0x503   :  { %v6329_v42 = vadd.f32 %v6328_v58, %v6310_v1  ;;  %v6386_v18 = vadd.f32 %v6385_v32, %v6367_v2 }
 0x506   :  { %9618 = vmatmul.msk.bf16.gmra.mxu3 %vm145_vm0, %v11445_v53  ;;  %9616 = vmatmul.msk.bf16.gmra.mxu2 %vm145_vm0, %v11472_v56 }
 0x509   :  { %v6508_v6 = vpop.f32.mrf.mxu3 }
 0x50a   :  { %v6330_v52 = vpop.f32.mrf.mxu1  ;;  %v6387_v11 = vpop.f32.mrf.mxu0  ;;  %6714 = vst [vmem:[%s11714_s8 + $0x88] sm:$0xff] %v6508_v6 }
 0x50b   :  { %v6331_v27 = vadd.f32 %v6330_v52, %v6312_v15  ;;  %v6388_v16 = vadd.f32 %v6387_v11, %v6369_v41 }
 0x50d   :  { %v6431_v49 = vpack.c.bf16 %v6331_v27, %v6329_v42 }
 0x50f   :  { %6645 = vmatpush.bf16.msrb.mxu0 %v6431_v49 }
 0x511   :  { %v6510_v61 = vpop.f32.mrf.mxu3 }
 0x512   :  { %v6399_v48 = vpop.f32.mrf.mxu1  ;;  %6722 = vst [vmem:[%s11714_s8 + $0xc8] sm:$0xff] %v6510_v61 }
 0x513   :  { %6646 = vmatpush.bf16.msrb.mxu0 %v6423_v7  ;;  %v6400_v50 = vadd.f32 %v6399_v48, %v6381_v37  ;;  %v6532_v62 = vpop.f32.mrf.mxu0 }
 0x514   :  { %6699 = vst [vmem:[%s11714_s8 + $0x10] sm:$0xff] %v6532_v62 }
 0x516   :  { %9621 = vmatmul.msk.bf16.vlgmr.msrb.gmra.mxu0 %vm145_vm0, %v11432_v51  ;;  %9619 = vmatmul.msk.bf16.gmra.mxu3 %vm145_vm0, %v11458_v25 }
 0x51a   :  { %v6401_v20 = vpop.f32.mrf.mxu1 }
 0x51b   :  { %v6402_v44 = vadd.f32 %v6401_v20, %v6383_v40 }
 0x51d   :  { %v6424_v19 = vpack.c.bf16 %v6402_v44, %v6400_v50 }
 0x51f   :  { %v6513_v59 = vpop.f32.mrf.mxu3 }
 0x520   :  { %6730 = vst [vmem:[%s11714_s8 + $0x108] sm:$0xff] %v6513_v59 }
 0x522   :  { %v6404_v34 = vpop.f32.mrf.mxu1 }
 0x523   :  { %v6405_v28 = vadd.f32 %v6404_v34, %v6386_v18 }
 0x526   :  { %9622 = vmatmul.msk.bf16.gmra.mxu0 %vm145_vm0, %v11445_v53  ;;  %9620 = vmatmul.msk.bf16.gmra.mxu3 %vm145_vm0, %v11472_v56 }
 0x527   :  { %v6515_v63 = vpop.f32.mrf.mxu3 }
 0x528   :  { %6738 = vst [vmem:[%s11714_s8 + $0x148] sm:$0xff] %v6515_v63 }
 0x52a   :  { %v6406_v55 = vpop.f32.mrf.mxu1 }
 0x52b   :  { %v6407_v8 = vadd.f32 %v6406_v55, %v6388_v16 }
 0x52d   :  { %v6432_v33 = vpack.c.bf16 %v6407_v8, %v6405_v28 }
 0x52f   :  { %6674 = vmatpush.bf16.msrb.mxu1 %v6432_v33  ;;  %v6518_v52 = vpop.f32.mrf.mxu3 }
 0x530   :  { %6746 = vst [vmem:[%s11714_s8 + $0x188] sm:$0xff] %v6518_v52 }
 0x533   :  { %6675 = vmatpush.bf16.msrb.mxu1 %v6424_v19  ;;  %v6561_v24 = vpop.f32.mrf.mxu1 }
 0x534   :  { %6700 = vst [vmem:[%s11714_s8 + $0x18] sm:$0xff] %v6561_v24 }
 0x536   :  { %9625 = vmatmul.msk.bf16.vlgmr.msrb.gmra.mxu1 %vm145_vm0, %v11432_v51  ;;  %9623 = vmatmul.msk.bf16.gmra.mxu0 %vm145_vm0, %v11458_v25  ;;  %v6474_v51 = vpop.f32.mrf.mxu2 }
 0x537   :  { %6697 = vst [vmem:[%s11714_s8] sm:$0xff] %v6474_v51  ;;  %v6520_v27 = vpop.f32.mrf.mxu3 }
 0x538   :  { %6754 = vst [vmem:[%s11714_s8 + $0x1c8] sm:$0xff] %v6520_v27 }
 0x53b   :  { %v6563_v57 = vpop.f32.mrf.mxu1 }
 0x53c   :  { %6708 = vst [vmem:[%s11714_s8 + $0x58] sm:$0xff] %v6563_v57 }
 0x53e   :  { %v6476_v45 = vpop.f32.mrf.mxu2 }
 0x53f   :  { %6705 = vst [vmem:[%s11714_s8 + $0x40] sm:$0xff] %v6476_v45 }
 0x543   :  { %v6566_v54 = vpop.f32.mrf.mxu1 }
 0x544   :  { %6716 = vst [vmem:[%s11714_s8 + $0x98] sm:$0xff] %v6566_v54 }
 0x546   :  { %9626 = vmatmul.msk.bf16.gmra.mxu1 %vm145_vm0, %v11445_v53  ;;  %9624 = vmatmul.msk.bf16.gmra.mxu0 %vm145_vm0, %v11472_v56  ;;  %v6534_v53 = vpop.f32.mrf.mxu0  ;;  %v6479_v36 = vpop.f32.mrf.mxu2 }
 0x547   :  { %6707 = vst [vmem:[%s11714_s8 + $0x50] sm:$0xff] %v6534_v53 }
 0x548   :  { %6713 = vst [vmem:[%s11714_s8 + $0x80] sm:$0xff] %v6479_v36 }
 0x54b   :  { %v6568_v17 = vpop.f32.mrf.mxu1 }
 0x54c   :  { %6724 = vst [vmem:[%s11714_s8 + $0xd8] sm:$0xff] %v6568_v17 }
 0x54e   :  { %v6537_v29 = vpop.f32.mrf.mxu0  ;;  %v6481_v12 = vpop.f32.mrf.mxu2 }
 0x54f   :  { %6715 = vst [vmem:[%s11714_s8 + $0x90] sm:$0xff] %v6537_v29 }
 0x550   :  { %6721 = vst [vmem:[%s11714_s8 + $0xc0] sm:$0xff] %v6481_v12 }
 0x553   :  { %v6571_v58 = vpop.f32.mrf.mxu1 }
 0x554   :  { %6732 = vst [vmem:[%s11714_s8 + $0x118] sm:$0xff] %v6571_v58 }
 0x556   :  { %9627 = vmatmul.msk.bf16.gmra.mxu1 %vm145_vm0, %v11458_v25  ;;  %v6539_v25 = vpop.f32.mrf.mxu0  ;;  %v6484_v43 = vpop.f32.mrf.mxu2 }
 0x557   :  { %6723 = vst [vmem:[%s11714_s8 + $0xd0] sm:$0xff] %v6539_v25 }
 0x558   :  { %6729 = vst [vmem:[%s11714_s8 + $0x100] sm:$0xff] %v6484_v43 }
 0x55b   :  { %v6573_v46 = vpop.f32.mrf.mxu1 }
 0x55c   :  { %6740 = vst [vmem:[%s11714_s8 + $0x158] sm:$0xff] %v6573_v46 }
 0x55e   :  { %v6542_v31 = vpop.f32.mrf.mxu0  ;;  %v6486_v47 = vpop.f32.mrf.mxu2 }
 0x55f   :  { %6731 = vst [vmem:[%s11714_s8 + $0x110] sm:$0xff] %v6542_v31 }
 0x560   :  { %6737 = vst [vmem:[%s11714_s8 + $0x140] sm:$0xff] %v6486_v47 }
 0x563   :  { %v6576_v1 = vpop.f32.mrf.mxu1 }
 0x564   :  { %6748 = vst [vmem:[%s11714_s8 + $0x198] sm:$0xff] %v6576_v1 }
 0x566   :  { %9628 = vmatmul.msk.bf16.gmra.mxu1 %vm145_vm0, %v11472_v56  ;;  %v6544_v56 = vpop.f32.mrf.mxu0  ;;  %v6489_v15 = vpop.f32.mrf.mxu2 }
 0x567   :  { %6739 = vst [vmem:[%s11714_s8 + $0x150] sm:$0xff] %v6544_v56 }
 0x568   :  { %6745 = vst [vmem:[%s11714_s8 + $0x180] sm:$0xff] %v6489_v15 }
 0x56b   :  { %v6578_v4 = vpop.f32.mrf.mxu1 }
 0x56c   :  { %6756 = vst [vmem:[%s11714_s8 + $0x1d8] sm:$0xff] %v6578_v4 }
 0x56e   :  { %v6547_v9 = vpop.f32.mrf.mxu0  ;;  %v6491_v42 = vpop.f32.mrf.mxu2 }
 0x56f   :  { %6747 = vst [vmem:[%s11714_s8 + $0x190] sm:$0xff] %v6547_v9 }
 0x570   :  { %6753 = vst [vmem:[%s11714_s8 + $0x1c0] sm:$0xff] %v6491_v42 }
 0x576   :  { %v6549_v0 = vpop.f32.mrf.mxu0  ;;  %v6590_v35 = vpop.f32.mrf.mxu2 }
 0x577   :  { %6755 = vst [vmem:[%s11714_s8 + $0x1d0] sm:$0xff] %v6549_v0 }
 0x578   :  { %6701 = vst [vmem:[%s11714_s8 + $0x20] sm:$0xff] %v6590_v35 }
 0x579   :  { %v6619_v21 = vpop.f32.mrf.mxu3 }
 0x57a   :  { %6702 = vst [vmem:[%s11714_s8 + $0x28] sm:$0xff] %v6619_v21 }
 0x57e   :  { %v6592_v60 = vpop.f32.mrf.mxu2 }
 0x57f   :  { %6709 = vst [vmem:[%s11714_s8 + $0x60] sm:$0xff] %v6592_v60 }
 0x581   :  { %v6621_v30 = vpop.f32.mrf.mxu3 }
 0x582   :  { %6710 = vst [vmem:[%s11714_s8 + $0x68] sm:$0xff] %v6621_v30 }
 0x586   :  { %v6595_v7 = vpop.f32.mrf.mxu2 }
 0x587   :  { %6717 = vst [vmem:[%s11714_s8 + $0xa0] sm:$0xff] %v6595_v7 }
 0x589   :  { %v6624_v14 = vpop.f32.mrf.mxu3 }
 0x58a   :  { %6718 = vst [vmem:[%s11714_s8 + $0xa8] sm:$0xff] %v6624_v14 }
 0x58e   :  { %v6597_v23 = vpop.f32.mrf.mxu2 }
 0x58f   :  { %6725 = vst [vmem:[%s11714_s8 + $0xe0] sm:$0xff] %v6597_v23 }
 0x591   :  { %v6626_v20 = vpop.f32.mrf.mxu3 }
 0x592   :  { %6726 = vst [vmem:[%s11714_s8 + $0xe8] sm:$0xff] %v6626_v20 }
 0x593   :  { %v6648_v49 = vpop.f32.mrf.mxu0 }
 0x594   :  { %6703 = vst [vmem:[%s11714_s8 + $0x30] sm:$0xff] %v6648_v49 }
 0x596   :  { %v6600_v32 = vpop.f32.mrf.mxu2 }
 0x597   :  { %6733 = vst [vmem:[%s11714_s8 + $0x120] sm:$0xff] %v6600_v32 }
 0x599   :  { %v6629_v34 = vpop.f32.mrf.mxu3 }
 0x59a   :  { %6734 = vst [vmem:[%s11714_s8 + $0x128] sm:$0xff] %v6629_v34 }
 0x59b   :  { %v6650_v10 = vpop.f32.mrf.mxu0 }
 0x59c   :  { %6711 = vst [vmem:[%s11714_s8 + $0x70] sm:$0xff] %v6650_v10 }
 0x59e   :  { %v6602_v11 = vpop.f32.mrf.mxu2 }
 0x59f   :  { %6741 = vst [vmem:[%s11714_s8 + $0x160] sm:$0xff] %v6602_v11 }
 0x5a1   :  { %v6631_v2 = vpop.f32.mrf.mxu3 }
 0x5a2   :  { %6742 = vst [vmem:[%s11714_s8 + $0x168] sm:$0xff] %v6631_v2 }
 0x5a3   :  { %v6653_v48 = vpop.f32.mrf.mxu0 }
 0x5a4   :  { %6719 = vst [vmem:[%s11714_s8 + $0xb0] sm:$0xff] %v6653_v48 }
 0x5a6   :  { %v6605_v18 = vpop.f32.mrf.mxu2 }
 0x5a7   :  { %6749 = vst [vmem:[%s11714_s8 + $0x1a0] sm:$0xff] %v6605_v18 }
 0x5a9   :  { %v6634_v16 = vpop.f32.mrf.mxu3 }
 0x5aa   :  { %6750 = vst [vmem:[%s11714_s8 + $0x1a8] sm:$0xff] %v6634_v16 }
 0x5ab   :  { %v6655_v5 = vpop.f32.mrf.mxu0 }
 0x5ac   :  { %6727 = vst [vmem:[%s11714_s8 + $0xf0] sm:$0xff] %v6655_v5 }
 0x5ae   :  { %v6607_v40 = vpop.f32.mrf.mxu2 }
 0x5af   :  { %6757 = vst [vmem:[%s11714_s8 + $0x1e0] sm:$0xff] %v6607_v40 }
 0x5b1   :  { %v6636_v28 = vpop.f32.mrf.mxu3 }
 0x5b2   :  { %6758 = vst [vmem:[%s11714_s8 + $0x1e8] sm:$0xff] %v6636_v28 }
 0x5b3   :  { %v6677_v22 = vpop.f32.mrf.mxu1  ;;  %v6658_v13 = vpop.f32.mrf.mxu0 }
 0x5b4   :  { %6704 = vst [vmem:[%s11714_s8 + $0x38] sm:$0xff] %v6677_v22 }
 0x5b5   :  { %6735 = vst [vmem:[%s11714_s8 + $0x130] sm:$0xff] %v6658_v13 }
 0x5bb   :  { %v6679_v41 = vpop.f32.mrf.mxu1  ;;  %v6660_v3 = vpop.f32.mrf.mxu0 }
 0x5bc   :  { %6712 = vst [vmem:[%s11714_s8 + $0x78] sm:$0xff] %v6679_v41 }
 0x5bd   :  { %6743 = vst [vmem:[%s11714_s8 + $0x170] sm:$0xff] %v6660_v3 }
 0x5c3   :  { %v6682_v55 = vpop.f32.mrf.mxu1  ;;  %v6663_v39 = vpop.f32.mrf.mxu0 }
 0x5c4   :  { %6720 = vst [vmem:[%s11714_s8 + $0xb8] sm:$0xff] %v6682_v55 }
 0x5c5   :  { %6751 = vst [vmem:[%s11714_s8 + $0x1b0] sm:$0xff] %v6663_v39 }
 0x5cb   :  { %v6684_v8 = vpop.f32.mrf.mxu1  ;;  %v6665_v37 = vpop.f32.mrf.mxu0 }
 0x5cc   :  { %6728 = vst [vmem:[%s11714_s8 + $0xf8] sm:$0xff] %v6684_v8 }
 0x5cd   :  { %6759 = vst [vmem:[%s11714_s8 + $0x1f0] sm:$0xff] %v6665_v37 }
 0x5d3   :  { %v6687_v44 = vpop.f32.mrf.mxu1 }
 0x5d4   :  { %6736 = vst [vmem:[%s11714_s8 + $0x138] sm:$0xff] %v6687_v44 }
 0x5db   :  { %v6689_v33 = vpop.f32.mrf.mxu1 }
 0x5dc   :  { %6744 = vst [vmem:[%s11714_s8 + $0x178] sm:$0xff] %v6689_v33 }
 0x5e3   :  { %v6692_v50 = vpop.f32.mrf.mxu1 }
 0x5e4   :  { %6752 = vst [vmem:[%s11714_s8 + $0x1b8] sm:$0xff] %v6692_v50 }
 0x5eb   :  { %v6694_v19 = vpop.f32.mrf.mxu1 }
 0x5ec   :  { %6760 = vst [vmem:[%s11714_s8 + $0x1f8] sm:$0xff] %v6694_v19 }
 0x5ed   :  { %6765 = vsyncpa [#allocation3], 1 }
 0x5ee   :  { %6766 = vsyncpa [#allocation5], 1 }
 0x5ef   :  { %6767 = vsyncpa [#allocation8], 1 }
 0x5f0   :  { %6768 = vsyncpa [#allocation11], 1 }

</bundles_post_ra>
